<compile_context>
chip_gen: v7x
topology: tpu7x:2x2x1
jax: 0.10.0
libtpu: 0.0.40
codegen_flags: <defaults>
</compile_context>

<pallas_src>
import functools

import jax
import jax.numpy as jnp
import numpy as np
from jax.experimental import pallas as pl
from jax.experimental.pallas import tpu as pltpu


_VMEM_LIMIT_BYTES = 24 * 1024 * 1024   # real per-layer footprint is ~4 MiB
_EPS = 1e-5                            # InstanceNorm2d default eps


# ----------------------------------------------------------------------------
# Static layer configuration (matches the PyTorch module; padding=True -> 1)
# ----------------------------------------------------------------------------
def _layer_cfg(in_ch=1, out_ch=64):
    return (
        dict(cin=in_ch,      cout=out_ch,     k=5, stride=2, pad=0, norm=False, lrelu=True),
        dict(cin=out_ch,     cout=out_ch * 2, k=5, stride=2, pad=1, norm=True,  lrelu=True),
        dict(cin=out_ch * 2, cout=out_ch * 4, k=5, stride=1, pad=1, norm=True,  lrelu=True),
        dict(cin=out_ch * 4, cout=out_ch * 8, k=5, stride=1, pad=1, norm=True,  lrelu=True),
        dict(cin=out_ch * 8, cout=1,          k=5, stride=1, pad=1, norm=False, lrelu=False),
    )


# ----------------------------------------------------------------------------
# Pallas kernel: fused Conv (+bias) [+InstanceNorm(affine=False)] [+LeakyReLU]
# ----------------------------------------------------------------------------
def _cbr_kernel(p_ref, w_ref, b_ref, o_ref, acc_ref, *,
                n_batch, hw, do_norm, do_lrelu):
    # Grid: (cout_blocks [parallel], k_blocks [arbitrary]).
    #   p_ref  : (N*HW, TK)  bf16   im2col patches, batch folded into M
    #   w_ref  : (TK, Cb)    bf16   weight K-slab for this Cout block
    #   b_ref  : (1, Cb)     f32
    #   o_ref  : (N*HW, Cb)  bf16
    #   acc_ref: (N*HW, Cb)  f32    VMEM accumulator (persists across K steps)
    kk = pl.program_id(1)

    @pl.when(kk == 0)
    def _():
        acc_ref[...] = jnp.zeros_like(acc_ref)

    # bf16 x bf16 MXU matmul, f32 accumulation.
    acc_ref[...] += jnp.dot(p_ref[...], w_ref[...],
                            preferred_element_type=jnp.float32)

    @pl.when(kk == pl.num_programs(1) - 1)
    def _():
        y = acc_ref[...] + b_ref[...]                      # f32 epilogue
        if do_norm:
            # InstanceNorm2d(affine=False): per-sample, per-channel stats over
            # the HW rows of each sample.  Batch is folded into the row axis,
            # so select a sample's rows via an iota mask (avoids non-8-aligned
            # sublane slicing inside the kernel).
            inv_hw = 1.0 / float(hw)
            row = jax.lax.broadcasted_iota(jnp.int32, (n_batch * hw, 1), 0)
            for n in range(n_batch):                       # static unroll, N=2
                m = (row >= n * hw) & (row < (n + 1) * hw)
                mean = jnp.sum(jnp.where(m, y, 0.0), axis=0,
                               keepdims=True) * inv_hw
                cen = y - mean
                var = jnp.sum(jnp.where(m, cen * cen, 0.0), axis=0,
                              keepdims=True) * inv_hw
                y = jnp.where(m, cen * jax.lax.rsqrt(var + _EPS), y)
        if do_lrelu:
            y = jnp.where(y >= 0, y, 0.2 * y)
        o_ref[...] = y.astype(o_ref.dtype)                 # bf16 activation out


# ----------------------------------------------------------------------------
# Glue (runs as fused XLA ops inside the single enclosing jit)
# ----------------------------------------------------------------------------
def _extract_patches(x_nhwc, k, stride):
    """im2col: (N,H,W,C) -> (N, Ho*Wo, K*K*C).  Static slices only."""
    N, H, W, C = x_nhwc.shape
    Ho = (H - k) // stride + 1
    Wo = (W - k) // stride + 1
    cols = []
    for di in range(k):
        for dj in range(k):
            cols.append(
                x_nhwc[:, di:di + stride * Ho:stride, dj:dj + stride * Wo:stride, :])
    p = jnp.stack(cols, axis=3)                      # (N, Ho, Wo, K*K, C)
    return p.reshape(N, Ho * Wo, k * k * C), Ho, Wo


def _num_k_tiles(kkc, cout_blk, target_bytes=2 * 1024 * 1024):
    """Split the (KKC, Cout_blk) bf16 weight along K into ~target_bytes blocks.
    Returns nk with kkc % nk == 0 and (kkc // nk) % 128 == 0 (BlockSpec lane
    rule); falls back to 1 (whole-K block == full dim, always legal)."""
    total = kkc * cout_blk * 2
    want = max(1, int(round(total / target_bytes)))
    for nk in range(want, 0, -1):
        if kkc % nk == 0 and (kkc // nk) % 128 == 0:
            return nk
    return 1


def _cbr_block(x_nhwc, w_mat, b_row, *, k, stride, pad, cout, norm, lrelu):
    """One disc_CBR block as a single Pallas call (bf16 in, bf16 out)."""
    N = x_nhwc.shape[0]
    if pad:
        x_nhwc = jnp.pad(x_nhwc, ((0, 0), (pad, pad), (pad, pad), (0, 0)))
    patches, Ho, Wo = _extract_patches(x_nhwc, k, stride)
    hw = Ho * Wo
    nhw = N * hw
    kkc = patches.shape[-1]
    patches = patches.reshape(nhw, kkc)              # batch folded into M

    nj = 2 if cout % 256 == 0 else 1                 # Cout split: both TCs on v7x
    cb = cout // nj
    nk = _num_k_tiles(kkc, cb)                       # stream big weights along K
    tk = kkc // nk

    out = pl.pallas_call(
        functools.partial(_cbr_kernel, n_batch=N, hw=hw,
                          do_norm=norm, do_lrelu=lrelu),
        out_shape=jax.ShapeDtypeStruct((nhw, cout), jnp.bfloat16),
        grid_spec=pltpu.PrefetchScalarGridSpec(
            num_scalar_prefetch=0,
            grid=(nj, nk),
            in_specs=[
                pl.BlockSpec((nhw, tk), lambda j, kk: (0, kk)),   # patches
                pl.BlockSpec((tk, cb), lambda j, kk: (kk, j)),    # weight slab
                pl.BlockSpec((1, cb), lambda j, kk: (0, j)),      # bias
            ],
            out_specs=pl.BlockSpec((nhw, cb), lambda j, kk: (0, j)),
            scratch_shapes=[pltpu.VMEM((nhw, cb), jnp.float32)],
        ),
        compiler_params=pltpu.CompilerParams(
            dimension_semantics=("parallel", "arbitrary"),
            vmem_limit_bytes=_VMEM_LIMIT_BYTES),
    )(patches, w_mat, b_row)
    return out.reshape(N, Ho, Wo, cout)


# ----------------------------------------------------------------------------
# One-time parameter preparation (hoisted out of the jitted forward)
# ----------------------------------------------------------------------------
def prepare_params(params, in_ch=1, out_ch=64):
    """OIHW f32 -> (K*K*Cin, Cout) matrices; Pallas layers (2-4) pre-cast bf16."""
    cfg = _layer_cfg(in_ch, out_ch)
    prepped = []
    for li, ((w, b), c) in enumerate(zip(params, cfg)):
        w_mat = jnp.transpose(w, (2, 3, 1, 0)).reshape(
            c["k"] * c["k"] * c["cin"], c["cout"])
        w_mat = w_mat.astype(jnp.bfloat16 if 1 <= li <= 3 else jnp.float32)
        prepped.append((w_mat, b.astype(jnp.float32).reshape(1, c["cout"])))
    return tuple(prepped)


# ----------------------------------------------------------------------------
# Forward pass (single jit; 3 Pallas calls + trivial in/out convs in XLA)
# ----------------------------------------------------------------------------
@jax.jit
def discriminator2_pallas(x_nchw, prepared):
    cfg = _layer_cfg()
    N = x_nchw.shape[0]
    x = jnp.transpose(x_nchw, (0, 2, 3, 1))          # NCHW -> NHWC, f32

    # Layer 1 (inconv + LeakyReLU): KKC=25, ~1 MFLOP -> plain XLA dot in f32
    # (a Pallas MXU call would be 80% lane padding + dispatch overhead).
    c = cfg[0]
    w1, b1 = prepared[0]
    p1, Ho, Wo = _extract_patches(x, c["k"], c["stride"])
    y1 = jnp.dot(p1.reshape(N * Ho * Wo, -1), w1,
                 precision=jax.lax.Precision.HIGHEST) + b1
    y1 = jnp.where(y1 >= 0, y1, 0.2 * y1)
    x = y1.reshape(N, Ho, Wo, c["cout"]).astype(jnp.bfloat16)

    # Layers 2-4 (disc_CBR blocks): fused Pallas kernels, bf16 activations.
    for (w_mat, b_row), c in zip(prepared[1:4], cfg[1:4]):
        x = _cbr_block(x, w_mat, b_row, k=c["k"], stride=c["stride"],
                       pad=c["pad"], cout=c["cout"], norm=c["norm"],
                       lrelu=c["lrelu"])

    # Layer 5 (outconv, Cout=1, 3x3 output, ~0.2 MFLOP): plain XLA dot.
    c = cfg[4]
    w5, b5 = prepared[4]
    xp = jnp.pad(x, ((0, 0), (c["pad"], c["pad"]), (c["pad"], c["pad"]), (0, 0)))
    p5, Ho, Wo = _extract_patches(xp, c["k"], c["stride"])
    y5 = jnp.dot(p5.reshape(N * Ho * Wo, -1).astype(jnp.float32), w5,
                 precision=jax.lax.Precision.HIGHEST) + b5
    out = y5.reshape(N, Ho, Wo, 1)
    return jnp.transpose(out, (0, 3, 1, 2))          # NHWC -> NCHW


# ----------------------------------------------------------------------------
# Parameters (deterministic, synthetic) and pure-JAX f32 reference
# ----------------------------------------------------------------------------
def make_params(key, in_ch=1, out_ch=64):
    params = []
    for c in _layer_cfg(in_ch, out_ch):
        key, kw, kb = jax.random.split(key, 3)
        w = 0.1 * jax.random.normal(kw, (c["cout"], c["cin"], c["k"], c["k"]), jnp.float32)
        b = 0.1 * jax.random.normal(kb, (c["cout"],), jnp.float32)
        params.append((w, b))
    return tuple(params)


@jax.jit
def discriminator2_ref(x_nchw, params):
    def inorm(y):
        m = y.mean(axis=(2, 3), keepdims=True)
        v = ((y - m) ** 2).mean(axis=(2, 3), keepdims=True)
        return (y - m) * jax.lax.rsqrt(v + _EPS)

    x = x_nchw
    for (w, b), c in zip(params, _layer_cfg()):
        x = jax.lax.conv_general_dilated(
            x, w, (c["stride"], c["stride"]),
            [(c["pad"], c["pad"]), (c["pad"], c["pad"])],
            dimension_numbers=("NCHW", "OIHW", "NCHW"),
            precision=jax.lax.Precision.HIGHEST) + b[None, :, None, None]
        if c["norm"]:
            x = inorm(x)
        if c["lrelu"]:
            x = jnp.where(x >= 0, x, 0.2 * x)
    return x


# ----------------------------------------------------------------------------
if __name__ == "__main__":
    key = jax.random.PRNGKey(0)
    kx, kp = jax.random.split(key)

    # NCHW input: batch=2, in_ch=1, 41x41 spatial (41 -> 19 -> 9 -> 7 -> 5 -> 3).
    x = jax.random.normal(kx, (2, 1, 41, 41), jnp.float32)
    params = make_params(kp, in_ch=1, out_ch=64)
    prepared = prepare_params(params)            # one-time weight relayout

    out = jax.block_until_ready(discriminator2_pallas(x, prepared))
    ref = jax.block_until_ready(discriminator2_ref(x, params))
    assert out.shape == ref.shape == (2, 1, 3, 3), (out.shape, ref.shape)

    # bf16 MXU inputs / bf16 activations vs. a full-f32 (HIGHEST) reference:
    # validate to ~2% of the output scale (the InstanceNorm layers renormalize,
    # so accumulated quantization error stays well below this).
    scale = float(jnp.max(jnp.abs(ref)))
    np.testing.assert_allclose(np.asarray(out), np.asarray(ref),
                               rtol=2e-2, atol=2e-2 * scale)

    print("KERNEL_OK")
</pallas_src>

<mosaic_0001>
module attributes {stable_mosaic.version = 11 : i64} {
  func.func @_cbr_kernel(%arg0: i32, %arg1: i32, %arg2: memref<162x1600xbf16, #tpu.memory_space<vmem>>, %arg3: memref<1600x128xbf16, #tpu.memory_space<vmem>>, %arg4: memref<1x128xf32, #tpu.memory_space<vmem>>, %arg5: memref<162x128xbf16, #tpu.memory_space<vmem>>, %arg6: memref<162x128xf32, #tpu.memory_space<vmem>>) attributes {dimension_semantics = [#tpu.dimension_semantics<parallel>, #tpu.dimension_semantics<arbitrary>], iteration_bounds = array<i64: 1, 1>, scalar_prefetch = 0 : i64, scratch_operands = 1 : i64, tpu.core_type = #tpu.core_type<tc>, window_params = [{transform_indices = @transform_0, window_bounds = array<i64: 162, 1600>}, {transform_indices = @transform_1, window_bounds = array<i64: 1600, 128>}, {transform_indices = @transform_2, window_bounds = array<i64: 1, 128>}, {transform_indices = @transform_3, window_bounds = array<i64: 162, 128>}]} {
    %c0_i32 = arith.constant 0 : i32
    %0 = arith.cmpi eq, %arg1, %c0_i32 : i32
    %1 = arith.extui %0 : i1 to i32
    %c0_i32_0 = arith.constant 0 : i32
    %2 = arith.cmpi ne, %1, %c0_i32_0 : i32
    scf.if %2 {
      %cst_10 = arith.constant 0.000000e+00 : f32
      %12 = vector.broadcast %cst_10 : f32 to vector<162x128xf32>
      %c0_11 = arith.constant 0 : index
      %c0_12 = arith.constant 0 : index
      %13 = vector.load %arg6[%c0_11, %c0_12] : memref<162x128xf32, #tpu.memory_space<vmem>>, vector<162x128xf32>
      tpu.vector_store %arg6[%c0_11, %c0_12], %12 {strides = array<i32>} : memref<162x128xf32, #tpu.memory_space<vmem>>, vector<162x128xf32>,
    } else {
    }
    %c0 = arith.constant 0 : index
    %c0_1 = arith.constant 0 : index
    %3 = vector.load %arg6[%c0, %c0_1] : memref<162x128xf32, #tpu.memory_space<vmem>>, vector<162x128xf32>
    %c0_2 = arith.constant 0 : index
    %c0_3 = arith.constant 0 : index
    %4 = vector.load %arg2[%c0_2, %c0_3] : memref<162x1600xbf16, #tpu.memory_space<vmem>>, vector<162x1600xbf16>
    %c0_4 = arith.constant 0 : index
    %c0_5 = arith.constant 0 : index
    %5 = vector.load %arg3[%c0_4, %c0_5] : memref<1600x128xbf16, #tpu.memory_space<vmem>>, vector<1600x128xbf16>
    %cst = arith.constant dense<0.000000e+00> : vector<162x128xf32>
    %6 = tpu.matmul %4, %5, %cst {dimension_numbers = #tpu.dot_dimension_numbers<[1], [0], [0], [1], [0, 0, 1, 1], [], []>} : vector<162x1600xbf16>, vector<1600x128xbf16>, vector<162x128xf32> -> vector<162x128xf32>
    %7 = arith.addf %3, %6 : vector<162x128xf32>
    %c0_6 = arith.constant 0 : index
    %c0_7 = arith.constant 0 : index
    %8 = vector.load %arg6[%c0_6, %c0_7] : memref<162x128xf32, #tpu.memory_space<vmem>>, vector<162x128xf32>
    tpu.vector_store %arg6[%c0_6, %c0_7], %7 {strides = array<i32>} : memref<162x128xf32, #tpu.memory_space<vmem>>, vector<162x128xf32>,
    %c0_i32_8 = arith.constant 0 : i32
    %9 = arith.cmpi eq, %arg1, %c0_i32_8 : i32
    %10 = arith.extui %9 : i1 to i32
    %c0_i32_9 = arith.constant 0 : i32
    %11 = arith.cmpi ne, %10, %c0_i32_9 : i32
    scf.if %11 {
      %c0_10 = arith.constant 0 : index
      %c0_11 = arith.constant 0 : index
      %12 = vector.load %arg6[%c0_10, %c0_11] : memref<162x128xf32, #tpu.memory_space<vmem>>, vector<162x128xf32>
      %c0_12 = arith.constant 0 : index
      %c0_13 = arith.constant 0 : index
      %13 = vector.load %arg4[%c0_12, %c0_13] : memref<1x128xf32, #tpu.memory_space<vmem>>, vector<1x128xf32>
      %14 = vector.broadcast %13 : vector<1x128xf32> to vector<162x128xf32>
      %15 = arith.addf %12, %14 : vector<162x128xf32>
      %16 = tpu.iota {dimensions = array<i32: 0>} : vector<162x1xi32>
      %c0_i32_14 = arith.constant 0 : i32
      %17 = vector.broadcast %c0_i32_14 : i32 to vector<162x1xi32>
      %18 = arith.cmpi sge, %16, %17 : vector<162x1xi32>
      %c81_i32 = arith.constant 81 : i32
      %19 = vector.broadcast %c81_i32 : i32 to vector<162x1xi32>
      %20 = arith.cmpi slt, %16, %19 : vector<162x1xi32>
      %21 = arith.andi %18, %20 : vector<162x1xi1>
      %cst_15 = arith.constant 0.000000e+00 : f32
      %22 = vector.shape_cast %21 : vector<162x1xi1> to vector<162x1xi1>
      %23 = vector.broadcast %22 : vector<162x1xi1> to vector<162x128xi1>
      %24 = vector.broadcast %cst_15 : f32 to vector<162x128xf32>
      %25 = arith.select %23, %15, %24 : vector<162x128xi1>, vector<162x128xf32>
      %cst_16 = arith.constant dense<0.000000e+00> : vector<128xf32>
      %26 = vector.multi_reduction <add>, %25, %cst_16 [0] : vector<162x128xf32> to vector<128xf32>
      %27 = vector.shape_cast %26 : vector<128xf32> to vector<1x128xf32>
      %cst_17 = arith.constant 0.0123456791 : f32
      %28 = vector.broadcast %cst_17 : f32 to vector<1x128xf32>
      %29 = arith.mulf %27, %28 : vector<1x128xf32>
      %30 = vector.broadcast %29 : vector<1x128xf32> to vector<162x128xf32>
      %31 = arith.subf %15, %30 : vector<162x128xf32>
      %32 = arith.mulf %31, %31 : vector<162x128xf32>
      %cst_18 = arith.constant 0.000000e+00 : f32
      %33 = vector.shape_cast %21 : vector<162x1xi1> to vector<162x1xi1>
      %34 = vector.broadcast %33 : vector<162x1xi1> to vector<162x128xi1>
      %35 = vector.broadcast %cst_18 : f32 to vector<162x128xf32>
      %36 = arith.select %34, %32, %35 : vector<162x128xi1>, vector<162x128xf32>
      %cst_19 = arith.constant dense<0.000000e+00> : vector<128xf32>
      %37 = vector.multi_reduction <add>, %36, %cst_19 [0] : vector<162x128xf32> to vector<128xf32>
      %38 = vector.shape_cast %37 : vector<128xf32> to vector<1x128xf32>
      %cst_20 = arith.constant 0.0123456791 : f32
      %39 = vector.broadcast %cst_20 : f32 to vector<1x128xf32>
      %40 = arith.mulf %38, %39 : vector<1x128xf32>
      %cst_21 = arith.constant 9.99999974E-6 : f32
      %41 = vector.broadcast %cst_21 : f32 to vector<1x128xf32>
      %42 = arith.addf %40, %41 : vector<1x128xf32>
      %43 = math.rsqrt %42 : vector<1x128xf32>
      %44 = vector.broadcast %43 : vector<1x128xf32> to vector<162x128xf32>
      %45 = arith.mulf %31, %44 : vector<162x128xf32>
      %46 = vector.shape_cast %21 : vector<162x1xi1> to vector<162x1xi1>
      %47 = vector.broadcast %46 : vector<162x1xi1> to vector<162x128xi1>
      %48 = arith.select %47, %45, %15 : vector<162x128xi1>, vector<162x128xf32>
      %c81_i32_22 = arith.constant 81 : i32
      %49 = vector.broadcast %c81_i32_22 : i32 to vector<162x1xi32>
      %50 = arith.cmpi sge, %16, %49 : vector<162x1xi32>
      %c162_i32 = arith.constant 162 : i32
      %51 = vector.broadcast %c162_i32 : i32 to vector<162x1xi32>
      %52 = arith.cmpi slt, %16, %51 : vector<162x1xi32>
      %53 = arith.andi %50, %52 : vector<162x1xi1>
      %cst_23 = arith.constant 0.000000e+00 : f32
      %54 = vector.shape_cast %53 : vector<162x1xi1> to vector<162x1xi1>
      %55 = vector.broadcast %54 : vector<162x1xi1> to vector<162x128xi1>
      %56 = vector.broadcast %cst_23 : f32 to vector<162x128xf32>
      %57 = arith.select %55, %48, %56 : vector<162x128xi1>, vector<162x128xf32>
      %cst_24 = arith.constant dense<0.000000e+00> : vector<128xf32>
      %58 = vector.multi_reduction <add>, %57, %cst_24 [0] : vector<162x128xf32> to vector<128xf32>
      %59 = vector.shape_cast %58 : vector<128xf32> to vector<1x128xf32>
      %cst_25 = arith.constant 0.0123456791 : f32
      %60 = vector.broadcast %cst_25 : f32 to vector<1x128xf32>
      %61 = arith.mulf %59, %60 : vector<1x128xf32>
      %62 = vector.broadcast %61 : vector<1x128xf32> to vector<162x128xf32>
      %63 = arith.subf %48, %62 : vector<162x128xf32>
      %64 = arith.mulf %63, %63 : vector<162x128xf32>
      %cst_26 = arith.constant 0.000000e+00 : f32
      %65 = vector.shape_cast %53 : vector<162x1xi1> to vector<162x1xi1>
      %66 = vector.broadcast %65 : vector<162x1xi1> to vector<162x128xi1>
      %67 = vector.broadcast %cst_26 : f32 to vector<162x128xf32>
      %68 = arith.select %66, %64, %67 : vector<162x128xi1>, vector<162x128xf32>
      %cst_27 = arith.constant dense<0.000000e+00> : vector<128xf32>
      %69 = vector.multi_reduction <add>, %68, %cst_27 [0] : vector<162x128xf32> to vector<128xf32>
      %70 = vector.shape_cast %69 : vector<128xf32> to vector<1x128xf32>
      %cst_28 = arith.constant 0.0123456791 : f32
      %71 = vector.broadcast %cst_28 : f32 to vector<1x128xf32>
      %72 = arith.mulf %70, %71 : vector<1x128xf32>
      %cst_29 = arith.constant 9.99999974E-6 : f32
      %73 = vector.broadcast %cst_29 : f32 to vector<1x128xf32>
      %74 = arith.addf %72, %73 : vector<1x128xf32>
      %75 = math.rsqrt %74 : vector<1x128xf32>
      %76 = vector.broadcast %75 : vector<1x128xf32> to vector<162x128xf32>
      %77 = arith.mulf %63, %76 : vector<162x128xf32>
      %78 = vector.shape_cast %53 : vector<162x1xi1> to vector<162x1xi1>
      %79 = vector.broadcast %78 : vector<162x1xi1> to vector<162x128xi1>
      %80 = arith.select %79, %77, %48 : vector<162x128xi1>, vector<162x128xf32>
      %cst_30 = arith.constant 0.000000e+00 : f32
      %81 = vector.broadcast %cst_30 : f32 to vector<162x128xf32>
      %82 = arith.cmpf oge, %80, %81 : vector<162x128xf32>
      %cst_31 = arith.constant 2.000000e-01 : f32
      %83 = vector.broadcast %cst_31 : f32 to vector<162x128xf32>
      %84 = arith.mulf %83, %80 : vector<162x128xf32>
      %85 = arith.select %82, %80, %84 : vector<162x128xi1>, vector<162x128xf32>
      %86 = arith.truncf %85 : vector<162x128xf32> to vector<162x128xbf16>
      %c0_32 = arith.constant 0 : index
      %c0_33 = arith.constant 0 : index
      %87 = vector.load %arg5[%c0_32, %c0_33] : memref<162x128xbf16, #tpu.memory_space<vmem>>, vector<162x128xbf16>
      tpu.vector_store %arg5[%c0_32, %c0_33], %86 {strides = array<i32>} : memref<162x128xbf16, #tpu.memory_space<vmem>>, vector<162x128xbf16>,
    } else {
    }
    return
  }
  func.func @transform_0(%arg0: i32, %arg1: i32) -> (i32, i32) {
    %c0_i32 = arith.constant 0 : i32
    %c0_i32_0 = arith.constant 0 : i32
    return %c0_i32, %arg1 : i32, i32
  }
  func.func @transform_1(%arg0: i32, %arg1: i32) -> (i32, i32) {
    %c0_i32 = arith.constant 0 : i32
    return %arg1, %arg0 : i32, i32
  }
  func.func @transform_2(%arg0: i32, %arg1: i32) -> (i32, i32) {
    %c0_i32 = arith.constant 0 : i32
    %c0_i32_0 = arith.constant 0 : i32
    return %c0_i32, %arg0 : i32, i32
  }
  func.func @transform_3(%arg0: i32, %arg1: i32) -> (i32, i32) {
    %c0_i32 = arith.constant 0 : i32
    %c0_i32_0 = arith.constant 0 : i32
    return %c0_i32, %arg0 : i32, i32
  }
}

module attributes {stable_mosaic.version = 11 : i64} {
  func.func @_cbr_kernel(%arg0: i32, %arg1: i32, %arg2: memref<98x3200xbf16, #tpu.memory_space<vmem>>, %arg3: memref<3200x128xbf16, #tpu.memory_space<vmem>>, %arg4: memref<1x128xf32, #tpu.memory_space<vmem>>, %arg5: memref<98x128xbf16, #tpu.memory_space<vmem>>, %arg6: memref<98x128xf32, #tpu.memory_space<vmem>>) attributes {dimension_semantics = [#tpu.dimension_semantics<parallel>, #tpu.dimension_semantics<arbitrary>], iteration_bounds = array<i64: 2, 1>, scalar_prefetch = 0 : i64, scratch_operands = 1 : i64, tpu.core_type = #tpu.core_type<tc>, window_params = [{transform_indices = @transform_0, window_bounds = array<i64: 98, 3200>}, {transform_indices = @transform_1, window_bounds = array<i64: 3200, 128>}, {transform_indices = @transform_2, window_bounds = array<i64: 1, 128>}, {transform_indices = @transform_3, window_bounds = array<i64: 98, 128>}]} {
    %c0_i32 = arith.constant 0 : i32
    %0 = arith.cmpi eq, %arg1, %c0_i32 : i32
    %1 = arith.extui %0 : i1 to i32
    %c0_i32_0 = arith.constant 0 : i32
    %2 = arith.cmpi ne, %1, %c0_i32_0 : i32
    scf.if %2 {
      %cst_10 = arith.constant 0.000000e+00 : f32
      %12 = vector.broadcast %cst_10 : f32 to vector<98x128xf32>
      %c0_11 = arith.constant 0 : index
      %c0_12 = arith.constant 0 : index
      %13 = vector.load %arg6[%c0_11, %c0_12] : memref<98x128xf32, #tpu.memory_space<vmem>>, vector<98x128xf32>
      tpu.vector_store %arg6[%c0_11, %c0_12], %12 {strides = array<i32>} : memref<98x128xf32, #tpu.memory_space<vmem>>, vector<98x128xf32>,
    } else {
    }
    %c0 = arith.constant 0 : index
    %c0_1 = arith.constant 0 : index
    %3 = vector.load %arg6[%c0, %c0_1] : memref<98x128xf32, #tpu.memory_space<vmem>>, vector<98x128xf32>
    %c0_2 = arith.constant 0 : index
    %c0_3 = arith.constant 0 : index
    %4 = vector.load %arg2[%c0_2, %c0_3] : memref<98x3200xbf16, #tpu.memory_space<vmem>>, vector<98x3200xbf16>
    %c0_4 = arith.constant 0 : index
    %c0_5 = arith.constant 0 : index
    %5 = vector.load %arg3[%c0_4, %c0_5] : memref<3200x128xbf16, #tpu.memory_space<vmem>>, vector<3200x128xbf16>
    %cst = arith.constant dense<0.000000e+00> : vector<98x128xf32>
    %6 = tpu.matmul %4, %5, %cst {dimension_numbers = #tpu.dot_dimension_numbers<[1], [0], [0], [1], [0, 0, 1, 1], [], []>} : vector<98x3200xbf16>, vector<3200x128xbf16>, vector<98x128xf32> -> vector<98x128xf32>
    %7 = arith.addf %3, %6 : vector<98x128xf32>
    %c0_6 = arith.constant 0 : index
    %c0_7 = arith.constant 0 : index
    %8 = vector.load %arg6[%c0_6, %c0_7] : memref<98x128xf32, #tpu.memory_space<vmem>>, vector<98x128xf32>
    tpu.vector_store %arg6[%c0_6, %c0_7], %7 {strides = array<i32>} : memref<98x128xf32, #tpu.memory_space<vmem>>, vector<98x128xf32>,
    %c0_i32_8 = arith.constant 0 : i32
    %9 = arith.cmpi eq, %arg1, %c0_i32_8 : i32
    %10 = arith.extui %9 : i1 to i32
    %c0_i32_9 = arith.constant 0 : i32
    %11 = arith.cmpi ne, %10, %c0_i32_9 : i32
    scf.if %11 {
      %c0_10 = arith.constant 0 : index
      %c0_11 = arith.constant 0 : index
      %12 = vector.load %arg6[%c0_10, %c0_11] : memref<98x128xf32, #tpu.memory_space<vmem>>, vector<98x128xf32>
      %c0_12 = arith.constant 0 : index
      %c0_13 = arith.constant 0 : index
      %13 = vector.load %arg4[%c0_12, %c0_13] : memref<1x128xf32, #tpu.memory_space<vmem>>, vector<1x128xf32>
      %14 = vector.broadcast %13 : vector<1x128xf32> to vector<98x128xf32>
      %15 = arith.addf %12, %14 : vector<98x128xf32>
      %16 = tpu.iota {dimensions = array<i32: 0>} : vector<98x1xi32>
      %c0_i32_14 = arith.constant 0 : i32
      %17 = vector.broadcast %c0_i32_14 : i32 to vector<98x1xi32>
      %18 = arith.cmpi sge, %16, %17 : vector<98x1xi32>
      %c49_i32 = arith.constant 49 : i32
      %19 = vector.broadcast %c49_i32 : i32 to vector<98x1xi32>
      %20 = arith.cmpi slt, %16, %19 : vector<98x1xi32>
      %21 = arith.andi %18, %20 : vector<98x1xi1>
      %cst_15 = arith.constant 0.000000e+00 : f32
      %22 = vector.shape_cast %21 : vector<98x1xi1> to vector<98x1xi1>
      %23 = vector.broadcast %22 : vector<98x1xi1> to vector<98x128xi1>
      %24 = vector.broadcast %cst_15 : f32 to vector<98x128xf32>
      %25 = arith.select %23, %15, %24 : vector<98x128xi1>, vector<98x128xf32>
      %cst_16 = arith.constant dense<0.000000e+00> : vector<128xf32>
      %26 = vector.multi_reduction <add>, %25, %cst_16 [0] : vector<98x128xf32> to vector<128xf32>
      %27 = vector.shape_cast %26 : vector<128xf32> to vector<1x128xf32>
      %cst_17 = arith.constant 0.0204081628 : f32
      %28 = vector.broadcast %cst_17 : f32 to vector<1x128xf32>
      %29 = arith.mulf %27, %28 : vector<1x128xf32>
      %30 = vector.broadcast %29 : vector<1x128xf32> to vector<98x128xf32>
      %31 = arith.subf %15, %30 : vector<98x128xf32>
      %32 = arith.mulf %31, %31 : vector<98x128xf32>
      %cst_18 = arith.constant 0.000000e+00 : f32
      %33 = vector.shape_cast %21 : vector<98x1xi1> to vector<98x1xi1>
      %34 = vector.broadcast %33 : vector<98x1xi1> to vector<98x128xi1>
      %35 = vector.broadcast %cst_18 : f32 to vector<98x128xf32>
      %36 = arith.select %34, %32, %35 : vector<98x128xi1>, vector<98x128xf32>
      %cst_19 = arith.constant dense<0.000000e+00> : vector<128xf32>
      %37 = vector.multi_reduction <add>, %36, %cst_19 [0] : vector<98x128xf32> to vector<128xf32>
      %38 = vector.shape_cast %37 : vector<128xf32> to vector<1x128xf32>
      %cst_20 = arith.constant 0.0204081628 : f32
      %39 = vector.broadcast %cst_20 : f32 to vector<1x128xf32>
      %40 = arith.mulf %38, %39 : vector<1x128xf32>
      %cst_21 = arith.constant 9.99999974E-6 : f32
      %41 = vector.broadcast %cst_21 : f32 to vector<1x128xf32>
      %42 = arith.addf %40, %41 : vector<1x128xf32>
      %43 = math.rsqrt %42 : vector<1x128xf32>
      %44 = vector.broadcast %43 : vector<1x128xf32> to vector<98x128xf32>
      %45 = arith.mulf %31, %44 : vector<98x128xf32>
      %46 = vector.shape_cast %21 : vector<98x1xi1> to vector<98x1xi1>
      %47 = vector.broadcast %46 : vector<98x1xi1> to vector<98x128xi1>
      %48 = arith.select %47, %45, %15 : vector<98x128xi1>, vector<98x128xf32>
      %c49_i32_22 = arith.constant 49 : i32
      %49 = vector.broadcast %c49_i32_22 : i32 to vector<98x1xi32>
      %50 = arith.cmpi sge, %16, %49 : vector<98x1xi32>
      %c98_i32 = arith.constant 98 : i32
      %51 = vector.broadcast %c98_i32 : i32 to vector<98x1xi32>
      %52 = arith.cmpi slt, %16, %51 : vector<98x1xi32>
      %53 = arith.andi %50, %52 : vector<98x1xi1>
      %cst_23 = arith.constant 0.000000e+00 : f32
      %54 = vector.shape_cast %53 : vector<98x1xi1> to vector<98x1xi1>
      %55 = vector.broadcast %54 : vector<98x1xi1> to vector<98x128xi1>
      %56 = vector.broadcast %cst_23 : f32 to vector<98x128xf32>
      %57 = arith.select %55, %48, %56 : vector<98x128xi1>, vector<98x128xf32>
      %cst_24 = arith.constant dense<0.000000e+00> : vector<128xf32>
      %58 = vector.multi_reduction <add>, %57, %cst_24 [0] : vector<98x128xf32> to vector<128xf32>
      %59 = vector.shape_cast %58 : vector<128xf32> to vector<1x128xf32>
      %cst_25 = arith.constant 0.0204081628 : f32
      %60 = vector.broadcast %cst_25 : f32 to vector<1x128xf32>
      %61 = arith.mulf %59, %60 : vector<1x128xf32>
      %62 = vector.broadcast %61 : vector<1x128xf32> to vector<98x128xf32>
      %63 = arith.subf %48, %62 : vector<98x128xf32>
      %64 = arith.mulf %63, %63 : vector<98x128xf32>
      %cst_26 = arith.constant 0.000000e+00 : f32
      %65 = vector.shape_cast %53 : vector<98x1xi1> to vector<98x1xi1>
      %66 = vector.broadcast %65 : vector<98x1xi1> to vector<98x128xi1>
      %67 = vector.broadcast %cst_26 : f32 to vector<98x128xf32>
      %68 = arith.select %66, %64, %67 : vector<98x128xi1>, vector<98x128xf32>
      %cst_27 = arith.constant dense<0.000000e+00> : vector<128xf32>
      %69 = vector.multi_reduction <add>, %68, %cst_27 [0] : vector<98x128xf32> to vector<128xf32>
      %70 = vector.shape_cast %69 : vector<128xf32> to vector<1x128xf32>
      %cst_28 = arith.constant 0.0204081628 : f32
      %71 = vector.broadcast %cst_28 : f32 to vector<1x128xf32>
      %72 = arith.mulf %70, %71 : vector<1x128xf32>
      %cst_29 = arith.constant 9.99999974E-6 : f32
      %73 = vector.broadcast %cst_29 : f32 to vector<1x128xf32>
      %74 = arith.addf %72, %73 : vector<1x128xf32>
      %75 = math.rsqrt %74 : vector<1x128xf32>
      %76 = vector.broadcast %75 : vector<1x128xf32> to vector<98x128xf32>
      %77 = arith.mulf %63, %76 : vector<98x128xf32>
      %78 = vector.shape_cast %53 : vector<98x1xi1> to vector<98x1xi1>
      %79 = vector.broadcast %78 : vector<98x1xi1> to vector<98x128xi1>
      %80 = arith.select %79, %77, %48 : vector<98x128xi1>, vector<98x128xf32>
      %cst_30 = arith.constant 0.000000e+00 : f32
      %81 = vector.broadcast %cst_30 : f32 to vector<98x128xf32>
      %82 = arith.cmpf oge, %80, %81 : vector<98x128xf32>
      %cst_31 = arith.constant 2.000000e-01 : f32
      %83 = vector.broadcast %cst_31 : f32 to vector<98x128xf32>
      %84 = arith.mulf %83, %80 : vector<98x128xf32>
      %85 = arith.select %82, %80, %84 : vector<98x128xi1>, vector<98x128xf32>
      %86 = arith.truncf %85 : vector<98x128xf32> to vector<98x128xbf16>
      %c0_32 = arith.constant 0 : index
      %c0_33 = arith.constant 0 : index
      %87 = vector.load %arg5[%c0_32, %c0_33] : memref<98x128xbf16, #tpu.memory_space<vmem>>, vector<98x128xbf16>
      tpu.vector_store %arg5[%c0_32, %c0_33], %86 {strides = array<i32>} : memref<98x128xbf16, #tpu.memory_space<vmem>>, vector<98x128xbf16>,
    } else {
    }
    return
  }
  func.func @transform_0(%arg0: i32, %arg1: i32) -> (i32, i32) {
    %c0_i32 = arith.constant 0 : i32
    %c0_i32_0 = arith.constant 0 : i32
    return %c0_i32, %arg1 : i32, i32
  }
  func.func @transform_1(%arg0: i32, %arg1: i32) -> (i32, i32) {
    %c0_i32 = arith.constant 0 : i32
    return %arg1, %arg0 : i32, i32
  }
  func.func @transform_2(%arg0: i32, %arg1: i32) -> (i32, i32) {
    %c0_i32 = arith.constant 0 : i32
    %c0_i32_0 = arith.constant 0 : i32
    return %c0_i32, %arg0 : i32, i32
  }
  func.func @transform_3(%arg0: i32, %arg1: i32) -> (i32, i32) {
    %c0_i32 = arith.constant 0 : i32
    %c0_i32_0 = arith.constant 0 : i32
    return %c0_i32, %arg0 : i32, i32
  }
}

module attributes {stable_mosaic.version = 11 : i64} {
  func.func @_cbr_kernel(%arg0: i32, %arg1: i32, %arg2: memref<50x3200xbf16, #tpu.memory_space<vmem>>, %arg3: memref<3200x256xbf16, #tpu.memory_space<vmem>>, %arg4: memref<1x256xf32, #tpu.memory_space<vmem>>, %arg5: memref<50x256xbf16, #tpu.memory_space<vmem>>, %arg6: memref<50x256xf32, #tpu.memory_space<vmem>>) attributes {dimension_semantics = [#tpu.dimension_semantics<parallel>, #tpu.dimension_semantics<arbitrary>], iteration_bounds = array<i64: 2, 2>, scalar_prefetch = 0 : i64, scratch_operands = 1 : i64, tpu.core_type = #tpu.core_type<tc>, window_params = [{transform_indices = @transform_0, window_bounds = array<i64: 50, 3200>}, {transform_indices = @transform_1, window_bounds = array<i64: 3200, 256>}, {transform_indices = @transform_2, window_bounds = array<i64: 1, 256>}, {transform_indices = @transform_3, window_bounds = array<i64: 50, 256>}]} {
    %c0_i32 = arith.constant 0 : i32
    %0 = arith.cmpi eq, %arg1, %c0_i32 : i32
    %1 = arith.extui %0 : i1 to i32
    %c0_i32_0 = arith.constant 0 : i32
    %2 = arith.cmpi ne, %1, %c0_i32_0 : i32
    scf.if %2 {
      %cst_9 = arith.constant 0.000000e+00 : f32
      %12 = vector.broadcast %cst_9 : f32 to vector<50x256xf32>
      %c0_10 = arith.constant 0 : index
      %c0_11 = arith.constant 0 : index
      %13 = vector.load %arg6[%c0_10, %c0_11] : memref<50x256xf32, #tpu.memory_space<vmem>>, vector<50x256xf32>
      tpu.vector_store %arg6[%c0_10, %c0_11], %12 {strides = array<i32>} : memref<50x256xf32, #tpu.memory_space<vmem>>, vector<50x256xf32>,
    } else {
    }
    %c0 = arith.constant 0 : index
    %c0_1 = arith.constant 0 : index
    %3 = vector.load %arg6[%c0, %c0_1] : memref<50x256xf32, #tpu.memory_space<vmem>>, vector<50x256xf32>
    %c0_2 = arith.constant 0 : index
    %c0_3 = arith.constant 0 : index
    %4 = vector.load %arg2[%c0_2, %c0_3] : memref<50x3200xbf16, #tpu.memory_space<vmem>>, vector<50x3200xbf16>
    %c0_4 = arith.constant 0 : index
    %c0_5 = arith.constant 0 : index
    %5 = vector.load %arg3[%c0_4, %c0_5] : memref<3200x256xbf16, #tpu.memory_space<vmem>>, vector<3200x256xbf16>
    %cst = arith.constant dense<0.000000e+00> : vector<50x256xf32>
    %6 = tpu.matmul %4, %5, %cst {dimension_numbers = #tpu.dot_dimension_numbers<[1], [0], [0], [1], [0, 0, 1, 1], [], []>} : vector<50x3200xbf16>, vector<3200x256xbf16>, vector<50x256xf32> -> vector<50x256xf32>
    %7 = arith.addf %3, %6 : vector<50x256xf32>
    %c0_6 = arith.constant 0 : index
    %c0_7 = arith.constant 0 : index
    %8 = vector.load %arg6[%c0_6, %c0_7] : memref<50x256xf32, #tpu.memory_space<vmem>>, vector<50x256xf32>
    tpu.vector_store %arg6[%c0_6, %c0_7], %7 {strides = array<i32>} : memref<50x256xf32, #tpu.memory_space<vmem>>, vector<50x256xf32>,
    %c1_i32 = arith.constant 1 : i32
    %9 = arith.cmpi eq, %arg1, %c1_i32 : i32
    %10 = arith.extui %9 : i1 to i32
    %c0_i32_8 = arith.constant 0 : i32
    %11 = arith.cmpi ne, %10, %c0_i32_8 : i32
    scf.if %11 {
      %c0_9 = arith.constant 0 : index
      %c0_10 = arith.constant 0 : index
      %12 = vector.load %arg6[%c0_9, %c0_10] : memref<50x256xf32, #tpu.memory_space<vmem>>, vector<50x256xf32>
      %c0_11 = arith.constant 0 : index
      %c0_12 = arith.constant 0 : index
      %13 = vector.load %arg4[%c0_11, %c0_12] : memref<1x256xf32, #tpu.memory_space<vmem>>, vector<1x256xf32>
      %14 = vector.broadcast %13 : vector<1x256xf32> to vector<50x256xf32>
      %15 = arith.addf %12, %14 : vector<50x256xf32>
      %16 = tpu.iota {dimensions = array<i32: 0>} : vector<50x1xi32>
      %c0_i32_13 = arith.constant 0 : i32
      %17 = vector.broadcast %c0_i32_13 : i32 to vector<50x1xi32>
      %18 = arith.cmpi sge, %16, %17 : vector<50x1xi32>
      %c25_i32 = arith.constant 25 : i32
      %19 = vector.broadcast %c25_i32 : i32 to vector<50x1xi32>
      %20 = arith.cmpi slt, %16, %19 : vector<50x1xi32>
      %21 = arith.andi %18, %20 : vector<50x1xi1>
      %cst_14 = arith.constant 0.000000e+00 : f32
      %22 = vector.shape_cast %21 : vector<50x1xi1> to vector<50x1xi1>
      %23 = vector.broadcast %22 : vector<50x1xi1> to vector<50x256xi1>
      %24 = vector.broadcast %cst_14 : f32 to vector<50x256xf32>
      %25 = arith.select %23, %15, %24 : vector<50x256xi1>, vector<50x256xf32>
      %cst_15 = arith.constant dense<0.000000e+00> : vector<256xf32>
      %26 = vector.multi_reduction <add>, %25, %cst_15 [0] : vector<50x256xf32> to vector<256xf32>
      %27 = vector.shape_cast %26 : vector<256xf32> to vector<1x256xf32>
      %cst_16 = arith.constant 4.000000e-02 : f32
      %28 = vector.broadcast %cst_16 : f32 to vector<1x256xf32>
      %29 = arith.mulf %27, %28 : vector<1x256xf32>
      %30 = vector.broadcast %29 : vector<1x256xf32> to vector<50x256xf32>
      %31 = arith.subf %15, %30 : vector<50x256xf32>
      %32 = arith.mulf %31, %31 : vector<50x256xf32>
      %cst_17 = arith.constant 0.000000e+00 : f32
      %33 = vector.shape_cast %21 : vector<50x1xi1> to vector<50x1xi1>
      %34 = vector.broadcast %33 : vector<50x1xi1> to vector<50x256xi1>
      %35 = vector.broadcast %cst_17 : f32 to vector<50x256xf32>
      %36 = arith.select %34, %32, %35 : vector<50x256xi1>, vector<50x256xf32>
      %cst_18 = arith.constant dense<0.000000e+00> : vector<256xf32>
      %37 = vector.multi_reduction <add>, %36, %cst_18 [0] : vector<50x256xf32> to vector<256xf32>
      %38 = vector.shape_cast %37 : vector<256xf32> to vector<1x256xf32>
      %cst_19 = arith.constant 4.000000e-02 : f32
      %39 = vector.broadcast %cst_19 : f32 to vector<1x256xf32>
      %40 = arith.mulf %38, %39 : vector<1x256xf32>
      %cst_20 = arith.constant 9.99999974E-6 : f32
      %41 = vector.broadcast %cst_20 : f32 to vector<1x256xf32>
      %42 = arith.addf %40, %41 : vector<1x256xf32>
      %43 = math.rsqrt %42 : vector<1x256xf32>
      %44 = vector.broadcast %43 : vector<1x256xf32> to vector<50x256xf32>
      %45 = arith.mulf %31, %44 : vector<50x256xf32>
      %46 = vector.shape_cast %21 : vector<50x1xi1> to vector<50x1xi1>
      %47 = vector.broadcast %46 : vector<50x1xi1> to vector<50x256xi1>
      %48 = arith.select %47, %45, %15 : vector<50x256xi1>, vector<50x256xf32>
      %c25_i32_21 = arith.constant 25 : i32
      %49 = vector.broadcast %c25_i32_21 : i32 to vector<50x1xi32>
      %50 = arith.cmpi sge, %16, %49 : vector<50x1xi32>
      %c50_i32 = arith.constant 50 : i32
      %51 = vector.broadcast %c50_i32 : i32 to vector<50x1xi32>
      %52 = arith.cmpi slt, %16, %51 : vector<50x1xi32>
      %53 = arith.andi %50, %52 : vector<50x1xi1>
      %cst_22 = arith.constant 0.000000e+00 : f32
      %54 = vector.shape_cast %53 : vector<50x1xi1> to vector<50x1xi1>
      %55 = vector.broadcast %54 : vector<50x1xi1> to vector<50x256xi1>
      %56 = vector.broadcast %cst_22 : f32 to vector<50x256xf32>
      %57 = arith.select %55, %48, %56 : vector<50x256xi1>, vector<50x256xf32>
      %cst_23 = arith.constant dense<0.000000e+00> : vector<256xf32>
      %58 = vector.multi_reduction <add>, %57, %cst_23 [0] : vector<50x256xf32> to vector<256xf32>
      %59 = vector.shape_cast %58 : vector<256xf32> to vector<1x256xf32>
      %cst_24 = arith.constant 4.000000e-02 : f32
      %60 = vector.broadcast %cst_24 : f32 to vector<1x256xf32>
      %61 = arith.mulf %59, %60 : vector<1x256xf32>
      %62 = vector.broadcast %61 : vector<1x256xf32> to vector<50x256xf32>
      %63 = arith.subf %48, %62 : vector<50x256xf32>
      %64 = arith.mulf %63, %63 : vector<50x256xf32>
      %cst_25 = arith.constant 0.000000e+00 : f32
      %65 = vector.shape_cast %53 : vector<50x1xi1> to vector<50x1xi1>
      %66 = vector.broadcast %65 : vector<50x1xi1> to vector<50x256xi1>
      %67 = vector.broadcast %cst_25 : f32 to vector<50x256xf32>
      %68 = arith.select %66, %64, %67 : vector<50x256xi1>, vector<50x256xf32>
      %cst_26 = arith.constant dense<0.000000e+00> : vector<256xf32>
      %69 = vector.multi_reduction <add>, %68, %cst_26 [0] : vector<50x256xf32> to vector<256xf32>
      %70 = vector.shape_cast %69 : vector<256xf32> to vector<1x256xf32>
      %cst_27 = arith.constant 4.000000e-02 : f32
      %71 = vector.broadcast %cst_27 : f32 to vector<1x256xf32>
      %72 = arith.mulf %70, %71 : vector<1x256xf32>
      %cst_28 = arith.constant 9.99999974E-6 : f32
      %73 = vector.broadcast %cst_28 : f32 to vector<1x256xf32>
      %74 = arith.addf %72, %73 : vector<1x256xf32>
      %75 = math.rsqrt %74 : vector<1x256xf32>
      %76 = vector.broadcast %75 : vector<1x256xf32> to vector<50x256xf32>
      %77 = arith.mulf %63, %76 : vector<50x256xf32>
      %78 = vector.shape_cast %53 : vector<50x1xi1> to vector<50x1xi1>
      %79 = vector.broadcast %78 : vector<50x1xi1> to vector<50x256xi1>
      %80 = arith.select %79, %77, %48 : vector<50x256xi1>, vector<50x256xf32>
      %cst_29 = arith.constant 0.000000e+00 : f32
      %81 = vector.broadcast %cst_29 : f32 to vector<50x256xf32>
      %82 = arith.cmpf oge, %80, %81 : vector<50x256xf32>
      %cst_30 = arith.constant 2.000000e-01 : f32
      %83 = vector.broadcast %cst_30 : f32 to vector<50x256xf32>
      %84 = arith.mulf %83, %80 : vector<50x256xf32>
      %85 = arith.select %82, %80, %84 : vector<50x256xi1>, vector<50x256xf32>
      %86 = arith.truncf %85 : vector<50x256xf32> to vector<50x256xbf16>
      %c0_31 = arith.constant 0 : index
      %c0_32 = arith.constant 0 : index
      %87 = vector.load %arg5[%c0_31, %c0_32] : memref<50x256xbf16, #tpu.memory_space<vmem>>, vector<50x256xbf16>
      tpu.vector_store %arg5[%c0_31, %c0_32], %86 {strides = array<i32>} : memref<50x256xbf16, #tpu.memory_space<vmem>>, vector<50x256xbf16>,
    } else {
    }
    return
  }
  func.func @transform_0(%arg0: i32, %arg1: i32) -> (i32, i32) {
    %c0_i32 = arith.constant 0 : i32
    %c0_i32_0 = arith.constant 0 : i32
    return %c0_i32, %arg1 : i32, i32
  }
  func.func @transform_1(%arg0: i32, %arg1: i32) -> (i32, i32) {
    %c0_i32 = arith.constant 0 : i32
    return %arg1, %arg0 : i32, i32
  }
  func.func @transform_2(%arg0: i32, %arg1: i32) -> (i32, i32) {
    %c0_i32 = arith.constant 0 : i32
    %c0_i32_0 = arith.constant 0 : i32
    return %c0_i32, %arg0 : i32, i32
  }
  func.func @transform_3(%arg0: i32, %arg1: i32) -> (i32, i32) {
    %c0_i32 = arith.constant 0 : i32
    %c0_i32_0 = arith.constant 0 : i32
    return %c0_i32, %arg0 : i32, i32
  }
}

</mosaic_0001>

<bundles_post_ra>
// kernel: discriminator2_pallas.3
= control target key start
LH: loop header
LB: loop body
LE: loop exit
PB: predicated region body
PF: predicated region fallthrough
CT: control target
= control target key end

     0   :  { %v4685_v42 = vmov 0.0   ;;  %vm4686_vm0 = vmmov 0   ;;  %vm1703_vm1 = vcmask 523264   ;;  %vm2838_vm15 = vcmask 1041408   ;;  %s5892_s1 = inlined_call_operand.vmem [shape: bf16[1600,128], index: 1, kind: input, shape index: {}]   ;;  %s5893_s0 = inlined_call_operand.vmem [shape: bf16[162,1600], index: 0, kind: input, shape index: {}]   ;;  %s5894_s2 = inlined_call_operand.vmem [shape: f32[1,128], index: 2, kind: input, shape index: {}]   ;;  %s5895_s3 = inlined_call_operand.vmem [shape: bf16[162,128], index: 3, kind: output, shape index: {}]  }
   0x1   :  { %v4378_v0 = vld [vmem:[%s5892_s1 + $0x40] sm:$0xff]   ;;  %v4380_v2 = vld [vmem:[%s5892_s1 + $0x48] sm:$0xff]   ;;  %v4382_v4 = vld [vmem:[%s5892_s1 + $0x50] sm:$0xff]   ;;  %39 = vst [vmem:[#allocation2 + $0xa0] sm:$0x3] %v4685_v42 }
   0x2   :  { %v4379_v1 = vld [vmem:[%s5892_s1] sm:$0xff]   ;;  %3801 = vmatprep.subr.bf16.mxu0 %v4378_v0  ;;  %4360 = vmatprep.subr.bf16.mxu1 %v4378_v0  ;;  %v4381_v3 = vld [vmem:[%s5892_s1 + $0x8] sm:$0xff]   ;;  %v4383_v5 = vld [vmem:[%s5892_s1 + $0x10] sm:$0xff]  }
   0x3   :  { %3802 = vmatpush3.bf16.msra.mxu0 %v4379_v1  ;;  %4368 = vmatpush3.bf16.msra.mxu1 %v4379_v1  ;;  %v4384_v6 = vld [vmem:[%s5892_s1 + $0x58] sm:$0xff]   ;;  %v4386_v8 = vld [vmem:[%s5892_s1 + $0x60] sm:$0xff]   ;;  %v4388_v10 = vld [vmem:[%s5892_s1 + $0x68] sm:$0xff]  }
   0x4   :  { %3803 = vmatprep.subr.bf16.mxu0 %v4380_v2  ;;  %4361 = vmatprep.subr.bf16.mxu1 %v4380_v2  ;;  %v4385_v7 = vld [vmem:[%s5892_s1 + $0x18] sm:$0xff]   ;;  %v4387_v9 = vld [vmem:[%s5892_s1 + $0x20] sm:$0xff]   ;;  %v4399_v12 = vld [vmem:[%s5893_s0 + $0x274] ss:$52 sps:$4 sm:$0xff]  }
   0x5   :  { %v4396_v11 = vld [vmem:[%s5893_s0 + $0x4] ss:$52 sps:$4 sm:$0xff]   ;;  %v4389_v13 = vld [vmem:[%s5892_s1 + $0x28] sm:$0xff]   ;;  %v4390_v14 = vld [vmem:[%s5892_s1 + $0x70] sm:$0xff]   ;;  %1817 = vmatprep.mubr.bf16.mxu1 %v4399_v12 }
   0x6   :  { %1769 = vmatprep.mubr.bf16.mxu0 %v4396_v11  ;;  %v4391_v15 = vld [vmem:[%s5892_s1 + $0x30] sm:$0xff]   ;;  %v4392_v16 = vld [vmem:[%s5892_s1 + $0x78] sm:$0xff]   ;;  %v4400_v18 = vld [vmem:[%s5892_s1 + $0x140] sm:$0xff]  }
   0x7   :  { %3804 = vmatpush3.bf16.msra.mxu0 %v4381_v3  ;;  %4369 = vmatpush3.bf16.msra.mxu1 %v4381_v3  ;;  %v4393_v17 = vld [vmem:[%s5892_s1 + $0x38] sm:$0xff]   ;;  %v4394_v19 = vld [vmem:[%s5893_s0] ss:$52 sps:$4 sm:$0xff]   ;;  %v4397_v20 = vld [vmem:[%s5893_s0 + $0x270] ss:$52 sps:$4 sm:$0xff]  }
   0x8   :  { %3805 = vmatprep.subr.bf16.mxu0 %v4382_v4  ;;  %4362 = vmatprep.subr.bf16.mxu1 %v4382_v4  ;;  %v4402_v21 = vld [vmem:[%s5892_s1 + $0xc0] sm:$0xff]   ;;  %v4404_v24 = vld [vmem:[%s5892_s1 + $0x148] sm:$0xff]   ;;  %v4407_v26 = vld [vmem:[%s5893_s0 + $0x2dc] ss:$52 sps:$4 sm:$0xff]  }
   0x9   :  { %v4401_v22 = vld [vmem:[%s5892_s1 + $0x100] sm:$0xff]   ;;  %v4412_v27 = vld [vmem:[%s5892_s1 + $0xc8] sm:$0xff]   ;;  %v4414_v30 = vld [vmem:[%s5892_s1 + $0x150] sm:$0xff]  }
   0xa   :  { %v4403_v23 = vld [vmem:[%s5892_s1 + $0x80] sm:$0xff]   ;;  %v4409_v28 = vld [vmem:[%s5892_s1 + $0x108] sm:$0xff]   ;;  %v4415_v33 = vld [vmem:[%s5892_s1 + $0xd0] sm:$0xff]  }
   0xb   :  { %3806 = vmatpush3.bf16.msra.mxu0 %v4383_v5  ;;  %4370 = vmatpush3.bf16.msra.mxu1 %v4383_v5  ;;  %v4405_v25 = vld [vmem:[%s5893_s0 + $0x6c] ss:$52 sps:$4 sm:$0xff]   ;;  %v4410_v31 = vld [vmem:[%s5893_s0 + $0x68] ss:$52 sps:$4 sm:$0xff]   ;;  %v4416_v34 = vld [vmem:[%s5892_s1 + $0x110] sm:$0xff]  }
   0xc   :  { %3807 = vmatprep.subr.bf16.mxu0 %v4384_v6  ;;  %4363 = vmatprep.subr.bf16.mxu1 %v4384_v6  ;;  %v4413_v29 = vld [vmem:[%s5892_s1 + $0x88] sm:$0xff]   ;;  %v4417_v35 = vld [vmem:[%s5892_s1 + $0x90] sm:$0xff]   ;;  %v4420_v37 = vld [vmem:[%s5893_s0 + $0x344] ss:$52 sps:$4 sm:$0xff]  }
   0xd   :  { %v4411_v32 = vld [vmem:[%s5893_s0 + $0x2d8] ss:$52 sps:$4 sm:$0xff]   ;;  %v4418_v36 = vld [vmem:[%s5893_s0 + $0xd4] ss:$52 sps:$4 sm:$0xff]   ;;  %v4422_v43 = vld [vmem:[%s5893_s0 + $0xd0] ss:$52 sps:$4 sm:$0xff]  }
   0xe   :  { %v4424_v38 = vld [vmem:[%s5892_s1 + $0xd8] sm:$0xff]   ;;  %v4423_v44 = vld [vmem:[%s5893_s0 + $0x340] ss:$52 sps:$4 sm:$0xff]   ;;  %v4438_v51 = vld [vmem:[%s5892_s1 + $0xe8] sm:$0xff]  }
   0xf   :  { %3808 = vmatpush3.bf16.msra.mxu0 %v4385_v7  ;;  %4371 = vmatpush3.bf16.msra.mxu1 %v4385_v7  ;;  %v4425_v39 = vld [vmem:[%s5892_s1 + $0x158] sm:$0xff]   ;;  %v4432_v45 = vld [vmem:[%s5892_s1 + $0xe0] sm:$0xff]   ;;  %v4440_v52 = vld [vmem:[%s5892_s1 + $0x168] sm:$0xff]  }
  0x10   :  { %3809 = vmatprep.subr.bf16.mxu0 %v4386_v8  ;;  %4364 = vmatprep.subr.bf16.mxu1 %v4386_v8  ;;  %v4426_v40 = vld [vmem:[%s5892_s1 + $0x98] sm:$0xff]   ;;  %v4430_v47 = vld [vmem:[%s5893_s0 + $0x3ac] ss:$52 sps:$4 sm:$0xff]   ;;  %v201_v54 = vld [vmem:[%s5893_s0 + $0x410] sm:$0x11] }
  0x11   :  { %v4427_v41 = vld [vmem:[%s5892_s1 + $0x118] sm:$0xff]   ;;  %v4436_v48 = vld [vmem:[%s5892_s1 + $0x160] sm:$0xff]   ;;  %v4439_v53 = vld [vmem:[%s5892_s1 + $0xa8] sm:$0xff]   ;;  %v3576_v60 = vcombine.high %v201_v54, %v201_v54  ;;  %v3575_v6 = vcombine.low %v201_v54, %v201_v54 }
  0x12   :  { %v4428_v46 = vld [vmem:[%s5893_s0 + $0x13c] ss:$52 sps:$4 sm:$0xff]   ;;  %v4435_v49 = vld [vmem:[%s5892_s1 + $0xa0] sm:$0xff]   ;;  %v4433_v55 = vld [vmem:[%s5893_s0 + $0x138] ss:$52 sps:$4 sm:$0xff]  }
  0x13   :  { %3810 = vmatpush3.bf16.msra.mxu0 %v4387_v9  ;;  %4372 = vmatpush3.bf16.msra.mxu1 %v4387_v9  ;;  %v4437_v50 = vld [vmem:[%s5892_s1 + $0x120] sm:$0xff]   ;;  %v4434_v56 = vld [vmem:[%s5893_s0 + $0x3a8] ss:$52 sps:$4 sm:$0xff]   ;;  %v4447_v58 = vld [vmem:[%s5892_s1 + $0xf0] sm:$0xff]  }
  0x14   :  { %3811 = vmatprep.subr.bf16.mxu0 %v4388_v10  ;;  %4365 = vmatprep.subr.bf16.mxu1 %v4388_v10  ;;  %v4444_v57 = vld [vmem:[%s5892_s1 + $0x128] sm:$0xff]   ;;  %v4441_v59 = vld [vmem:[%s5893_s0 + $0x1a4] ss:$52 sps:$4 sm:$0xff]   ;;  %v4448_v61 = vld [vmem:[%s5892_s1 + $0xb0] sm:$0xff]  }
  0x15   :  { %v4450_v62 = vld [vmem:[%s5892_s1 + $0x170] sm:$0xff]   ;;  %v4449_v63 = vld [vmem:[%s5892_s1 + $0xf8] sm:$0xff]   ;;  %v4453_v3 = vld [vmem:[%s5893_s0 + $0x20c] ss:$52 sps:$4 sm:$0xff]  }
  0x16   :  { %v4452_v0 = vld [vmem:[%s5892_s1 + $0x130] sm:$0xff]   ;;  %v4451_v2 = vld [vmem:[%s5892_s1 + $0xb8] sm:$0xff]   ;;  %v4457_v4 = vld [vmem:[%s5893_s0 + $0xc] ss:$52 sps:$4 sm:$0xff]  }
  0x17   :  { %3812 = vmatpush3.bf16.msra.mxu0 %v4389_v13  ;;  %4373 = vmatpush3.bf16.msra.mxu1 %v4389_v13  ;;  %v4445_v1 = vld [vmem:[%s5893_s0 + $0x1a0] ss:$52 sps:$4 sm:$0xff]   ;;  %v4459_v5 = vld [vmem:[%s5892_s1 + $0x178] sm:$0xff]   ;;  %v4532_v54 = vld [vmem:[%s5892_s1 + $0x228] sm:$0xff]  }
  0x18   :  { %3813 = vmatprep.subr.bf16.mxu0 %v4390_v14  ;;  %4366 = vmatprep.subr.bf16.mxu1 %v4390_v14  ;;  %v4460_v7 = vld [vmem:[%s5892_s1 + $0x138] sm:$0xff]   ;;  %v4461_v8 = vld [vmem:[%s5892_s1 + $0x1c0] sm:$0xff]   ;;  %v4463_v13 = vld [vmem:[%s5893_s0 + $0x74] ss:$52 sps:$4 sm:$0xff]  }
  0x19   :  { %v4455_v9 = vld [vmem:[%s5893_s0 + $0x8] ss:$52 sps:$4 sm:$0xff]   ;;  %v4469_v11 = vld [vmem:[%s5892_s1 + $0x240] sm:$0xff]  }
  0x1a   :  { %v4458_v10 = vld [vmem:[%s5893_s0 + $0x208] ss:$52 sps:$4 sm:$0xff]   ;;  %v4462_v12 = vld [vmem:[%s5892_s1 + $0x180] sm:$0xff]  }
  0x1b   :  { %3814 = vmatpush3.bf16.msra.mxu0 %v4391_v15  ;;  %4374 = vmatpush3.bf16.msra.mxu1 %v4391_v15  ;;  %v4467_v14 = vld [vmem:[%s5893_s0 + $0x14] ss:$52 sps:$4 sm:$0xff]  }
  0x1c   :  { %3815 = vmatprep.subr.bf16.mxu0 %v4392_v16  ;;  %4367 = vmatprep.subr.bf16.mxu1 %v4392_v16  ;;  %v4471_v15 = vld [vmem:[%s5892_s1 + $0x1c8] sm:$0xff]  }
  0x1d   :  { %v4476_v16 = vld [vmem:[%s5892_s1 + $0x188] sm:$0xff]  }
  0x1f   :  { %3816 = vmatpush3.bf16.msra.mxu0 %v4393_v17  ;;  %4375 = vmatpush3.bf16.msra.mxu1 %v4393_v17  ;;  %v4465_v17 = vld [vmem:[%s5893_s0 + $0x10] ss:$52 sps:$4 sm:$0xff]  }
  0x20   :  { %3965 = vmatprep.subr.bf16.mxu0 %v4400_v18  ;;  %3883 = vmatprep.subr.bf16.mxu1 %v4402_v21  ;;  %v4468_v18 = vld [vmem:[%s5893_s0 + $0x70] ss:$52 sps:$4 sm:$0xff]  }
  0x21   :  { %v4474_v21 = vld [vmem:[%s5893_s0 + $0x7c] ss:$52 sps:$4 sm:$0xff]  }
  0x22   :  { %1770 = vmatmul.mubr.bf16.vlgmr.msra.gmra.mrb[0].mxu0 %v4394_v19  ;;  %1818 = vmatmul.mubr.bf16.vlgmr.msra.gmra.mrb[0].mxu1 %v4397_v20  ;;  %v4470_v19 = vld [vmem:[%s5892_s1 + $0x200] sm:$0xff]   ;;  %v4472_v20 = vld [vmem:[%s5893_s0 + $0xdc] ss:$52 sps:$4 sm:$0xff]  }
  0x23   :  { %3966 = vmatpush3.bf16.msra.mxu0 %v4401_v22  ;;  %3884 = vmatpush3.bf16.msra.mxu1 %v4403_v23  ;;  %v4487_v22 = vld [vmem:[%s5892_s1 + $0x1d0] sm:$0xff]   ;;  %v4479_v23 = vld [vmem:[%s5892_s1 + $0x248] sm:$0xff]  }
  0x24   :  { %3967 = vmatprep.subr.bf16.mxu0 %v4404_v24  ;;  %1777 = vmatprep.mubr.bf16.mxu0 %v4405_v25  ;;  %v4488_v24 = vld [vmem:[%s5892_s1 + $0x190] sm:$0xff]   ;;  %v4480_v25 = vld [vmem:[%s5892_s1 + $0x208] sm:$0xff]  }
  0x25   :  { %1825 = vmatprep.mubr.bf16.mxu1 %v4407_v26  ;;  %3885 = vmatprep.subr.bf16.mxu1 %v4412_v27  ;;  %v4477_v26 = vld [vmem:[%s5893_s0 + $0xd8] ss:$52 sps:$4 sm:$0xff]  }
  0x26   :  { %v4478_v27 = vld [vmem:[%s5893_s0 + $0x78] ss:$52 sps:$4 sm:$0xff]  }
  0x27   :  { %3968 = vmatpush3.bf16.msra.mxu0 %v4409_v28  ;;  %3886 = vmatpush3.bf16.msra.mxu1 %v4413_v29  ;;  %v4489_v28 = vld [vmem:[%s5892_s1 + $0x250] sm:$0xff]   ;;  %v4481_v29 = vld [vmem:[%s5893_s0 + $0x144] ss:$52 sps:$4 sm:$0xff]  }
  0x28   :  { %3969 = vmatprep.subr.bf16.mxu0 %v4414_v30  ;;  %3887 = vmatprep.subr.bf16.mxu1 %v4415_v33  ;;  %v4483_v30 = vld [vmem:[%s5893_s0 + $0xe4] ss:$52 sps:$4 sm:$0xff]   ;;  %v4494_v33 = vld [vmem:[%s5892_s1 + $0x210] sm:$0xff]  }
  0x2a   :  { %1778 = vmatmul.mubr.bf16.gmra.mrb[4].mxu0 %v4410_v31  ;;  %1826 = vmatmul.mubr.bf16.gmra.mrb[4].mxu1 %v4411_v32  ;;  %v4497_v31 = vld [vmem:[%s5892_s1 + $0x1d8] sm:$0xff]  }
  0x2b   :  { %3970 = vmatpush3.bf16.msra.mxu0 %v4416_v34  ;;  %3888 = vmatpush3.bf16.msra.mxu1 %v4417_v35  ;;  %v4498_v32 = vld [vmem:[%s5892_s1 + $0x198] sm:$0xff]  }
  0x2c   :  { %1785 = vmatprep.mubr.bf16.mxu0 %v4418_v36  ;;  %1833 = vmatprep.mubr.bf16.mxu1 %v4420_v37  ;;  %v4505_v34 = vld [vmem:[%s5892_s1 + $0x258] sm:$0xff]   ;;  %v4485_v36 = vld [vmem:[%s5893_s0 + $0x140] ss:$52 sps:$4 sm:$0xff]  }
  0x2d   :  { %3889 = vmatprep.subr.bf16.mxu1 %v4424_v38  ;;  %3971 = vmatprep.subr.bf16.mxu0 %v4425_v39  ;;  %v4506_v35 = vld [vmem:[%s5892_s1 + $0x218] sm:$0xff]   ;;  %v4486_v37 = vld [vmem:[%s5893_s0 + $0xe0] ss:$52 sps:$4 sm:$0xff]  }
  0x2e   :  { %v4490_v38 = vld [vmem:[%s5893_s0 + $0x1ac] ss:$52 sps:$4 sm:$0xff]  }
  0x2f   :  { %3890 = vmatpush3.bf16.msra.mxu1 %v4426_v40  ;;  %3972 = vmatpush3.bf16.msra.mxu0 %v4427_v41  ;;  %v4492_v39 = vld [vmem:[%s5893_s0 + $0x14c] ss:$52 sps:$4 sm:$0xff]  }
  0x30   :  { %3891 = vmatprep.subr.bf16.mxu1 %v4432_v45  ;;  %3973 = vmatprep.subr.bf16.mxu0 %v4436_v48  ;;  %v4511_v40 = vld [vmem:[%s5892_s1 + $0x1e0] sm:$0xff]   ;;  %v4495_v45 = vld [vmem:[%s5893_s0 + $0x1a8] ss:$52 sps:$4 sm:$0xff]  }
  0x31   :  { %v4514_v41 = vld [vmem:[%s5892_s1 + $0x1a0] sm:$0xff]   ;;  %v4501_v48 = vld [vmem:[%s5893_s0 + $0x1b4] ss:$52 sps:$4 sm:$0xff]  }
  0x32   :  { %1786 = vmatmul.mubr.bf16.gmra.mrb[8].mxu0 %v4422_v43  ;;  %1834 = vmatmul.mubr.bf16.gmra.mrb[8].mxu1 %v4423_v44  ;;  %v4515_v43 = vld [vmem:[%s5892_s1 + $0x260] sm:$0xff]  }
  0x33   :  { %1793 = vmatprep.mubr.bf16.mxu0 %v4428_v46  ;;  %1841 = vmatprep.mubr.bf16.mxu1 %v4430_v47  ;;  %v4516_v44 = vld [vmem:[%s5892_s1 + $0x220] sm:$0xff]   ;;  %v4496_v46 = vld [vmem:[%s5893_s0 + $0x148] ss:$52 sps:$4 sm:$0xff]  }
  0x34   :  { %3892 = vmatpush3.bf16.msra.mxu1 %v4435_v49  ;;  %3974 = vmatpush3.bf16.msra.mxu0 %v4437_v50  ;;  %v4499_v47 = vld [vmem:[%s5893_s0 + $0x214] ss:$52 sps:$4 sm:$0xff]  }
  0x35   :  { %3893 = vmatprep.subr.bf16.mxu1 %v4438_v51  ;;  %3975 = vmatprep.subr.bf16.mxu0 %v4440_v52  ;;  %v4523_v49 = vld [vmem:[%s5892_s1 + $0x1e8] sm:$0xff]   ;;  %v4503_v52 = vld [vmem:[%s5893_s0 + $0x210] ss:$52 sps:$4 sm:$0xff]  }
  0x36   :  { %v4524_v50 = vld [vmem:[%s5892_s1 + $0x1a8] sm:$0xff]  }
  0x37   :  { %v4529_v51 = vld [vmem:[%s5892_s1 + $0x268] sm:$0xff]  }
  0x38   :  { %3894 = vmatpush3.bf16.msra.mxu1 %v4439_v53  ;;  %3976 = vmatpush3.bf16.msra.mxu0 %v4444_v57  ;;  %v4504_v53 = vld [vmem:[%s5893_s0 + $0x1b0] ss:$52 sps:$4 sm:$0xff]  }
  0x39   :  { %3895 = vmatprep.subr.bf16.mxu1 %v4447_v58  ;;  %3977 = vmatprep.subr.bf16.mxu0 %v4450_v62  ;;  %v4534_v57 = vld [vmem:[%s5892_s1 + $0x1b0] sm:$0xff]   ;;  %v4513_v62 = vld [vmem:[%s5893_s0 + $0x218] ss:$52 sps:$4 sm:$0xff]  }
  0x3a   :  { %1794 = vmatmul.mubr.bf16.gmra.mrb[12].mxu0 %v4433_v55  ;;  %1842 = vmatmul.mubr.bf16.gmra.mrb[12].mxu1 %v4434_v56  ;;  %v4507_v55 = vld [vmem:[%s5893_s0 + $0x27c] ss:$52 sps:$4 sm:$0xff]  }
  0x3b   :  { %1801 = vmatprep.mubr.bf16.mxu0 %v4441_v59  ;;  %1849 = vmatprep.mubr.bf16.mxu1 %v3576_v60  ;;  %v4533_v56 = vld [vmem:[%s5892_s1 + $0x1f0] sm:$0xff]  }
  0x3c   :  { %3896 = vmatpush3.bf16.msra.mxu1 %v4448_v61  ;;  %3978 = vmatpush3.bf16.msra.mxu0 %v4452_v0  ;;  %v4509_v58 = vld [vmem:[%s5893_s0 + $0x21c] ss:$52 sps:$4 sm:$0xff]   ;;  %v4512_v61 = vld [vmem:[%s5893_s0 + $0x278] ss:$52 sps:$4 sm:$0xff]  }
  0x3d   :  { %3897 = vmatprep.subr.bf16.mxu1 %v4449_v63  ;;  %3979 = vmatprep.subr.bf16.mxu0 %v4459_v5  ;;  %v4541_v59 = vld [vmem:[%s5892_s1 + $0x270] sm:$0xff]   ;;  %v4517_v63 = vld [vmem:[%s5893_s0 + $0x2e4] ss:$52 sps:$4 sm:$0xff]  }
  0x3e   :  { %v4542_v60 = vld [vmem:[%s5892_s1 + $0x230] sm:$0xff]   ;;  %v4519_v0 = vld [vmem:[%s5893_s0 + $0x284] ss:$52 sps:$4 sm:$0xff]  }
  0x3f   :  { %v4557_v5 = vld [vmem:[%s5892_s1 + $0x2c0] sm:$0xff]  }
  0x40   :  { %3898 = vmatpush3.bf16.msra.mxu1 %v4451_v2  ;;  %3980 = vmatpush3.bf16.msra.mxu0 %v4460_v7  ;;  %v4549_v2 = vld [vmem:[%s5892_s1 + $0x1b8] sm:$0xff]   ;;  %v4522_v7 = vld [vmem:[%s5893_s0 + $0x280] ss:$52 sps:$4 sm:$0xff]  }
  0x41   :  { %4047 = vmatprep.subr.bf16.mxu1 %v4461_v8  ;;  %4129 = vmatprep.subr.bf16.mxu0 %v4469_v11  ;;  %v4525_v8 = vld [vmem:[%s5893_s0 + $0x34c] ss:$52 sps:$4 sm:$0xff]   ;;  %v4531_v11 = vld [vmem:[%s5893_s0 + $0x2e8] ss:$52 sps:$4 sm:$0xff]  }
  0x42   :  { %1802 = vmatmul.mubr.bf16.gmra.mrb[16].mxu0 %v4445_v1  ;;  %1850 = vmatmul.mubr.bf16.gmra.mrb[16].mxu1 %v3575_v6  ;;  %v4548_v1 = vld [vmem:[%s5892_s1 + $0x1f8] sm:$0xff]   ;;  %v4521_v6 = vld [vmem:[%s5893_s0 + $0x2e0] ss:$52 sps:$4 sm:$0xff]  }
  0x43   :  { %1809 = vmatprep.mubr.bf16.mxu0 %v4453_v3  ;;  %1889 = vmatprep.mubr.bf16.mxu1 %v4457_v4  ;;  %v4550_v3 = vld [vmem:[%s5892_s1 + $0x278] sm:$0xff]  }
  0x44   :  { %v4551_v4 = vld [vmem:[%s5892_s1 + $0x238] sm:$0xff]  }
  0x4a   :  { %1810 = vmatmul.mubr.bf16.gmra.mrb[20].mxu0 %v4458_v10  ;;  %1890 = vmatmul.mubr.bf16.vlgmr.msra.gmra.mrb[20].mxu1 %v4455_v9  ;;  %v4527_v9 = vld [vmem:[%s5893_s0 + $0x2ec] ss:$52 sps:$4 sm:$0xff]   ;;  %v4530_v10 = vld [vmem:[%s5893_s0 + $0x348] ss:$52 sps:$4 sm:$0xff]  }
  0x4b   :  { %4048 = vmatpush3.bf16.msra.mxu1 %v4462_v12  ;;  %1897 = vmatprep.mubr.bf16.mxu1 %v4463_v13  ;;  %v4535_v12 = vld [vmem:[%s5893_s0 + $0x3b4] ss:$52 sps:$4 sm:$0xff]  }
  0x4c   :  { %2009 = vmatprep.mubr.bf16.mxu0 %v4467_v14  ;;  %4049 = vmatprep.subr.bf16.mxu1 %v4471_v15  ;;  %v4537_v13 = vld [vmem:[%s5893_s0 + $0x354] ss:$52 sps:$4 sm:$0xff]   ;;  %v202_v14 = vld [vmem:[%s5893_s0 + $0x418] sm:$0x11]  ;;  %v4539_v15 = vld [vmem:[%s5893_s0 + $0x3b0] ss:$52 sps:$4 sm:$0xff]  }
  0x4f   :  { %4050 = vmatpush3.bf16.msra.mxu1 %v4476_v16  ;;  %v4540_v16 = vld [vmem:[%s5893_s0 + $0x350] ss:$52 sps:$4 sm:$0xff]  }
  0x50   :  { %4051 = vmatprep.subr.bf16.mxu1 %v4487_v22 }
  0x52   :  { %1898 = vmatmul.mubr.bf16.gmra.mrb[24].mxu1 %v4468_v18  ;;  %2010 = vmatmul.mubr.bf16.vlgmr.msra.gmra.mrb[24].mxu0 %v4465_v17  ;;  %v3578_v17 = vcombine.high %v202_v14, %v202_v14  ;;  %v4544_v18 = vld [vmem:[%s5893_s0 + $0x3bc] ss:$52 sps:$4 sm:$0xff]  }
  0x53   :  { %4130 = vmatpush3.bf16.msra.mxu0 %v4470_v19  ;;  %1905 = vmatprep.mubr.bf16.mxu1 %v4472_v20  ;;  %v203_v19 = vld [vmem:[%s5893_s0 + $0x420] sm:$0x11]  ;;  %v3577_v20 = vcombine.low %v202_v14, %v202_v14 }
  0x54   :  { %2017 = vmatprep.mubr.bf16.mxu0 %v4474_v21  ;;  %4131 = vmatprep.subr.bf16.mxu0 %v4479_v23  ;;  %v4547_v21 = vld [vmem:[%s5893_s0 + $0x3b8] ss:$52 sps:$4 sm:$0xff]   ;;  %v3580_v22 = vcombine.high %v203_v19, %v203_v19  ;;  %v4555_v23 = vld [vmem:[%s5893_s0 + $0x1c] ss:$52 sps:$4 sm:$0xff]  }
  0x55   :  { %4052 = vmatpush3.bf16.msra.mxu1 %v4488_v24  ;;  %v4553_v24 = vld [vmem:[%s5893_s0 + $0x18] ss:$52 sps:$4 sm:$0xff]  }
  0x56   :  { %4053 = vmatprep.subr.bf16.mxu1 %v4497_v31  ;;  %v4561_v31 = vld [vmem:[%s5893_s0 + $0x20] ss:$52 sps:$4 sm:$0xff]   ;;  %v4622_v14 = vld [vmem:[%s5893_s0 + $0x3c4] ss:$52 sps:$4 sm:$0xff]  }
  0x57   :  { %4132 = vmatpush3.bf16.msra.mxu0 %v4480_v25  ;;  %v3579_v25 = vcombine.low %v203_v19, %v203_v19 }
  0x58   :  { %4133 = vmatprep.subr.bf16.mxu0 %v4489_v28  ;;  %v4563_v28 = vld [vmem:[%s5893_s0 + $0x24] ss:$52 sps:$4 sm:$0xff]  }
  0x59   :  { %4054 = vmatpush3.bf16.msra.mxu1 %v4498_v32  ;;  %v4580_v32 = vld [vmem:[%s5892_s1 + $0x2d0] sm:$0xff]  }
  0x5a   :  { %1906 = vmatmul.mubr.bf16.gmra.mrb[28].mxu1 %v4477_v26  ;;  %2018 = vmatmul.mubr.bf16.gmra.mrb[28].mxu0 %v4478_v27  ;;  %v4558_v26 = vld [vmem:[%s5892_s1 + $0x280] sm:$0xff]  }
  0x5b   :  { %1913 = vmatprep.mubr.bf16.mxu1 %v4481_v29  ;;  %2025 = vmatprep.mubr.bf16.mxu0 %v4483_v30  ;;  %v4559_v27 = vld [vmem:[%s5893_s0 + $0x84] ss:$52 sps:$4 sm:$0xff]   ;;  %v4566_v29 = vld [vmem:[%s5892_s1 + $0x2c8] sm:$0xff]  }
  0x5c   :  { %4134 = vmatpush3.bf16.msra.mxu0 %v4494_v33  ;;  %4055 = vmatprep.subr.bf16.mxu1 %v4511_v40  ;;  %v4571_v30 = vld [vmem:[%s5892_s1 + $0x288] sm:$0xff]   ;;  %v4564_v33 = vld [vmem:[%s5893_s0 + $0x80] ss:$52 sps:$4 sm:$0xff]  }
  0x5d   :  { %4135 = vmatprep.subr.bf16.mxu0 %v4505_v34  ;;  %4056 = vmatpush3.bf16.msra.mxu1 %v4514_v41  ;;  %v4565_v34 = vld [vmem:[%s5892_s1 + $0x300] sm:$0xff]   ;;  %v4572_v40 = vld [vmem:[%s5893_s0 + $0xe8] ss:$52 sps:$4 sm:$0xff]  }
  0x5e   :  { %4057 = vmatprep.subr.bf16.mxu1 %v4523_v49  ;;  %v4573_v41 = vld [vmem:[%s5893_s0 + $0x88] ss:$52 sps:$4 sm:$0xff]  }
  0x5f   :  { %v4612_v49 = vld [vmem:[%s5892_s1 + $0x2e8] sm:$0xff]  }
  0x60   :  { %4136 = vmatpush3.bf16.msra.mxu0 %v4506_v35  ;;  %v4567_v35 = vld [vmem:[%s5893_s0 + $0xec] ss:$52 sps:$4 sm:$0xff]  }
  0x61   :  { %4137 = vmatprep.subr.bf16.mxu0 %v4515_v43  ;;  %4058 = vmatpush3.bf16.msra.mxu1 %v4524_v50  ;;  %v4590_v43 = vld [vmem:[%s5892_s1 + $0x298] sm:$0xff]   ;;  %v4613_v50 = vld [vmem:[%s5892_s1 + $0x2a8] sm:$0xff]  }
  0x62   :  { %1914 = vmatmul.mubr.bf16.gmra.mrb[32].mxu1 %v4485_v36  ;;  %2026 = vmatmul.mubr.bf16.gmra.mrb[32].mxu0 %v4486_v37  ;;  %v4569_v36 = vld [vmem:[%s5893_s0 + $0x8c] ss:$52 sps:$4 sm:$0xff]   ;;  %v4581_v37 = vld [vmem:[%s5892_s1 + $0x290] sm:$0xff]  }
  0x63   :  { %1921 = vmatprep.mubr.bf16.mxu1 %v4490_v38  ;;  %2033 = vmatprep.mubr.bf16.mxu0 %v4492_v39  ;;  %v4589_v38 = vld [vmem:[%s5892_s1 + $0x2d8] sm:$0xff]   ;;  %v4586_v39 = vld [vmem:[%s5892_s1 + $0x308] sm:$0xff]  }
  0x64   :  { %4138 = vmatpush3.bf16.msra.mxu0 %v4516_v44  ;;  %4059 = vmatprep.subr.bf16.mxu1 %v4533_v56  ;;  %v4601_v44 = vld [vmem:[%s5892_s1 + $0x2e0] sm:$0xff]   ;;  %v4584_v56 = vld [vmem:[%s5893_s0 + $0x15c] ss:$52 sps:$4 sm:$0xff]  }
  0x65   :  { %4139 = vmatprep.subr.bf16.mxu0 %v4529_v51  ;;  %4060 = vmatpush3.bf16.msra.mxu1 %v4534_v57  ;;  %v4578_v51 = vld [vmem:[%s5893_s0 + $0x150] ss:$52 sps:$4 sm:$0xff]  }
  0x66   :  { %4061 = vmatprep.subr.bf16.mxu1 %v4548_v1  ;;  %v4621_v57 = vld [vmem:[%s5892_s1 + $0x2b0] sm:$0xff]  }
  0x67   :  { %v4596_v1 = vld [vmem:[%s5893_s0 + $0x1c0] ss:$52 sps:$4 sm:$0xff]  }
  0x68   :  { %4140 = vmatpush3.bf16.msra.mxu0 %v4532_v54  ;;  %v4579_v54 = vld [vmem:[%s5893_s0 + $0xf0] ss:$52 sps:$4 sm:$0xff]  }
  0x69   :  { %4141 = vmatprep.subr.bf16.mxu0 %v4541_v59  ;;  %4062 = vmatpush3.bf16.msra.mxu1 %v4549_v2  ;;  %v4587_v59 = vld [vmem:[%s5893_s0 + $0x1b8] ss:$52 sps:$4 sm:$0xff]  }
  0x6a   :  { %1922 = vmatmul.mubr.bf16.gmra.mrb[36].mxu1 %v4495_v45  ;;  %2034 = vmatmul.mubr.bf16.gmra.mrb[36].mxu0 %v4496_v46  ;;  %v4574_v45 = vld [vmem:[%s5893_s0 + $0x154] ss:$52 sps:$4 sm:$0xff]   ;;  %v4597_v2 = vld [vmem:[%s5893_s0 + $0x28c] ss:$52 sps:$4 sm:$0xff]  }
  0x6b   :  { %1929 = vmatprep.mubr.bf16.mxu1 %v4499_v47  ;;  %2041 = vmatprep.mubr.bf16.mxu0 %v4501_v48  ;;  %v4576_v46 = vld [vmem:[%s5893_s0 + $0xf4] ss:$52 sps:$4 sm:$0xff]   ;;  %v4604_v47 = vld [vmem:[%s5892_s1 + $0x2a0] sm:$0xff]  }
  0x6c   :  { %4142 = vmatpush3.bf16.msra.mxu0 %v4542_v60  ;;  %4211 = vmatprep.subr.bf16.mxu1 %v4557_v5  ;;  %v4605_v48 = vld [vmem:[%s5892_s1 + $0x310] sm:$0xff]   ;;  %v4635_v60 = vld [vmem:[%s5892_s1 + $0x2b8] sm:$0xff]  }
  0x6d   :  { %4143 = vmatprep.subr.bf16.mxu0 %v4550_v3  ;;  %v4599_v3 = vld [vmem:[%s5893_s0 + $0x22c] ss:$52 sps:$4 sm:$0xff]   ;;  %v4603_v5 = vld [vmem:[%s5893_s0 + $0x228] ss:$52 sps:$4 sm:$0xff]  }
  0x70   :  { %4144 = vmatpush3.bf16.msra.mxu0 %v4551_v4  ;;  %v4602_v4 = vld [vmem:[%s5893_s0 + $0x288] ss:$52 sps:$4 sm:$0xff]  }
  0x71   :  { %4308 = vmatprep.subr.bf16.mxu0 %v4685_v42 }
  0x72   :  { %1930 = vmatmul.mubr.bf16.gmra.mrb[40].mxu1 %v4503_v52  ;;  %2042 = vmatmul.mubr.bf16.gmra.mrb[40].mxu0 %v4504_v53  ;;  %v4628_v52 = vld [vmem:[%s5892_s1 + $0x318] sm:$0xff]   ;;  %v4620_v53 = vld [vmem:[%s5892_s1 + $0x2f0] sm:$0xff]  }
  0x73   :  { %1937 = vmatprep.mubr.bf16.mxu1 %v4507_v55  ;;  %2049 = vmatprep.mubr.bf16.mxu0 %v4509_v58  ;;  %v4582_v55 = vld [vmem:[%s5893_s0 + $0x1bc] ss:$52 sps:$4 sm:$0xff]  }
  0x74   :  { %v4634_v58 = vld [vmem:[%s5892_s1 + $0x2f8] sm:$0xff]  }
  0x7a   :  { %1938 = vmatmul.mubr.bf16.gmra.mrb[44].mxu1 %v4512_v61  ;;  %2050 = vmatmul.mubr.bf16.gmra.mrb[44].mxu0 %v4513_v62  ;;  %v4588_v61 = vld [vmem:[%s5893_s0 + $0x158] ss:$52 sps:$4 sm:$0xff]  }
  0x7b   :  { %1945 = vmatprep.mubr.bf16.mxu1 %v4517_v63  ;;  %2057 = vmatprep.mubr.bf16.mxu0 %v4519_v0  ;;  %v4591_v62 = vld [vmem:[%s5893_s0 + $0x224] ss:$52 sps:$4 sm:$0xff]   ;;  %v4595_v0 = vld [vmem:[%s5893_s0 + $0x220] ss:$52 sps:$4 sm:$0xff]  }
  0x7c   :  { %v4593_v63 = vld [vmem:[%s5893_s0 + $0x1c4] ss:$52 sps:$4 sm:$0xff]  }
  0x82   :  { %1946 = vmatmul.mubr.bf16.gmra.mrb[48].mxu1 %v4521_v6  ;;  %2058 = vmatmul.mubr.bf16.gmra.mrb[48].mxu0 %v4522_v7  ;;  %v4606_v6 = vld [vmem:[%s5893_s0 + $0x2f4] ss:$52 sps:$4 sm:$0xff]  }
  0x83   :  { %1953 = vmatprep.mubr.bf16.mxu1 %v4525_v8  ;;  %2065 = vmatprep.mubr.bf16.mxu0 %v4527_v9  ;;  %v4608_v7 = vld [vmem:[%s5893_s0 + $0x294] ss:$52 sps:$4 sm:$0xff]   ;;  %v4610_v8 = vld [vmem:[%s5893_s0 + $0x2f0] ss:$52 sps:$4 sm:$0xff]  }
  0x84   :  { %v4611_v9 = vld [vmem:[%s5893_s0 + $0x290] ss:$52 sps:$4 sm:$0xff]  }
  0x8a   :  { %1954 = vmatmul.mubr.bf16.gmra.mrb[52].mxu1 %v4530_v10  ;;  %2066 = vmatmul.mubr.bf16.gmra.mrb[52].mxu0 %v4531_v11  ;;  %v4614_v10 = vld [vmem:[%s5893_s0 + $0x35c] ss:$52 sps:$4 sm:$0xff]  }
  0x8b   :  { %1961 = vmatprep.mubr.bf16.mxu1 %v4535_v12  ;;  %2073 = vmatprep.mubr.bf16.mxu0 %v4537_v13  ;;  %v4616_v11 = vld [vmem:[%s5893_s0 + $0x2fc] ss:$52 sps:$4 sm:$0xff]   ;;  %v4618_v12 = vld [vmem:[%s5893_s0 + $0x358] ss:$52 sps:$4 sm:$0xff]  }
  0x8c   :  { %v4619_v13 = vld [vmem:[%s5893_s0 + $0x2f8] ss:$52 sps:$4 sm:$0xff]  }
  0x92   :  { %1962 = vmatmul.mubr.bf16.gmra.mrb[56].mxu1 %v4539_v15  ;;  %2074 = vmatmul.mubr.bf16.gmra.mrb[56].mxu0 %v4540_v16  ;;  %v4624_v15 = vld [vmem:[%s5893_s0 + $0x364] ss:$52 sps:$4 sm:$0xff]   ;;  %v204_v16 = vld [vmem:[%s5893_s0 + $0x428] sm:$0x11] }
  0x93   :  { %1969 = vmatprep.mubr.bf16.mxu1 %v3578_v17  ;;  %2081 = vmatprep.mubr.bf16.mxu0 %v4544_v18  ;;  %v4626_v17 = vld [vmem:[%s5893_s0 + $0x3c0] ss:$52 sps:$4 sm:$0xff]   ;;  %v3582_v19 = vcombine.high %v204_v16, %v204_v16 }
  0x94   :  { %v4627_v18 = vld [vmem:[%s5893_s0 + $0x360] ss:$52 sps:$4 sm:$0xff]  }
  0x9a   :  { %1970 = vmatmul.mubr.bf16.gmra.mrb[60].mxu1 %v3577_v20  ;;  %2082 = vmatmul.mubr.bf16.gmra.mrb[60].mxu0 %v4547_v21  ;;  %v4630_v20 = vld [vmem:[%s5893_s0 + $0x3cc] ss:$52 sps:$4 sm:$0xff]   ;;  %v205_v21 = vld [vmem:[%s5893_s0 + $0x430] sm:$0x11] }
  0x9b   :  { %2089 = vmatprep.mubr.bf16.mxu0 %v3580_v22  ;;  %2129 = vmatprep.mubr.bf16.mxu1 %v4555_v23  ;;  %v3581_v22 = vcombine.low %v204_v16, %v204_v16  ;;  %v4633_v23 = vld [vmem:[%s5893_s0 + $0x3c8] ss:$52 sps:$4 sm:$0xff]  }
  0xa2   :  { %2090 = vmatmul.mubr.bf16.gmra.mrb[64].mxu0 %v3579_v25  ;;  %2130 = vmatmul.mubr.bf16.vlgmr.msra.gmra.mrb[64].mxu1 %v4553_v24  ;;  %v3584_v24 = vcombine.high %v205_v21, %v205_v21  ;;  %v4639_v25 = vld [vmem:[%s5893_s0 + $0x2c] ss:$52 sps:$4 sm:$0xff]  }
  0xa3   :  { %4212 = vmatpush3.bf16.msra.mxu1 %v4558_v26  ;;  %2137 = vmatprep.mubr.bf16.mxu1 %v4559_v27 }
  0xa4   :  { %2249 = vmatprep.mubr.bf16.mxu0 %v4563_v28  ;;  %4213 = vmatprep.subr.bf16.mxu1 %v4566_v29 }
  0xa7   :  { %4214 = vmatpush3.bf16.msra.mxu1 %v4571_v30  ;;  %v4637_v30 = vld [vmem:[%s5893_s0 + $0x28] ss:$52 sps:$4 sm:$0xff]  }
  0xa8   :  { %4215 = vmatprep.subr.bf16.mxu1 %v4580_v32 }
  0xaa   :  { %2138 = vmatmul.mubr.bf16.gmra.mrb[68].mxu1 %v4564_v33  ;;  %2250 = vmatmul.mubr.bf16.vlgmr.msra.gmra.mrb[68].mxu0 %v4561_v31  ;;  %v3583_v31 = vcombine.low %v205_v21, %v205_v21 }
  0xab   :  { %4309 = vmatpush3.bf16.msra.mxu0 %v4565_v34  ;;  %2145 = vmatprep.mubr.bf16.mxu1 %v4567_v35 }
  0xac   :  { %2257 = vmatprep.mubr.bf16.mxu0 %v4569_v36  ;;  %4216 = vmatpush3.bf16.msra.mxu1 %v4581_v37  ;;  %v4641_v36 = vld [vmem:[%s5893_s0 + $0x94] ss:$52 sps:$4 sm:$0xff]  }
  0xad   :  { %4310 = vmatprep.subr.bf16.mxu0 %v4685_v42  ;;  %4217 = vmatprep.subr.bf16.mxu1 %v4589_v38 }
  0xaf   :  { %4311 = vmatpush3.bf16.msra.mxu0 %v4586_v39 }
  0xb0   :  { %4218 = vmatpush3.bf16.msra.mxu1 %v4590_v43  ;;  %4312 = vmatprep.subr.bf16.mxu0 %v4685_v42 }
  0xb1   :  { %4219 = vmatprep.subr.bf16.mxu1 %v4601_v44 }
  0xb2   :  { %2146 = vmatmul.mubr.bf16.gmra.mrb[72].mxu1 %v4572_v40  ;;  %2258 = vmatmul.mubr.bf16.gmra.mrb[72].mxu0 %v4573_v41 }
  0xb3   :  { %2153 = vmatprep.mubr.bf16.mxu1 %v4574_v45  ;;  %2265 = vmatprep.mubr.bf16.mxu0 %v4576_v46  ;;  %v4643_v46 = vld [vmem:[%s5893_s0 + $0x90] ss:$52 sps:$4 sm:$0xff]  }
  0xb4   :  { %4220 = vmatpush3.bf16.msra.mxu1 %v4604_v47  ;;  %4313 = vmatpush3.bf16.msra.mxu0 %v4605_v48  ;;  %v4644_v47 = vld [vmem:[%s5893_s0 + $0x30] ss:$52 sps:$4 sm:$0xff]  }
  0xb5   :  { %4221 = vmatprep.subr.bf16.mxu1 %v4612_v49  ;;  %4314 = vmatprep.subr.bf16.mxu0 %v4685_v42 }
  0xb8   :  { %4222 = vmatpush3.bf16.msra.mxu1 %v4613_v50  ;;  %4315 = vmatpush3.bf16.msra.mxu0 %v4628_v52  ;;  %v4645_v52 = vld [vmem:[%s5893_s0 + $0xfc] ss:$52 sps:$4 sm:$0xff]  }
  0xb9   :  { %4223 = vmatprep.subr.bf16.mxu1 %v4620_v53 }
  0xba   :  { %2154 = vmatmul.mubr.bf16.gmra.mrb[76].mxu1 %v4578_v51  ;;  %2266 = vmatmul.mubr.bf16.gmra.mrb[76].mxu0 %v4579_v54 }
  0xbb   :  { %2161 = vmatprep.mubr.bf16.mxu1 %v4582_v55  ;;  %2273 = vmatprep.mubr.bf16.mxu0 %v4584_v56 }
  0xbc   :  { %4224 = vmatpush3.bf16.msra.mxu1 %v4621_v57 }
  0xbd   :  { %4225 = vmatprep.subr.bf16.mxu1 %v4634_v58 }
  0xc0   :  { %4226 = vmatpush3.bf16.msra.mxu1 %v4635_v60 }
  0xc2   :  { %2162 = vmatmul.mubr.bf16.gmra.mrb[80].mxu1 %v4587_v59  ;;  %2274 = vmatmul.mubr.bf16.gmra.mrb[80].mxu0 %v4588_v61  ;;  %v4647_v61 = vld [vmem:[%s5893_s0 + $0xf8] ss:$52 sps:$4 sm:$0xff]  }
  0xc3   :  { %2169 = vmatprep.mubr.bf16.mxu1 %v4591_v62  ;;  %2281 = vmatprep.mubr.bf16.mxu0 %v4593_v63  ;;  %v4648_v62 = vld [vmem:[%s5893_s0 + $0x98] ss:$52 sps:$4 sm:$0xff]  }
  0xca   :  { %2170 = vmatmul.mubr.bf16.gmra.mrb[84].mxu1 %v4595_v0  ;;  %2282 = vmatmul.mubr.bf16.gmra.mrb[84].mxu0 %v4596_v1 }
  0xcb   :  { %2177 = vmatprep.mubr.bf16.mxu1 %v4597_v2  ;;  %2289 = vmatprep.mubr.bf16.mxu0 %v4599_v3  ;;  %v4649_v3 = vld [vmem:[%s5893_s0 + $0x164] ss:$52 sps:$4 sm:$0xff]  }
  0xd2   :  { %2178 = vmatmul.mubr.bf16.gmra.mrb[88].mxu1 %v4602_v4  ;;  %2290 = vmatmul.mubr.bf16.gmra.mrb[88].mxu0 %v4603_v5 }
  0xd3   :  { %2185 = vmatprep.mubr.bf16.mxu1 %v4606_v6  ;;  %2297 = vmatprep.mubr.bf16.mxu0 %v4608_v7 }
  0xda   :  { %2186 = vmatmul.mubr.bf16.gmra.mrb[92].mxu1 %v4610_v8  ;;  %2298 = vmatmul.mubr.bf16.gmra.mrb[92].mxu0 %v4611_v9 }
  0xdb   :  { %2193 = vmatprep.mubr.bf16.mxu1 %v4614_v10  ;;  %2305 = vmatprep.mubr.bf16.mxu0 %v4616_v11 }
  0xe2   :  { %2194 = vmatmul.mubr.bf16.gmra.mrb[96].mxu1 %v4618_v12  ;;  %2306 = vmatmul.mubr.bf16.gmra.mrb[96].mxu0 %v4619_v13  ;;  %v4651_v12 = vld [vmem:[%s5893_s0 + $0x160] ss:$52 sps:$4 sm:$0xff]  }
  0xe3   :  { %2201 = vmatprep.mubr.bf16.mxu1 %v4622_v14  ;;  %2313 = vmatprep.mubr.bf16.mxu0 %v4624_v15  ;;  %v4652_v13 = vld [vmem:[%s5893_s0 + $0x100] ss:$52 sps:$4 sm:$0xff]  }
  0xea   :  { %2202 = vmatmul.mubr.bf16.gmra.mrb[100].mxu1 %v4626_v17  ;;  %2314 = vmatmul.mubr.bf16.gmra.mrb[100].mxu0 %v4627_v18  ;;  %v4653_v18 = vld [vmem:[%s5893_s0 + $0x1cc] ss:$52 sps:$4 sm:$0xff]  }
  0xeb   :  { %2209 = vmatprep.mubr.bf16.mxu1 %v3582_v19  ;;  %2321 = vmatprep.mubr.bf16.mxu0 %v4630_v20 }
  0xf2   :  { %2210 = vmatmul.mubr.bf16.gmra.mrb[104].mxu1 %v3581_v22  ;;  %2322 = vmatmul.mubr.bf16.gmra.mrb[104].mxu0 %v4633_v23 }
  0xf3   :  { %2329 = vmatprep.mubr.bf16.mxu0 %v3584_v24  ;;  %2369 = vmatprep.mubr.bf16.mxu1 %v4639_v25 }
  0xf5   :  { %v3817_v26 = vpop.f32.mrb[0].mxu0  ;;  %v3853_v27 = vpop.f32.mrb[0].mxu1 }
  0xf6   :  { %v3818_v28 = vpop.f32.mrb[1].mxu0  ;;  %v3854_v29 = vpop.f32.mrb[1].mxu1 }
  0xf7   :  { %v5333_v32 = vadd.f32 %v3818_v28, %v3817_v26  ;;  %v3820_v33 = vpop.f32.mrb[2].mxu0  ;;  %v5335_v34 = vadd.f32 %v3854_v29, %v3853_v27  ;;  %v3856_v35 = vpop.f32.mrb[2].mxu1  ;;  %v4655_v27 = vld [vmem:[%s5893_s0 + $0x1c8] ss:$52 sps:$4 sm:$0xff]  }
  0xf8   :  { %v3821_v37 = vpop.f32.mrb[3].mxu0  ;;  %v3857_v38 = vpop.f32.mrb[3].mxu1  ;;  %v4656_v28 = vld [vmem:[%s5893_s0 + $0x168] ss:$52 sps:$4 sm:$0xff]  }
  0xf9   :  { %v5340_v39 = vadd.f32 %v3821_v37, %v3820_v33  ;;  %v5342_v40 = vadd.f32 %v3857_v38, %v3856_v35  ;;  %v4657_v35 = vld [vmem:[%s5893_s0 + $0x234] ss:$52 sps:$4 sm:$0xff]  }
  0xfa   :  { %2330 = vmatmul.mubr.bf16.gmra.mrb[108].mxu0 %v3583_v31  ;;  %2370 = vmatmul.mubr.bf16.vlgmr.msra.gmra.mrb[108].mxu1 %v4637_v30 }
  0xfb   :  { %2377 = vmatprep.mubr.bf16.mxu1 %v4641_v36  ;;  %4316 = vmatprep.mubr.msk.bf16.mxu0 %vm4686_vm0, %v4685_v42 }
  0xfd   :  { %v3823_v41 = vpop.f32.mrb[4].mxu0  ;;  %v3859_v43 = vpop.f32.mrb[4].mxu1 }
  0xfe   :  { %v3824_v44 = vpop.f32.mrb[5].mxu0  ;;  %v3860_v45 = vpop.f32.mrb[5].mxu1 }
  0xff   :  { %v5352_v48 = vadd.f32 %v3824_v44, %v3823_v41  ;;  %v3826_v49 = vpop.f32.mrb[6].mxu0  ;;  %v5354_v50 = vadd.f32 %v3860_v45, %v3859_v43  ;;  %v3862_v51 = vpop.f32.mrb[6].mxu1 }
 0x100   :  { %v3827_v53 = vpop.f32.mrb[7].mxu0  ;;  %v3863_v54 = vpop.f32.mrb[7].mxu1 }
 0x101   :  { %v5359_v55 = vadd.f32 %v3827_v53, %v3826_v49  ;;  %v5361_v56 = vadd.f32 %v3863_v54, %v3862_v51  ;;  %v4661_v54 = vld [vmem:[%s5893_s0 + $0x29c] ss:$52 sps:$4 sm:$0xff]  }
 0x102   :  { %2378 = vmatmul.mubr.bf16.gmra.mrb[112].mxu1 %v4643_v46  ;;  %4317 = vmatmul.mubr.msk.bf16.vlgmr.msra.gmra.mrb[112].mxu0 %vm1703_vm1, %v4644_v47  ;;  %v4659_v46 = vld [vmem:[%s5893_s0 + $0x230] ss:$52 sps:$4 sm:$0xff]  }
 0x103   :  { %2385 = vmatprep.mubr.bf16.mxu1 %v4645_v52  ;;  %4320 = vmatprep.mubr.msk.bf16.mxu0 %vm4686_vm0, %v4685_v42  ;;  %v4660_v47 = vld [vmem:[%s5893_s0 + $0x1d0] ss:$52 sps:$4 sm:$0xff]  }
 0x105   :  { %v3829_v57 = vpop.f32.mrb[8].mxu0  ;;  %v3865_v58 = vpop.f32.mrb[8].mxu1 }
 0x106   :  { %v3830_v59 = vpop.f32.mrb[9].mxu0  ;;  %v3866_v60 = vpop.f32.mrb[9].mxu1 }
 0x107   :  { %v5372_v63 = vadd.f32 %v3830_v59, %v3829_v57  ;;  %v3832_v0 = vpop.f32.mrb[10].mxu0  ;;  %v5374_v1 = vadd.f32 %v3866_v60, %v3865_v58  ;;  %v3868_v2 = vpop.f32.mrb[10].mxu1 }
 0x108   :  { %v3833_v4 = vpop.f32.mrb[11].mxu0  ;;  %v3869_v5 = vpop.f32.mrb[11].mxu1 }
 0x109   :  { %v5379_v6 = vadd.f32 %v3833_v4, %v3832_v0  ;;  %v5381_v7 = vadd.f32 %v3869_v5, %v3868_v2  ;;  %v4664_v5 = vld [vmem:[%s5893_s0 + $0x238] ss:$52 sps:$4 sm:$0xff]  }
 0x10a   :  { %2386 = vmatmul.mubr.bf16.gmra.mrb[116].mxu1 %v4647_v61  ;;  %4321 = vmatmul.mubr.msk.bf16.gmra.mrb[116].mxu0 %vm1703_vm1, %v4648_v62 }
 0x10b   :  { %2393 = vmatprep.mubr.bf16.mxu1 %v4649_v3  ;;  %4324 = vmatprep.mubr.msk.bf16.mxu0 %vm4686_vm0, %v4685_v42 }
 0x10d   :  { %v3835_v8 = vpop.f32.mrb[12].mxu0  ;;  %v3871_v9 = vpop.f32.mrb[12].mxu1 }
 0x10e   :  { %v3836_v10 = vpop.f32.mrb[13].mxu0  ;;  %v3872_v11 = vpop.f32.mrb[13].mxu1 }
 0x10f   :  { %v5392_v14 = vadd.f32 %v3836_v10, %v3835_v8  ;;  %v3838_v15 = vpop.f32.mrb[14].mxu0  ;;  %v5394_v16 = vadd.f32 %v3872_v11, %v3871_v9  ;;  %v3874_v17 = vpop.f32.mrb[14].mxu1  ;;  %v4665_v11 = vld [vmem:[%s5893_s0 + $0x304] ss:$52 sps:$4 sm:$0xff]  }
 0x110   :  { %v3839_v19 = vpop.f32.mrb[15].mxu0  ;;  %v3875_v20 = vpop.f32.mrb[15].mxu1 }
 0x111   :  { %v5399_v21 = vadd.f32 %v3839_v19, %v3838_v15  ;;  %v5401_v22 = vadd.f32 %v3875_v20, %v3874_v17 }
 0x112   :  { %2394 = vmatmul.mubr.bf16.gmra.mrb[120].mxu1 %v4651_v12  ;;  %4325 = vmatmul.mubr.msk.bf16.gmra.mrb[120].mxu0 %vm1703_vm1, %v4652_v13 }
 0x113   :  { %2401 = vmatprep.mubr.bf16.mxu1 %v4653_v18  ;;  %4328 = vmatprep.mubr.msk.bf16.mxu0 %vm4686_vm0, %v4685_v42 }
 0x115   :  { %v3841_v23 = vpop.f32.mrb[16].mxu0  ;;  %v3877_v24 = vpop.f32.mrb[16].mxu1 }
 0x116   :  { %v3842_v25 = vpop.f32.mrb[17].mxu0  ;;  %v3878_v26 = vpop.f32.mrb[17].mxu1 }
 0x117   :  { %v5412_v29 = vadd.f32 %v3842_v25, %v3841_v23  ;;  %v3844_v30 = vpop.f32.mrb[18].mxu0  ;;  %v5414_v31 = vadd.f32 %v3878_v26, %v3877_v24  ;;  %v3880_v33 = vpop.f32.mrb[18].mxu1 }
 0x118   :  { %v3845_v36 = vpop.f32.mrb[19].mxu0  ;;  %v3881_v37 = vpop.f32.mrb[19].mxu1 }
 0x119   :  { %v5419_v38 = vadd.f32 %v3845_v36, %v3844_v30  ;;  %v4669_v36 = vld [vmem:[%s5893_s0 + $0x36c] ss:$52 sps:$4 sm:$0xff]  }
 0x11a   :  { %2402 = vmatmul.mubr.bf16.gmra.mrb[124].mxu1 %v4655_v27  ;;  %4329 = vmatmul.mubr.msk.bf16.gmra.mrb[124].mxu0 %vm1703_vm1, %v4656_v28  ;;  %v4668_v28 = vld [vmem:[%s5893_s0 + $0x2a0] ss:$52 sps:$4 sm:$0xff]  }
 0x11b   :  { %2409 = vmatprep.mubr.bf16.mxu1 %v4657_v35  ;;  %4332 = vmatprep.mubr.msk.bf16.mxu0 %vm4686_vm0, %v4685_v42 }
 0x11d   :  { %v3847_v41 = vpop.f32.mrb[20].mxu0  ;;  %v3899_v43 = vpop.f32.mrb[20].mxu1 }
 0x11e   :  { %v3848_v44 = vpop.f32.mrb[21].mxu0  ;;  %v3900_v45 = vpop.f32.mrb[21].mxu1 }
 0x11f   :  { %v5430_v49 = vadd.f32 %v3848_v44, %v3847_v41  ;;  %v3901_v51 = vadd.f32 %v3900_v45, %v3899_v43  ;;  %v3850_v52 = vpop.f32.mrb[22].mxu0  ;;  %v3902_v53 = vpop.f32.mrb[22].mxu1 }
 0x120   :  { %v3851_v57 = vpop.f32.mrb[23].mxu0  ;;  %v3903_v58 = vpop.f32.mrb[23].mxu1 }
 0x121   :  { %v1892_v59 = vadd.f32 %v3901_v51, %v5333_v32  ;;  %v5436_v60 = vadd.f32 %v3851_v57, %v3850_v52  ;;  %v3904_v61 = vadd.f32 %v3903_v58, %v3902_v53  ;;  %v4663_v32 = vld [vmem:[%s5893_s0 + $0x298] ss:$52 sps:$4 sm:$0xff]   ;;  %v4672_v58 = vld [vmem:[%s5893_s0 + $0x308] ss:$52 sps:$4 sm:$0xff]  }
 0x122   :  { %2410 = vmatmul.mubr.bf16.gmra.mrb[128].mxu1 %v4659_v46  ;;  %4333 = vmatmul.mubr.msk.bf16.gmra.mrb[128].mxu0 %vm1703_vm1, %v4660_v47 }
 0x123   :  { %v1895_v62 = vadd.f32 %v3904_v61, %v5340_v39  ;;  %2417 = vmatprep.mubr.bf16.mxu1 %v4661_v54  ;;  %4336 = vmatprep.mubr.msk.bf16.mxu0 %vm4686_vm0, %v4685_v42 }
 0x125   :  { %v3905_v0 = vpop.f32.mrb[24].mxu1  ;;  %v3981_v2 = vpop.f32.mrb[24].mxu0 }
 0x126   :  { %v3906_v3 = vpop.f32.mrb[25].mxu1  ;;  %v3982_v4 = vpop.f32.mrb[25].mxu0 }
 0x127   :  { %v3907_v8 = vadd.f32 %v3906_v3, %v3905_v0  ;;  %v3983_v9 = vadd.f32 %v3982_v4, %v3981_v2  ;;  %v3908_v10 = vpop.f32.mrb[26].mxu1  ;;  %v3984_v39 = vpop.f32.mrb[26].mxu0  ;;  %v4673_v0 = vld [vmem:[%s5893_s0 + $0x3d4] ss:$52 sps:$4 sm:$0xff]  }
 0x128   :  { %v3909_v12 = vpop.f32.mrb[27].mxu1  ;;  %v3985_v13 = vpop.f32.mrb[27].mxu0 }
 0x129   :  { %v1900_v15 = vadd.f32 %v3907_v8, %v5352_v48  ;;  %v5452_v17 = vadd.f32 %v3983_v9, %v1892_v59  ;;  %v3910_v18 = vadd.f32 %v3909_v12, %v3908_v10  ;;  %v3986_v19 = vadd.f32 %v3985_v13, %v3984_v39  ;;  %v4667_v48 = vld [vmem:[%s5893_s0 + $0x300] ss:$52 sps:$4 sm:$0xff]   ;;  %v206_v39 = vld [vmem:[%s5893_s0 + $0x438] sm:$0x11] }
 0x12a   :  { %2418 = vmatmul.mubr.bf16.gmra.mrb[132].mxu1 %v4663_v32  ;;  %4337 = vmatmul.mubr.msk.bf16.gmra.mrb[132].mxu0 %vm1703_vm1, %v4664_v5 }
 0x12b   :  { %v1903_v20 = vadd.f32 %v3910_v18, %v5359_v55  ;;  %v5456_v23 = vadd.f32 %v3986_v19, %v1895_v62  ;;  %2425 = vmatprep.mubr.bf16.mxu1 %v4665_v11  ;;  %4340 = vmatprep.mubr.msk.bf16.mxu0 %vm4686_vm0, %v4685_v42 }
 0x12d   :  { %v3911_v24 = vpop.f32.mrb[28].mxu1  ;;  %v3987_v25 = vpop.f32.mrb[28].mxu0 }
 0x12e   :  { %v3912_v26 = vpop.f32.mrb[29].mxu1  ;;  %v3988_v27 = vpop.f32.mrb[29].mxu0 }
 0x12f   :  { %v3913_v30 = vadd.f32 %v3912_v26, %v3911_v24  ;;  %v3989_v55 = vadd.f32 %v3988_v27, %v3987_v25  ;;  %v3914_v33 = vpop.f32.mrb[30].mxu1  ;;  %v3990_v35 = vpop.f32.mrb[30].mxu0  ;;  %v3586_v25 = vcombine.high %v206_v39, %v206_v39 }
 0x130   :  { %v3915_v37 = vpop.f32.mrb[31].mxu1  ;;  %v3991_v41 = vpop.f32.mrb[31].mxu0 }
 0x131   :  { %v1908_v43 = vadd.f32 %v3913_v30, %v5372_v63  ;;  %v5470_v44 = vadd.f32 %v3989_v55, %v1900_v15  ;;  %v3916_v45 = vadd.f32 %v3915_v37, %v3914_v33  ;;  %v3992_v46 = vadd.f32 %v3991_v41, %v3990_v35  ;;  %v4671_v63 = vld [vmem:[%s5893_s0 + $0x368] ss:$52 sps:$4 sm:$0xff]   ;;  %v4675_v15 = vld [vmem:[%s5893_s0 + $0x3d0] ss:$52 sps:$4 sm:$0xff]  }
 0x132   :  { %2426 = vmatmul.mubr.bf16.gmra.mrb[136].mxu1 %v4667_v48  ;;  %4341 = vmatmul.mubr.msk.bf16.gmra.mrb[136].mxu0 %vm1703_vm1, %v4668_v28 }
 0x133   :  { %v1911_v47 = vadd.f32 %v3916_v45, %v5379_v6  ;;  %v5474_v51 = vadd.f32 %v3992_v46, %v1903_v20  ;;  %2433 = vmatprep.mubr.bf16.mxu1 %v4669_v36  ;;  %4344 = vmatprep.mubr.msk.bf16.mxu0 %vm4686_vm0, %v4685_v42  ;;  %v4679_v45 = vld [vmem:[%s5893_s0 + $0x3d8] ss:$52 sps:$4 sm:$0xff]  }
 0x135   :  { %v3917_v52 = vpop.f32.mrb[32].mxu1  ;;  %v3993_v53 = vpop.f32.mrb[32].mxu0 }
 0x136   :  { %v3918_v54 = vpop.f32.mrb[33].mxu1  ;;  %v3994_v57 = vpop.f32.mrb[33].mxu0 }
 0x137   :  { %v3919_v59 = vadd.f32 %v3918_v54, %v3917_v52  ;;  %v3995_v6 = vadd.f32 %v3994_v57, %v3993_v53  ;;  %v3920_v61 = vpop.f32.mrb[34].mxu1  ;;  %v3996_v62 = vpop.f32.mrb[34].mxu0 }
 0x138   :  { %v3921_v2 = vpop.f32.mrb[35].mxu1  ;;  %v3997_v3 = vpop.f32.mrb[35].mxu0 }
 0x139   :  { %v1916_v4 = vadd.f32 %v3919_v59, %v5392_v14  ;;  %v5488_v32 = vadd.f32 %v3995_v6, %v1908_v43  ;;  %v3922_v5 = vadd.f32 %v3921_v2, %v3920_v61  ;;  %v3998_v8 = vadd.f32 %v3997_v3, %v3996_v62 }
 0x13a   :  { %2434 = vmatmul.mubr.bf16.gmra.mrb[140].mxu1 %v4671_v63  ;;  %4345 = vmatmul.mubr.msk.bf16.gmra.mrb[140].mxu0 %vm1703_vm1, %v4672_v58 }
 0x13b   :  { %v1919_v9 = vadd.f32 %v3922_v5, %v5399_v21  ;;  %v5492_v10 = vadd.f32 %v3998_v8, %v1911_v47  ;;  %2441 = vmatprep.mubr.bf16.mxu1 %v4673_v0  ;;  %4348 = vmatprep.mubr.msk.bf16.mxu0 %vm4686_vm0, %v4685_v42  ;;  %v4676_v21 = vld [vmem:[%s5893_s0 + $0x370] ss:$52 sps:$4 sm:$0xff]  }
 0x13d   :  { %v3923_v14 = vpop.f32.mrb[36].mxu1  ;;  %v3999_v11 = vpop.f32.mrb[36].mxu0 }
 0x13e   :  { %v3924_v12 = vpop.f32.mrb[37].mxu1  ;;  %v4000_v13 = vpop.f32.mrb[37].mxu0 }
 0x13f   :  { %v3925_v18 = vadd.f32 %v3924_v12, %v3923_v14  ;;  %v4001_v19 = vadd.f32 %v4000_v13, %v3999_v11  ;;  %v3926_v20 = vpop.f32.mrb[38].mxu1  ;;  %v4002_v24 = vpop.f32.mrb[38].mxu0 }
 0x140   :  { %v3927_v26 = vpop.f32.mrb[39].mxu1  ;;  %v4003_v27 = vpop.f32.mrb[39].mxu0 }
 0x141   :  { %v1924_v48 = vadd.f32 %v3925_v18, %v5412_v29  ;;  %v5506_v28 = vadd.f32 %v4001_v19, %v1916_v4  ;;  %v3928_v30 = vadd.f32 %v3927_v26, %v3926_v20  ;;  %v4004_v55 = vadd.f32 %v4003_v27, %v4002_v24 }
 0x142   :  { %2442 = vmatmul.mubr.bf16.gmra.mrb[144].mxu1 %v4675_v15  ;;  %4349 = vmatmul.mubr.msk.bf16.gmra.mrb[144].mxu0 %vm1703_vm1, %v4676_v21  ;;  %v3585_v29 = vcombine.low %v206_v39, %v206_v39 }
 0x143   :  { %v1927_v33 = vadd.f32 %v3928_v30, %v5419_v38  ;;  %v5510_v35 = vadd.f32 %v4004_v55, %v1919_v9  ;;  %2449 = vmatprep.mubr.bf16.mxu1 %v3586_v25  ;;  %4352 = vmatprep.mubr.msk.bf16.mxu0 %vm4686_vm0, %v4685_v42 }
 0x145   :  { %v3929_v36 = vpop.f32.mrb[40].mxu1  ;;  %v4005_v37 = vpop.f32.mrb[40].mxu0 }
 0x146   :  { %v3930_v41 = vpop.f32.mrb[41].mxu1  ;;  %v4006_v43 = vpop.f32.mrb[41].mxu0 }
 0x147   :  { %v3931_v46 = vadd.f32 %v3930_v41, %v3929_v36  ;;  %v4007_v47 = vadd.f32 %v4006_v43, %v4005_v37  ;;  %v3932_v52 = vpop.f32.mrb[42].mxu1  ;;  %v4008_v53 = vpop.f32.mrb[42].mxu0 }
 0x148   :  { %v3933_v38 = vpop.f32.mrb[43].mxu1  ;;  %v4009_v54 = vpop.f32.mrb[43].mxu0 }
 0x149   :  { %v1932_v57 = vadd.f32 %v3931_v46, %v5430_v49  ;;  %v5518_v63 = vadd.f32 %v4007_v47, %v1924_v48  ;;  %v3934_v58 = vadd.f32 %v3933_v38, %v3932_v52  ;;  %v4010_v59 = vadd.f32 %v4009_v54, %v4008_v53  ;;  %v4680_v49 = vld [vmem:[%s5893_s0 + $0x440] ss:$0 sps:$4 sm:$0x11]  }
 0x14a   :  { %2450 = vmatmul.mubr.bf16.gmra.mrb[148].mxu1 %v3585_v29  ;;  %4353 = vmatmul.mubr.msk.bf16.gmra.mrb[148].mxu0 %vm1703_vm1, %v4679_v45 }
 0x14b   :  { %v1935_v6 = vadd.f32 %v3934_v58, %v5436_v60  ;;  %v5522_v61 = vadd.f32 %v4010_v59, %v1927_v33  ;;  %4356 = vmatprep.mubr.msk.bf16.mxu0 %vm4686_vm0, %v4685_v42 }
 0x14d   :  { %v3935_v62 = vpop.f32.mrb[44].mxu1  ;;  %v4011_v0 = vpop.f32.mrb[44].mxu0 }
 0x14e   :  { %v3936_v2 = vpop.f32.mrb[45].mxu1  ;;  %v4012_v3 = vpop.f32.mrb[45].mxu0 }
 0x14f   :  { %v3937_v4 = vadd.f32 %v3936_v2, %v3935_v62  ;;  %v4013_v5 = vadd.f32 %v4012_v3, %v4011_v0  ;;  %v3938_v8 = vpop.f32.mrb[46].mxu1  ;;  %v4014_v9 = vpop.f32.mrb[46].mxu0 }
 0x150   :  { %v3939_v39 = vpop.f32.mrb[47].mxu1  ;;  %v4015_v14 = vpop.f32.mrb[47].mxu0 }
 0x151   :  { %v1940_v60 = vadd.f32 %v3937_v4, %v5335_v34  ;;  %v5530_v11 = vadd.f32 %v4013_v5, %v1932_v57  ;;  %v3940_v12 = vadd.f32 %v3939_v39, %v3938_v8  ;;  %v4016_v42 = vadd.f32 %v4015_v14, %v4014_v9 }
 0x152   :  { %4357 = vmatmul.mubr.msk.bf16.gmra.mrb[152].mxu0 %vm1703_vm1, %v4680_v49 }
 0x153   :  { %v1943_v13 = vadd.f32 %v3940_v12, %v5342_v40  ;;  %v5534_v15 = vadd.f32 %v4016_v42, %v1935_v6 }
 0x155   :  { %v3941_v21 = vpop.f32.mrb[48].mxu1  ;;  %v4017_v18 = vpop.f32.mrb[48].mxu0 }
 0x156   :  { %v3942_v19 = vpop.f32.mrb[49].mxu1  ;;  %v4018_v20 = vpop.f32.mrb[49].mxu0 }
 0x157   :  { %v3943_v24 = vadd.f32 %v3942_v19, %v3941_v21  ;;  %v4019_v25 = vadd.f32 %v4018_v20, %v4017_v18  ;;  %v3944_v26 = vpop.f32.mrb[50].mxu1  ;;  %v4020_v27 = vpop.f32.mrb[50].mxu0 }
 0x158   :  { %v3945_v48 = vpop.f32.mrb[51].mxu1  ;;  %v4021_v34 = vpop.f32.mrb[51].mxu0 }
 0x159   :  { %v1948_v30 = vadd.f32 %v3943_v24, %v5354_v50  ;;  %v5537_v55 = vadd.f32 %v4019_v25, %v1940_v60  ;;  %v3946_v33 = vadd.f32 %v3945_v48, %v3944_v26  ;;  %v4022_v36 = vadd.f32 %v4021_v34, %v4020_v27 }
 0x15b   :  { %v1951_v40 = vadd.f32 %v3946_v33, %v5361_v56  ;;  %v5540_v37 = vadd.f32 %v4022_v36, %v1943_v13 }
 0x15d   :  { %v3947_v41 = vpop.f32.mrb[52].mxu1  ;;  %v4023_v43 = vpop.f32.mrb[52].mxu0 }
 0x15e   :  { %v3948_v29 = vpop.f32.mrb[53].mxu1  ;;  %v4024_v45 = vpop.f32.mrb[53].mxu0 }
 0x15f   :  { %v3949_v46 = vadd.f32 %v3948_v29, %v3947_v41  ;;  %v4025_v47 = vadd.f32 %v4024_v45, %v4023_v43  ;;  %v3950_v52 = vpop.f32.mrb[54].mxu1  ;;  %v4026_v53 = vpop.f32.mrb[54].mxu0 }
 0x160   :  { %v3951_v38 = vpop.f32.mrb[55].mxu1  ;;  %v4027_v54 = vpop.f32.mrb[55].mxu0 }
 0x161   :  { %v1956_v50 = vadd.f32 %v3949_v46, %v5374_v1  ;;  %v5543_v57 = vadd.f32 %v4025_v47, %v1948_v30  ;;  %v3952_v58 = vadd.f32 %v3951_v38, %v3950_v52  ;;  %v4028_v59 = vadd.f32 %v4027_v54, %v4026_v53 }
 0x163   :  { %v1959_v56 = vadd.f32 %v3952_v58, %v5381_v7  ;;  %v5546_v6 = vadd.f32 %v4028_v59, %v1951_v40 }
 0x165   :  { %v3953_v62 = vpop.f32.mrb[56].mxu1  ;;  %v4029_v0 = vpop.f32.mrb[56].mxu0 }
 0x166   :  { %v3954_v2 = vpop.f32.mrb[57].mxu1  ;;  %v4030_v3 = vpop.f32.mrb[57].mxu0 }
 0x167   :  { %v3955_v49 = vadd.f32 %v3954_v2, %v3953_v62  ;;  %v4031_v4 = vadd.f32 %v4030_v3, %v4029_v0  ;;  %v3956_v5 = vpop.f32.mrb[58].mxu1  ;;  %v4032_v8 = vpop.f32.mrb[58].mxu0 }
 0x168   :  { %v3957_v9 = vpop.f32.mrb[59].mxu1  ;;  %v4033_v39 = vpop.f32.mrb[59].mxu0 }
 0x169   :  { %v1964_v1 = vadd.f32 %v3955_v49, %v5394_v16  ;;  %v5549_v14 = vadd.f32 %v4031_v4, %v1956_v50  ;;  %v3958_v60 = vadd.f32 %v3957_v9, %v3956_v5  ;;  %v4034_v12 = vadd.f32 %v4033_v39, %v4032_v8 }
 0x16b   :  { %v1967_v7 = vadd.f32 %v3958_v60, %v5401_v22  ;;  %v5552_v42 = vadd.f32 %v4034_v12, %v1959_v56 }
 0x16d   :  { %v3959_v13 = vpop.f32.mrb[60].mxu1  ;;  %v4035_v21 = vpop.f32.mrb[60].mxu0 }
 0x16e   :  { %v3960_v18 = vpop.f32.mrb[61].mxu1  ;;  %v4036_v19 = vpop.f32.mrb[61].mxu0 }
 0x16f   :  { %v3961_v20 = vadd.f32 %v3960_v18, %v3959_v13  ;;  %v4037_v24 = vadd.f32 %v4036_v19, %v4035_v21  ;;  %v4038_v25 = vpop.f32.mrb[62].mxu0  ;;  %v3962_v26 = vpop.f32.mrb[62].mxu1 }
 0x170   :  { %v4039_v27 = vpop.f32.mrb[63].mxu0  ;;  %v3963_v48 = vpop.f32.mrb[63].mxu1 }
 0x171   :  { %v1972_v16 = vadd.f32 %v3961_v20, %v5414_v31  ;;  %v5555_v34 = vadd.f32 %v4037_v24, %v1964_v1  ;;  %v4040_v30 = vadd.f32 %v4039_v27, %v4038_v25 }
 0x173   :  { %v5557_v33 = vadd.f32 %v4040_v30, %v1967_v7 }
 0x175   :  { %v4041_v22 = vpop.f32.mrb[64].mxu0  ;;  %v4063_v36 = vpop.f32.mrb[64].mxu1 }
 0x176   :  { %v4042_v40 = vpop.f32.mrb[65].mxu0  ;;  %v4064_v41 = vpop.f32.mrb[65].mxu1 }
 0x177   :  { %v4043_v43 = vadd.f32 %v4042_v40, %v4041_v22  ;;  %v4065_v29 = vadd.f32 %v4064_v41, %v4063_v36  ;;  %v4044_v45 = vpop.f32.mrb[66].mxu0  ;;  %v4066_v46 = vpop.f32.mrb[66].mxu1 }
 0x178   :  { %v4045_v47 = vpop.f32.mrb[67].mxu0  ;;  %v4067_v52 = vpop.f32.mrb[67].mxu1 }
 0x179   :  { %v5559_v53 = vadd.f32 %v4043_v43, %v1972_v16  ;;  %v2132_v38 = vadd.f32 %v4065_v29, %v5452_v17  ;;  %v4068_v31 = vadd.f32 %v4067_v52, %v4066_v46 }
 0x17b   :  { %v2135_v54 = vadd.f32 %v4068_v31, %v5456_v23 }
 0x17d   :  { %v4069_v50 = vpop.f32.mrb[68].mxu1  ;;  %v4145_v58 = vpop.f32.mrb[68].mxu0 }
 0x17e   :  { %v4070_v59 = vpop.f32.mrb[69].mxu1  ;;  %v4146_v56 = vpop.f32.mrb[69].mxu0 }
 0x17f   :  { %v4071_v62 = vadd.f32 %v4070_v59, %v4069_v50  ;;  %v4147_v0 = vadd.f32 %v4146_v56, %v4145_v58  ;;  %v4072_v2 = vpop.f32.mrb[70].mxu1  ;;  %v4148_v3 = vpop.f32.mrb[70].mxu0 }
 0x180   :  { %v4073_v49 = vpop.f32.mrb[71].mxu1  ;;  %v4149_v4 = vpop.f32.mrb[71].mxu0 }
 0x181   :  { %v2140_v5 = vadd.f32 %v4071_v62, %v5470_v44  ;;  %v5564_v8 = vadd.f32 %v4147_v0, %v2132_v38  ;;  %v4074_v9 = vadd.f32 %v4073_v49, %v4072_v2  ;;  %v4150_v39 = vadd.f32 %v4149_v4, %v4148_v3 }
 0x183   :  { %v2143_v17 = vadd.f32 %v4074_v9, %v5474_v51  ;;  %v5567_v1 = vadd.f32 %v4150_v39, %v2135_v54 }
 0x185   :  { %v4075_v23 = vpop.f32.mrb[72].mxu1  ;;  %v4151_v60 = vpop.f32.mrb[72].mxu0 }
 0x186   :  { %v4076_v12 = vpop.f32.mrb[73].mxu1  ;;  %v4152_v7 = vpop.f32.mrb[73].mxu0 }
 0x187   :  { %v4077_v13 = vadd.f32 %v4076_v12, %v4075_v23  ;;  %v4153_v21 = vadd.f32 %v4152_v7, %v4151_v60  ;;  %v4078_v18 = vpop.f32.mrb[74].mxu1  ;;  %v4154_v19 = vpop.f32.mrb[74].mxu0 }
 0x188   :  { %v4079_v20 = vpop.f32.mrb[75].mxu1  ;;  %v4155_v24 = vpop.f32.mrb[75].mxu0 }
 0x189   :  { %v2148_v44 = vadd.f32 %v4077_v13, %v5488_v32  ;;  %v5570_v25 = vadd.f32 %v4153_v21, %v2140_v5  ;;  %v4080_v26 = vadd.f32 %v4079_v20, %v4078_v18  ;;  %v4156_v27 = vadd.f32 %v4155_v24, %v4154_v19 }
 0x18b   :  { %v2151_v51 = vadd.f32 %v4080_v26, %v5492_v10  ;;  %v5573_v48 = vadd.f32 %v4156_v27, %v2143_v17 }
 0x18d   :  { %v4081_v16 = vpop.f32.mrb[76].mxu1  ;;  %v4157_v30 = vpop.f32.mrb[76].mxu0 }
 0x18e   :  { %v4082_v22 = vpop.f32.mrb[77].mxu1  ;;  %v4158_v36 = vpop.f32.mrb[77].mxu0 }
 0x18f   :  { %v4083_v40 = vadd.f32 %v4082_v22, %v4081_v16  ;;  %v4159_v41 = vadd.f32 %v4158_v36, %v4157_v30  ;;  %v4084_v43 = vpop.f32.mrb[78].mxu1  ;;  %v4160_v29 = vpop.f32.mrb[78].mxu0 }
 0x190   :  { %v4085_v45 = vpop.f32.mrb[79].mxu1  ;;  %v4161_v46 = vpop.f32.mrb[79].mxu0 }
 0x191   :  { %v2156_v32 = vadd.f32 %v4083_v40, %v5506_v28  ;;  %v5576_v47 = vadd.f32 %v4159_v41, %v2148_v44  ;;  %v4086_v52 = vadd.f32 %v4085_v45, %v4084_v43  ;;  %v4162_v38 = vadd.f32 %v4161_v46, %v4160_v29 }
 0x193   :  { %v2159_v10 = vadd.f32 %v4086_v52, %v5510_v35  ;;  %v5579_v31 = vadd.f32 %v4162_v38, %v2151_v51 }
 0x195   :  { %v4087_v54 = vpop.f32.mrb[80].mxu1  ;;  %v4163_v50 = vpop.f32.mrb[80].mxu0 }
 0x196   :  { %v4088_v58 = vpop.f32.mrb[81].mxu1  ;;  %v4164_v59 = vpop.f32.mrb[81].mxu0 }
 0x197   :  { %v4089_v56 = vadd.f32 %v4088_v58, %v4087_v54  ;;  %v4165_v62 = vadd.f32 %v4164_v59, %v4163_v50  ;;  %v4090_v0 = vpop.f32.mrb[82].mxu1  ;;  %v4166_v2 = vpop.f32.mrb[82].mxu0 }
 0x198   :  { %v4091_v3 = vpop.f32.mrb[83].mxu1  ;;  %v4167_v49 = vpop.f32.mrb[83].mxu0 }
 0x199   :  { %v2164_v28 = vadd.f32 %v4089_v56, %v5518_v63  ;;  %v5582_v4 = vadd.f32 %v4165_v62, %v2156_v32  ;;  %v4092_v5 = vadd.f32 %v4091_v3, %v4090_v0  ;;  %v4168_v9 = vadd.f32 %v4167_v49, %v4166_v2 }
 0x19b   :  { %v2167_v35 = vadd.f32 %v4092_v5, %v5522_v61  ;;  %v5585_v39 = vadd.f32 %v4168_v9, %v2159_v10 }
 0x19d   :  { %v4093_v17 = vpop.f32.mrb[84].mxu1  ;;  %v4169_v23 = vpop.f32.mrb[84].mxu0 }
 0x19e   :  { %v4094_v60 = vpop.f32.mrb[85].mxu1  ;;  %v4170_v12 = vpop.f32.mrb[85].mxu0 }
 0x19f   :  { %v4095_v7 = vadd.f32 %v4094_v60, %v4093_v17  ;;  %v4171_v13 = vadd.f32 %v4170_v12, %v4169_v23  ;;  %v4096_v21 = vpop.f32.mrb[86].mxu1  ;;  %v4172_v18 = vpop.f32.mrb[86].mxu0 }
 0x1a0   :  { %v4097_v19 = vpop.f32.mrb[87].mxu1  ;;  %v4173_v20 = vpop.f32.mrb[87].mxu0 }
 0x1a1   :  { %v2172_v63 = vadd.f32 %v4095_v7, %v5530_v11  ;;  %v5588_v24 = vadd.f32 %v4171_v13, %v2164_v28  ;;  %v4098_v44 = vadd.f32 %v4097_v19, %v4096_v21  ;;  %v4174_v26 = vadd.f32 %v4173_v20, %v4172_v18 }
 0x1a3   :  { %v2175_v61 = vadd.f32 %v4098_v44, %v5534_v15  ;;  %v5591_v27 = vadd.f32 %v4174_v26, %v2167_v35 }
 0x1a5   :  { %v4099_v51 = vpop.f32.mrb[88].mxu1  ;;  %v4175_v16 = vpop.f32.mrb[88].mxu0 }
 0x1a6   :  { %v4100_v30 = vpop.f32.mrb[89].mxu1  ;;  %v4176_v22 = vpop.f32.mrb[89].mxu0 }
 0x1a7   :  { %v4101_v36 = vadd.f32 %v4100_v30, %v4099_v51  ;;  %v4177_v40 = vadd.f32 %v4176_v22, %v4175_v16  ;;  %v4102_v41 = vpop.f32.mrb[90].mxu1  ;;  %v4178_v43 = vpop.f32.mrb[90].mxu0 }
 0x1a8   :  { %v4103_v29 = vpop.f32.mrb[91].mxu1  ;;  %v4179_v45 = vpop.f32.mrb[91].mxu0 }
 0x1a9   :  { %v2180_v11 = vadd.f32 %v4101_v36, %v5537_v55  ;;  %v5594_v46 = vadd.f32 %v4177_v40, %v2172_v63  ;;  %v4104_v32 = vadd.f32 %v4103_v29, %v4102_v41  ;;  %v4180_v52 = vadd.f32 %v4179_v45, %v4178_v43 }
 0x1ab   :  { %v2183_v15 = vadd.f32 %v4104_v32, %v5540_v37  ;;  %v5597_v38 = vadd.f32 %v4180_v52, %v2175_v61 }
 0x1ad   :  { %v4105_v10 = vpop.f32.mrb[92].mxu1  ;;  %v4181_v54 = vpop.f32.mrb[92].mxu0 }
 0x1ae   :  { %v4106_v50 = vpop.f32.mrb[93].mxu1  ;;  %v4182_v58 = vpop.f32.mrb[93].mxu0 }
 0x1af   :  { %v4107_v59 = vadd.f32 %v4106_v50, %v4105_v10  ;;  %v4183_v56 = vadd.f32 %v4182_v58, %v4181_v54  ;;  %v4108_v62 = vpop.f32.mrb[94].mxu1  ;;  %v4184_v0 = vpop.f32.mrb[94].mxu0 }
 0x1b0   :  { %v4109_v2 = vpop.f32.mrb[95].mxu1  ;;  %v4185_v3 = vpop.f32.mrb[95].mxu0 }
 0x1b1   :  { %v2188_v55 = vadd.f32 %v4107_v59, %v5543_v57  ;;  %v5600_v49 = vadd.f32 %v4183_v56, %v2180_v11  ;;  %v4110_v28 = vadd.f32 %v4109_v2, %v4108_v62  ;;  %v4186_v5 = vadd.f32 %v4185_v3, %v4184_v0 }
 0x1b3   :  { %v2191_v37 = vadd.f32 %v4110_v28, %v5546_v6  ;;  %v5603_v9 = vadd.f32 %v4186_v5, %v2183_v15 }
 0x1b5   :  { %v4111_v35 = vpop.f32.mrb[96].mxu1  ;;  %v4187_v17 = vpop.f32.mrb[96].mxu0 }
 0x1b6   :  { %v4112_v23 = vpop.f32.mrb[97].mxu1  ;;  %v4188_v60 = vpop.f32.mrb[97].mxu0 }
 0x1b7   :  { %v4113_v12 = vadd.f32 %v4112_v23, %v4111_v35  ;;  %v4189_v7 = vadd.f32 %v4188_v60, %v4187_v17  ;;  %v4114_v13 = vpop.f32.mrb[98].mxu1  ;;  %v4190_v21 = vpop.f32.mrb[98].mxu0 }
 0x1b8   :  { %v4115_v18 = vpop.f32.mrb[99].mxu1  ;;  %v4191_v19 = vpop.f32.mrb[99].mxu0 }
 0x1b9   :  { %v2196_v57 = vadd.f32 %v4113_v12, %v5549_v14  ;;  %v5606_v20 = vadd.f32 %v4189_v7, %v2188_v55  ;;  %v4116_v63 = vadd.f32 %v4115_v18, %v4114_v13  ;;  %v4192_v44 = vadd.f32 %v4191_v19, %v4190_v21 }
 0x1bb   :  { %v2199_v6 = vadd.f32 %v4116_v63, %v5552_v42  ;;  %v5609_v26 = vadd.f32 %v4192_v44, %v2191_v37 }
 0x1bd   :  { %v4117_v61 = vpop.f32.mrb[100].mxu1  ;;  %v4193_v51 = vpop.f32.mrb[100].mxu0 }
 0x1be   :  { %v4118_v16 = vpop.f32.mrb[101].mxu1  ;;  %v4194_v30 = vpop.f32.mrb[101].mxu0 }
 0x1bf   :  { %v4119_v22 = vadd.f32 %v4118_v16, %v4117_v61  ;;  %v4195_v36 = vadd.f32 %v4194_v30, %v4193_v51  ;;  %v4120_v40 = vpop.f32.mrb[102].mxu1  ;;  %v4196_v41 = vpop.f32.mrb[102].mxu0 }
 0x1c0   :  { %v4121_v43 = vpop.f32.mrb[103].mxu1  ;;  %v4197_v29 = vpop.f32.mrb[103].mxu0 }
 0x1c1   :  { %v2204_v14 = vadd.f32 %v4119_v22, %v5555_v34  ;;  %v5612_v45 = vadd.f32 %v4195_v36, %v2196_v57  ;;  %v4122_v11 = vadd.f32 %v4121_v43, %v4120_v40  ;;  %v4198_v32 = vadd.f32 %v4197_v29, %v4196_v41  ;;  %v5629_v41 = vld [vmem:[%s5894_s2] ss:$0 sm:$0xff] }
 0x1c3   :  { %v2207_v42 = vadd.f32 %v4122_v11, %v5557_v33  ;;  %v5615_v52 = vadd.f32 %v4198_v32, %v2199_v6 }
 0x1c5   :  { %v4123_v15 = vpop.f32.mrb[104].mxu1  ;;  %v4199_v10 = vpop.f32.mrb[104].mxu0 }
 0x1c6   :  { %v4124_v54 = vpop.f32.mrb[105].mxu1  ;;  %v4200_v50 = vpop.f32.mrb[105].mxu0 }
 0x1c7   :  { %v4125_v58 = vadd.f32 %v4124_v54, %v4123_v15  ;;  %v4201_v59 = vadd.f32 %v4200_v50, %v4199_v10  ;;  %v4202_v56 = vpop.f32.mrb[106].mxu0  ;;  %v4126_v62 = vpop.f32.mrb[106].mxu1 }
 0x1c8   :  { %v4203_v0 = vpop.f32.mrb[107].mxu0  ;;  %v4127_v2 = vpop.f32.mrb[107].mxu1 }
 0x1c9   :  { %v2212_v34 = vadd.f32 %v4125_v58, %v5559_v53  ;;  %v5618_v3 = vadd.f32 %v4201_v59, %v2204_v14  ;;  %v4204_v55 = vadd.f32 %v4203_v0, %v4202_v56 }
 0x1cb   :  { %v5620_v28 = vadd.f32 %v4204_v55, %v2207_v42 }
 0x1cd   :  { %v4205_v33 = vpop.f32.mrb[108].mxu0  ;;  %v4227_v5 = vpop.f32.mrb[108].mxu1 }
 0x1ce   :  { %v4206_v37 = vpop.f32.mrb[109].mxu0  ;;  %v4228_v35 = vpop.f32.mrb[109].mxu1 }
 0x1cf   :  { %v4207_v17 = vadd.f32 %v4206_v37, %v4205_v33  ;;  %v4229_v23 = vadd.f32 %v4228_v35, %v4227_v5  ;;  %v4208_v60 = vpop.f32.mrb[110].mxu0  ;;  %v4230_v12 = vpop.f32.mrb[110].mxu1 }
 0x1d0   :  { %v4209_v7 = vpop.f32.mrb[111].mxu0  ;;  %v4231_v13 = vpop.f32.mrb[111].mxu1 }
 0x1d1   :  { %v5622_v21 = vadd.f32 %v4207_v17, %v2212_v34  ;;  %v4232_v18 = vadd.f32 %v4231_v13, %v4230_v12  ;;  %v2372_v53 = vadd.f32 %v4229_v23, %v5564_v8 }
 0x1d3   :  { %v2375_v19 = vadd.f32 %v4232_v18, %v5567_v1 }
 0x1d5   :  { %v4233_v57 = vpop.f32.mrb[112].mxu1  ;;  %v2491_v63 = vpop.f32.mrb[112].mxu0 }
 0x1d6   :  { %v2492_v44 = vadd.f32 %v2491_v63, %v2372_v53  ;;  %v4234_v6 = vpop.f32.mrb[113].mxu1  ;;  %v4318_v61 = vpop.f32.mrb[113].mxu0 }
 0x1d7   :  { %v4235_v51 = vadd.f32 %v4234_v6, %v4233_v57  ;;  %v4236_v16 = vpop.f32.mrb[114].mxu1  ;;  %v2494_v30 = vpop.f32.mrb[114].mxu0 }
 0x1d8   :  { %v2495_v22 = vadd.f32 %v2494_v30, %v2375_v19  ;;  %v4237_v36 = vpop.f32.mrb[115].mxu1  ;;  %v4319_v40 = vpop.f32.mrb[115].mxu0  ;;  %v5634_v29 = vadd.f32 %v5629_v41, %v2492_v44 }
 0x1d9   :  { %v4238_v43 = vadd.f32 %v4237_v36, %v4236_v16  ;;  %v2380_v8 = vadd.f32 %v4235_v51, %v5570_v25 }
 0x1da   :  { %v5637_v14 = vadd.f32 %v5629_v41, %v2495_v22 }
 0x1db   :  { %v2383_v1 = vadd.f32 %v4238_v43, %v5573_v48 }
 0x1dc   :  { %v2819_v42 = vadd.f32 %v5637_v14, %v5634_v29 }
 0x1dd   :  { %v4239_v11 = vpop.f32.mrb[116].mxu1  ;;  %v2499_v32 = vpop.f32.mrb[116].mxu0 }
 0x1de   :  { %v2500_v15 = vadd.f32 %v2499_v32, %v2380_v8  ;;  %v4240_v10 = vpop.f32.mrb[117].mxu1  ;;  %v4322_v54 = vpop.f32.mrb[117].mxu0 }
 0x1df   :  { %v4241_v50 = vadd.f32 %v4240_v10, %v4239_v11  ;;  %v4242_v58 = vpop.f32.mrb[118].mxu1  ;;  %v2502_v59 = vpop.f32.mrb[118].mxu0 }
 0x1e0   :  { %v2503_v25 = vadd.f32 %v2502_v59, %v2383_v1  ;;  %v4243_v56 = vpop.f32.mrb[119].mxu1  ;;  %v4323_v48 = vpop.f32.mrb[119].mxu0  ;;  %v5643_v2 = vadd.f32 %v5629_v41, %v2500_v15  ;;  %v2671_v59 = vlaneseq }
 0x1e1   :  { %v4244_v62 = vadd.f32 %v4243_v56, %v4242_v58  ;;  %v2388_v0 = vadd.f32 %v4241_v50, %v5576_v47 }
 0x1e2   :  { %v2820_v55 = vadd.f32 %v2819_v42, %v5643_v2  ;;  %v5648_v33 = vadd.f32 %v5629_v41, %v2503_v25 }
 0x1e3   :  { %v2391_v34 = vadd.f32 %v4244_v62, %v5579_v31 }
 0x1e4   :  { %v2821_v35 = vadd.f32 %v2820_v55, %v5648_v33 }
 0x1e5   :  { %v4245_v5 = vpop.f32.mrb[120].mxu1  ;;  %v2507_v37 = vpop.f32.mrb[120].mxu0 }
 0x1e6   :  { %v2508_v17 = vadd.f32 %v2507_v37, %v2388_v0  ;;  %v4246_v23 = vpop.f32.mrb[121].mxu1  ;;  %v4326_v60 = vpop.f32.mrb[121].mxu0 }
 0x1e7   :  { %v4247_v12 = vadd.f32 %v4246_v23, %v4245_v5  ;;  %v4248_v7 = vpop.f32.mrb[122].mxu1  ;;  %v2510_v47 = vpop.f32.mrb[122].mxu0 }
 0x1e8   :  { %v2511_v13 = vadd.f32 %v2510_v47, %v2391_v34  ;;  %v4249_v18 = vpop.f32.mrb[123].mxu1  ;;  %v4327_v53 = vpop.f32.mrb[123].mxu0  ;;  %v5653_v57 = vadd.f32 %v5629_v41, %v2508_v17  ;;  %v5672_v17 = vshrl.u32 %v2671_v59, 7 }
 0x1e9   :  { %v4250_v19 = vadd.f32 %v4249_v18, %v4248_v7  ;;  %v2396_v31 = vadd.f32 %v4247_v12, %v5582_v4 }
 0x1ea   :  { %v2822_v44 = vadd.f32 %v2821_v35, %v5653_v57  ;;  %v5658_v6 = vadd.f32 %v5629_v41, %v2511_v13  ;;  %v5683_v18 = vadd.s32 80, %v5672_v17 }
 0x1eb   :  { %v2399_v63 = vadd.f32 %v4250_v19, %v5585_v39 }
 0x1ec   :  { %v2823_v16 = vadd.f32 %v2822_v44, %v5658_v6  ;;  %vm2724_vm2 = vcmp.lt.s32.totalorder %v5683_v18, 81  ;;  %vm2993_vm3 = vcmp.ge.s32.totalorder %v5683_v18, 81 }
 0x1ed   :  { %v4251_v61 = vpop.f32.mrb[124].mxu1  ;;  %v2515_v51 = vpop.f32.mrb[124].mxu0 }
 0x1ee   :  { %v2516_v30 = vadd.f32 %v2515_v51, %v2396_v31  ;;  %v4252_v22 = vpop.f32.mrb[125].mxu1  ;;  %v4330_v36 = vpop.f32.mrb[125].mxu0 }
 0x1ef   :  { %v4253_v40 = vadd.f32 %v4252_v22, %v4251_v61  ;;  %v4254_v43 = vpop.f32.mrb[126].mxu1  ;;  %v2518_v4 = vpop.f32.mrb[126].mxu0 }
 0x1f0   :  { %v2519_v8 = vadd.f32 %v2518_v4, %v2399_v63  ;;  %v4255_v1 = vpop.f32.mrb[127].mxu1  ;;  %v4331_v11 = vpop.f32.mrb[127].mxu0  ;;  %v5663_v42 = vadd.f32 %v5629_v41, %v2516_v30 }
 0x1f1   :  { %v4256_v32 = vadd.f32 %v4255_v1, %v4254_v43  ;;  %v2404_v39 = vadd.f32 %v4253_v40, %v5588_v24 }
 0x1f2   :  { %v2824_v10 = vadd.f32 %v2823_v16, %v5663_v42  ;;  %v5668_v54 = vadd.f32 %v5629_v41, %v2519_v8 }
 0x1f3   :  { %v2407_v15 = vadd.f32 %v4256_v32, %v5591_v27 }
 0x1f4   :  { %v2825_v25 = vadd.f32 %v2824_v10, %v5668_v54 }
 0x1f5   :  { %v4257_v50 = vpop.f32.mrb[128].mxu1  ;;  %v2523_v58 = vpop.f32.mrb[128].mxu0 }
 0x1f6   :  { %v2524_v56 = vadd.f32 %v2523_v58, %v2404_v39  ;;  %v4258_v48 = vpop.f32.mrb[129].mxu1  ;;  %v4334_v62 = vpop.f32.mrb[129].mxu0 }
 0x1f7   :  { %v4259_v0 = vadd.f32 %v4258_v48, %v4257_v50  ;;  %v4260_v24 = vpop.f32.mrb[130].mxu1  ;;  %v2526_v34 = vpop.f32.mrb[130].mxu0 }
 0x1f8   :  { %v2527_v55 = vadd.f32 %v2526_v34, %v2407_v15  ;;  %v4261_v5 = vpop.f32.mrb[131].mxu1  ;;  %v4335_v37 = vpop.f32.mrb[131].mxu0  ;;  %v5675_v23 = vadd.f32 %v5629_v41, %v2524_v56 }
 0x1f9   :  { %v4262_v27 = vadd.f32 %v4261_v5, %v4260_v24  ;;  %v2412_v35 = vadd.f32 %v4259_v0, %v5594_v46 }
 0x1fa   :  { %v2826_v12 = vadd.f32 %v2825_v25, %v5675_v23  ;;  %v5680_v7 = vadd.f32 %v5629_v41, %v2527_v55 }
 0x1fb   :  { %v2415_v60 = vadd.f32 %v4262_v27, %v5597_v38 }
 0x1fc   :  { %v2827_v53 = vadd.f32 %v2826_v12, %v5680_v7 }
 0x1fd   :  { %v4263_v47 = vpop.f32.mrb[132].mxu1  ;;  %v2531_v13 = vpop.f32.mrb[132].mxu0 }
 0x1fe   :  { %v2532_v46 = vadd.f32 %v2531_v13, %v2412_v35  ;;  %v4264_v19 = vpop.f32.mrb[133].mxu1  ;;  %v4338_v31 = vpop.f32.mrb[133].mxu0 }
 0x1ff   :  { %v4265_v63 = vadd.f32 %v4264_v19, %v4263_v47  ;;  %v4266_v44 = vpop.f32.mrb[134].mxu1  ;;  %v2534_v61 = vpop.f32.mrb[134].mxu0 }
 0x200   :  { %v5686_v51 = vadd.f32 %v2534_v61, %v2415_v60  ;;  %v4267_v38 = vpop.f32.mrb[135].mxu1  ;;  %v4339_v16 = vpop.f32.mrb[135].mxu0  ;;  %v5691_v36 = vadd.f32 %v5629_v41, %v2532_v46 }
 0x201   :  { %v4268_v30 = vadd.f32 %v4267_v38, %v4266_v44  ;;  %v2420_v22 = vadd.f32 %v4265_v63, %v5600_v49 }
 0x202   :  { %v2808_v43 = vsel %vm2724_vm2, %v5691_v36, 0.0 }
 0x203   :  { %v2423_v40 = vadd.f32 %v4268_v30, %v5603_v9  ;;  %v2828_v4 = vadd.f32 %v2827_v53, %v2808_v43 }
 0x205   :  { %v4269_v8 = vpop.f32.mrb[136].mxu1  ;;  %v2539_v1 = vpop.f32.mrb[136].mxu0  ;;  %v2841_v15 = vrot.slane %v2828_v4, 4 }
 0x206   :  { %v5697_v11 = vadd.f32 %v2539_v1, %v2420_v22  ;;  %v4270_v32 = vpop.f32.mrb[137].mxu1  ;;  %v4342_v39 = vpop.f32.mrb[137].mxu0 }
 0x207   :  { %v4271_v10 = vadd.f32 %v4270_v32, %v4269_v8  ;;  %v4272_v50 = vpop.f32.mrb[138].mxu1  ;;  %v2542_v49 = vpop.f32.mrb[138].mxu0  ;;  %v2842_v9 = vadd.f32 %v2841_v15, %v2828_v4 }
 0x208   :  { %v5699_v58 = vadd.f32 %v2542_v49, %v2423_v40  ;;  %v4273_v59 = vpop.f32.mrb[139].mxu1  ;;  %v4343_v25 = vpop.f32.mrb[139].mxu0 }
 0x209   :  { %v4274_v56 = vadd.f32 %v4273_v59, %v4272_v50  ;;  %v2428_v48 = vadd.f32 %v4271_v10, %v5606_v20  ;;  %v2843_v62 = vrot.slane %v2842_v9, 2 }
 0x20b   :  { %v2431_v0 = vadd.f32 %v4274_v56, %v5609_v26  ;;  %v2844_v24 = vadd.f32 %v2843_v62, %v2842_v9 }
 0x20d   :  { %v4275_v34 = vpop.f32.mrb[140].mxu1  ;;  %v2547_v55 = vpop.f32.mrb[140].mxu0  ;;  %v2845_v35 = vrot.slane %v2844_v24, 1 }
 0x20e   :  { %v5703_v5 = vadd.f32 %v2547_v55, %v2428_v48  ;;  %v4276_v37 = vpop.f32.mrb[141].mxu1  ;;  %v4346_v27 = vpop.f32.mrb[141].mxu0 }
 0x20f   :  { %v4277_v60 = vadd.f32 %v4276_v37, %v4275_v34  ;;  %v4278_v12 = vpop.f32.mrb[142].mxu1  ;;  %v2550_v47 = vpop.f32.mrb[142].mxu0  ;;  %v2846_v19 = vadd.f32 %v2845_v35, %v2844_v24 }
 0x210   :  { %v5705_v13 = vadd.f32 %v2550_v47, %v2431_v0  ;;  %v4279_v53 = vpop.f32.mrb[143].mxu1  ;;  %v4347_v46 = vpop.f32.mrb[143].mxu0 }
 0x211   :  { %v4280_v20 = vadd.f32 %v4279_v53, %v4278_v12  ;;  %v2436_v31 = vadd.f32 %v4277_v60, %v5612_v45  ;;  %v2847_v26 = vmul.f32 0.012345679, %v2846_v19 }
 0x213   :  { %v2439_v63 = vadd.f32 %v4280_v20, %v5615_v52  ;;  %v5710_v44 = vsub.f32 %v5634_v29, %v2847_v26  ;;  %v5713_v61 = vsub.f32 %v5637_v14, %v2847_v26  ;;  %v5716_v38 = vsub.f32 %v5643_v2, %v2847_v26 }
 0x214   :  { %v5719_v16 = vsub.f32 %v5648_v33, %v2847_v26  ;;  %v5722_v40 = vsub.f32 %v5653_v57, %v2847_v26  ;;  %v5725_v45 = vsub.f32 %v5658_v6, %v2847_v26  ;;  %v5728_v52 = vsub.f32 %v5663_v42, %v2847_v26 }
 0x215   :  { %v4281_v30 = vpop.f32.mrb[144].mxu1  ;;  %v2555_v22 = vpop.f32.mrb[144].mxu0  ;;  %v5731_v29 = vsub.f32 %v5668_v54, %v2847_v26  ;;  %v5734_v43 = vsub.f32 %v5675_v23, %v2847_v26  ;;  %v5737_v33 = vsub.f32 %v5680_v7, %v2847_v26  ;;  %v2869_v57 = vmul.f32 %v5710_v44, %v5710_v44 }
 0x216   :  { %v4282_v14 = vpop.f32.mrb[145].mxu1  ;;  %v4350_v2 = vpop.f32.mrb[145].mxu0  ;;  %v2870_v42 = vmul.f32 %v5713_v61, %v5713_v61  ;;  %v2871_v54 = vmul.f32 %v5716_v38, %v5716_v38  ;;  %v5745_v39 = vadd.f32 %v2555_v22, %v2436_v31  ;;  %v2872_v10 = vmul.f32 %v5719_v16, %v5719_v16  ;;  %v60_v31 = vld [vmem:[#allocation2 + $0xa0] sm:$0x3] }
 0x217   :  { %v4284_v4 = vpop.f32.mrb[146].mxu1  ;;  %v2558_v6 = vpop.f32.mrb[146].mxu0  ;;  %v4283_v23 = vadd.f32 %v4282_v14, %v4281_v30  ;;  %v2873_v56 = vmul.f32 %v5722_v40, %v5722_v40  ;;  %v2874_v27 = vmul.f32 %v5725_v45, %v5725_v45  ;;  %v2875_v47 = vmul.f32 %v5728_v52, %v5728_v52 }
 0x218   :  { %v4285_v8 = vpop.f32.mrb[147].mxu1  ;;  %v4351_v1 = vpop.f32.mrb[147].mxu0  ;;  %v2911_v32 = vadd.f32 %v2870_v42, %v2869_v57  ;;  %v5747_v15 = vadd.f32 %v2558_v6, %v2439_v63  ;;  %v2858_v46 = vsub.f32 %v5691_v36, %v2847_v26  ;;  %v2876_v19 = vmul.f32 %v5731_v29, %v5731_v29 }
 0x219   :  { %v4286_v7 = vadd.f32 %v4285_v8, %v4284_v4  ;;  %v2444_v59 = vadd.f32 %v4283_v23, %v5618_v3  ;;  %v2877_v30 = vmul.f32 %v5734_v43, %v5734_v43  ;;  %v2878_v4 = vmul.f32 %v5737_v33, %v5737_v33 }
 0x21a   :  { %v2912_v50 = vadd.f32 %v2911_v32, %v2871_v54  ;;  %v2879_v57 = vmul.f32 %v2858_v46, %v2858_v46 }
 0x21b   :  { %v2447_v9 = vadd.f32 %v4286_v7, %v5620_v28 }
 0x21c   :  { %v2913_v48 = vadd.f32 %v2912_v50, %v2872_v10  ;;  %v2900_v1 = vsel %vm2724_vm2, %v2879_v57, 0.0 }
 0x21d   :  { %v4287_v49 = vpop.f32.mrb[148].mxu1  ;;  %v2563_v25 = vpop.f32.mrb[148].mxu0 }
 0x21e   :  { %v4288_v62 = vpop.f32.mrb[149].mxu1  ;;  %v4354_v0 = vpop.f32.mrb[149].mxu0  ;;  %v5755_v24 = vadd.f32 %v2563_v25, %v2444_v59  ;;  %v2914_v35 = vadd.f32 %v2913_v48, %v2873_v56 }
 0x21f   :  { %v4289_v34 = vadd.f32 %v4288_v62, %v4287_v49  ;;  %v2566_v55 = vpop.f32.mrb[150].mxu0  ;;  %v4290_v37 = vpop.f32.mrb[150].mxu1 }
 0x220   :  { %v5759_v60 = vadd.f32 %v2566_v55, %v2447_v9  ;;  %v4355_v3 = vpop.f32.mrb[151].mxu0  ;;  %v4291_v12 = vpop.f32.mrb[151].mxu1  ;;  %v2915_v53 = vadd.f32 %v2914_v35, %v2874_v27 }
 0x221   :  { %v2452_v28 = vadd.f32 %v4289_v34, %v5622_v21 }
 0x222   :  { %v2916_v20 = vadd.f32 %v2915_v53, %v2875_v47 }
 0x224   :  { %v2917_v22 = vadd.f32 %v2916_v20, %v2876_v19 }
 0x225   :  { %v2571_v63 = vpop.f32.mrb[152].mxu0 }
 0x226   :  { %v2572_v14 = vadd.f32 %v2571_v63, %v2452_v28  ;;  %v4358_v2 = vpop.f32.mrb[153].mxu0  ;;  %v2918_v6 = vadd.f32 %v2917_v22, %v2877_v30 }
 0x227   :  { %v2574_v21 = vpop.f32.mrb[154].mxu0 }
 0x228   :  { %v2597_v42 = vadd.f32 %v2572_v14, %v60_v31  ;;  %v4359_v26 = vpop.f32.mrb[155].mxu0  ;;  %v2919_v8 = vadd.f32 %v2918_v6, %v2878_v4 }
 0x229   :  { %v2662_v26 = vadd.f32 %v5629_v41, %v5697_v11  ;;  %v2666_v11 = vadd.f32 %v5629_v41, %v5745_v39 }
 0x22a   :  { %2618 = vst [vmem:[#allocation2 + $0xa0] sm:$0x3] %v2597_v42  ;;  %v2920_v54 = vadd.f32 %v2919_v8, %v2900_v1  ;;  %v2663_v1 = vadd.f32 %v5629_v41, %v5699_v58  ;;  %v2667_v58 = vadd.f32 %v5629_v41, %v5747_v15 }
 0x22c   :  { %v2932_v32 = vrot.slane %v2920_v54, 4 }
 0x22e   :  { %v2933_v23 = vadd.f32 %v2932_v32, %v2920_v54  ;;  %v2664_v32 = vadd.f32 %v5629_v41, %v5703_v5 }
 0x230   :  { %v2934_v7 = vrot.slane %v2933_v23, 2 }
 0x232   :  { %v2935_v10 = vadd.f32 %v2934_v7, %v2933_v23  ;;  %v2665_v7 = vadd.f32 %v5629_v41, %v5705_v13  ;;  %v2668_v13 = vadd.f32 %v5629_v41, %v5755_v24 }
 0x234   :  { %v2936_v50 = vrot.slane %v2935_v10, 1 }
 0x236   :  { %v2937_v49 = vadd.f32 %v2936_v50, %v2935_v10  ;;  %v2642_v10 = vld [vmem:[#allocation2 + $0xa0] sm:$0x3]  ;;  %v5831_v50 = vadd.s32 160, %v5672_v17  ;;  %v2669_v17 = vadd.f32 %v5629_v41, %v5759_v60 }
 0x238   :  { %v2938_v59 = vmul.f32 0.012345679, %v2937_v49  ;;  %vm3024_vm14 = vcmp.lt.s32.totalorder %v5831_v50, 162 }
 0x23a   :  { %v2939_v25 = vadd.f32 1e-05, %v2938_v59 }
 0x23c   :  { %4681 = vrsqrt.f32 %v2939_v25  ;;  %v5838_v25 = vadd.f32 %v5629_v41, %v2642_v10 }
 0x23e   :  { %v3108_v39 = vsel %vm3024_vm14, %v5838_v25, 0.0 }
 0x23f   :  { %v3128_v15 = vsel %vm2838_vm15, %v3108_v39, 0.0 }
 0x246   :  { %v4682_v9 = vpop.eup %4681 }
 0x247   :  { %v2941_v56 = vmul.f32 %v4682_v9, %v5710_v44  ;;  %v2942_v48 = vmul.f32 %v4682_v9, %v5713_v61  ;;  %v2943_v62 = vmul.f32 %v4682_v9, %v5716_v38  ;;  %v2944_v0 = vmul.f32 %v4682_v9, %v5719_v16 }
 0x248   :  { %v2945_v34 = vmul.f32 %v4682_v9, %v5722_v40  ;;  %v2946_v55 = vmul.f32 %v4682_v9, %v5725_v45  ;;  %v2947_v37 = vmul.f32 %v4682_v9, %v5728_v52  ;;  %v2948_v27 = vmul.f32 %v4682_v9, %v5731_v29 }
 0x249   :  { %v2949_v35 = vmul.f32 %v4682_v9, %v5734_v43  ;;  %v2950_v44 = vmul.f32 %v4682_v9, %v5737_v33  ;;  %v2951_v3 = vmul.f32 %v4682_v9, %v2858_v46  ;;  %v5786_v61 = vadd.f32 %v5629_v41, %v5686_v51 }
 0x24a   :  { %vm3272_vm4 = vcmp.ge.f32.partialorder %v2941_v56, 0.0  ;;  %vm3273_vm5 = vcmp.ge.f32.partialorder %v2942_v48, 0.0  ;;  %vm3274_vm6 = vcmp.ge.f32.partialorder %v2943_v62, 0.0  ;;  %vm3275_vm7 = vcmp.ge.f32.partialorder %v2944_v0, 0.0 }
 0x24b   :  { %vm3276_vm8 = vcmp.ge.f32.partialorder %v2945_v34, 0.0  ;;  %vm3277_vm9 = vcmp.ge.f32.partialorder %v2946_v55, 0.0  ;;  %vm3278_vm10 = vcmp.ge.f32.partialorder %v2947_v37, 0.0  ;;  %vm3279_vm11 = vcmp.ge.f32.partialorder %v2948_v27, 0.0 }
 0x24c   :  { %vm3280_vm12 = vcmp.ge.f32.partialorder %v2949_v35, 0.0  ;;  %vm3281_vm13 = vcmp.ge.f32.partialorder %v2950_v44, 0.0  ;;  %v3293_v38 = vmul.f32 0.2, %v2941_v56  ;;  %v3294_v16 = vmul.f32 0.2, %v2942_v48 }
 0x24d   :  { %v5791_v40 = vsel %vm2724_vm2, %v2951_v3, %v5691_v36  ;;  %v3295_v45 = vmul.f32 0.2, %v2943_v62  ;;  %v3296_v51 = vmul.f32 0.2, %v2944_v0  ;;  %v3297_v52 = vmul.f32 0.2, %v2945_v34 }
 0x24e   :  { %v3298_v29 = vmul.f32 0.2, %v2946_v55  ;;  %v3299_v43 = vmul.f32 0.2, %v2947_v37  ;;  %v3300_v33 = vmul.f32 0.2, %v2948_v27  ;;  %v3314_v12 = vsel %vm3272_vm4, %v2941_v56, %v3293_v38 }
 0x24f   :  { %v3301_v28 = vmul.f32 0.2, %v2949_v35  ;;  %v3302_v47 = vmul.f32 0.2, %v2950_v44  ;;  %v3315_v53 = vsel %vm3273_vm5, %v2942_v48, %v3294_v16  ;;  %v3316_v46 = vsel %vm3274_vm6, %v2943_v62, %v3295_v45 }
 0x250   :  { %v3317_v19 = vsel %vm3275_vm7, %v2944_v0, %v3296_v51  ;;  %v3318_v20 = vsel %vm3276_vm8, %v2945_v34, %v3297_v52  ;;  %v3319_v36 = vsel %vm3277_vm9, %v2946_v55, %v3298_v29  ;;  %v3320_v31 = vsel %vm3278_vm10, %v2947_v37, %v3299_v43 }
 0x251   :  { %v3321_v63 = vsel %vm3279_vm11, %v2948_v27, %v3300_v33  ;;  %v3322_v30 = vsel %vm3280_vm12, %v2949_v35, %v3301_v28  ;;  %v3323_v22 = vsel %vm3281_vm13, %v2950_v44, %v3302_v47  ;;  %v3745_v14 = vpack.c.bf16 %v3315_v53, %v3314_v12 }
 0x252   :  { %v3750_v2 = vpack.c.bf16 %v3317_v19, %v3316_v46  ;;  %v3755_v57 = vpack.c.bf16 %v3319_v36, %v3318_v20  ;;  %v3760_v21 = vpack.c.bf16 %v3321_v63, %v3320_v31  ;;  %v3765_v4 = vpack.c.bf16 %v3323_v22, %v3322_v30 }
 0x253   :  { %3746 = vst [vmem:[%s5895_s3] sm:$0xff] %v3745_v14   ;;  %v3098_v6 = vsel %vm2993_vm3, %v5791_v40, 0.0 }
 0x254   :  { %3792 = vst [vmem:[%s5895_s3 + $0x8] sm:$0xff] %v3750_v2   ;;  %3793 = vst [vmem:[%s5895_s3 + $0x10] sm:$0xff] %v3755_v57   ;;  %v3119_v42 = vadd.f32 %v3098_v6, %v5786_v61 }
 0x255   :  { %3794 = vst [vmem:[%s5895_s3 + $0x18] sm:$0xff] %v3760_v21   ;;  %3795 = vst [vmem:[%s5895_s3 + $0x20] sm:$0xff] %v3765_v4  }
 0x256   :  { %v3120_v8 = vadd.f32 %v3119_v42, %v2662_v26 }
 0x258   :  { %v3121_v54 = vadd.f32 %v3120_v8, %v2663_v1 }
 0x25a   :  { %v3122_v23 = vadd.f32 %v3121_v54, %v2664_v32 }
 0x25c   :  { %v3123_v49 = vadd.f32 %v3122_v23, %v2665_v7 }
 0x25e   :  { %v3124_v59 = vadd.f32 %v3123_v49, %v2666_v11 }
 0x260   :  { %v3125_v5 = vadd.f32 %v3124_v59, %v2667_v58 }
 0x262   :  { %v3126_v9 = vadd.f32 %v3125_v5, %v2668_v13 }
 0x264   :  { %v3127_v56 = vadd.f32 %v3126_v9, %v2669_v17 }
 0x266   :  { %v3129_v48 = vadd.f32 %v3128_v15, %v3127_v56 }
 0x268   :  { %v3130_v62 = vrot.slane %v3129_v48, 4 }
 0x26a   :  { %v3131_v0 = vadd.f32 %v3130_v62, %v3129_v48 }
 0x26c   :  { %v3132_v34 = vrot.slane %v3131_v0, 2 }
 0x26e   :  { %v3133_v55 = vadd.f32 %v3132_v34, %v3131_v0 }
 0x270   :  { %v3134_v37 = vrot.slane %v3133_v55, 1 }
 0x272   :  { %v3135_v27 = vadd.f32 %v3134_v37, %v3133_v55 }
 0x274   :  { %v3136_v24 = vmul.f32 0.012345679, %v3135_v27 }
 0x276   :  { %v3147_v35 = vsub.f32 %v5791_v40, %v3136_v24  ;;  %v3148_v41 = vsub.f32 %v5786_v61, %v3136_v24  ;;  %v3149_v60 = vsub.f32 %v2662_v26, %v3136_v24  ;;  %v3150_v44 = vsub.f32 %v2663_v1, %v3136_v24 }
 0x277   :  { %v3151_v3 = vsub.f32 %v2664_v32, %v3136_v24  ;;  %v3152_v38 = vsub.f32 %v2665_v7, %v3136_v24  ;;  %v3153_v16 = vsub.f32 %v2666_v11, %v3136_v24  ;;  %v3154_v45 = vsub.f32 %v2667_v58, %v3136_v24 }
 0x278   :  { %v3155_v51 = vsub.f32 %v2668_v13, %v3136_v24  ;;  %v3156_v52 = vsub.f32 %v2669_v17, %v3136_v24  ;;  %v3168_v29 = vmul.f32 %v3147_v35, %v3147_v35  ;;  %v3169_v43 = vmul.f32 %v3148_v41, %v3148_v41 }
 0x279   :  { %v3170_v12 = vmul.f32 %v3149_v60, %v3149_v60  ;;  %v3171_v47 = vmul.f32 %v3150_v44, %v3150_v44  ;;  %v3172_v46 = vmul.f32 %v3151_v3, %v3151_v3  ;;  %v3157_v61 = vsub.f32 %v5838_v25, %v3136_v24 }
 0x27a   :  { %v3189_v33 = vsel %vm2993_vm3, %v3168_v29, 0.0  ;;  %v3173_v20 = vmul.f32 %v3152_v38, %v3152_v38  ;;  %v3174_v31 = vmul.f32 %v3153_v16, %v3153_v16  ;;  %v3175_v30 = vmul.f32 %v3154_v45, %v3154_v45 }
 0x27b   :  { %v3210_v28 = vadd.f32 %v3189_v33, %v3169_v43  ;;  %v3178_v22 = vmul.f32 %v3157_v61, %v3157_v61  ;;  %v3176_v2 = vmul.f32 %v3155_v51, %v3155_v51  ;;  %v3177_v21 = vmul.f32 %v3156_v52, %v3156_v52 }
 0x27d   :  { %v3211_v53 = vadd.f32 %v3210_v28, %v3170_v12  ;;  %v3199_v4 = vsel %vm3024_vm14, %v3178_v22, 0.0 }
 0x27e   :  { %v3219_v26 = vsel %vm2838_vm15, %v3199_v4, 0.0 }
 0x27f   :  { %v3212_v19 = vadd.f32 %v3211_v53, %v3171_v47 }
 0x281   :  { %v3213_v36 = vadd.f32 %v3212_v19, %v3172_v46 }
 0x283   :  { %v3214_v63 = vadd.f32 %v3213_v36, %v3173_v20 }
 0x285   :  { %v3215_v14 = vadd.f32 %v3214_v63, %v3174_v31 }
 0x287   :  { %v3216_v57 = vadd.f32 %v3215_v14, %v3175_v30 }
 0x289   :  { %v3217_v6 = vadd.f32 %v3216_v57, %v3176_v2 }
 0x28b   :  { %v3218_v42 = vadd.f32 %v3217_v6, %v3177_v21 }
 0x28d   :  { %v3220_v8 = vadd.f32 %v3219_v26, %v3218_v42 }
 0x28f   :  { %v3221_v1 = vrot.slane %v3220_v8, 4 }
 0x291   :  { %v3222_v54 = vadd.f32 %v3221_v1, %v3220_v8 }
 0x293   :  { %v3223_v32 = vrot.slane %v3222_v54, 2 }
 0x295   :  { %v3224_v23 = vadd.f32 %v3223_v32, %v3222_v54 }
 0x297   :  { %v3225_v7 = vrot.slane %v3224_v23, 1 }
 0x299   :  { %v3226_v10 = vadd.f32 %v3225_v7, %v3224_v23 }
 0x29b   :  { %v3227_v49 = vmul.f32 0.012345679, %v3226_v10 }
 0x29d   :  { %v3228_v11 = vadd.f32 1e-05, %v3227_v49 }
 0x29f   :  { %4683 = vrsqrt.f32 %v3228_v11 }
 0x2a9   :  { %v4684_v59 = vpop.eup %4683 }
 0x2aa   :  { %v3240_v58 = vmul.f32 %v4684_v59, %v3147_v35  ;;  %v3241_v5 = vmul.f32 %v4684_v59, %v3148_v41  ;;  %v3242_v13 = vmul.f32 %v4684_v59, %v3149_v60  ;;  %v3243_v9 = vmul.f32 %v4684_v59, %v3150_v44 }
 0x2ab   :  { %v3244_v17 = vmul.f32 %v4684_v59, %v3151_v3  ;;  %v3245_v39 = vmul.f32 %v4684_v59, %v3152_v38  ;;  %v3246_v56 = vmul.f32 %v4684_v59, %v3153_v16  ;;  %v3247_v15 = vmul.f32 %v4684_v59, %v3154_v45 }
 0x2ac   :  { %v3248_v48 = vmul.f32 %v4684_v59, %v3155_v51  ;;  %v3249_v62 = vmul.f32 %v4684_v59, %v3156_v52  ;;  %v3250_v0 = vmul.f32 %v4684_v59, %v3157_v61  ;;  %v3261_v34 = vsel %vm2993_vm3, %v3240_v58, %v5791_v40 }
 0x2ad   :  { %vm3282_vm0 = vcmp.ge.f32.partialorder %v3261_v34, 0.0  ;;  %vm3283_vm1 = vcmp.ge.f32.partialorder %v3241_v5, 0.0  ;;  %vm3284_vm2 = vcmp.ge.f32.partialorder %v3242_v13, 0.0  ;;  %vm3285_vm4 = vcmp.ge.f32.partialorder %v3243_v9, 0.0 }
 0x2ae   :  { %v3271_v55 = vsel %vm3024_vm14, %v3250_v0, %v5838_v25  ;;  %vm3286_vm5 = vcmp.ge.f32.partialorder %v3244_v17, 0.0  ;;  %vm3287_vm6 = vcmp.ge.f32.partialorder %v3245_v39, 0.0  ;;  %vm3288_vm7 = vcmp.ge.f32.partialorder %v3246_v56, 0.0 }
 0x2af   :  { %vm3289_vm8 = vcmp.ge.f32.partialorder %v3247_v15, 0.0  ;;  %vm3290_vm9 = vcmp.ge.f32.partialorder %v3248_v48, 0.0  ;;  %vm3291_vm10 = vcmp.ge.f32.partialorder %v3249_v62, 0.0  ;;  %vm3292_vm11 = vcmp.ge.f32.partialorder %v3271_v55, 0.0 }
 0x2b0   :  { %v3303_v37 = vmul.f32 0.2, %v3261_v34  ;;  %v3304_v27 = vmul.f32 0.2, %v3241_v5  ;;  %v3305_v24 = vmul.f32 0.2, %v3242_v13 }
 0x2b1   :  { %v3306_v18 = vmul.f32 0.2, %v3243_v9  ;;  %v3307_v40 = vmul.f32 0.2, %v3244_v17  ;;  %v3308_v35 = vmul.f32 0.2, %v3245_v39 }
 0x2b2   :  { %v3309_v41 = vmul.f32 0.2, %v3246_v56  ;;  %v3310_v60 = vmul.f32 0.2, %v3247_v15  ;;  %v3311_v44 = vmul.f32 0.2, %v3248_v48  ;;  %v3324_v3 = vsel %vm3282_vm0, %v3261_v34, %v3303_v37 }
 0x2b3   :  { %v3312_v50 = vmul.f32 0.2, %v3249_v62  ;;  %v3313_v25 = vmul.f32 0.2, %v3271_v55  ;;  %v3325_v38 = vsel %vm3283_vm1, %v3241_v5, %v3304_v27  ;;  %v3326_v16 = vsel %vm3284_vm2, %v3242_v13, %v3305_v24 }
 0x2b4   :  { %v3327_v45 = vsel %vm3285_vm4, %v3243_v9, %v3306_v18  ;;  %v3328_v51 = vsel %vm3286_vm5, %v3244_v17, %v3307_v40  ;;  %v3329_v52 = vsel %vm3287_vm6, %v3245_v39, %v3308_v35  ;;  %v3330_v29 = vsel %vm3288_vm7, %v3246_v56, %v3309_v41 }
 0x2b5   :  { %v3331_v43 = vsel %vm3289_vm8, %v3247_v15, %v3310_v60  ;;  %v3332_v33 = vsel %vm3290_vm9, %v3248_v48, %v3311_v44  ;;  %v3333_v12 = vsel %vm3291_vm10, %v3249_v62, %v3312_v50  ;;  %v3334_v28 = vsel %vm3292_vm11, %v3271_v55, %v3313_v25 }
 0x2b6   :  { %v3741_v47 = vpack.c.bf16 %v3334_v28, %v3334_v28  ;;  %v3770_v53 = vpack.c.bf16 %v3325_v38, %v3324_v3  ;;  %v3775_v46 = vpack.c.bf16 %v3327_v45, %v3326_v16  ;;  %v3780_v19 = vpack.c.bf16 %v3329_v52, %v3328_v51 }
 0x2b7   :  { %v3785_v61 = vpack.c.bf16 %v3331_v43, %v3330_v29  ;;  %v3790_v20 = vpack.c.bf16 %v3333_v12, %v3332_v33 }
 0x2b8   :  { %3796 = vst [vmem:[%s5895_s3 + $0x28] sm:$0xff] %v3770_v53   ;;  %3797 = vst [vmem:[%s5895_s3 + $0x30] sm:$0xff] %v3775_v46  }
 0x2b9   :  { %3798 = vst [vmem:[%s5895_s3 + $0x38] sm:$0xff] %v3780_v19   ;;  %3440 = vst [vmem:[%s5895_s3 + $0x50] sm:$0x1] %v3741_v47 }
 0x2ba   :  { %3799 = vst [vmem:[%s5895_s3 + $0x40] sm:$0xff] %v3785_v61   ;;  %3800 = vst [vmem:[%s5895_s3 + $0x48] sm:$0xff] %v3790_v20  }

// kernel: discriminator2_pallas.4
= control target key start
LH: loop header
LB: loop body
LE: loop exit
PB: predicated region body
PF: predicated region fallthrough
CT: control target
= control target key end

     0   :  { %s8159_s12 = smov 0   ;;  %s8161_s13 = smov 0   ;;  %s10124_s0 = inlined_call_operand.vmem [shape: bf16[98,3200], index: 0, kind: input, shape index: {}]   ;;  %s10125_s1 = inlined_call_operand.vmem [shape: bf16[3200,256], index: 1, kind: input, shape index: {}]   ;;  %s10126_s2 = inlined_call_operand.vmem [shape: f32[1,256], index: 2, kind: input, shape index: {}]   ;;  %s10127_s3 = inlined_call_operand.vmem [shape: bf16[98,256], index: 3, kind: output, shape index: {}]  }
   0x1   :  { %s8163_s14 = smov 0   ;;  %s8165_s15 = smov 0  }
   0x2   :  { %s8167_s16 = smov 0  }
   0x3 LB: > { %s25_s17 = sadd.s32 1, %s8131_s15  ;;  %s6383_s18 = sadd.s32 4294967295, %s8135_s16   ;;  %s8135_s16 = sphi %s8167_s16, %s13_s16   ;;  %s8131_s15 = sphi %s8165_s15, %s10132_s15   ;;  %s8127_s14 = sphi %s8163_s14, %s10131_s14   ;;  %s8123_s13 = sphi %s8161_s13, %s10130_s13   ;;  %s8119_s12 = sphi %s8159_s12, %s10129_s12  }
   0x4   : > { %p27_p0 = scmp.ge.s32.totalorder %s25_s17, 2  ;;  %p67_p1 = scmp.ne.s32.totalorder %s8123_s13, %s8119_s12 }
   0x5   : > { %p68_p2 = scmp.eq.s32.totalorder %s8135_s16, 0  ;;  %p123_p4 = scmp.eq.s32.totalorder %s6383_s18, 1 }
   0x6   : > { %s10134_s17 = smov (%p27_p0, %s25_s17), 0  ;;  %s60_s20 = sadd.s32 1, %s8123_s13 }
   0x7   : > { %p69_p3 = por %p68_p2, %p67_p1  ;;  %s56_s19 = ssub.s32 %s8131_s15, %s10134_s17 }
   0x8   : > { %p58_p5 = scmp.eq.s32.totalorder %s56_s19, 0  ;;  %p8194_p6 = por %p123_p4, %p67_p1 }
   0x9   : > { %p6387_p7 = scmp.ge.s32.totalorder %s8135_s16, 2 }
   0xa   : > { %s8199_s22 = scalar_select %p58_p5, %s8123_s13, %s60_s20  }
   0xb   : > { %154 = sbr.rel (%p6387_p7) target bundleno = 289 (0x121), region = 20 }
  0x12   : > { %157 = sbr.rel (!%p69_p3) target bundleno = 289 (0x121), region = 24  ;;  %s159_s23 = sand.u32 (%p69_p3), 1, %s8123_s13  }
  0x13   : > { %s6388_s24 = sshll.u32 (%p69_p3), %s8131_s15, 2  ;;  %s7601_s25 = smul.u32 (%p69_p3), 1600, %s159_s23 }
  0x14   : > { %s8207_s28 = scalar_lea.vmem (%p69_p3), %s10125_s1, %s6388_s24 }
  0x15   : > { %v182_v0 = vld [vmem:[%s8207_s28] sm:$0xf] (%p69_p3)  ;;  %v184_v1 = vld [vmem:[%s8207_s28 + $0x8] sm:$0xf] (%p69_p3)  ;;  %v186_v2 = vld [vmem:[%s8207_s28 + $0x10] sm:$0xf] (%p69_p3) }
  0x16   : > { %v188_v3 = vld [vmem:[%s8207_s28 + $0x18] sm:$0xf] (%p69_p3)  ;;  %v190_v4 = vld [vmem:[%s8207_s28 + $0x20] sm:$0xf] (%p69_p3)  ;;  %s8214_s29 = scalar_lea.vmem (%p69_p3), [#allocation3], %s7601_s25 }
  0x17   : > { %183 = vst [vmem:[%s8214_s29] sm:$0xf] (%p69_p3), %v182_v0  ;;  %185 = vst [vmem:[%s8214_s29 + $0x4] sm:$0xf] (%p69_p3), %v184_v1  ;;  %v192_v5 = vld [vmem:[%s8207_s28 + $0x28] sm:$0xf] (%p69_p3) }
  0x18   : > { %187 = vst [vmem:[%s8214_s29 + $0x8] sm:$0xf] (%p69_p3), %v186_v2  ;;  %189 = vst [vmem:[%s8214_s29 + $0xc] sm:$0xf] (%p69_p3), %v188_v3  ;;  %v194_v6 = vld [vmem:[%s8207_s28 + $0x30] sm:$0xf] (%p69_p3) }
  0x19   : > { %191 = vst [vmem:[%s8214_s29 + $0x10] sm:$0xf] %v190_v4  ;;  %v196_v7 = vld [vmem:[%s8207_s28 + $0x38] sm:$0xf]  ;;  %193 = vst [vmem:[%s8214_s29 + $0x14] sm:$0xf] %v192_v5 }
  0x1a   : > { %195 = vst [vmem:[%s8214_s29 + $0x18] sm:$0xf] %v194_v6  ;;  %197 = vst [vmem:[%s8214_s29 + $0x1c] sm:$0xf] %v196_v7  ;;  %v198_v8 = vld [vmem:[%s8207_s28 + $0x40] sm:$0xf] }
  0x1b   : > { %v200_v9 = vld [vmem:[%s8207_s28 + $0x48] sm:$0xf]  ;;  %v202_v10 = vld [vmem:[%s8207_s28 + $0x50] sm:$0xf]  ;;  %199 = vst [vmem:[%s8214_s29 + $0x20] sm:$0xf] %v198_v8 }
  0x1c   : > { %201 = vst [vmem:[%s8214_s29 + $0x24] sm:$0xf] %v200_v9  ;;  %203 = vst [vmem:[%s8214_s29 + $0x28] sm:$0xf] %v202_v10  ;;  %v204_v11 = vld [vmem:[%s8207_s28 + $0x58] sm:$0xf] }
  0x1d   : > { %v206_v12 = vld [vmem:[%s8207_s28 + $0x60] sm:$0xf]  ;;  %v208_v13 = vld [vmem:[%s8207_s28 + $0x68] sm:$0xf]  ;;  %205 = vst [vmem:[%s8214_s29 + $0x2c] sm:$0xf] %v204_v11 }
  0x1e   : > { %207 = vst [vmem:[%s8214_s29 + $0x30] sm:$0xf] %v206_v12  ;;  %209 = vst [vmem:[%s8214_s29 + $0x34] sm:$0xf] %v208_v13  ;;  %v210_v14 = vld [vmem:[%s8207_s28 + $0x70] sm:$0xf] }
  0x1f   : > { %v212_v15 = vld [vmem:[%s8207_s28 + $0x78] sm:$0xf]  ;;  %v214_v16 = vld [vmem:[%s8207_s28 + $0x80] sm:$0xf]  ;;  %211 = vst [vmem:[%s8214_s29 + $0x38] sm:$0xf] %v210_v14 }
  0x20   : > { %213 = vst [vmem:[%s8214_s29 + $0x3c] sm:$0xf] %v212_v15  ;;  %215 = vst [vmem:[%s8214_s29 + $0x40] sm:$0xf] %v214_v16  ;;  %v216_v17 = vld [vmem:[%s8207_s28 + $0x88] sm:$0xf] }
  0x21   : > { %v218_v18 = vld [vmem:[%s8207_s28 + $0x90] sm:$0xf]  ;;  %v220_v19 = vld [vmem:[%s8207_s28 + $0x98] sm:$0xf]  ;;  %217 = vst [vmem:[%s8214_s29 + $0x44] sm:$0xf] %v216_v17 }
  0x22   : > { %219 = vst [vmem:[%s8214_s29 + $0x48] sm:$0xf] %v218_v18  ;;  %221 = vst [vmem:[%s8214_s29 + $0x4c] sm:$0xf] %v220_v19  ;;  %v222_v20 = vld [vmem:[%s8207_s28 + $0xa0] sm:$0xf] }
  0x23   : > { %v224_v21 = vld [vmem:[%s8207_s28 + $0xa8] sm:$0xf]  ;;  %v226_v22 = vld [vmem:[%s8207_s28 + $0xb0] sm:$0xf]  ;;  %223 = vst [vmem:[%s8214_s29 + $0x50] sm:$0xf] %v222_v20 }
  0x24   : > { %225 = vst [vmem:[%s8214_s29 + $0x54] sm:$0xf] %v224_v21  ;;  %227 = vst [vmem:[%s8214_s29 + $0x58] sm:$0xf] %v226_v22  ;;  %v228_v23 = vld [vmem:[%s8207_s28 + $0xb8] sm:$0xf] }
  0x25   : > { %v230_v24 = vld [vmem:[%s8207_s28 + $0xc0] sm:$0xf]  ;;  %v232_v25 = vld [vmem:[%s8207_s28 + $0xc8] sm:$0xf]  ;;  %229 = vst [vmem:[%s8214_s29 + $0x5c] sm:$0xf] %v228_v23 }
  0x26   : > { %231 = vst [vmem:[%s8214_s29 + $0x60] sm:$0xf] %v230_v24  ;;  %233 = vst [vmem:[%s8214_s29 + $0x64] sm:$0xf] %v232_v25  ;;  %v234_v26 = vld [vmem:[%s8207_s28 + $0xd0] sm:$0xf] }
  0x27   : > { %v236_v27 = vld [vmem:[%s8207_s28 + $0xd8] sm:$0xf]  ;;  %v238_v28 = vld [vmem:[%s8207_s28 + $0xe0] sm:$0xf]  ;;  %235 = vst [vmem:[%s8214_s29 + $0x68] sm:$0xf] %v234_v26 }
  0x28   : > { %237 = vst [vmem:[%s8214_s29 + $0x6c] sm:$0xf] %v236_v27  ;;  %239 = vst [vmem:[%s8214_s29 + $0x70] sm:$0xf] %v238_v28  ;;  %v240_v29 = vld [vmem:[%s8207_s28 + $0xe8] sm:$0xf] }
  0x29   : > { %v242_v30 = vld [vmem:[%s8207_s28 + $0xf0] sm:$0xf]  ;;  %v244_v31 = vld [vmem:[%s8207_s28 + $0xf8] sm:$0xf]  ;;  %241 = vst [vmem:[%s8214_s29 + $0x74] sm:$0xf] %v240_v29 }
  0x2a   : > { %243 = vst [vmem:[%s8214_s29 + $0x78] sm:$0xf] %v242_v30  ;;  %245 = vst [vmem:[%s8214_s29 + $0x7c] sm:$0xf] %v244_v31  ;;  %v246_v32 = vld [vmem:[%s8207_s28 + $0x100] sm:$0xf] }
  0x2b   : > { %v248_v33 = vld [vmem:[%s8207_s28 + $0x108] sm:$0xf]  ;;  %v250_v34 = vld [vmem:[%s8207_s28 + $0x110] sm:$0xf]  ;;  %247 = vst [vmem:[%s8214_s29 + $0x80] sm:$0xf] %v246_v32 }
  0x2c   : > { %249 = vst [vmem:[%s8214_s29 + $0x84] sm:$0xf] %v248_v33  ;;  %251 = vst [vmem:[%s8214_s29 + $0x88] sm:$0xf] %v250_v34  ;;  %v252_v35 = vld [vmem:[%s8207_s28 + $0x118] sm:$0xf] }
  0x2d   : > { %v254_v36 = vld [vmem:[%s8207_s28 + $0x120] sm:$0xf]  ;;  %v256_v37 = vld [vmem:[%s8207_s28 + $0x128] sm:$0xf]  ;;  %253 = vst [vmem:[%s8214_s29 + $0x8c] sm:$0xf] %v252_v35 }
  0x2e   : > { %255 = vst [vmem:[%s8214_s29 + $0x90] sm:$0xf] %v254_v36  ;;  %257 = vst [vmem:[%s8214_s29 + $0x94] sm:$0xf] %v256_v37  ;;  %v258_v38 = vld [vmem:[%s8207_s28 + $0x130] sm:$0xf] }
  0x2f   : > { %v260_v39 = vld [vmem:[%s8207_s28 + $0x138] sm:$0xf]  ;;  %v262_v40 = vld [vmem:[%s8207_s28 + $0x140] sm:$0xf]  ;;  %259 = vst [vmem:[%s8214_s29 + $0x98] sm:$0xf] %v258_v38 }
  0x30   : > { %261 = vst [vmem:[%s8214_s29 + $0x9c] sm:$0xf] %v260_v39  ;;  %263 = vst [vmem:[%s8214_s29 + $0xa0] sm:$0xf] %v262_v40  ;;  %v264_v41 = vld [vmem:[%s8207_s28 + $0x148] sm:$0xf] }
  0x31   : > { %v266_v42 = vld [vmem:[%s8207_s28 + $0x150] sm:$0xf]  ;;  %v268_v43 = vld [vmem:[%s8207_s28 + $0x158] sm:$0xf]  ;;  %265 = vst [vmem:[%s8214_s29 + $0xa4] sm:$0xf] %v264_v41 }
  0x32   : > { %267 = vst [vmem:[%s8214_s29 + $0xa8] sm:$0xf] %v266_v42  ;;  %269 = vst [vmem:[%s8214_s29 + $0xac] sm:$0xf] %v268_v43  ;;  %v270_v44 = vld [vmem:[%s8207_s28 + $0x160] sm:$0xf] }
  0x33   : > { %v272_v45 = vld [vmem:[%s8207_s28 + $0x168] sm:$0xf]  ;;  %v274_v46 = vld [vmem:[%s8207_s28 + $0x170] sm:$0xf]  ;;  %271 = vst [vmem:[%s8214_s29 + $0xb0] sm:$0xf] %v270_v44 }
  0x34   : > { %273 = vst [vmem:[%s8214_s29 + $0xb4] sm:$0xf] %v272_v45  ;;  %275 = vst [vmem:[%s8214_s29 + $0xb8] sm:$0xf] %v274_v46  ;;  %v276_v47 = vld [vmem:[%s8207_s28 + $0x178] sm:$0xf] }
  0x35   : > { %v278_v48 = vld [vmem:[%s8207_s28 + $0x180] sm:$0xf]  ;;  %v280_v49 = vld [vmem:[%s8207_s28 + $0x188] sm:$0xf]  ;;  %277 = vst [vmem:[%s8214_s29 + $0xbc] sm:$0xf] %v276_v47 }
  0x36   : > { %279 = vst [vmem:[%s8214_s29 + $0xc0] sm:$0xf] %v278_v48  ;;  %281 = vst [vmem:[%s8214_s29 + $0xc4] sm:$0xf] %v280_v49  ;;  %v282_v50 = vld [vmem:[%s8207_s28 + $0x190] sm:$0xf] }
  0x37   : > { %v284_v51 = vld [vmem:[%s8207_s28 + $0x198] sm:$0xf]  ;;  %v286_v52 = vld [vmem:[%s8207_s28 + $0x1a0] sm:$0xf]  ;;  %283 = vst [vmem:[%s8214_s29 + $0xc8] sm:$0xf] %v282_v50 }
  0x38   : > { %285 = vst [vmem:[%s8214_s29 + $0xcc] sm:$0xf] %v284_v51  ;;  %287 = vst [vmem:[%s8214_s29 + $0xd0] sm:$0xf] %v286_v52  ;;  %v288_v53 = vld [vmem:[%s8207_s28 + $0x1a8] sm:$0xf] }
  0x39   : > { %v290_v54 = vld [vmem:[%s8207_s28 + $0x1b0] sm:$0xf]  ;;  %v292_v55 = vld [vmem:[%s8207_s28 + $0x1b8] sm:$0xf]  ;;  %289 = vst [vmem:[%s8214_s29 + $0xd4] sm:$0xf] %v288_v53 }
  0x3a   : > { %291 = vst [vmem:[%s8214_s29 + $0xd8] sm:$0xf] %v290_v54  ;;  %293 = vst [vmem:[%s8214_s29 + $0xdc] sm:$0xf] %v292_v55  ;;  %v294_v56 = vld [vmem:[%s8207_s28 + $0x1c0] sm:$0xf] }
  0x3b   : > { %v296_v57 = vld [vmem:[%s8207_s28 + $0x1c8] sm:$0xf]  ;;  %v298_v58 = vld [vmem:[%s8207_s28 + $0x1d0] sm:$0xf]  ;;  %295 = vst [vmem:[%s8214_s29 + $0xe0] sm:$0xf] %v294_v56 }
  0x3c   : > { %297 = vst [vmem:[%s8214_s29 + $0xe4] sm:$0xf] %v296_v57  ;;  %299 = vst [vmem:[%s8214_s29 + $0xe8] sm:$0xf] %v298_v58  ;;  %v300_v59 = vld [vmem:[%s8207_s28 + $0x1d8] sm:$0xf] }
  0x3d   : > { %v302_v60 = vld [vmem:[%s8207_s28 + $0x1e0] sm:$0xf]  ;;  %v304_v61 = vld [vmem:[%s8207_s28 + $0x1e8] sm:$0xf]  ;;  %301 = vst [vmem:[%s8214_s29 + $0xec] sm:$0xf] %v300_v59 }
  0x3e   : > { %303 = vst [vmem:[%s8214_s29 + $0xf0] sm:$0xf] %v302_v60  ;;  %305 = vst [vmem:[%s8214_s29 + $0xf4] sm:$0xf] %v304_v61  ;;  %v306_v62 = vld [vmem:[%s8207_s28 + $0x1f0] sm:$0xf] }
  0x3f   : > { %v308_v63 = vld [vmem:[%s8207_s28 + $0x1f8] sm:$0xf]  ;;  %v310_v0 = vld [vmem:[%s8207_s28 + $0x200] sm:$0xf]  ;;  %307 = vst [vmem:[%s8214_s29 + $0xf8] sm:$0xf] %v306_v62 }
  0x40   : > { %309 = vst [vmem:[%s8214_s29 + $0xfc] sm:$0xf] %v308_v63  ;;  %311 = vst [vmem:[%s8214_s29 + $0x100] sm:$0xf] %v310_v0  ;;  %v312_v1 = vld [vmem:[%s8207_s28 + $0x208] sm:$0xf] }
  0x41   : > { %v314_v2 = vld [vmem:[%s8207_s28 + $0x210] sm:$0xf]  ;;  %v316_v3 = vld [vmem:[%s8207_s28 + $0x218] sm:$0xf]  ;;  %313 = vst [vmem:[%s8214_s29 + $0x104] sm:$0xf] %v312_v1 }
  0x42   : > { %315 = vst [vmem:[%s8214_s29 + $0x108] sm:$0xf] %v314_v2  ;;  %317 = vst [vmem:[%s8214_s29 + $0x10c] sm:$0xf] %v316_v3  ;;  %v318_v4 = vld [vmem:[%s8207_s28 + $0x220] sm:$0xf] }
  0x43   : > { %v320_v5 = vld [vmem:[%s8207_s28 + $0x228] sm:$0xf]  ;;  %v322_v6 = vld [vmem:[%s8207_s28 + $0x230] sm:$0xf]  ;;  %319 = vst [vmem:[%s8214_s29 + $0x110] sm:$0xf] %v318_v4 }
  0x44   : > { %321 = vst [vmem:[%s8214_s29 + $0x114] sm:$0xf] %v320_v5  ;;  %323 = vst [vmem:[%s8214_s29 + $0x118] sm:$0xf] %v322_v6  ;;  %v324_v7 = vld [vmem:[%s8207_s28 + $0x238] sm:$0xf] }
  0x45   : > { %v326_v8 = vld [vmem:[%s8207_s28 + $0x240] sm:$0xf]  ;;  %v328_v9 = vld [vmem:[%s8207_s28 + $0x248] sm:$0xf]  ;;  %325 = vst [vmem:[%s8214_s29 + $0x11c] sm:$0xf] %v324_v7 }
  0x46   : > { %327 = vst [vmem:[%s8214_s29 + $0x120] sm:$0xf] %v326_v8  ;;  %329 = vst [vmem:[%s8214_s29 + $0x124] sm:$0xf] %v328_v9  ;;  %v330_v10 = vld [vmem:[%s8207_s28 + $0x250] sm:$0xf] }
  0x47   : > { %v332_v11 = vld [vmem:[%s8207_s28 + $0x258] sm:$0xf]  ;;  %v334_v12 = vld [vmem:[%s8207_s28 + $0x260] sm:$0xf]  ;;  %331 = vst [vmem:[%s8214_s29 + $0x128] sm:$0xf] %v330_v10 }
  0x48   : > { %333 = vst [vmem:[%s8214_s29 + $0x12c] sm:$0xf] %v332_v11  ;;  %335 = vst [vmem:[%s8214_s29 + $0x130] sm:$0xf] %v334_v12  ;;  %v336_v13 = vld [vmem:[%s8207_s28 + $0x268] sm:$0xf] }
  0x49   : > { %v338_v14 = vld [vmem:[%s8207_s28 + $0x270] sm:$0xf]  ;;  %v340_v15 = vld [vmem:[%s8207_s28 + $0x278] sm:$0xf]  ;;  %337 = vst [vmem:[%s8214_s29 + $0x134] sm:$0xf] %v336_v13 }
  0x4a   : > { %339 = vst [vmem:[%s8214_s29 + $0x138] sm:$0xf] %v338_v14  ;;  %341 = vst [vmem:[%s8214_s29 + $0x13c] sm:$0xf] %v340_v15  ;;  %v342_v16 = vld [vmem:[%s8207_s28 + $0x280] sm:$0xf] }
  0x4b   : > { %v344_v17 = vld [vmem:[%s8207_s28 + $0x288] sm:$0xf]  ;;  %v346_v18 = vld [vmem:[%s8207_s28 + $0x290] sm:$0xf]  ;;  %343 = vst [vmem:[%s8214_s29 + $0x140] sm:$0xf] %v342_v16 }
  0x4c   : > { %345 = vst [vmem:[%s8214_s29 + $0x144] sm:$0xf] %v344_v17  ;;  %347 = vst [vmem:[%s8214_s29 + $0x148] sm:$0xf] %v346_v18  ;;  %v348_v19 = vld [vmem:[%s8207_s28 + $0x298] sm:$0xf] }
  0x4d   : > { %v350_v20 = vld [vmem:[%s8207_s28 + $0x2a0] sm:$0xf]  ;;  %v352_v21 = vld [vmem:[%s8207_s28 + $0x2a8] sm:$0xf]  ;;  %349 = vst [vmem:[%s8214_s29 + $0x14c] sm:$0xf] %v348_v19 }
  0x4e   : > { %351 = vst [vmem:[%s8214_s29 + $0x150] sm:$0xf] %v350_v20  ;;  %353 = vst [vmem:[%s8214_s29 + $0x154] sm:$0xf] %v352_v21  ;;  %v354_v22 = vld [vmem:[%s8207_s28 + $0x2b0] sm:$0xf] }
  0x4f   : > { %v356_v23 = vld [vmem:[%s8207_s28 + $0x2b8] sm:$0xf]  ;;  %v358_v24 = vld [vmem:[%s8207_s28 + $0x2c0] sm:$0xf]  ;;  %355 = vst [vmem:[%s8214_s29 + $0x158] sm:$0xf] %v354_v22 }
  0x50   : > { %357 = vst [vmem:[%s8214_s29 + $0x15c] sm:$0xf] %v356_v23  ;;  %359 = vst [vmem:[%s8214_s29 + $0x160] sm:$0xf] %v358_v24  ;;  %v360_v25 = vld [vmem:[%s8207_s28 + $0x2c8] sm:$0xf] }
  0x51   : > { %v362_v26 = vld [vmem:[%s8207_s28 + $0x2d0] sm:$0xf]  ;;  %v364_v27 = vld [vmem:[%s8207_s28 + $0x2d8] sm:$0xf]  ;;  %361 = vst [vmem:[%s8214_s29 + $0x164] sm:$0xf] %v360_v25 }
  0x52   : > { %363 = vst [vmem:[%s8214_s29 + $0x168] sm:$0xf] %v362_v26  ;;  %365 = vst [vmem:[%s8214_s29 + $0x16c] sm:$0xf] %v364_v27  ;;  %v366_v28 = vld [vmem:[%s8207_s28 + $0x2e0] sm:$0xf] }
  0x53   : > { %v368_v29 = vld [vmem:[%s8207_s28 + $0x2e8] sm:$0xf]  ;;  %v370_v30 = vld [vmem:[%s8207_s28 + $0x2f0] sm:$0xf]  ;;  %367 = vst [vmem:[%s8214_s29 + $0x170] sm:$0xf] %v366_v28 }
  0x54   : > { %369 = vst [vmem:[%s8214_s29 + $0x174] sm:$0xf] %v368_v29  ;;  %371 = vst [vmem:[%s8214_s29 + $0x178] sm:$0xf] %v370_v30  ;;  %v372_v31 = vld [vmem:[%s8207_s28 + $0x2f8] sm:$0xf] }
  0x55   : > { %v374_v32 = vld [vmem:[%s8207_s28 + $0x300] sm:$0xf]  ;;  %v376_v33 = vld [vmem:[%s8207_s28 + $0x308] sm:$0xf]  ;;  %373 = vst [vmem:[%s8214_s29 + $0x17c] sm:$0xf] %v372_v31 }
  0x56   : > { %375 = vst [vmem:[%s8214_s29 + $0x180] sm:$0xf] %v374_v32  ;;  %377 = vst [vmem:[%s8214_s29 + $0x184] sm:$0xf] %v376_v33  ;;  %v378_v34 = vld [vmem:[%s8207_s28 + $0x310] sm:$0xf] }
  0x57   : > { %v380_v35 = vld [vmem:[%s8207_s28 + $0x318] sm:$0xf]  ;;  %v382_v36 = vld [vmem:[%s8207_s28 + $0x320] sm:$0xf]  ;;  %379 = vst [vmem:[%s8214_s29 + $0x188] sm:$0xf] %v378_v34 }
  0x58   : > { %381 = vst [vmem:[%s8214_s29 + $0x18c] sm:$0xf] %v380_v35  ;;  %383 = vst [vmem:[%s8214_s29 + $0x190] sm:$0xf] %v382_v36  ;;  %v384_v37 = vld [vmem:[%s8207_s28 + $0x328] sm:$0xf] }
  0x59   : > { %v386_v38 = vld [vmem:[%s8207_s28 + $0x330] sm:$0xf]  ;;  %v388_v39 = vld [vmem:[%s8207_s28 + $0x338] sm:$0xf]  ;;  %385 = vst [vmem:[%s8214_s29 + $0x194] sm:$0xf] %v384_v37 }
  0x5a   : > { %387 = vst [vmem:[%s8214_s29 + $0x198] sm:$0xf] %v386_v38  ;;  %389 = vst [vmem:[%s8214_s29 + $0x19c] sm:$0xf] %v388_v39  ;;  %v390_v40 = vld [vmem:[%s8207_s28 + $0x340] sm:$0xf] }
  0x5b   : > { %v392_v41 = vld [vmem:[%s8207_s28 + $0x348] sm:$0xf]  ;;  %v394_v42 = vld [vmem:[%s8207_s28 + $0x350] sm:$0xf]  ;;  %391 = vst [vmem:[%s8214_s29 + $0x1a0] sm:$0xf] %v390_v40 }
  0x5c   : > { %393 = vst [vmem:[%s8214_s29 + $0x1a4] sm:$0xf] %v392_v41  ;;  %395 = vst [vmem:[%s8214_s29 + $0x1a8] sm:$0xf] %v394_v42  ;;  %v396_v43 = vld [vmem:[%s8207_s28 + $0x358] sm:$0xf] }
  0x5d   : > { %v398_v44 = vld [vmem:[%s8207_s28 + $0x360] sm:$0xf]  ;;  %v400_v45 = vld [vmem:[%s8207_s28 + $0x368] sm:$0xf]  ;;  %397 = vst [vmem:[%s8214_s29 + $0x1ac] sm:$0xf] %v396_v43 }
  0x5e   : > { %399 = vst [vmem:[%s8214_s29 + $0x1b0] sm:$0xf] %v398_v44  ;;  %401 = vst [vmem:[%s8214_s29 + $0x1b4] sm:$0xf] %v400_v45  ;;  %v402_v46 = vld [vmem:[%s8207_s28 + $0x370] sm:$0xf] }
  0x5f   : > { %v404_v47 = vld [vmem:[%s8207_s28 + $0x378] sm:$0xf]  ;;  %v406_v48 = vld [vmem:[%s8207_s28 + $0x380] sm:$0xf]  ;;  %403 = vst [vmem:[%s8214_s29 + $0x1b8] sm:$0xf] %v402_v46 }
  0x60   : > { %405 = vst [vmem:[%s8214_s29 + $0x1bc] sm:$0xf] %v404_v47  ;;  %407 = vst [vmem:[%s8214_s29 + $0x1c0] sm:$0xf] %v406_v48  ;;  %v408_v49 = vld [vmem:[%s8207_s28 + $0x388] sm:$0xf] }
  0x61   : > { %v410_v50 = vld [vmem:[%s8207_s28 + $0x390] sm:$0xf]  ;;  %v412_v51 = vld [vmem:[%s8207_s28 + $0x398] sm:$0xf]  ;;  %409 = vst [vmem:[%s8214_s29 + $0x1c4] sm:$0xf] %v408_v49 }
  0x62   : > { %411 = vst [vmem:[%s8214_s29 + $0x1c8] sm:$0xf] %v410_v50  ;;  %413 = vst [vmem:[%s8214_s29 + $0x1cc] sm:$0xf] %v412_v51  ;;  %v414_v52 = vld [vmem:[%s8207_s28 + $0x3a0] sm:$0xf] }
  0x63   : > { %v416_v53 = vld [vmem:[%s8207_s28 + $0x3a8] sm:$0xf]  ;;  %v418_v54 = vld [vmem:[%s8207_s28 + $0x3b0] sm:$0xf]  ;;  %415 = vst [vmem:[%s8214_s29 + $0x1d0] sm:$0xf] %v414_v52 }
  0x64   : > { %417 = vst [vmem:[%s8214_s29 + $0x1d4] sm:$0xf] %v416_v53  ;;  %419 = vst [vmem:[%s8214_s29 + $0x1d8] sm:$0xf] %v418_v54  ;;  %v420_v55 = vld [vmem:[%s8207_s28 + $0x3b8] sm:$0xf] }
  0x65   : > { %v422_v56 = vld [vmem:[%s8207_s28 + $0x3c0] sm:$0xf]  ;;  %v424_v57 = vld [vmem:[%s8207_s28 + $0x3c8] sm:$0xf]  ;;  %421 = vst [vmem:[%s8214_s29 + $0x1dc] sm:$0xf] %v420_v55 }
  0x66   : > { %423 = vst [vmem:[%s8214_s29 + $0x1e0] sm:$0xf] %v422_v56  ;;  %425 = vst [vmem:[%s8214_s29 + $0x1e4] sm:$0xf] %v424_v57  ;;  %v426_v58 = vld [vmem:[%s8207_s28 + $0x3d0] sm:$0xf] }
  0x67   : > { %v428_v59 = vld [vmem:[%s8207_s28 + $0x3d8] sm:$0xf]  ;;  %v430_v60 = vld [vmem:[%s8207_s28 + $0x3e0] sm:$0xf]  ;;  %427 = vst [vmem:[%s8214_s29 + $0x1e8] sm:$0xf] %v426_v58 }
  0x68   : > { %429 = vst [vmem:[%s8214_s29 + $0x1ec] sm:$0xf] %v428_v59  ;;  %431 = vst [vmem:[%s8214_s29 + $0x1f0] sm:$0xf] %v430_v60  ;;  %v432_v61 = vld [vmem:[%s8207_s28 + $0x3e8] sm:$0xf] }
  0x69   : > { %v434_v62 = vld [vmem:[%s8207_s28 + $0x3f0] sm:$0xf]  ;;  %v436_v63 = vld [vmem:[%s8207_s28 + $0x3f8] sm:$0xf]  ;;  %433 = vst [vmem:[%s8214_s29 + $0x1f4] sm:$0xf] %v432_v61 }
  0x6a   : > { %435 = vst [vmem:[%s8214_s29 + $0x1f8] sm:$0xf] %v434_v62  ;;  %437 = vst [vmem:[%s8214_s29 + $0x1fc] sm:$0xf] %v436_v63  ;;  %v438_v0 = vld [vmem:[%s8207_s28 + $0x400] sm:$0xf] }
  0x6b   : > { %v440_v1 = vld [vmem:[%s8207_s28 + $0x408] sm:$0xf]  ;;  %v442_v2 = vld [vmem:[%s8207_s28 + $0x410] sm:$0xf]  ;;  %439 = vst [vmem:[%s8214_s29 + $0x200] sm:$0xf] %v438_v0 }
  0x6c   : > { %441 = vst [vmem:[%s8214_s29 + $0x204] sm:$0xf] %v440_v1  ;;  %443 = vst [vmem:[%s8214_s29 + $0x208] sm:$0xf] %v442_v2  ;;  %v444_v3 = vld [vmem:[%s8207_s28 + $0x418] sm:$0xf] }
  0x6d   : > { %v446_v4 = vld [vmem:[%s8207_s28 + $0x420] sm:$0xf]  ;;  %v448_v5 = vld [vmem:[%s8207_s28 + $0x428] sm:$0xf]  ;;  %445 = vst [vmem:[%s8214_s29 + $0x20c] sm:$0xf] %v444_v3 }
  0x6e   : > { %447 = vst [vmem:[%s8214_s29 + $0x210] sm:$0xf] %v446_v4  ;;  %449 = vst [vmem:[%s8214_s29 + $0x214] sm:$0xf] %v448_v5  ;;  %v450_v6 = vld [vmem:[%s8207_s28 + $0x430] sm:$0xf] }
  0x6f   : > { %v452_v7 = vld [vmem:[%s8207_s28 + $0x438] sm:$0xf]  ;;  %v454_v8 = vld [vmem:[%s8207_s28 + $0x440] sm:$0xf]  ;;  %451 = vst [vmem:[%s8214_s29 + $0x218] sm:$0xf] %v450_v6 }
  0x70   : > { %453 = vst [vmem:[%s8214_s29 + $0x21c] sm:$0xf] %v452_v7  ;;  %455 = vst [vmem:[%s8214_s29 + $0x220] sm:$0xf] %v454_v8  ;;  %v456_v9 = vld [vmem:[%s8207_s28 + $0x448] sm:$0xf] }
  0x71   : > { %v458_v10 = vld [vmem:[%s8207_s28 + $0x450] sm:$0xf]  ;;  %v460_v11 = vld [vmem:[%s8207_s28 + $0x458] sm:$0xf]  ;;  %457 = vst [vmem:[%s8214_s29 + $0x224] sm:$0xf] %v456_v9 }
  0x72   : > { %459 = vst [vmem:[%s8214_s29 + $0x228] sm:$0xf] %v458_v10  ;;  %461 = vst [vmem:[%s8214_s29 + $0x22c] sm:$0xf] %v460_v11  ;;  %v462_v12 = vld [vmem:[%s8207_s28 + $0x460] sm:$0xf] }
  0x73   : > { %v464_v13 = vld [vmem:[%s8207_s28 + $0x468] sm:$0xf]  ;;  %v466_v14 = vld [vmem:[%s8207_s28 + $0x470] sm:$0xf]  ;;  %463 = vst [vmem:[%s8214_s29 + $0x230] sm:$0xf] %v462_v12 }
  0x74   : > { %465 = vst [vmem:[%s8214_s29 + $0x234] sm:$0xf] %v464_v13  ;;  %467 = vst [vmem:[%s8214_s29 + $0x238] sm:$0xf] %v466_v14  ;;  %v468_v15 = vld [vmem:[%s8207_s28 + $0x478] sm:$0xf] }
  0x75   : > { %v470_v16 = vld [vmem:[%s8207_s28 + $0x480] sm:$0xf]  ;;  %v472_v17 = vld [vmem:[%s8207_s28 + $0x488] sm:$0xf]  ;;  %469 = vst [vmem:[%s8214_s29 + $0x23c] sm:$0xf] %v468_v15 }
  0x76   : > { %471 = vst [vmem:[%s8214_s29 + $0x240] sm:$0xf] %v470_v16  ;;  %473 = vst [vmem:[%s8214_s29 + $0x244] sm:$0xf] %v472_v17  ;;  %v474_v18 = vld [vmem:[%s8207_s28 + $0x490] sm:$0xf] }
  0x77   : > { %v476_v19 = vld [vmem:[%s8207_s28 + $0x498] sm:$0xf]  ;;  %v478_v20 = vld [vmem:[%s8207_s28 + $0x4a0] sm:$0xf]  ;;  %475 = vst [vmem:[%s8214_s29 + $0x248] sm:$0xf] %v474_v18 }
  0x78   : > { %477 = vst [vmem:[%s8214_s29 + $0x24c] sm:$0xf] %v476_v19  ;;  %479 = vst [vmem:[%s8214_s29 + $0x250] sm:$0xf] %v478_v20  ;;  %v480_v21 = vld [vmem:[%s8207_s28 + $0x4a8] sm:$0xf] }
  0x79   : > { %v482_v22 = vld [vmem:[%s8207_s28 + $0x4b0] sm:$0xf]  ;;  %v484_v23 = vld [vmem:[%s8207_s28 + $0x4b8] sm:$0xf]  ;;  %481 = vst [vmem:[%s8214_s29 + $0x254] sm:$0xf] %v480_v21 }
  0x7a   : > { %483 = vst [vmem:[%s8214_s29 + $0x258] sm:$0xf] %v482_v22  ;;  %485 = vst [vmem:[%s8214_s29 + $0x25c] sm:$0xf] %v484_v23  ;;  %v486_v24 = vld [vmem:[%s8207_s28 + $0x4c0] sm:$0xf] }
  0x7b   : > { %v488_v25 = vld [vmem:[%s8207_s28 + $0x4c8] sm:$0xf]  ;;  %v490_v26 = vld [vmem:[%s8207_s28 + $0x4d0] sm:$0xf]  ;;  %487 = vst [vmem:[%s8214_s29 + $0x260] sm:$0xf] %v486_v24 }
  0x7c   : > { %489 = vst [vmem:[%s8214_s29 + $0x264] sm:$0xf] %v488_v25  ;;  %491 = vst [vmem:[%s8214_s29 + $0x268] sm:$0xf] %v490_v26  ;;  %v492_v27 = vld [vmem:[%s8207_s28 + $0x4d8] sm:$0xf] }
  0x7d   : > { %v494_v28 = vld [vmem:[%s8207_s28 + $0x4e0] sm:$0xf]  ;;  %v496_v29 = vld [vmem:[%s8207_s28 + $0x4e8] sm:$0xf]  ;;  %493 = vst [vmem:[%s8214_s29 + $0x26c] sm:$0xf] %v492_v27 }
  0x7e   : > { %495 = vst [vmem:[%s8214_s29 + $0x270] sm:$0xf] %v494_v28  ;;  %497 = vst [vmem:[%s8214_s29 + $0x274] sm:$0xf] %v496_v29  ;;  %v498_v30 = vld [vmem:[%s8207_s28 + $0x4f0] sm:$0xf] }
  0x7f   : > { %v500_v31 = vld [vmem:[%s8207_s28 + $0x4f8] sm:$0xf]  ;;  %v502_v32 = vld [vmem:[%s8207_s28 + $0x500] sm:$0xf]  ;;  %499 = vst [vmem:[%s8214_s29 + $0x278] sm:$0xf] %v498_v30 }
  0x80   : > { %501 = vst [vmem:[%s8214_s29 + $0x27c] sm:$0xf] %v500_v31  ;;  %503 = vst [vmem:[%s8214_s29 + $0x280] sm:$0xf] %v502_v32  ;;  %v504_v33 = vld [vmem:[%s8207_s28 + $0x508] sm:$0xf] }
  0x81   : > { %v506_v34 = vld [vmem:[%s8207_s28 + $0x510] sm:$0xf]  ;;  %v508_v35 = vld [vmem:[%s8207_s28 + $0x518] sm:$0xf]  ;;  %505 = vst [vmem:[%s8214_s29 + $0x284] sm:$0xf] %v504_v33 }
  0x82   : > { %507 = vst [vmem:[%s8214_s29 + $0x288] sm:$0xf] %v506_v34  ;;  %509 = vst [vmem:[%s8214_s29 + $0x28c] sm:$0xf] %v508_v35  ;;  %v510_v36 = vld [vmem:[%s8207_s28 + $0x520] sm:$0xf] }
  0x83   : > { %v512_v37 = vld [vmem:[%s8207_s28 + $0x528] sm:$0xf]  ;;  %v514_v38 = vld [vmem:[%s8207_s28 + $0x530] sm:$0xf]  ;;  %511 = vst [vmem:[%s8214_s29 + $0x290] sm:$0xf] %v510_v36 }
  0x84   : > { %513 = vst [vmem:[%s8214_s29 + $0x294] sm:$0xf] %v512_v37  ;;  %515 = vst [vmem:[%s8214_s29 + $0x298] sm:$0xf] %v514_v38  ;;  %v516_v39 = vld [vmem:[%s8207_s28 + $0x538] sm:$0xf] }
  0x85   : > { %v518_v40 = vld [vmem:[%s8207_s28 + $0x540] sm:$0xf]  ;;  %v520_v41 = vld [vmem:[%s8207_s28 + $0x548] sm:$0xf]  ;;  %517 = vst [vmem:[%s8214_s29 + $0x29c] sm:$0xf] %v516_v39 }
  0x86   : > { %519 = vst [vmem:[%s8214_s29 + $0x2a0] sm:$0xf] %v518_v40  ;;  %521 = vst [vmem:[%s8214_s29 + $0x2a4] sm:$0xf] %v520_v41  ;;  %v522_v42 = vld [vmem:[%s8207_s28 + $0x550] sm:$0xf] }
  0x87   : > { %v524_v43 = vld [vmem:[%s8207_s28 + $0x558] sm:$0xf]  ;;  %v526_v44 = vld [vmem:[%s8207_s28 + $0x560] sm:$0xf]  ;;  %523 = vst [vmem:[%s8214_s29 + $0x2a8] sm:$0xf] %v522_v42 }
  0x88   : > { %525 = vst [vmem:[%s8214_s29 + $0x2ac] sm:$0xf] %v524_v43  ;;  %527 = vst [vmem:[%s8214_s29 + $0x2b0] sm:$0xf] %v526_v44  ;;  %v528_v45 = vld [vmem:[%s8207_s28 + $0x568] sm:$0xf] }
  0x89   : > { %v530_v46 = vld [vmem:[%s8207_s28 + $0x570] sm:$0xf]  ;;  %v532_v47 = vld [vmem:[%s8207_s28 + $0x578] sm:$0xf]  ;;  %529 = vst [vmem:[%s8214_s29 + $0x2b4] sm:$0xf] %v528_v45 }
  0x8a   : > { %531 = vst [vmem:[%s8214_s29 + $0x2b8] sm:$0xf] %v530_v46  ;;  %533 = vst [vmem:[%s8214_s29 + $0x2bc] sm:$0xf] %v532_v47  ;;  %v534_v48 = vld [vmem:[%s8207_s28 + $0x580] sm:$0xf] }
  0x8b   : > { %v536_v49 = vld [vmem:[%s8207_s28 + $0x588] sm:$0xf]  ;;  %v538_v50 = vld [vmem:[%s8207_s28 + $0x590] sm:$0xf]  ;;  %535 = vst [vmem:[%s8214_s29 + $0x2c0] sm:$0xf] %v534_v48 }
  0x8c   : > { %537 = vst [vmem:[%s8214_s29 + $0x2c4] sm:$0xf] %v536_v49  ;;  %539 = vst [vmem:[%s8214_s29 + $0x2c8] sm:$0xf] %v538_v50  ;;  %v540_v51 = vld [vmem:[%s8207_s28 + $0x598] sm:$0xf] }
  0x8d   : > { %v542_v52 = vld [vmem:[%s8207_s28 + $0x5a0] sm:$0xf]  ;;  %v544_v53 = vld [vmem:[%s8207_s28 + $0x5a8] sm:$0xf]  ;;  %541 = vst [vmem:[%s8214_s29 + $0x2cc] sm:$0xf] %v540_v51 }
  0x8e   : > { %543 = vst [vmem:[%s8214_s29 + $0x2d0] sm:$0xf] %v542_v52  ;;  %545 = vst [vmem:[%s8214_s29 + $0x2d4] sm:$0xf] %v544_v53  ;;  %v546_v54 = vld [vmem:[%s8207_s28 + $0x5b0] sm:$0xf] }
  0x8f   : > { %v548_v55 = vld [vmem:[%s8207_s28 + $0x5b8] sm:$0xf]  ;;  %v550_v56 = vld [vmem:[%s8207_s28 + $0x5c0] sm:$0xf]  ;;  %547 = vst [vmem:[%s8214_s29 + $0x2d8] sm:$0xf] %v546_v54 }
  0x90   : > { %549 = vst [vmem:[%s8214_s29 + $0x2dc] sm:$0xf] %v548_v55  ;;  %551 = vst [vmem:[%s8214_s29 + $0x2e0] sm:$0xf] %v550_v56  ;;  %v552_v57 = vld [vmem:[%s8207_s28 + $0x5c8] sm:$0xf] }
  0x91   : > { %v554_v58 = vld [vmem:[%s8207_s28 + $0x5d0] sm:$0xf]  ;;  %v556_v59 = vld [vmem:[%s8207_s28 + $0x5d8] sm:$0xf]  ;;  %553 = vst [vmem:[%s8214_s29 + $0x2e4] sm:$0xf] %v552_v57 }
  0x92   : > { %555 = vst [vmem:[%s8214_s29 + $0x2e8] sm:$0xf] %v554_v58  ;;  %557 = vst [vmem:[%s8214_s29 + $0x2ec] sm:$0xf] %v556_v59  ;;  %v558_v60 = vld [vmem:[%s8207_s28 + $0x5e0] sm:$0xf] }
  0x93   : > { %v560_v61 = vld [vmem:[%s8207_s28 + $0x5e8] sm:$0xf]  ;;  %v562_v62 = vld [vmem:[%s8207_s28 + $0x5f0] sm:$0xf]  ;;  %559 = vst [vmem:[%s8214_s29 + $0x2f0] sm:$0xf] %v558_v60 }
  0x94   : > { %561 = vst [vmem:[%s8214_s29 + $0x2f4] sm:$0xf] %v560_v61  ;;  %563 = vst [vmem:[%s8214_s29 + $0x2f8] sm:$0xf] %v562_v62  ;;  %v564_v63 = vld [vmem:[%s8207_s28 + $0x5f8] sm:$0xf] }
  0x95   : > { %v566_v0 = vld [vmem:[%s8207_s28 + $0x600] sm:$0xf]  ;;  %v568_v1 = vld [vmem:[%s8207_s28 + $0x608] sm:$0xf]  ;;  %565 = vst [vmem:[%s8214_s29 + $0x2fc] sm:$0xf] %v564_v63 }
  0x96   : > { %567 = vst [vmem:[%s8214_s29 + $0x300] sm:$0xf] %v566_v0  ;;  %569 = vst [vmem:[%s8214_s29 + $0x304] sm:$0xf] %v568_v1  ;;  %v570_v2 = vld [vmem:[%s8207_s28 + $0x610] sm:$0xf] }
  0x97   : > { %v572_v3 = vld [vmem:[%s8207_s28 + $0x618] sm:$0xf]  ;;  %v574_v4 = vld [vmem:[%s8207_s28 + $0x620] sm:$0xf]  ;;  %571 = vst [vmem:[%s8214_s29 + $0x308] sm:$0xf] %v570_v2 }
  0x98   : > { %573 = vst [vmem:[%s8214_s29 + $0x30c] sm:$0xf] %v572_v3  ;;  %575 = vst [vmem:[%s8214_s29 + $0x310] sm:$0xf] %v574_v4  ;;  %v576_v5 = vld [vmem:[%s8207_s28 + $0x628] sm:$0xf] }
  0x99   : > { %v578_v6 = vld [vmem:[%s8207_s28 + $0x630] sm:$0xf]  ;;  %v580_v7 = vld [vmem:[%s8207_s28 + $0x638] sm:$0xf]  ;;  %577 = vst [vmem:[%s8214_s29 + $0x314] sm:$0xf] %v576_v5 }
  0x9a   : > { %579 = vst [vmem:[%s8214_s29 + $0x318] sm:$0xf] %v578_v6  ;;  %581 = vst [vmem:[%s8214_s29 + $0x31c] sm:$0xf] %v580_v7  ;;  %v582_v8 = vld [vmem:[%s8207_s28 + $0x640] sm:$0xf] }
  0x9b   : > { %v584_v9 = vld [vmem:[%s8207_s28 + $0x648] sm:$0xf]  ;;  %v586_v10 = vld [vmem:[%s8207_s28 + $0x650] sm:$0xf]  ;;  %583 = vst [vmem:[%s8214_s29 + $0x320] sm:$0xf] %v582_v8 }
  0x9c   : > { %585 = vst [vmem:[%s8214_s29 + $0x324] sm:$0xf] %v584_v9  ;;  %587 = vst [vmem:[%s8214_s29 + $0x328] sm:$0xf] %v586_v10  ;;  %v588_v11 = vld [vmem:[%s8207_s28 + $0x658] sm:$0xf] }
  0x9d   : > { %v590_v12 = vld [vmem:[%s8207_s28 + $0x660] sm:$0xf]  ;;  %v592_v13 = vld [vmem:[%s8207_s28 + $0x668] sm:$0xf]  ;;  %589 = vst [vmem:[%s8214_s29 + $0x32c] sm:$0xf] %v588_v11 }
  0x9e   : > { %591 = vst [vmem:[%s8214_s29 + $0x330] sm:$0xf] %v590_v12  ;;  %593 = vst [vmem:[%s8214_s29 + $0x334] sm:$0xf] %v592_v13  ;;  %v594_v14 = vld [vmem:[%s8207_s28 + $0x670] sm:$0xf] }
  0x9f   : > { %v596_v15 = vld [vmem:[%s8207_s28 + $0x678] sm:$0xf]  ;;  %v598_v16 = vld [vmem:[%s8207_s28 + $0x680] sm:$0xf]  ;;  %595 = vst [vmem:[%s8214_s29 + $0x338] sm:$0xf] %v594_v14 }
  0xa0   : > { %597 = vst [vmem:[%s8214_s29 + $0x33c] sm:$0xf] %v596_v15  ;;  %599 = vst [vmem:[%s8214_s29 + $0x340] sm:$0xf] %v598_v16  ;;  %v600_v17 = vld [vmem:[%s8207_s28 + $0x688] sm:$0xf] }
  0xa1   : > { %v602_v18 = vld [vmem:[%s8207_s28 + $0x690] sm:$0xf]  ;;  %v604_v19 = vld [vmem:[%s8207_s28 + $0x698] sm:$0xf]  ;;  %601 = vst [vmem:[%s8214_s29 + $0x344] sm:$0xf] %v600_v17 }
  0xa2   : > { %603 = vst [vmem:[%s8214_s29 + $0x348] sm:$0xf] %v602_v18  ;;  %605 = vst [vmem:[%s8214_s29 + $0x34c] sm:$0xf] %v604_v19  ;;  %v606_v20 = vld [vmem:[%s8207_s28 + $0x6a0] sm:$0xf] }
  0xa3   : > { %v608_v21 = vld [vmem:[%s8207_s28 + $0x6a8] sm:$0xf]  ;;  %v610_v22 = vld [vmem:[%s8207_s28 + $0x6b0] sm:$0xf]  ;;  %607 = vst [vmem:[%s8214_s29 + $0x350] sm:$0xf] %v606_v20 }
  0xa4   : > { %609 = vst [vmem:[%s8214_s29 + $0x354] sm:$0xf] %v608_v21  ;;  %611 = vst [vmem:[%s8214_s29 + $0x358] sm:$0xf] %v610_v22  ;;  %v612_v23 = vld [vmem:[%s8207_s28 + $0x6b8] sm:$0xf] }
  0xa5   : > { %v614_v24 = vld [vmem:[%s8207_s28 + $0x6c0] sm:$0xf]  ;;  %v616_v25 = vld [vmem:[%s8207_s28 + $0x6c8] sm:$0xf]  ;;  %613 = vst [vmem:[%s8214_s29 + $0x35c] sm:$0xf] %v612_v23 }
  0xa6   : > { %615 = vst [vmem:[%s8214_s29 + $0x360] sm:$0xf] %v614_v24  ;;  %617 = vst [vmem:[%s8214_s29 + $0x364] sm:$0xf] %v616_v25  ;;  %v618_v26 = vld [vmem:[%s8207_s28 + $0x6d0] sm:$0xf] }
  0xa7   : > { %v620_v27 = vld [vmem:[%s8207_s28 + $0x6d8] sm:$0xf]  ;;  %v622_v28 = vld [vmem:[%s8207_s28 + $0x6e0] sm:$0xf]  ;;  %619 = vst [vmem:[%s8214_s29 + $0x368] sm:$0xf] %v618_v26 }
  0xa8   : > { %621 = vst [vmem:[%s8214_s29 + $0x36c] sm:$0xf] %v620_v27  ;;  %623 = vst [vmem:[%s8214_s29 + $0x370] sm:$0xf] %v622_v28  ;;  %v624_v29 = vld [vmem:[%s8207_s28 + $0x6e8] sm:$0xf] }
  0xa9   : > { %v626_v30 = vld [vmem:[%s8207_s28 + $0x6f0] sm:$0xf]  ;;  %v628_v31 = vld [vmem:[%s8207_s28 + $0x6f8] sm:$0xf]  ;;  %625 = vst [vmem:[%s8214_s29 + $0x374] sm:$0xf] %v624_v29 }
  0xaa   : > { %627 = vst [vmem:[%s8214_s29 + $0x378] sm:$0xf] %v626_v30  ;;  %629 = vst [vmem:[%s8214_s29 + $0x37c] sm:$0xf] %v628_v31  ;;  %v630_v32 = vld [vmem:[%s8207_s28 + $0x700] sm:$0xf] }
  0xab   : > { %v632_v33 = vld [vmem:[%s8207_s28 + $0x708] sm:$0xf]  ;;  %v634_v34 = vld [vmem:[%s8207_s28 + $0x710] sm:$0xf]  ;;  %631 = vst [vmem:[%s8214_s29 + $0x380] sm:$0xf] %v630_v32 }
  0xac   : > { %633 = vst [vmem:[%s8214_s29 + $0x384] sm:$0xf] %v632_v33  ;;  %635 = vst [vmem:[%s8214_s29 + $0x388] sm:$0xf] %v634_v34  ;;  %v636_v35 = vld [vmem:[%s8207_s28 + $0x718] sm:$0xf] }
  0xad   : > { %v638_v36 = vld [vmem:[%s8207_s28 + $0x720] sm:$0xf]  ;;  %v640_v37 = vld [vmem:[%s8207_s28 + $0x728] sm:$0xf]  ;;  %637 = vst [vmem:[%s8214_s29 + $0x38c] sm:$0xf] %v636_v35 }
  0xae   : > { %639 = vst [vmem:[%s8214_s29 + $0x390] sm:$0xf] %v638_v36  ;;  %641 = vst [vmem:[%s8214_s29 + $0x394] sm:$0xf] %v640_v37  ;;  %v642_v38 = vld [vmem:[%s8207_s28 + $0x730] sm:$0xf] }
  0xaf   : > { %v644_v39 = vld [vmem:[%s8207_s28 + $0x738] sm:$0xf]  ;;  %v646_v40 = vld [vmem:[%s8207_s28 + $0x740] sm:$0xf]  ;;  %643 = vst [vmem:[%s8214_s29 + $0x398] sm:$0xf] %v642_v38 }
  0xb0   : > { %645 = vst [vmem:[%s8214_s29 + $0x39c] sm:$0xf] %v644_v39  ;;  %647 = vst [vmem:[%s8214_s29 + $0x3a0] sm:$0xf] %v646_v40  ;;  %v648_v41 = vld [vmem:[%s8207_s28 + $0x748] sm:$0xf] }
  0xb1   : > { %v650_v42 = vld [vmem:[%s8207_s28 + $0x750] sm:$0xf]  ;;  %v652_v43 = vld [vmem:[%s8207_s28 + $0x758] sm:$0xf]  ;;  %649 = vst [vmem:[%s8214_s29 + $0x3a4] sm:$0xf] %v648_v41 }
  0xb2   : > { %651 = vst [vmem:[%s8214_s29 + $0x3a8] sm:$0xf] %v650_v42  ;;  %653 = vst [vmem:[%s8214_s29 + $0x3ac] sm:$0xf] %v652_v43  ;;  %v654_v44 = vld [vmem:[%s8207_s28 + $0x760] sm:$0xf] }
  0xb3   : > { %v656_v45 = vld [vmem:[%s8207_s28 + $0x768] sm:$0xf]  ;;  %v658_v46 = vld [vmem:[%s8207_s28 + $0x770] sm:$0xf]  ;;  %655 = vst [vmem:[%s8214_s29 + $0x3b0] sm:$0xf] %v654_v44 }
  0xb4   : > { %657 = vst [vmem:[%s8214_s29 + $0x3b4] sm:$0xf] %v656_v45  ;;  %659 = vst [vmem:[%s8214_s29 + $0x3b8] sm:$0xf] %v658_v46  ;;  %v660_v47 = vld [vmem:[%s8207_s28 + $0x778] sm:$0xf] }
  0xb5   : > { %v662_v48 = vld [vmem:[%s8207_s28 + $0x780] sm:$0xf]  ;;  %v664_v49 = vld [vmem:[%s8207_s28 + $0x788] sm:$0xf]  ;;  %661 = vst [vmem:[%s8214_s29 + $0x3bc] sm:$0xf] %v660_v47 }
  0xb6   : > { %663 = vst [vmem:[%s8214_s29 + $0x3c0] sm:$0xf] %v662_v48  ;;  %665 = vst [vmem:[%s8214_s29 + $0x3c4] sm:$0xf] %v664_v49  ;;  %v666_v50 = vld [vmem:[%s8207_s28 + $0x790] sm:$0xf] }
  0xb7   : > { %v668_v51 = vld [vmem:[%s8207_s28 + $0x798] sm:$0xf]  ;;  %v670_v52 = vld [vmem:[%s8207_s28 + $0x7a0] sm:$0xf]  ;;  %667 = vst [vmem:[%s8214_s29 + $0x3c8] sm:$0xf] %v666_v50 }
  0xb8   : > { %669 = vst [vmem:[%s8214_s29 + $0x3cc] sm:$0xf] %v668_v51  ;;  %671 = vst [vmem:[%s8214_s29 + $0x3d0] sm:$0xf] %v670_v52  ;;  %v672_v53 = vld [vmem:[%s8207_s28 + $0x7a8] sm:$0xf] }
  0xb9   : > { %v674_v54 = vld [vmem:[%s8207_s28 + $0x7b0] sm:$0xf]  ;;  %v676_v55 = vld [vmem:[%s8207_s28 + $0x7b8] sm:$0xf]  ;;  %673 = vst [vmem:[%s8214_s29 + $0x3d4] sm:$0xf] %v672_v53 }
  0xba   : > { %675 = vst [vmem:[%s8214_s29 + $0x3d8] sm:$0xf] %v674_v54  ;;  %677 = vst [vmem:[%s8214_s29 + $0x3dc] sm:$0xf] %v676_v55  ;;  %v678_v56 = vld [vmem:[%s8207_s28 + $0x7c0] sm:$0xf] }
  0xbb   : > { %v680_v57 = vld [vmem:[%s8207_s28 + $0x7c8] sm:$0xf]  ;;  %v682_v58 = vld [vmem:[%s8207_s28 + $0x7d0] sm:$0xf]  ;;  %679 = vst [vmem:[%s8214_s29 + $0x3e0] sm:$0xf] %v678_v56 }
  0xbc   : > { %681 = vst [vmem:[%s8214_s29 + $0x3e4] sm:$0xf] %v680_v57  ;;  %683 = vst [vmem:[%s8214_s29 + $0x3e8] sm:$0xf] %v682_v58  ;;  %v684_v59 = vld [vmem:[%s8207_s28 + $0x7d8] sm:$0xf] }
  0xbd   : > { %v686_v60 = vld [vmem:[%s8207_s28 + $0x7e0] sm:$0xf]  ;;  %v688_v61 = vld [vmem:[%s8207_s28 + $0x7e8] sm:$0xf]  ;;  %685 = vst [vmem:[%s8214_s29 + $0x3ec] sm:$0xf] %v684_v59 }
  0xbe   : > { %687 = vst [vmem:[%s8214_s29 + $0x3f0] sm:$0xf] %v686_v60  ;;  %689 = vst [vmem:[%s8214_s29 + $0x3f4] sm:$0xf] %v688_v61  ;;  %v690_v62 = vld [vmem:[%s8207_s28 + $0x7f0] sm:$0xf] }
  0xbf   : > { %v692_v63 = vld [vmem:[%s8207_s28 + $0x7f8] sm:$0xf]  ;;  %v694_v0 = vld [vmem:[%s8207_s28 + $0x800] sm:$0xf]  ;;  %691 = vst [vmem:[%s8214_s29 + $0x3f8] sm:$0xf] %v690_v62 }
  0xc0   : > { %693 = vst [vmem:[%s8214_s29 + $0x3fc] sm:$0xf] %v692_v63  ;;  %695 = vst [vmem:[%s8214_s29 + $0x400] sm:$0xf] %v694_v0  ;;  %v696_v1 = vld [vmem:[%s8207_s28 + $0x808] sm:$0xf] }
  0xc1   : > { %v698_v2 = vld [vmem:[%s8207_s28 + $0x810] sm:$0xf]  ;;  %v700_v3 = vld [vmem:[%s8207_s28 + $0x818] sm:$0xf]  ;;  %697 = vst [vmem:[%s8214_s29 + $0x404] sm:$0xf] %v696_v1 }
  0xc2   : > { %699 = vst [vmem:[%s8214_s29 + $0x408] sm:$0xf] %v698_v2  ;;  %701 = vst [vmem:[%s8214_s29 + $0x40c] sm:$0xf] %v700_v3  ;;  %v702_v4 = vld [vmem:[%s8207_s28 + $0x820] sm:$0xf] }
  0xc3   : > { %v704_v5 = vld [vmem:[%s8207_s28 + $0x828] sm:$0xf]  ;;  %v706_v6 = vld [vmem:[%s8207_s28 + $0x830] sm:$0xf]  ;;  %703 = vst [vmem:[%s8214_s29 + $0x410] sm:$0xf] %v702_v4 }
  0xc4   : > { %705 = vst [vmem:[%s8214_s29 + $0x414] sm:$0xf] %v704_v5  ;;  %707 = vst [vmem:[%s8214_s29 + $0x418] sm:$0xf] %v706_v6  ;;  %v708_v7 = vld [vmem:[%s8207_s28 + $0x838] sm:$0xf] }
  0xc5   : > { %v710_v8 = vld [vmem:[%s8207_s28 + $0x840] sm:$0xf]  ;;  %v712_v9 = vld [vmem:[%s8207_s28 + $0x848] sm:$0xf]  ;;  %709 = vst [vmem:[%s8214_s29 + $0x41c] sm:$0xf] %v708_v7 }
  0xc6   : > { %711 = vst [vmem:[%s8214_s29 + $0x420] sm:$0xf] %v710_v8  ;;  %713 = vst [vmem:[%s8214_s29 + $0x424] sm:$0xf] %v712_v9  ;;  %v714_v10 = vld [vmem:[%s8207_s28 + $0x850] sm:$0xf] }
  0xc7   : > { %v716_v11 = vld [vmem:[%s8207_s28 + $0x858] sm:$0xf]  ;;  %v718_v12 = vld [vmem:[%s8207_s28 + $0x860] sm:$0xf]  ;;  %715 = vst [vmem:[%s8214_s29 + $0x428] sm:$0xf] %v714_v10 }
  0xc8   : > { %717 = vst [vmem:[%s8214_s29 + $0x42c] sm:$0xf] %v716_v11  ;;  %719 = vst [vmem:[%s8214_s29 + $0x430] sm:$0xf] %v718_v12  ;;  %v720_v13 = vld [vmem:[%s8207_s28 + $0x868] sm:$0xf] }
  0xc9   : > { %v722_v14 = vld [vmem:[%s8207_s28 + $0x870] sm:$0xf]  ;;  %v724_v15 = vld [vmem:[%s8207_s28 + $0x878] sm:$0xf]  ;;  %721 = vst [vmem:[%s8214_s29 + $0x434] sm:$0xf] %v720_v13 }
  0xca   : > { %723 = vst [vmem:[%s8214_s29 + $0x438] sm:$0xf] %v722_v14  ;;  %725 = vst [vmem:[%s8214_s29 + $0x43c] sm:$0xf] %v724_v15  ;;  %v726_v16 = vld [vmem:[%s8207_s28 + $0x880] sm:$0xf] }
  0xcb   : > { %v728_v17 = vld [vmem:[%s8207_s28 + $0x888] sm:$0xf]  ;;  %v730_v18 = vld [vmem:[%s8207_s28 + $0x890] sm:$0xf]  ;;  %727 = vst [vmem:[%s8214_s29 + $0x440] sm:$0xf] %v726_v16 }
  0xcc   : > { %729 = vst [vmem:[%s8214_s29 + $0x444] sm:$0xf] %v728_v17  ;;  %731 = vst [vmem:[%s8214_s29 + $0x448] sm:$0xf] %v730_v18  ;;  %v732_v19 = vld [vmem:[%s8207_s28 + $0x898] sm:$0xf] }
  0xcd   : > { %v734_v20 = vld [vmem:[%s8207_s28 + $0x8a0] sm:$0xf]  ;;  %v736_v21 = vld [vmem:[%s8207_s28 + $0x8a8] sm:$0xf]  ;;  %733 = vst [vmem:[%s8214_s29 + $0x44c] sm:$0xf] %v732_v19 }
  0xce   : > { %735 = vst [vmem:[%s8214_s29 + $0x450] sm:$0xf] %v734_v20  ;;  %737 = vst [vmem:[%s8214_s29 + $0x454] sm:$0xf] %v736_v21  ;;  %v738_v22 = vld [vmem:[%s8207_s28 + $0x8b0] sm:$0xf] }
  0xcf   : > { %v740_v23 = vld [vmem:[%s8207_s28 + $0x8b8] sm:$0xf]  ;;  %v742_v24 = vld [vmem:[%s8207_s28 + $0x8c0] sm:$0xf]  ;;  %739 = vst [vmem:[%s8214_s29 + $0x458] sm:$0xf] %v738_v22 }
  0xd0   : > { %741 = vst [vmem:[%s8214_s29 + $0x45c] sm:$0xf] %v740_v23  ;;  %743 = vst [vmem:[%s8214_s29 + $0x460] sm:$0xf] %v742_v24  ;;  %v744_v25 = vld [vmem:[%s8207_s28 + $0x8c8] sm:$0xf] }
  0xd1   : > { %v746_v26 = vld [vmem:[%s8207_s28 + $0x8d0] sm:$0xf]  ;;  %v748_v27 = vld [vmem:[%s8207_s28 + $0x8d8] sm:$0xf]  ;;  %745 = vst [vmem:[%s8214_s29 + $0x464] sm:$0xf] %v744_v25 }
  0xd2   : > { %747 = vst [vmem:[%s8214_s29 + $0x468] sm:$0xf] %v746_v26  ;;  %749 = vst [vmem:[%s8214_s29 + $0x46c] sm:$0xf] %v748_v27  ;;  %v750_v28 = vld [vmem:[%s8207_s28 + $0x8e0] sm:$0xf] }
  0xd3   : > { %v752_v29 = vld [vmem:[%s8207_s28 + $0x8e8] sm:$0xf]  ;;  %v754_v30 = vld [vmem:[%s8207_s28 + $0x8f0] sm:$0xf]  ;;  %751 = vst [vmem:[%s8214_s29 + $0x470] sm:$0xf] %v750_v28 }
  0xd4   : > { %753 = vst [vmem:[%s8214_s29 + $0x474] sm:$0xf] %v752_v29  ;;  %755 = vst [vmem:[%s8214_s29 + $0x478] sm:$0xf] %v754_v30  ;;  %v756_v31 = vld [vmem:[%s8207_s28 + $0x8f8] sm:$0xf] }
  0xd5   : > { %v758_v32 = vld [vmem:[%s8207_s28 + $0x900] sm:$0xf]  ;;  %v760_v33 = vld [vmem:[%s8207_s28 + $0x908] sm:$0xf]  ;;  %757 = vst [vmem:[%s8214_s29 + $0x47c] sm:$0xf] %v756_v31 }
  0xd6   : > { %759 = vst [vmem:[%s8214_s29 + $0x480] sm:$0xf] %v758_v32  ;;  %761 = vst [vmem:[%s8214_s29 + $0x484] sm:$0xf] %v760_v33  ;;  %v762_v34 = vld [vmem:[%s8207_s28 + $0x910] sm:$0xf] }
  0xd7   : > { %v764_v35 = vld [vmem:[%s8207_s28 + $0x918] sm:$0xf]  ;;  %v766_v36 = vld [vmem:[%s8207_s28 + $0x920] sm:$0xf]  ;;  %763 = vst [vmem:[%s8214_s29 + $0x488] sm:$0xf] %v762_v34 }
  0xd8   : > { %765 = vst [vmem:[%s8214_s29 + $0x48c] sm:$0xf] %v764_v35  ;;  %767 = vst [vmem:[%s8214_s29 + $0x490] sm:$0xf] %v766_v36  ;;  %v768_v37 = vld [vmem:[%s8207_s28 + $0x928] sm:$0xf] }
  0xd9   : > { %v770_v38 = vld [vmem:[%s8207_s28 + $0x930] sm:$0xf]  ;;  %v772_v39 = vld [vmem:[%s8207_s28 + $0x938] sm:$0xf]  ;;  %769 = vst [vmem:[%s8214_s29 + $0x494] sm:$0xf] %v768_v37 }
  0xda   : > { %771 = vst [vmem:[%s8214_s29 + $0x498] sm:$0xf] %v770_v38  ;;  %773 = vst [vmem:[%s8214_s29 + $0x49c] sm:$0xf] %v772_v39  ;;  %v774_v40 = vld [vmem:[%s8207_s28 + $0x940] sm:$0xf] }
  0xdb   : > { %v776_v41 = vld [vmem:[%s8207_s28 + $0x948] sm:$0xf]  ;;  %v778_v42 = vld [vmem:[%s8207_s28 + $0x950] sm:$0xf]  ;;  %775 = vst [vmem:[%s8214_s29 + $0x4a0] sm:$0xf] %v774_v40 }
  0xdc   : > { %777 = vst [vmem:[%s8214_s29 + $0x4a4] sm:$0xf] %v776_v41  ;;  %779 = vst [vmem:[%s8214_s29 + $0x4a8] sm:$0xf] %v778_v42  ;;  %v780_v43 = vld [vmem:[%s8207_s28 + $0x958] sm:$0xf] }
  0xdd   : > { %v782_v44 = vld [vmem:[%s8207_s28 + $0x960] sm:$0xf]  ;;  %v784_v45 = vld [vmem:[%s8207_s28 + $0x968] sm:$0xf]  ;;  %781 = vst [vmem:[%s8214_s29 + $0x4ac] sm:$0xf] %v780_v43 }
  0xde   : > { %783 = vst [vmem:[%s8214_s29 + $0x4b0] sm:$0xf] %v782_v44  ;;  %785 = vst [vmem:[%s8214_s29 + $0x4b4] sm:$0xf] %v784_v45  ;;  %v786_v46 = vld [vmem:[%s8207_s28 + $0x970] sm:$0xf] }
  0xdf   : > { %v788_v47 = vld [vmem:[%s8207_s28 + $0x978] sm:$0xf]  ;;  %v790_v48 = vld [vmem:[%s8207_s28 + $0x980] sm:$0xf]  ;;  %787 = vst [vmem:[%s8214_s29 + $0x4b8] sm:$0xf] %v786_v46 }
  0xe0   : > { %789 = vst [vmem:[%s8214_s29 + $0x4bc] sm:$0xf] %v788_v47  ;;  %791 = vst [vmem:[%s8214_s29 + $0x4c0] sm:$0xf] %v790_v48  ;;  %v792_v49 = vld [vmem:[%s8207_s28 + $0x988] sm:$0xf] }
  0xe1   : > { %v794_v50 = vld [vmem:[%s8207_s28 + $0x990] sm:$0xf]  ;;  %v796_v51 = vld [vmem:[%s8207_s28 + $0x998] sm:$0xf]  ;;  %793 = vst [vmem:[%s8214_s29 + $0x4c4] sm:$0xf] %v792_v49 }
  0xe2   : > { %795 = vst [vmem:[%s8214_s29 + $0x4c8] sm:$0xf] %v794_v50  ;;  %797 = vst [vmem:[%s8214_s29 + $0x4cc] sm:$0xf] %v796_v51  ;;  %v798_v52 = vld [vmem:[%s8207_s28 + $0x9a0] sm:$0xf] }
  0xe3   : > { %v800_v53 = vld [vmem:[%s8207_s28 + $0x9a8] sm:$0xf]  ;;  %v802_v54 = vld [vmem:[%s8207_s28 + $0x9b0] sm:$0xf]  ;;  %799 = vst [vmem:[%s8214_s29 + $0x4d0] sm:$0xf] %v798_v52 }
  0xe4   : > { %801 = vst [vmem:[%s8214_s29 + $0x4d4] sm:$0xf] %v800_v53  ;;  %803 = vst [vmem:[%s8214_s29 + $0x4d8] sm:$0xf] %v802_v54  ;;  %v804_v55 = vld [vmem:[%s8207_s28 + $0x9b8] sm:$0xf] }
  0xe5   : > { %v806_v56 = vld [vmem:[%s8207_s28 + $0x9c0] sm:$0xf]  ;;  %v808_v57 = vld [vmem:[%s8207_s28 + $0x9c8] sm:$0xf]  ;;  %805 = vst [vmem:[%s8214_s29 + $0x4dc] sm:$0xf] %v804_v55 }
  0xe6   : > { %807 = vst [vmem:[%s8214_s29 + $0x4e0] sm:$0xf] %v806_v56  ;;  %809 = vst [vmem:[%s8214_s29 + $0x4e4] sm:$0xf] %v808_v57  ;;  %v810_v58 = vld [vmem:[%s8207_s28 + $0x9d0] sm:$0xf] }
  0xe7   : > { %v812_v59 = vld [vmem:[%s8207_s28 + $0x9d8] sm:$0xf]  ;;  %v814_v60 = vld [vmem:[%s8207_s28 + $0x9e0] sm:$0xf]  ;;  %811 = vst [vmem:[%s8214_s29 + $0x4e8] sm:$0xf] %v810_v58 }
  0xe8   : > { %813 = vst [vmem:[%s8214_s29 + $0x4ec] sm:$0xf] %v812_v59  ;;  %815 = vst [vmem:[%s8214_s29 + $0x4f0] sm:$0xf] %v814_v60  ;;  %v816_v61 = vld [vmem:[%s8207_s28 + $0x9e8] sm:$0xf] }
  0xe9   : > { %v818_v62 = vld [vmem:[%s8207_s28 + $0x9f0] sm:$0xf]  ;;  %v820_v63 = vld [vmem:[%s8207_s28 + $0x9f8] sm:$0xf]  ;;  %817 = vst [vmem:[%s8214_s29 + $0x4f4] sm:$0xf] %v816_v61 }
  0xea   : > { %819 = vst [vmem:[%s8214_s29 + $0x4f8] sm:$0xf] %v818_v62  ;;  %821 = vst [vmem:[%s8214_s29 + $0x4fc] sm:$0xf] %v820_v63  ;;  %v822_v0 = vld [vmem:[%s8207_s28 + $0xa00] sm:$0xf] }
  0xeb   : > { %v824_v1 = vld [vmem:[%s8207_s28 + $0xa08] sm:$0xf]  ;;  %v826_v2 = vld [vmem:[%s8207_s28 + $0xa10] sm:$0xf]  ;;  %823 = vst [vmem:[%s8214_s29 + $0x500] sm:$0xf] %v822_v0 }
  0xec   : > { %825 = vst [vmem:[%s8214_s29 + $0x504] sm:$0xf] %v824_v1  ;;  %827 = vst [vmem:[%s8214_s29 + $0x508] sm:$0xf] %v826_v2  ;;  %v828_v3 = vld [vmem:[%s8207_s28 + $0xa18] sm:$0xf] }
  0xed   : > { %v830_v4 = vld [vmem:[%s8207_s28 + $0xa20] sm:$0xf]  ;;  %v832_v5 = vld [vmem:[%s8207_s28 + $0xa28] sm:$0xf]  ;;  %829 = vst [vmem:[%s8214_s29 + $0x50c] sm:$0xf] %v828_v3 }
  0xee   : > { %831 = vst [vmem:[%s8214_s29 + $0x510] sm:$0xf] %v830_v4  ;;  %833 = vst [vmem:[%s8214_s29 + $0x514] sm:$0xf] %v832_v5  ;;  %v834_v6 = vld [vmem:[%s8207_s28 + $0xa30] sm:$0xf] }
  0xef   : > { %v836_v7 = vld [vmem:[%s8207_s28 + $0xa38] sm:$0xf]  ;;  %v838_v8 = vld [vmem:[%s8207_s28 + $0xa40] sm:$0xf]  ;;  %835 = vst [vmem:[%s8214_s29 + $0x518] sm:$0xf] %v834_v6 }
  0xf0   : > { %837 = vst [vmem:[%s8214_s29 + $0x51c] sm:$0xf] %v836_v7  ;;  %839 = vst [vmem:[%s8214_s29 + $0x520] sm:$0xf] %v838_v8  ;;  %v840_v9 = vld [vmem:[%s8207_s28 + $0xa48] sm:$0xf] }
  0xf1   : > { %v842_v10 = vld [vmem:[%s8207_s28 + $0xa50] sm:$0xf]  ;;  %v844_v11 = vld [vmem:[%s8207_s28 + $0xa58] sm:$0xf]  ;;  %841 = vst [vmem:[%s8214_s29 + $0x524] sm:$0xf] %v840_v9 }
  0xf2   : > { %843 = vst [vmem:[%s8214_s29 + $0x528] sm:$0xf] %v842_v10  ;;  %845 = vst [vmem:[%s8214_s29 + $0x52c] sm:$0xf] %v844_v11  ;;  %v846_v12 = vld [vmem:[%s8207_s28 + $0xa60] sm:$0xf] }
  0xf3   : > { %v848_v13 = vld [vmem:[%s8207_s28 + $0xa68] sm:$0xf]  ;;  %v850_v14 = vld [vmem:[%s8207_s28 + $0xa70] sm:$0xf]  ;;  %847 = vst [vmem:[%s8214_s29 + $0x530] sm:$0xf] %v846_v12 }
  0xf4   : > { %849 = vst [vmem:[%s8214_s29 + $0x534] sm:$0xf] %v848_v13  ;;  %851 = vst [vmem:[%s8214_s29 + $0x538] sm:$0xf] %v850_v14  ;;  %v852_v15 = vld [vmem:[%s8207_s28 + $0xa78] sm:$0xf] }
  0xf5   : > { %v854_v16 = vld [vmem:[%s8207_s28 + $0xa80] sm:$0xf]  ;;  %v856_v17 = vld [vmem:[%s8207_s28 + $0xa88] sm:$0xf]  ;;  %853 = vst [vmem:[%s8214_s29 + $0x53c] sm:$0xf] %v852_v15 }
  0xf6   : > { %855 = vst [vmem:[%s8214_s29 + $0x540] sm:$0xf] %v854_v16  ;;  %857 = vst [vmem:[%s8214_s29 + $0x544] sm:$0xf] %v856_v17  ;;  %v858_v18 = vld [vmem:[%s8207_s28 + $0xa90] sm:$0xf] }
  0xf7   : > { %v860_v19 = vld [vmem:[%s8207_s28 + $0xa98] sm:$0xf]  ;;  %v862_v20 = vld [vmem:[%s8207_s28 + $0xaa0] sm:$0xf]  ;;  %859 = vst [vmem:[%s8214_s29 + $0x548] sm:$0xf] %v858_v18 }
  0xf8   : > { %861 = vst [vmem:[%s8214_s29 + $0x54c] sm:$0xf] %v860_v19  ;;  %863 = vst [vmem:[%s8214_s29 + $0x550] sm:$0xf] %v862_v20  ;;  %v864_v21 = vld [vmem:[%s8207_s28 + $0xaa8] sm:$0xf] }
  0xf9   : > { %v866_v22 = vld [vmem:[%s8207_s28 + $0xab0] sm:$0xf]  ;;  %v868_v23 = vld [vmem:[%s8207_s28 + $0xab8] sm:$0xf]  ;;  %865 = vst [vmem:[%s8214_s29 + $0x554] sm:$0xf] %v864_v21 }
  0xfa   : > { %867 = vst [vmem:[%s8214_s29 + $0x558] sm:$0xf] %v866_v22  ;;  %869 = vst [vmem:[%s8214_s29 + $0x55c] sm:$0xf] %v868_v23  ;;  %v870_v24 = vld [vmem:[%s8207_s28 + $0xac0] sm:$0xf] }
  0xfb   : > { %v872_v25 = vld [vmem:[%s8207_s28 + $0xac8] sm:$0xf]  ;;  %v874_v26 = vld [vmem:[%s8207_s28 + $0xad0] sm:$0xf]  ;;  %871 = vst [vmem:[%s8214_s29 + $0x560] sm:$0xf] %v870_v24 }
  0xfc   : > { %873 = vst [vmem:[%s8214_s29 + $0x564] sm:$0xf] %v872_v25  ;;  %875 = vst [vmem:[%s8214_s29 + $0x568] sm:$0xf] %v874_v26  ;;  %v876_v27 = vld [vmem:[%s8207_s28 + $0xad8] sm:$0xf] }
  0xfd   : > { %v878_v28 = vld [vmem:[%s8207_s28 + $0xae0] sm:$0xf]  ;;  %v880_v29 = vld [vmem:[%s8207_s28 + $0xae8] sm:$0xf]  ;;  %877 = vst [vmem:[%s8214_s29 + $0x56c] sm:$0xf] %v876_v27 }
  0xfe   : > { %879 = vst [vmem:[%s8214_s29 + $0x570] sm:$0xf] %v878_v28  ;;  %881 = vst [vmem:[%s8214_s29 + $0x574] sm:$0xf] %v880_v29  ;;  %v882_v30 = vld [vmem:[%s8207_s28 + $0xaf0] sm:$0xf] }
  0xff   : > { %v884_v31 = vld [vmem:[%s8207_s28 + $0xaf8] sm:$0xf]  ;;  %v886_v32 = vld [vmem:[%s8207_s28 + $0xb00] sm:$0xf]  ;;  %883 = vst [vmem:[%s8214_s29 + $0x578] sm:$0xf] %v882_v30 }
 0x100   : > { %885 = vst [vmem:[%s8214_s29 + $0x57c] sm:$0xf] %v884_v31  ;;  %887 = vst [vmem:[%s8214_s29 + $0x580] sm:$0xf] %v886_v32  ;;  %v888_v33 = vld [vmem:[%s8207_s28 + $0xb08] sm:$0xf] }
 0x101   : > { %v890_v34 = vld [vmem:[%s8207_s28 + $0xb10] sm:$0xf]  ;;  %v892_v35 = vld [vmem:[%s8207_s28 + $0xb18] sm:$0xf]  ;;  %889 = vst [vmem:[%s8214_s29 + $0x584] sm:$0xf] %v888_v33 }
 0x102   : > { %891 = vst [vmem:[%s8214_s29 + $0x588] sm:$0xf] %v890_v34  ;;  %893 = vst [vmem:[%s8214_s29 + $0x58c] sm:$0xf] %v892_v35  ;;  %v894_v36 = vld [vmem:[%s8207_s28 + $0xb20] sm:$0xf] }
 0x103   : > { %v896_v37 = vld [vmem:[%s8207_s28 + $0xb28] sm:$0xf]  ;;  %v898_v38 = vld [vmem:[%s8207_s28 + $0xb30] sm:$0xf]  ;;  %895 = vst [vmem:[%s8214_s29 + $0x590] sm:$0xf] %v894_v36 }
 0x104   : > { %897 = vst [vmem:[%s8214_s29 + $0x594] sm:$0xf] %v896_v37  ;;  %899 = vst [vmem:[%s8214_s29 + $0x598] sm:$0xf] %v898_v38  ;;  %v900_v39 = vld [vmem:[%s8207_s28 + $0xb38] sm:$0xf] }
 0x105   : > { %v902_v40 = vld [vmem:[%s8207_s28 + $0xb40] sm:$0xf]  ;;  %v904_v41 = vld [vmem:[%s8207_s28 + $0xb48] sm:$0xf]  ;;  %901 = vst [vmem:[%s8214_s29 + $0x59c] sm:$0xf] %v900_v39 }
 0x106   : > { %903 = vst [vmem:[%s8214_s29 + $0x5a0] sm:$0xf] %v902_v40  ;;  %905 = vst [vmem:[%s8214_s29 + $0x5a4] sm:$0xf] %v904_v41  ;;  %v906_v42 = vld [vmem:[%s8207_s28 + $0xb50] sm:$0xf] }
 0x107   : > { %v908_v43 = vld [vmem:[%s8207_s28 + $0xb58] sm:$0xf]  ;;  %v910_v44 = vld [vmem:[%s8207_s28 + $0xb60] sm:$0xf]  ;;  %907 = vst [vmem:[%s8214_s29 + $0x5a8] sm:$0xf] %v906_v42 }
 0x108   : > { %909 = vst [vmem:[%s8214_s29 + $0x5ac] sm:$0xf] %v908_v43  ;;  %911 = vst [vmem:[%s8214_s29 + $0x5b0] sm:$0xf] %v910_v44  ;;  %v912_v45 = vld [vmem:[%s8207_s28 + $0xb68] sm:$0xf] }
 0x109   : > { %v914_v46 = vld [vmem:[%s8207_s28 + $0xb70] sm:$0xf]  ;;  %v916_v47 = vld [vmem:[%s8207_s28 + $0xb78] sm:$0xf]  ;;  %913 = vst [vmem:[%s8214_s29 + $0x5b4] sm:$0xf] %v912_v45 }
 0x10a   : > { %915 = vst [vmem:[%s8214_s29 + $0x5b8] sm:$0xf] %v914_v46  ;;  %917 = vst [vmem:[%s8214_s29 + $0x5bc] sm:$0xf] %v916_v47  ;;  %v918_v48 = vld [vmem:[%s8207_s28 + $0xb80] sm:$0xf] }
 0x10b   : > { %v920_v49 = vld [vmem:[%s8207_s28 + $0xb88] sm:$0xf]  ;;  %v922_v50 = vld [vmem:[%s8207_s28 + $0xb90] sm:$0xf]  ;;  %919 = vst [vmem:[%s8214_s29 + $0x5c0] sm:$0xf] %v918_v48 }
 0x10c   : > { %921 = vst [vmem:[%s8214_s29 + $0x5c4] sm:$0xf] %v920_v49  ;;  %923 = vst [vmem:[%s8214_s29 + $0x5c8] sm:$0xf] %v922_v50  ;;  %v924_v51 = vld [vmem:[%s8207_s28 + $0xb98] sm:$0xf] }
 0x10d   : > { %v926_v52 = vld [vmem:[%s8207_s28 + $0xba0] sm:$0xf]  ;;  %v928_v53 = vld [vmem:[%s8207_s28 + $0xba8] sm:$0xf]  ;;  %925 = vst [vmem:[%s8214_s29 + $0x5cc] sm:$0xf] %v924_v51 }
 0x10e   : > { %927 = vst [vmem:[%s8214_s29 + $0x5d0] sm:$0xf] %v926_v52  ;;  %929 = vst [vmem:[%s8214_s29 + $0x5d4] sm:$0xf] %v928_v53  ;;  %v930_v54 = vld [vmem:[%s8207_s28 + $0xbb0] sm:$0xf] }
 0x10f   : > { %v932_v55 = vld [vmem:[%s8207_s28 + $0xbb8] sm:$0xf]  ;;  %v934_v56 = vld [vmem:[%s8207_s28 + $0xbc0] sm:$0xf]  ;;  %931 = vst [vmem:[%s8214_s29 + $0x5d8] sm:$0xf] %v930_v54 }
 0x110   : > { %933 = vst [vmem:[%s8214_s29 + $0x5dc] sm:$0xf] %v932_v55  ;;  %935 = vst [vmem:[%s8214_s29 + $0x5e0] sm:$0xf] %v934_v56  ;;  %v936_v57 = vld [vmem:[%s8207_s28 + $0xbc8] sm:$0xf] }
 0x111   : > { %v938_v58 = vld [vmem:[%s8207_s28 + $0xbd0] sm:$0xf]  ;;  %v940_v59 = vld [vmem:[%s8207_s28 + $0xbd8] sm:$0xf]  ;;  %937 = vst [vmem:[%s8214_s29 + $0x5e4] sm:$0xf] %v936_v57 }
 0x112   : > { %939 = vst [vmem:[%s8214_s29 + $0x5e8] sm:$0xf] %v938_v58  ;;  %941 = vst [vmem:[%s8214_s29 + $0x5ec] sm:$0xf] %v940_v59  ;;  %v942_v60 = vld [vmem:[%s8207_s28 + $0xbe0] sm:$0xf] }
 0x113   : > { %v944_v61 = vld [vmem:[%s8207_s28 + $0xbe8] sm:$0xf]  ;;  %v946_v62 = vld [vmem:[%s8207_s28 + $0xbf0] sm:$0xf]  ;;  %943 = vst [vmem:[%s8214_s29 + $0x5f0] sm:$0xf] %v942_v60 }
 0x114   : > { %945 = vst [vmem:[%s8214_s29 + $0x5f4] sm:$0xf] %v944_v61  ;;  %947 = vst [vmem:[%s8214_s29 + $0x5f8] sm:$0xf] %v946_v62  ;;  %v948_v63 = vld [vmem:[%s8207_s28 + $0xbf8] sm:$0xf] }
 0x115   : > { %v950_v0 = vld [vmem:[%s8207_s28 + $0xc00] sm:$0xf]  ;;  %v952_v1 = vld [vmem:[%s8207_s28 + $0xc08] sm:$0xf]  ;;  %949 = vst [vmem:[%s8214_s29 + $0x5fc] sm:$0xf] %v948_v63 }
 0x116   : > { %951 = vst [vmem:[%s8214_s29 + $0x600] sm:$0xf] %v950_v0  ;;  %953 = vst [vmem:[%s8214_s29 + $0x604] sm:$0xf] %v952_v1  ;;  %v954_v2 = vld [vmem:[%s8207_s28 + $0xc10] sm:$0xf] }
 0x117   : > { %v956_v3 = vld [vmem:[%s8207_s28 + $0xc18] sm:$0xf]  ;;  %v958_v4 = vld [vmem:[%s8207_s28 + $0xc20] sm:$0xf]  ;;  %955 = vst [vmem:[%s8214_s29 + $0x608] sm:$0xf] %v954_v2 }
 0x118   : > { %957 = vst [vmem:[%s8214_s29 + $0x60c] sm:$0xf] %v956_v3  ;;  %959 = vst [vmem:[%s8214_s29 + $0x610] sm:$0xf] %v958_v4  ;;  %v960_v5 = vld [vmem:[%s8207_s28 + $0xc28] sm:$0xf] }
 0x119   : > { %v962_v6 = vld [vmem:[%s8207_s28 + $0xc30] sm:$0xf]  ;;  %v964_v7 = vld [vmem:[%s8207_s28 + $0xc38] sm:$0xf]  ;;  %961 = vst [vmem:[%s8214_s29 + $0x614] sm:$0xf] %v960_v5 }
 0x11a   : > { %963 = vst [vmem:[%s8214_s29 + $0x618] sm:$0xf] %v962_v6  ;;  %965 = vst [vmem:[%s8214_s29 + $0x61c] sm:$0xf] %v964_v7  ;;  %v966_v8 = vld [vmem:[%s8207_s28 + $0xc40] sm:$0xf] }
 0x11b   : > { %v968_v9 = vld [vmem:[%s8207_s28 + $0xc48] sm:$0xf]  ;;  %v970_v10 = vld [vmem:[%s8207_s28 + $0xc50] sm:$0xf]  ;;  %967 = vst [vmem:[%s8214_s29 + $0x620] sm:$0xf] %v966_v8 }
 0x11c   : > { %969 = vst [vmem:[%s8214_s29 + $0x624] sm:$0xf] %v968_v9  ;;  %971 = vst [vmem:[%s8214_s29 + $0x628] sm:$0xf] %v970_v10  ;;  %v972_v11 = vld [vmem:[%s8207_s28 + $0xc58] sm:$0xf] }
 0x11d   : > { %v974_v12 = vld [vmem:[%s8207_s28 + $0xc60] sm:$0xf]  ;;  %v976_v13 = vld [vmem:[%s8207_s28 + $0xc68] sm:$0xf]  ;;  %973 = vst [vmem:[%s8214_s29 + $0x62c] sm:$0xf] %v972_v11 }
 0x11e   : > { %975 = vst [vmem:[%s8214_s29 + $0x630] sm:$0xf] %v974_v12  ;;  %977 = vst [vmem:[%s8214_s29 + $0x634] sm:$0xf] %v976_v13  ;;  %v978_v14 = vld [vmem:[%s8207_s28 + $0xc70] sm:$0xf] }
 0x11f   : > { %v980_v15 = vld [vmem:[%s8207_s28 + $0xc78] sm:$0xf]  ;;  %979 = vst [vmem:[%s8214_s29 + $0x638] sm:$0xf] %v978_v14 }
 0x120   : > { %981 = vst [vmem:[%s8214_s29 + $0x63c] sm:$0xf] %v980_v15 }
 0x121 PF: > { %p6389_p8 = scmp.ge.s32.totalorder %s8135_s16, 1  ;;  %p1809_p9 = scmp.lt.s32.totalorder %s8135_s16, 3 }
 0x123   : > { %p1810_p10 = pnand %p6389_p8, %p1809_p9 }
 0x124   : > { %s1816_s30 = sand.u32 (!%p1810_p10), 1, %s8119_s12   ;;  %v7664_v16 = vld [vmem:[%s10124_s0 + $0x324] ss:$100 sps:$4 sm:$0xff] (!%p1810_p10)   ;;  %v7677_v41 = vld [vmem:[%s10124_s0 + $0xcc] ss:$100 sps:$4 sm:$0xff] (!%p1810_p10)   ;;  %vm8138_vm0 = vmmov (!%p1810_p10), 0  }
 0x125   : > { %1813 = sbr.rel (%p1810_p10) target bundleno = 1045 (0x415), region = 69  ;;  %v7668_v17 = vld [vmem:[%s10124_s0 + $0x4] ss:$100 sps:$4 sm:$0xff] (!%p1810_p10)   ;;  %4564 = vmatprep.mubr.bf16.mxu1 (!%p1810_p10), %v7664_v16  ;;  %v7684_v43 = vld [vmem:[%s10124_s0 + $0x3ec] ss:$100 sps:$4 sm:$0xff] (!%p1810_p10)   ;;  %p1853_p11 = scmp.lt.s32.totalorder (!%p1810_p10), %s8127_s14, 1 }
 0x126   : > { %s7602_s4 = smul.u32 (!%p1810_p10), 1600, %s1816_s30  ;;  %4532 = vmatprep.mubr.bf16.mxu0 (!%p1810_p10), %v7668_v17  ;;  %v7662_v35 = vld [vmem:[%s10124_s0 + $0x320] ss:$100 sps:$4 sm:$0xff] (!%p1810_p10)   ;;  %v7680_v47 = vld [vmem:[%s10124_s0 + $0xc8] ss:$100 sps:$4 sm:$0xff] (!%p1810_p10)   ;;  %vm5809_vm10 = vcmask (!%p1810_p10), 1041408  }
 0x127   : > { %v7666_v36 = vld [vmem:[%s10124_s0] ss:$100 sps:$4 sm:$0xff] (!%p1810_p10)   ;;  %v7687_v51 = vld [vmem:[%s10124_s0 + $0x3e8] ss:$100 sps:$4 sm:$0xff] (!%p1810_p10)   ;;  %v2043_v53 = vld [vmem:[%s10124_s0 + $0x4b0] sm:$0x11] (!%p1810_p10) }
 0x128   : > { %s9022_s9 = scalar_lea.vmem (!%p1810_p10), [#allocation3], %s7602_s4  ;;  %v7691_v56 = vld [vmem:[%s10124_s0 + $0x194] ss:$100 sps:$4 sm:$0xff] (!%p1810_p10)   ;;  %v6541_v57 = vcombine.high (!%p1810_p10), %v2043_v53, %v2043_v53  ;;  %v6540_v0 = vcombine.low (!%p1810_p10), %v2043_v53, %v2043_v53  ;;  %v7704_v4 = vld [vmem:[%s10124_s0 + $0x25c] ss:$100 sps:$4 sm:$0xff] (!%p1810_p10)   ;;  %s7603_s8 = smul.u32 (!%p1810_p10), 52, %s1816_s30 }
 0x129   : > { %v7646_v18 = vld [vmem:[%s9022_s9 + $0x40] sm:$0xff] (!%p1810_p10)   ;;  %v7648_v20 = vld [vmem:[%s9022_s9 + $0x48] sm:$0xff] (!%p1810_p10)   ;;  %v7650_v22 = vld [vmem:[%s9022_s9 + $0x50] sm:$0xff] (!%p1810_p10)  }
 0x12a   : > { %v7647_v19 = vld [vmem:[%s9022_s9] sm:$0xff] (!%p1810_p10)   ;;  %7585 = vmatprep.subr.bf16.mxu1 (!%p1810_p10), %v7646_v18  ;;  %6830 = vmatprep.subr.bf16.mxu0 (!%p1810_p10), %v7646_v18  ;;  %v7649_v21 = vld [vmem:[%s9022_s9 + $0x8] sm:$0xff] (!%p1810_p10)   ;;  %v7651_v23 = vld [vmem:[%s9022_s9 + $0x10] sm:$0xff] (!%p1810_p10)   ;;  %s10054_s12 = scalar_lea.vmem (!%p1810_p10), [#allocation4], %s7603_s8 }
 0x12b   : > { %7593 = vmatpush3.bf16.msra.mxu1 (!%p1810_p10), %v7647_v19  ;;  %6831 = vmatpush3.bf16.msra.mxu0 (!%p1810_p10), %v7647_v19  ;;  %v7652_v24 = vld [vmem:[%s9022_s9 + $0x58] sm:$0xff] (!%p1810_p10)   ;;  %v7654_v26 = vld [vmem:[%s9022_s9 + $0x60] sm:$0xff] (!%p1810_p10)   ;;  %v7656_v28 = vld [vmem:[%s9022_s9 + $0x68] sm:$0xff] (!%p1810_p10)  }
 0x12c   : > { %7586 = vmatprep.subr.bf16.mxu1 %v7648_v20  ;;  %6832 = vmatprep.subr.bf16.mxu0 %v7648_v20  ;;  %v7653_v25 = vld [vmem:[%s9022_s9 + $0x18] sm:$0xff]   ;;  %v7655_v27 = vld [vmem:[%s9022_s9 + $0x20] sm:$0xff]   ;;  %v7657_v29 = vld [vmem:[%s9022_s9 + $0x28] sm:$0xff]   ;;  %s1854_s5 = scalar_select %p1853_p11, %s8127_s14, 1 }
 0x12d   : > { %v7658_v30 = vld [vmem:[%s9022_s9 + $0x70] sm:$0xff]   ;;  %v7660_v32 = vld [vmem:[%s9022_s9 + $0x78] sm:$0xff]   ;;  %v7665_v34 = vld [vmem:[%s9022_s9 + $0xc0] sm:$0xff]   ;;  %s6779_s30 = sshll.u32 (%p8194_p6), %s8127_s14, 2 }
 0x12e   : > { %v7659_v31 = vld [vmem:[%s9022_s9 + $0x30] sm:$0xff]   ;;  %v7661_v33 = vld [vmem:[%s9022_s9 + $0x38] sm:$0xff]   ;;  %v7670_v37 = vld [vmem:[%s9022_s9 + $0x140] sm:$0xff]   ;;  %s1855_s7 = scalar_lea.vmem %s10126_s2, %s1854_s5  ;;  %s6204_s18 = scalar_lea.vmem (%p8194_p6), %s10127_s3, %s6779_s30 }
 0x12f   : > { %7594 = vmatpush3.bf16.msra.mxu1 %v7649_v21  ;;  %6833 = vmatpush3.bf16.msra.mxu0 %v7649_v21  ;;  %v7669_v38 = vld [vmem:[%s9022_s9 + $0x80] sm:$0xff]   ;;  %v7672_v40 = vld [vmem:[%s9022_s9 + $0xc8] sm:$0xff]   ;;  %v7676_v46 = vld [vmem:[%s9022_s9 + $0xd0] sm:$0xff]  }
 0x130   : > { %7587 = vmatprep.subr.bf16.mxu1 %v7650_v22  ;;  %6834 = vmatprep.subr.bf16.mxu0 %v7650_v22  ;;  %v7671_v39 = vld [vmem:[%s9022_s9 + $0x100] sm:$0xff]   ;;  %v7674_v42 = vld [vmem:[%s9022_s9 + $0x148] sm:$0xff]   ;;  %v7681_v48 = vld [vmem:[%s9022_s9 + $0x150] sm:$0xff]  }
 0x131   : > { %v7673_v44 = vld [vmem:[%s9022_s9 + $0x88] sm:$0xff]   ;;  %v7679_v49 = vld [vmem:[%s9022_s9 + $0x90] sm:$0xff]   ;;  %v7683_v52 = vld [vmem:[%s9022_s9 + $0xd8] sm:$0xff]  }
 0x132   : > { %v7675_v45 = vld [vmem:[%s9022_s9 + $0x108] sm:$0xff]   ;;  %v7682_v50 = vld [vmem:[%s9022_s9 + $0x110] sm:$0xff]   ;;  %v7688_v54 = vld [vmem:[%s9022_s9 + $0x158] sm:$0xff]  }
 0x133   : > { %7595 = vmatpush3.bf16.msra.mxu1 %v7651_v23  ;;  %6835 = vmatpush3.bf16.msra.mxu0 %v7651_v23  ;;  %v7686_v55 = vld [vmem:[%s9022_s9 + $0x98] sm:$0xff]   ;;  %v7690_v59 = vld [vmem:[%s9022_s9 + $0xe0] sm:$0xff]   ;;  %v7694_v62 = vld [vmem:[%s10124_s0 + $0x190] ss:$100 sps:$4 sm:$0xff]  }
 0x134   : > { %7588 = vmatprep.subr.bf16.mxu1 %v7652_v24  ;;  %6836 = vmatprep.subr.bf16.mxu0 %v7652_v24  ;;  %v7689_v58 = vld [vmem:[%s9022_s9 + $0x118] sm:$0xff]   ;;  %v7695_v60 = vld [vmem:[%s9022_s9 + $0x160] sm:$0xff]   ;;  %v7697_v1 = vld [vmem:[%s9022_s9 + $0xe8] sm:$0xff]  }
 0x135   : > { %v7693_v61 = vld [vmem:[%s9022_s9 + $0xa0] sm:$0xff]   ;;  %v7701_v2 = vld [vmem:[%s9022_s9 + $0x168] sm:$0xff]   ;;  %v7703_v6 = vld [vmem:[%s9022_s9 + $0xf0] sm:$0xff]  }
 0x136   : > { %v7696_v63 = vld [vmem:[%s9022_s9 + $0x120] sm:$0xff]   ;;  %v7699_v3 = vld [vmem:[%s9022_s9 + $0xa8] sm:$0xff]   ;;  %v7708_v7 = vld [vmem:[%s9022_s9 + $0x170] sm:$0xff]  }
 0x137   : > { %7596 = vmatpush3.bf16.msra.mxu1 %v7653_v25  ;;  %6837 = vmatpush3.bf16.msra.mxu0 %v7653_v25  ;;  %v7702_v5 = vld [vmem:[%s9022_s9 + $0x128] sm:$0xff]   ;;  %v7706_v9 = vld [vmem:[%s9022_s9 + $0xb0] sm:$0xff]   ;;  %v7710_v12 = vld [vmem:[%s9022_s9 + $0xf8] sm:$0xff]  }
 0x138   : > { %7589 = vmatprep.subr.bf16.mxu1 %v7654_v26  ;;  %6838 = vmatprep.subr.bf16.mxu0 %v7654_v26  ;;  %v7715_v8 = vld [vmem:[%s10124_s0 + $0xc] ss:$100 sps:$4 sm:$0xff]   ;;  %v7707_v10 = vld [vmem:[%s10124_s0 + $0x258] ss:$100 sps:$4 sm:$0xff]   ;;  %v7712_v13 = vld [vmem:[%s9022_s9 + $0x178] sm:$0xff]  }
 0x139   : > { %v7709_v11 = vld [vmem:[%s9022_s9 + $0x130] sm:$0xff]   ;;  %v7711_v14 = vld [vmem:[%s9022_s9 + $0xb8] sm:$0xff]   ;;  %v7717_v17 = vld [vmem:[%s9022_s9 + $0x1c0] sm:$0xff]  }
 0x13a   : > { %v7720_v15 = vld [vmem:[%s10124_s0 + $0x14] ss:$100 sps:$4 sm:$0xff]   ;;  %v7716_v16 = vld [vmem:[%s9022_s9 + $0x138] sm:$0xff]   ;;  %v7713_v18 = vld [vmem:[%s10124_s0 + $0x8] ss:$100 sps:$4 sm:$0xff]  }
 0x13b   : > { %7597 = vmatpush3.bf16.msra.mxu1 %v7655_v27  ;;  %6839 = vmatpush3.bf16.msra.mxu0 %v7655_v27  ;;  %v7718_v19 = vld [vmem:[%s10124_s0 + $0x10] ss:$100 sps:$4 sm:$0xff]   ;;  %v7722_v20 = vld [vmem:[%s9022_s9 + $0x240] sm:$0xff]   ;;  %v7729_v25 = vld [vmem:[%s10124_s0 + $0xdc] ss:$100 sps:$4 sm:$0xff]  }
 0x13c   : > { %7590 = vmatprep.subr.bf16.mxu1 %v7656_v28  ;;  %6840 = vmatprep.subr.bf16.mxu0 %v7656_v28  ;;  %v7721_v21 = vld [vmem:[%s9022_s9 + $0x180] sm:$0xff]   ;;  %v7724_v23 = vld [vmem:[%s10124_s0 + $0xd4] ss:$100 sps:$4 sm:$0xff]  }
 0x13d   : > { %v7723_v22 = vld [vmem:[%s9022_s9 + $0x200] sm:$0xff]   ;;  %v7726_v24 = vld [vmem:[%s9022_s9 + $0x1c8] sm:$0xff]  }
 0x13e   : > { %v7732_v26 = vld [vmem:[%s9022_s9 + $0x248] sm:$0xff]  }
 0x13f   : > { %7598 = vmatpush3.bf16.msra.mxu1 %v7657_v29  ;;  %6841 = vmatpush3.bf16.msra.mxu0 %v7657_v29  ;;  %v7728_v27 = vld [vmem:[%s9022_s9 + $0x188] sm:$0xff]  }
 0x140   : > { %7591 = vmatprep.subr.bf16.mxu1 %v7658_v30  ;;  %6842 = vmatprep.subr.bf16.mxu0 %v7658_v30  ;;  %v7733_v28 = vld [vmem:[%s9022_s9 + $0x208] sm:$0xff]   ;;  %v7731_v30 = vld [vmem:[%s10124_s0 + $0xd8] ss:$100 sps:$4 sm:$0xff]  }
 0x141   : > { %v7727_v29 = vld [vmem:[%s10124_s0 + $0xd0] ss:$100 sps:$4 sm:$0xff]  }
 0x142   : > { %v7764_v53 = vld [vmem:[%s9022_s9 + $0x1e8] sm:$0xff]  }
 0x143   : > { %7599 = vmatpush3.bf16.msra.mxu1 %v7659_v31  ;;  %6843 = vmatpush3.bf16.msra.mxu0 %v7659_v31  ;;  %v7734_v31 = vld [vmem:[%s9022_s9 + $0x1d0] sm:$0xff]  }
 0x144   : > { %7592 = vmatprep.subr.bf16.mxu1 %v7660_v32  ;;  %6844 = vmatprep.subr.bf16.mxu0 %v7660_v32  ;;  %v7735_v32 = vld [vmem:[%s10124_s0 + $0x19c] ss:$100 sps:$4 sm:$0xff]  }
 0x147   : > { %7600 = vmatpush3.bf16.msra.mxu1 %v7661_v33  ;;  %6845 = vmatpush3.bf16.msra.mxu0 %v7661_v33  ;;  %v7737_v33 = vld [vmem:[%s9022_s9 + $0x190] sm:$0xff]  }
 0x148   : > { %6888 = vmatprep.subr.bf16.mxu1 %v7665_v34  ;;  %6946 = vmatprep.subr.bf16.mxu0 %v7670_v37  ;;  %v7739_v34 = vld [vmem:[%s10124_s0 + $0x1a4] ss:$100 sps:$4 sm:$0xff]  }
 0x149   : > { %v7744_v37 = vld [vmem:[%s9022_s9 + $0x1d8] sm:$0xff]  }
 0x14a   : > { %4565 = vmatmul.mubr.bf16.vlgmr.msra.gmra.mrb[0].mxu1 %v7662_v35  ;;  %4533 = vmatmul.mubr.bf16.vlgmr.msra.gmra.mrb[0].mxu0 %v7666_v36  ;;  %v7742_v35 = vld [vmem:[%s9022_s9 + $0x250] sm:$0xff]  }
 0x14b   : > { %6889 = vmatpush3.bf16.msra.mxu1 %v7669_v38  ;;  %6947 = vmatpush3.bf16.msra.mxu0 %v7671_v39  ;;  %v7743_v36 = vld [vmem:[%s9022_s9 + $0x210] sm:$0xff]   ;;  %v7745_v38 = vld [vmem:[%s9022_s9 + $0x198] sm:$0xff]  }
 0x14c   : > { %6890 = vmatprep.subr.bf16.mxu1 %v7672_v40  ;;  %6948 = vmatprep.subr.bf16.mxu0 %v7674_v42  ;;  %v7738_v39 = vld [vmem:[%s10124_s0 + $0x198] ss:$100 sps:$4 sm:$0xff]   ;;  %v7741_v40 = vld [vmem:[%s10124_s0 + $0x1a0] ss:$100 sps:$4 sm:$0xff]   ;;  %v7749_v42 = vld [vmem:[%s10124_s0 + $0x26c] ss:$100 sps:$4 sm:$0xff]  }
 0x14d   : > { %4540 = vmatprep.mubr.bf16.mxu0 %v7677_v41  ;;  %4572 = vmatprep.mubr.bf16.mxu1 %v7684_v43  ;;  %v7746_v41 = vld [vmem:[%s10124_s0 + $0x264] ss:$100 sps:$4 sm:$0xff]  }
 0x14e   : > { %v7752_v43 = vld [vmem:[%s9022_s9 + $0x258] sm:$0xff]  }
 0x14f   : > { %6891 = vmatpush3.bf16.msra.mxu1 %v7673_v44  ;;  %6949 = vmatpush3.bf16.msra.mxu0 %v7675_v45  ;;  %v7753_v44 = vld [vmem:[%s9022_s9 + $0x218] sm:$0xff]   ;;  %v7754_v45 = vld [vmem:[%s9022_s9 + $0x1e0] sm:$0xff]  }
 0x150   : > { %6892 = vmatprep.subr.bf16.mxu1 %v7676_v46  ;;  %6950 = vmatprep.subr.bf16.mxu0 %v7681_v48  ;;  %v7755_v46 = vld [vmem:[%s9022_s9 + $0x1a0] sm:$0xff]  }
 0x151   : > { %v7751_v48 = vld [vmem:[%s10124_s0 + $0x268] ss:$100 sps:$4 sm:$0xff]  }
 0x152   : > { %4541 = vmatmul.mubr.bf16.gmra.mrb[4].mxu0 %v7680_v47  ;;  %4573 = vmatmul.mubr.bf16.gmra.mrb[4].mxu1 %v7687_v51  ;;  %v7748_v47 = vld [vmem:[%s10124_s0 + $0x260] ss:$100 sps:$4 sm:$0xff]   ;;  %v7759_v51 = vld [vmem:[%s10124_s0 + $0x334] ss:$100 sps:$4 sm:$0xff]  }
 0x153   : > { %6893 = vmatpush3.bf16.msra.mxu1 %v7679_v49  ;;  %6951 = vmatpush3.bf16.msra.mxu0 %v7682_v50  ;;  %v7761_v49 = vld [vmem:[%s9022_s9 + $0x260] sm:$0xff]  }
 0x154   : > { %6894 = vmatprep.subr.bf16.mxu1 %v7683_v52  ;;  %6952 = vmatprep.subr.bf16.mxu0 %v7688_v54  ;;  %v7756_v50 = vld [vmem:[%s10124_s0 + $0x32c] ss:$100 sps:$4 sm:$0xff]  }
 0x155   : > { %4548 = vmatprep.mubr.bf16.mxu0 %v7691_v56  ;;  %4580 = vmatprep.mubr.bf16.mxu1 %v6541_v57  ;;  %v7763_v52 = vld [vmem:[%s9022_s9 + $0x220] sm:$0xff]   ;;  %v7765_v54 = vld [vmem:[%s9022_s9 + $0x1a8] sm:$0xff]  }
 0x156   : > { %v7772_v56 = vld [vmem:[%s9022_s9 + $0x228] sm:$0xff]   ;;  %v7758_v57 = vld [vmem:[%s10124_s0 + $0x328] ss:$100 sps:$4 sm:$0xff]  }
 0x157   : > { %6895 = vmatpush3.bf16.msra.mxu1 %v7686_v55  ;;  %6953 = vmatpush3.bf16.msra.mxu0 %v7689_v58  ;;  %v7769_v55 = vld [vmem:[%s9022_s9 + $0x268] sm:$0xff]  }
 0x158   : > { %6896 = vmatprep.subr.bf16.mxu1 %v7690_v59  ;;  %6954 = vmatprep.subr.bf16.mxu0 %v7695_v60  ;;  %v7762_v58 = vld [vmem:[%s10124_s0 + $0x330] ss:$100 sps:$4 sm:$0xff]   ;;  %v7774_v60 = vld [vmem:[%s9022_s9 + $0x1f0] sm:$0xff]  }
 0x159   : > { %v7766_v59 = vld [vmem:[%s10124_s0 + $0x3f4] ss:$100 sps:$4 sm:$0xff]  }
 0x15a   : > { %4549 = vmatmul.mubr.bf16.gmra.mrb[8].mxu0 %v7694_v62  ;;  %4581 = vmatmul.mubr.bf16.gmra.mrb[8].mxu1 %v6540_v0  ;;  %v7775_v62 = vld [vmem:[%s9022_s9 + $0x1b0] sm:$0xff]  }
 0x15b   : > { %6897 = vmatpush3.bf16.msra.mxu1 %v7693_v61  ;;  %6955 = vmatpush3.bf16.msra.mxu0 %v7696_v63  ;;  %v7770_v61 = vld [vmem:[%s10124_s0 + $0x3fc] ss:$100 sps:$4 sm:$0xff]  }
 0x15c   : > { %6898 = vmatprep.subr.bf16.mxu1 %v7697_v1  ;;  %6956 = vmatprep.subr.bf16.mxu0 %v7701_v2  ;;  %v7777_v63 = vld [vmem:[%s9022_s9 + $0x270] sm:$0xff]   ;;  %v7781_v1 = vld [vmem:[%s9022_s9 + $0x1f8] sm:$0xff]  }
 0x15d   : > { %4556 = vmatprep.mubr.bf16.mxu0 %v7704_v4  ;;  %4620 = vmatprep.mubr.bf16.mxu1 %v7715_v8  ;;  %v7779_v0 = vld [vmem:[%s9022_s9 + $0x230] sm:$0xff]   ;;  %v7784_v4 = vld [vmem:[%s9022_s9 + $0x278] sm:$0xff]  }
 0x15e   : > { %v2044_v2 = vld [vmem:[%s10124_s0 + $0x4b8] sm:$0x11]  ;;  %v7788_v8 = vld [vmem:[%s9022_s9 + $0x238] sm:$0xff]  }
 0x15f   : > { %6899 = vmatpush3.bf16.msra.mxu1 %v7699_v3  ;;  %6957 = vmatpush3.bf16.msra.mxu0 %v7702_v5  ;;  %v7783_v3 = vld [vmem:[%s9022_s9 + $0x1b8] sm:$0xff]   ;;  %v7768_v5 = vld [vmem:[%s10124_s0 + $0x3f0] ss:$100 sps:$4 sm:$0xff]  }
 0x160   : > { %6900 = vmatprep.subr.bf16.mxu1 %v7703_v6  ;;  %6958 = vmatprep.subr.bf16.mxu0 %v7708_v7  ;;  %v2045_v6 = vld [vmem:[%s10124_s0 + $0x4c0] sm:$0x11]  ;;  %v7773_v7 = vld [vmem:[%s10124_s0 + $0x3f8] ss:$100 sps:$4 sm:$0xff]  }
 0x162   : > { %4557 = vmatmul.mubr.bf16.gmra.mrb[12].mxu0 %v7707_v10  ;;  %v6545_v10 = vcombine.high %v2045_v6, %v2045_v6 }
 0x163   : > { %6901 = vmatpush3.bf16.msra.mxu1 %v7706_v9  ;;  %6959 = vmatpush3.bf16.msra.mxu0 %v7709_v11  ;;  %v6543_v9 = vcombine.high %v2044_v2, %v2044_v2  ;;  %v7789_v11 = vld [vmem:[%s9022_s9 + $0x2c0] sm:$0xff]  }
 0x164   : > { %6902 = vmatprep.subr.bf16.mxu1 %v7710_v12  ;;  %6960 = vmatprep.subr.bf16.mxu0 %v7712_v13  ;;  %v7794_v12 = vld [vmem:[%s9022_s9 + $0x340] sm:$0xff]   ;;  %v6542_v13 = vcombine.low %v2044_v2, %v2044_v2  ;;  %v7860_v2 = vld [vmem:[%s9022_s9 + $0x338] sm:$0xff]  }
 0x165   : > { %4708 = vmatprep.mubr.bf16.mxu0 %v7720_v15  ;;  %v7787_v15 = vld [vmem:[%s10124_s0 + $0x1c] ss:$100 sps:$4 sm:$0xff]  }
 0x167   : > { %6903 = vmatpush3.bf16.msra.mxu1 %v7711_v14  ;;  %6961 = vmatpush3.bf16.msra.mxu0 %v7716_v16  ;;  %v6544_v14 = vcombine.low %v2045_v6, %v2045_v6  ;;  %v7792_v16 = vld [vmem:[%s10124_s0 + $0x24] ss:$100 sps:$4 sm:$0xff]   ;;  %v2047_v6 = vld [vmem:[%s10124_s0 + $0x4d0] sm:$0x11] }
 0x168   : > { %7004 = vmatprep.subr.bf16.mxu1 %v7717_v17  ;;  %7062 = vmatprep.subr.bf16.mxu0 %v7722_v20  ;;  %v7785_v17 = vld [vmem:[%s10124_s0 + $0x18] ss:$100 sps:$4 sm:$0xff]   ;;  %v7795_v20 = vld [vmem:[%s9022_s9 + $0x300] sm:$0xff]  }
 0x16a   : > { %4621 = vmatmul.mubr.bf16.vlgmr.msra.gmra.mrb[12].mxu1 %v7713_v18  ;;  %4709 = vmatmul.mubr.bf16.vlgmr.msra.gmra.mrb[16].mxu0 %v7718_v19  ;;  %v7790_v18 = vld [vmem:[%s10124_s0 + $0x20] ss:$100 sps:$4 sm:$0xff]   ;;  %v7793_v19 = vld [vmem:[%s9022_s9 + $0x280] sm:$0xff]  }
 0x16b   : > { %7005 = vmatpush3.bf16.msra.mxu1 %v7721_v21  ;;  %7063 = vmatpush3.bf16.msra.mxu0 %v7723_v22  ;;  %v7796_v21 = vld [vmem:[%s10124_s0 + $0xe4] ss:$100 sps:$4 sm:$0xff]   ;;  %v7798_v22 = vld [vmem:[%s9022_s9 + $0x2c8] sm:$0xff]  }
 0x16c   : > { %4628 = vmatprep.mubr.bf16.mxu1 %v7724_v23  ;;  %7006 = vmatprep.subr.bf16.mxu1 %v7726_v24  ;;  %v7801_v23 = vld [vmem:[%s10124_s0 + $0xec] ss:$100 sps:$4 sm:$0xff]  }
 0x16d   : > { %4716 = vmatprep.mubr.bf16.mxu0 %v7729_v25  ;;  %7064 = vmatprep.subr.bf16.mxu0 %v7732_v26  ;;  %v7800_v24 = vld [vmem:[%s9022_s9 + $0x288] sm:$0xff]  }
 0x16e   : > { %v7804_v25 = vld [vmem:[%s9022_s9 + $0x348] sm:$0xff]  }
 0x16f   : > { %7007 = vmatpush3.bf16.msra.mxu1 %v7728_v27  ;;  %7065 = vmatpush3.bf16.msra.mxu0 %v7733_v28  ;;  %v7805_v26 = vld [vmem:[%s9022_s9 + $0x308] sm:$0xff]   ;;  %v7806_v27 = vld [vmem:[%s9022_s9 + $0x2d0] sm:$0xff]   ;;  %v7799_v28 = vld [vmem:[%s10124_s0 + $0xe0] ss:$100 sps:$4 sm:$0xff]  }
 0x170   : > { %7008 = vmatprep.subr.bf16.mxu1 %v7734_v31  ;;  %7066 = vmatprep.subr.bf16.mxu0 %v7742_v35  ;;  %v7807_v31 = vld [vmem:[%s10124_s0 + $0x1ac] ss:$100 sps:$4 sm:$0xff]   ;;  %v7816_v35 = vld [vmem:[%s9022_s9 + $0x2d8] sm:$0xff]  }
 0x172   : > { %4629 = vmatmul.mubr.bf16.gmra.mrb[16].mxu1 %v7727_v29  ;;  %4717 = vmatmul.mubr.bf16.gmra.mrb[20].mxu0 %v7731_v30  ;;  %v7803_v29 = vld [vmem:[%s10124_s0 + $0xe8] ss:$100 sps:$4 sm:$0xff]   ;;  %v7814_v30 = vld [vmem:[%s9022_s9 + $0x350] sm:$0xff]  }
 0x173   : > { %4636 = vmatprep.mubr.bf16.mxu1 %v7735_v32  ;;  %7009 = vmatpush3.bf16.msra.mxu1 %v7737_v33  ;;  %v7809_v32 = vld [vmem:[%s9022_s9 + $0x290] sm:$0xff]  }
 0x174   : > { %4724 = vmatprep.mubr.bf16.mxu0 %v7739_v34  ;;  %7067 = vmatpush3.bf16.msra.mxu0 %v7743_v36  ;;  %v7811_v33 = vld [vmem:[%s10124_s0 + $0x1b4] ss:$100 sps:$4 sm:$0xff]   ;;  %v7824_v36 = vld [vmem:[%s9022_s9 + $0x358] sm:$0xff]  }
 0x175   : > { %7010 = vmatprep.subr.bf16.mxu1 %v7744_v37  ;;  %7068 = vmatprep.subr.bf16.mxu0 %v7752_v43  ;;  %v7815_v34 = vld [vmem:[%s9022_s9 + $0x310] sm:$0xff]   ;;  %v7817_v37 = vld [vmem:[%s9022_s9 + $0x298] sm:$0xff]   ;;  %v7833_v43 = vld [vmem:[%s9022_s9 + $0x360] sm:$0xff]  }
 0x177   : > { %7011 = vmatpush3.bf16.msra.mxu1 %v7745_v38  ;;  %v7825_v38 = vld [vmem:[%s9022_s9 + $0x318] sm:$0xff]  }
 0x178   : > { %7069 = vmatpush3.bf16.msra.mxu0 %v7753_v44  ;;  %7012 = vmatprep.subr.bf16.mxu1 %v7754_v45  ;;  %v7821_v44 = vld [vmem:[%s10124_s0 + $0x27c] ss:$100 sps:$4 sm:$0xff]   ;;  %v7827_v45 = vld [vmem:[%s9022_s9 + $0x2a0] sm:$0xff]  }
 0x179   : > { %7070 = vmatprep.subr.bf16.mxu0 %v7761_v49  ;;  %v7820_v49 = vld [vmem:[%s10124_s0 + $0x270] ss:$100 sps:$4 sm:$0xff]  }
 0x17a   : > { %4637 = vmatmul.mubr.bf16.gmra.mrb[20].mxu1 %v7738_v39  ;;  %4725 = vmatmul.mubr.bf16.gmra.mrb[24].mxu0 %v7741_v40  ;;  %v7810_v39 = vld [vmem:[%s10124_s0 + $0x1a8] ss:$100 sps:$4 sm:$0xff]   ;;  %v7813_v40 = vld [vmem:[%s10124_s0 + $0x1b0] ss:$100 sps:$4 sm:$0xff]  }
 0x17b   : > { %4644 = vmatprep.mubr.bf16.mxu1 %v7746_v41  ;;  %4732 = vmatprep.mubr.bf16.mxu0 %v7749_v42  ;;  %v7826_v41 = vld [vmem:[%s9022_s9 + $0x2e0] sm:$0xff]   ;;  %v7818_v42 = vld [vmem:[%s10124_s0 + $0x274] ss:$100 sps:$4 sm:$0xff]  }
 0x17c   : > { %7013 = vmatpush3.bf16.msra.mxu1 %v7755_v46  ;;  %7071 = vmatpush3.bf16.msra.mxu0 %v7763_v52  ;;  %v7835_v46 = vld [vmem:[%s9022_s9 + $0x320] sm:$0xff]   ;;  %v7844_v52 = vld [vmem:[%s9022_s9 + $0x328] sm:$0xff]  }
 0x17d   : > { %7014 = vmatprep.subr.bf16.mxu1 %v7764_v53  ;;  %7072 = vmatprep.subr.bf16.mxu0 %v7769_v55  ;;  %v7828_v53 = vld [vmem:[%s10124_s0 + $0x33c] ss:$100 sps:$4 sm:$0xff]   ;;  %v7831_v55 = vld [vmem:[%s10124_s0 + $0x344] ss:$100 sps:$4 sm:$0xff]  }
 0x180   : > { %7015 = vmatpush3.bf16.msra.mxu1 %v7765_v54  ;;  %7073 = vmatpush3.bf16.msra.mxu0 %v7772_v56  ;;  %v7846_v54 = vld [vmem:[%s9022_s9 + $0x2f0] sm:$0xff]  }
 0x181   : > { %7016 = vmatprep.subr.bf16.mxu1 %v7774_v60  ;;  %7074 = vmatprep.subr.bf16.mxu0 %v7777_v63  ;;  %v7847_v56 = vld [vmem:[%s9022_s9 + $0x2b0] sm:$0xff]   ;;  %v7855_v60 = vld [vmem:[%s9022_s9 + $0x2b8] sm:$0xff]  }
 0x182   : > { %4645 = vmatmul.mubr.bf16.gmra.mrb[24].mxu1 %v7748_v47  ;;  %4733 = vmatmul.mubr.bf16.gmra.mrb[28].mxu0 %v7751_v48  ;;  %v7836_v47 = vld [vmem:[%s9022_s9 + $0x2e8] sm:$0xff]   ;;  %v7856_v63 = vld [vmem:[%s9022_s9 + $0x378] sm:$0xff]  }
 0x183   : > { %4652 = vmatprep.mubr.bf16.mxu1 %v7756_v50  ;;  %4740 = vmatprep.mubr.bf16.mxu0 %v7759_v51  ;;  %v7841_v48 = vld [vmem:[%s9022_s9 + $0x368] sm:$0xff]   ;;  %v7823_v50 = vld [vmem:[%s10124_s0 + $0x278] ss:$100 sps:$4 sm:$0xff]  }
 0x184   : > { %7017 = vmatpush3.bf16.msra.mxu1 %v7775_v62  ;;  %7075 = vmatpush3.bf16.msra.mxu0 %v7779_v0  ;;  %v7837_v51 = vld [vmem:[%s9022_s9 + $0x2a8] sm:$0xff]   ;;  %v7834_v62 = vld [vmem:[%s10124_s0 + $0x340] ss:$100 sps:$4 sm:$0xff]  }
 0x185   : > { %7018 = vmatprep.subr.bf16.mxu1 %v7781_v1  ;;  %7076 = vmatprep.subr.bf16.mxu0 %v7784_v4  ;;  %v7838_v0 = vld [vmem:[%s10124_s0 + $0x404] ss:$100 sps:$4 sm:$0xff]   ;;  %v7842_v1 = vld [vmem:[%s10124_s0 + $0x40c] ss:$100 sps:$4 sm:$0xff]  }
 0x186   : > { %v2046_v4 = vld [vmem:[%s10124_s0 + $0x4c8] sm:$0x11] }
 0x188   : > { %7019 = vmatpush3.bf16.msra.mxu1 %v7783_v3  ;;  %7077 = vmatpush3.bf16.msra.mxu0 %v7788_v8  ;;  %v7861_v3 = vld [vmem:[%s9022_s9 + $0x3c0] sm:$0xff]  }
 0x189   : > { %7120 = vmatprep.subr.bf16.mxu1 %v7789_v11  ;;  %7178 = vmatprep.subr.bf16.mxu0 %v7794_v12  ;;  %v7845_v8 = vld [vmem:[%s10124_s0 + $0x408] ss:$100 sps:$4 sm:$0xff]   ;;  %v6546_v11 = vcombine.low %v2046_v4, %v2046_v4  ;;  %v6548_v12 = vcombine.low %v2047_v6, %v2047_v6 }
 0x18a   : > { %4653 = vmatmul.mubr.bf16.gmra.mrb[28].mxu1 %v7758_v57  ;;  %4741 = vmatmul.mubr.bf16.gmra.mrb[32].mxu0 %v7762_v58  ;;  %v7849_v57 = vld [vmem:[%s9022_s9 + $0x370] sm:$0xff]  }
 0x18b   : > { %4660 = vmatprep.mubr.bf16.mxu1 %v7766_v59  ;;  %4748 = vmatprep.mubr.bf16.mxu0 %v7770_v61  ;;  %v7851_v58 = vld [vmem:[%s9022_s9 + $0x330] sm:$0xff]   ;;  %v7853_v59 = vld [vmem:[%s9022_s9 + $0x2f8] sm:$0xff]  }
 0x18c   : > { %v7830_v61 = vld [vmem:[%s10124_s0 + $0x338] ss:$100 sps:$4 sm:$0xff]  }
 0x192   : > { %4661 = vmatmul.mubr.bf16.gmra.mrb[32].mxu1 %v7768_v5  ;;  %4749 = vmatmul.mubr.bf16.gmra.mrb[36].mxu0 %v7773_v7  ;;  %v7866_v5 = vld [vmem:[%s9022_s9 + $0x440] sm:$0xff]   ;;  %v7840_v7 = vld [vmem:[%s10124_s0 + $0x400] ss:$100 sps:$4 sm:$0xff]  }
 0x193   : > { %4668 = vmatprep.mubr.bf16.mxu1 %v6543_v9  ;;  %4756 = vmatprep.mubr.bf16.mxu0 %v6545_v10  ;;  %v6547_v9 = vcombine.high %v2046_v4, %v2046_v4  ;;  %v6549_v10 = vcombine.high %v2047_v6, %v2047_v6  ;;  %v2048_v4 = vld [vmem:[%s10124_s0 + $0x4d8] sm:$0x11]  ;;  %v7912_v6 = vld [vmem:[%s10124_s0 + $0x410] ss:$100 sps:$4 sm:$0xff]  }
 0x19a   : > { %4669 = vmatmul.mubr.bf16.gmra.mrb[36].mxu1 %v6542_v13  ;;  %4757 = vmatmul.mubr.bf16.gmra.mrb[40].mxu0 %v6544_v14  ;;  %v7859_v13 = vld [vmem:[%s10124_s0 + $0x2c] ss:$100 sps:$4 sm:$0xff]   ;;  %v7864_v14 = vld [vmem:[%s10124_s0 + $0x34] ss:$100 sps:$4 sm:$0xff]  }
 0x19b   : > { %4796 = vmatprep.mubr.bf16.mxu1 %v7787_v15  ;;  %4884 = vmatprep.mubr.bf16.mxu0 %v7792_v16  ;;  %v8137_v15 = vmov 0.0   ;;  %v7857_v16 = vld [vmem:[%s10124_s0 + $0x28] ss:$100 sps:$4 sm:$0xff]  }
 0x19c   : > { %1873 = vst [vmem:[#allocation2 + $0x60] sm:$0x3] %v8137_v15 }
 0x1a2   : > { %4797 = vmatmul.mubr.bf16.vlgmr.msra.gmra.mrb[40].mxu1 %v7785_v17  ;;  %4885 = vmatmul.mubr.bf16.vlgmr.msra.gmra.mrb[44].mxu0 %v7790_v18  ;;  %v7862_v17 = vld [vmem:[%s10124_s0 + $0x30] ss:$100 sps:$4 sm:$0xff]   ;;  %v7865_v18 = vld [vmem:[%s9022_s9 + $0x380] sm:$0xff]  }
 0x1a3   : > { %7121 = vmatpush3.bf16.msra.mxu1 %v7793_v19  ;;  %7179 = vmatpush3.bf16.msra.mxu0 %v7795_v20  ;;  %v7867_v19 = vld [vmem:[%s9022_s9 + $0x400] sm:$0xff]   ;;  %v7868_v20 = vld [vmem:[%s10124_s0 + $0xf4] ss:$100 sps:$4 sm:$0xff]  }
 0x1a4   : > { %4804 = vmatprep.mubr.bf16.mxu1 %v7796_v21  ;;  %7122 = vmatprep.subr.bf16.mxu1 %v7798_v22  ;;  %v7870_v21 = vld [vmem:[%s9022_s9 + $0x3c8] sm:$0xff]   ;;  %v7873_v22 = vld [vmem:[%s10124_s0 + $0xfc] ss:$100 sps:$4 sm:$0xff]  }
 0x1a5   : > { %4892 = vmatprep.mubr.bf16.mxu0 %v7801_v23  ;;  %7180 = vmatprep.subr.bf16.mxu0 %v7804_v25  ;;  %v7876_v23 = vld [vmem:[%s9022_s9 + $0x448] sm:$0xff]  }
 0x1a6   : > { %v7877_v25 = vld [vmem:[%s9022_s9 + $0x408] sm:$0xff]  }
 0x1a7   : > { %7123 = vmatpush3.bf16.msra.mxu1 %v7800_v24  ;;  %7181 = vmatpush3.bf16.msra.mxu0 %v7805_v26  ;;  %v7872_v24 = vld [vmem:[%s9022_s9 + $0x388] sm:$0xff]   ;;  %v7878_v26 = vld [vmem:[%s9022_s9 + $0x3d0] sm:$0xff]  }
 0x1a8   : > { %7124 = vmatprep.subr.bf16.mxu1 %v7806_v27  ;;  %7182 = vmatprep.subr.bf16.mxu0 %v7814_v30  ;;  %v7871_v27 = vld [vmem:[%s10124_s0 + $0xf0] ss:$100 sps:$4 sm:$0xff]   ;;  %v7879_v30 = vld [vmem:[%s10124_s0 + $0x1bc] ss:$100 sps:$4 sm:$0xff]  }
 0x1aa   : > { %4805 = vmatmul.mubr.bf16.gmra.mrb[44].mxu1 %v7799_v28  ;;  %4893 = vmatmul.mubr.bf16.gmra.mrb[48].mxu0 %v7803_v29  ;;  %v7875_v28 = vld [vmem:[%s10124_s0 + $0xf8] ss:$100 sps:$4 sm:$0xff]  }
 0x1ab   : > { %4812 = vmatprep.mubr.bf16.mxu1 %v7807_v31  ;;  %7125 = vmatpush3.bf16.msra.mxu1 %v7809_v32  ;;  %v7886_v29 = vld [vmem:[%s9022_s9 + $0x450] sm:$0xff]   ;;  %v7883_v32 = vld [vmem:[%s10124_s0 + $0x1c4] ss:$100 sps:$4 sm:$0xff]  }
 0x1ac   : > { %4900 = vmatprep.mubr.bf16.mxu0 %v7811_v33  ;;  %7183 = vmatpush3.bf16.msra.mxu0 %v7815_v34  ;;  %v7881_v31 = vld [vmem:[%s9022_s9 + $0x390] sm:$0xff]   ;;  %v7888_v34 = vld [vmem:[%s9022_s9 + $0x3d8] sm:$0xff]  }
 0x1ad   : > { %7126 = vmatprep.subr.bf16.mxu1 %v7816_v35  ;;  %7184 = vmatprep.subr.bf16.mxu0 %v7824_v36  ;;  %v7887_v33 = vld [vmem:[%s9022_s9 + $0x410] sm:$0xff]   ;;  %v7896_v35 = vld [vmem:[%s9022_s9 + $0x458] sm:$0xff]  }
 0x1ae   : > { %v7889_v36 = vld [vmem:[%s9022_s9 + $0x398] sm:$0xff]  }
 0x1af   : > { %7127 = vmatpush3.bf16.msra.mxu1 %v7817_v37  ;;  %v7897_v37 = vld [vmem:[%s9022_s9 + $0x418] sm:$0xff]  }
 0x1b0   : > { %7185 = vmatpush3.bf16.msra.mxu0 %v7825_v38  ;;  %7128 = vmatprep.subr.bf16.mxu1 %v7826_v41  ;;  %v7882_v38 = vld [vmem:[%s10124_s0 + $0x1b8] ss:$100 sps:$4 sm:$0xff]   ;;  %v7890_v41 = vld [vmem:[%s10124_s0 + $0x284] ss:$100 sps:$4 sm:$0xff]  }
 0x1b1   : > { %7186 = vmatprep.subr.bf16.mxu0 %v7833_v43  ;;  %v7893_v43 = vld [vmem:[%s10124_s0 + $0x28c] ss:$100 sps:$4 sm:$0xff]  }
 0x1b2   : > { %4813 = vmatmul.mubr.bf16.gmra.mrb[48].mxu1 %v7810_v39  ;;  %4901 = vmatmul.mubr.bf16.gmra.mrb[52].mxu0 %v7813_v40  ;;  %v7885_v39 = vld [vmem:[%s10124_s0 + $0x1c0] ss:$100 sps:$4 sm:$0xff]   ;;  %v7898_v40 = vld [vmem:[%s9022_s9 + $0x3e0] sm:$0xff]  }
 0x1b3   : > { %4820 = vmatprep.mubr.bf16.mxu1 %v7818_v42  ;;  %4908 = vmatprep.mubr.bf16.mxu0 %v7821_v44  ;;  %v7905_v42 = vld [vmem:[%s9022_s9 + $0x460] sm:$0xff]  }
 0x1b4   : > { %7129 = vmatpush3.bf16.msra.mxu1 %v7827_v45  ;;  %7187 = vmatpush3.bf16.msra.mxu0 %v7835_v46  ;;  %v7899_v44 = vld [vmem:[%s9022_s9 + $0x3a0] sm:$0xff]   ;;  %v7908_v46 = vld [vmem:[%s9022_s9 + $0x3e8] sm:$0xff]  }
 0x1b5   : > { %7130 = vmatprep.subr.bf16.mxu1 %v7836_v47  ;;  %7188 = vmatprep.subr.bf16.mxu0 %v7841_v48  ;;  %v7907_v45 = vld [vmem:[%s9022_s9 + $0x420] sm:$0xff]   ;;  %v7913_v47 = vld [vmem:[%s9022_s9 + $0x468] sm:$0xff]  }
 0x1b6   : > { %v7909_v48 = vld [vmem:[%s9022_s9 + $0x3a8] sm:$0xff]  }
 0x1b8   : > { %7131 = vmatpush3.bf16.msra.mxu1 %v7837_v51  ;;  %7189 = vmatpush3.bf16.msra.mxu0 %v7844_v52  ;;  %v7895_v51 = vld [vmem:[%s10124_s0 + $0x288] ss:$100 sps:$4 sm:$0xff]   ;;  %v7918_v52 = vld [vmem:[%s9022_s9 + $0x3f0] sm:$0xff]  }
 0x1b9   : > { %7132 = vmatprep.subr.bf16.mxu1 %v7846_v54  ;;  %7190 = vmatprep.subr.bf16.mxu0 %v7849_v57  ;;  %v7900_v54 = vld [vmem:[%s10124_s0 + $0x34c] ss:$100 sps:$4 sm:$0xff]   ;;  %v7923_v57 = vld [vmem:[%s9022_s9 + $0x430] sm:$0xff]  }
 0x1ba   : > { %4821 = vmatmul.mubr.bf16.gmra.mrb[52].mxu1 %v7820_v49  ;;  %4909 = vmatmul.mubr.bf16.gmra.mrb[56].mxu0 %v7823_v50  ;;  %v7916_v49 = vld [vmem:[%s9022_s9 + $0x428] sm:$0xff]   ;;  %v7892_v50 = vld [vmem:[%s10124_s0 + $0x280] ss:$100 sps:$4 sm:$0xff]  }
 0x1bb   : > { %4828 = vmatprep.mubr.bf16.mxu1 %v7828_v53  ;;  %4916 = vmatprep.mubr.bf16.mxu0 %v7831_v55  ;;  %v7921_v53 = vld [vmem:[%s9022_s9 + $0x470] sm:$0xff]  }
 0x1bc   : > { %7133 = vmatpush3.bf16.msra.mxu1 %v7847_v56  ;;  %7191 = vmatpush3.bf16.msra.mxu0 %v7851_v58  ;;  %v7903_v55 = vld [vmem:[%s10124_s0 + $0x354] ss:$100 sps:$4 sm:$0xff]   ;;  %v7925_v58 = vld [vmem:[%s9022_s9 + $0x3f8] sm:$0xff]  }
 0x1bd   : > { %7134 = vmatprep.subr.bf16.mxu1 %v7853_v59  ;;  %7192 = vmatprep.subr.bf16.mxu0 %v7856_v63  ;;  %v7919_v56 = vld [vmem:[%s9022_s9 + $0x3b0] sm:$0xff]   ;;  %v7928_v59 = vld [vmem:[%s9022_s9 + $0x478] sm:$0xff]   ;;  %v7906_v63 = vld [vmem:[%s10124_s0 + $0x350] ss:$100 sps:$4 sm:$0xff]  }
 0x1c0   : > { %7135 = vmatpush3.bf16.msra.mxu1 %v7855_v60  ;;  %7193 = vmatpush3.bf16.msra.mxu0 %v7860_v2  ;;  %v7927_v60 = vld [vmem:[%s9022_s9 + $0x3b8] sm:$0xff]   ;;  %v7910_v2 = vld [vmem:[%s10124_s0 + $0x414] ss:$100 sps:$4 sm:$0xff]  }
 0x1c1   : > { %7236 = vmatprep.subr.bf16.mxu1 %v7861_v3  ;;  %7294 = vmatprep.subr.bf16.mxu0 %v7866_v5  ;;  %v7914_v3 = vld [vmem:[%s10124_s0 + $0x41c] ss:$100 sps:$4 sm:$0xff]  }
 0x1c2   : > { %4829 = vmatmul.mubr.bf16.gmra.mrb[56].mxu1 %v7830_v61  ;;  %4917 = vmatmul.mubr.bf16.gmra.mrb[60].mxu0 %v7834_v62  ;;  %v7932_v61 = vld [vmem:[%s9022_s9 + $0x438] sm:$0xff]   ;;  %v7902_v62 = vld [vmem:[%s10124_s0 + $0x348] ss:$100 sps:$4 sm:$0xff]  }
 0x1c3   : > { %4836 = vmatprep.mubr.bf16.mxu1 %v7838_v0  ;;  %4924 = vmatprep.mubr.bf16.mxu0 %v7842_v1  ;;  %v7933_v0 = vld [vmem:[%s9022_s9 + $0x4c0] sm:$0xff]   ;;  %v2049_v5 = vld [vmem:[%s10124_s0 + $0x4e0] sm:$0x11] }
 0x1c4   : > { %v7938_v1 = vld [vmem:[%s9022_s9 + $0x540] sm:$0xff]  }
 0x1ca   : > { %4837 = vmatmul.mubr.bf16.gmra.mrb[60].mxu1 %v7840_v7  ;;  %4925 = vmatmul.mubr.bf16.gmra.mrb[64].mxu0 %v7845_v8  ;;  %v7917_v7 = vld [vmem:[%s10124_s0 + $0x418] ss:$100 sps:$4 sm:$0xff]   ;;  %v6551_v8 = vcombine.high %v2048_v4, %v2048_v4 }
 0x1cb   : > { %4844 = vmatprep.mubr.bf16.mxu1 %v6547_v9  ;;  %4932 = vmatprep.mubr.bf16.mxu0 %v6549_v10  ;;  %v6553_v9 = vcombine.high %v2049_v5, %v2049_v5  ;;  %v6550_v10 = vcombine.low %v2048_v4, %v2048_v4 }
 0x1d2   : > { %4845 = vmatmul.mubr.bf16.gmra.mrb[64].mxu1 %v6546_v11  ;;  %4933 = vmatmul.mubr.bf16.gmra.mrb[68].mxu0 %v6548_v12  ;;  %v6552_v11 = vcombine.low %v2049_v5, %v2049_v5  ;;  %v7931_v12 = vld [vmem:[%s10124_s0 + $0x3c] ss:$100 sps:$4 sm:$0xff]  }
 0x1d3   : > { %4972 = vmatprep.mubr.bf16.mxu1 %v7859_v13  ;;  %5060 = vmatprep.mubr.bf16.mxu0 %v7864_v14  ;;  %v7936_v13 = vld [vmem:[%s10124_s0 + $0x44] ss:$100 sps:$4 sm:$0xff]   ;;  %v7929_v14 = vld [vmem:[%s10124_s0 + $0x38] ss:$100 sps:$4 sm:$0xff]  }
 0x1da   : > { %4973 = vmatmul.mubr.bf16.vlgmr.msra.gmra.mrb[68].mxu1 %v7857_v16  ;;  %5061 = vmatmul.mubr.bf16.vlgmr.msra.gmra.mrb[72].mxu0 %v7862_v17  ;;  %v7934_v16 = vld [vmem:[%s10124_s0 + $0x40] ss:$100 sps:$4 sm:$0xff]   ;;  %v7937_v17 = vld [vmem:[%s9022_s9 + $0x480] sm:$0xff]  }
 0x1db   : > { %7237 = vmatpush3.bf16.msra.mxu1 %v7865_v18  ;;  %7295 = vmatpush3.bf16.msra.mxu0 %v7867_v19  ;;  %v7939_v18 = vld [vmem:[%s9022_s9 + $0x500] sm:$0xff]  }
 0x1dc   : > { %4980 = vmatprep.mubr.bf16.mxu1 %v7868_v20  ;;  %7238 = vmatprep.subr.bf16.mxu1 %v7870_v21  ;;  %v7940_v19 = vld [vmem:[%s10124_s0 + $0x104] ss:$100 sps:$4 sm:$0xff]   ;;  %v7942_v20 = vld [vmem:[%s9022_s9 + $0x4c8] sm:$0xff]  }
 0x1dd   : > { %5068 = vmatprep.mubr.bf16.mxu0 %v7873_v22  ;;  %7296 = vmatprep.subr.bf16.mxu0 %v7876_v23  ;;  %v7945_v21 = vld [vmem:[%s10124_s0 + $0x10c] ss:$100 sps:$4 sm:$0xff]  }
 0x1de   : > { %v7948_v22 = vld [vmem:[%s9022_s9 + $0x548] sm:$0xff]  }
 0x1df   : > { %7239 = vmatpush3.bf16.msra.mxu1 %v7872_v24  ;;  %7297 = vmatpush3.bf16.msra.mxu0 %v7877_v25  ;;  %v7944_v23 = vld [vmem:[%s9022_s9 + $0x488] sm:$0xff]   ;;  %v7950_v25 = vld [vmem:[%s9022_s9 + $0x4d0] sm:$0xff]  }
 0x1e0   : > { %7240 = vmatprep.subr.bf16.mxu1 %v7878_v26  ;;  %7298 = vmatprep.subr.bf16.mxu0 %v7886_v29  ;;  %v7949_v24 = vld [vmem:[%s9022_s9 + $0x508] sm:$0xff]   ;;  %v7943_v26 = vld [vmem:[%s10124_s0 + $0x100] ss:$100 sps:$4 sm:$0xff]  }
 0x1e1   : > { %v7951_v29 = vld [vmem:[%s10124_s0 + $0x1cc] ss:$100 sps:$4 sm:$0xff]  }
 0x1e2   : > { %4981 = vmatmul.mubr.bf16.gmra.mrb[72].mxu1 %v7871_v27  ;;  %5069 = vmatmul.mubr.bf16.gmra.mrb[76].mxu0 %v7875_v28  ;;  %v7947_v27 = vld [vmem:[%s10124_s0 + $0x108] ss:$100 sps:$4 sm:$0xff]   ;;  %v7958_v28 = vld [vmem:[%s9022_s9 + $0x550] sm:$0xff]  }
 0x1e3   : > { %4988 = vmatprep.mubr.bf16.mxu1 %v7879_v30  ;;  %7241 = vmatpush3.bf16.msra.mxu1 %v7881_v31  ;;  %v7953_v30 = vld [vmem:[%s9022_s9 + $0x490] sm:$0xff]  }
 0x1e4   : > { %5076 = vmatprep.mubr.bf16.mxu0 %v7883_v32  ;;  %7299 = vmatpush3.bf16.msra.mxu0 %v7887_v33  ;;  %v7955_v31 = vld [vmem:[%s10124_s0 + $0x1d4] ss:$100 sps:$4 sm:$0xff]   ;;  %v7960_v33 = vld [vmem:[%s9022_s9 + $0x4d8] sm:$0xff]  }
 0x1e5   : > { %7242 = vmatprep.subr.bf16.mxu1 %v7888_v34  ;;  %7300 = vmatprep.subr.bf16.mxu0 %v7896_v35  ;;  %v7959_v32 = vld [vmem:[%s9022_s9 + $0x510] sm:$0xff]   ;;  %v7968_v34 = vld [vmem:[%s9022_s9 + $0x558] sm:$0xff]  }
 0x1e6   : > { %v7961_v35 = vld [vmem:[%s9022_s9 + $0x498] sm:$0xff]  }
 0x1e7   : > { %7243 = vmatpush3.bf16.msra.mxu1 %v7889_v36  ;;  %v7969_v36 = vld [vmem:[%s9022_s9 + $0x518] sm:$0xff]  }
 0x1e8   : > { %7301 = vmatpush3.bf16.msra.mxu0 %v7897_v37  ;;  %7244 = vmatprep.subr.bf16.mxu1 %v7898_v40  ;;  %v7970_v37 = vld [vmem:[%s9022_s9 + $0x4e0] sm:$0xff]  }
 0x1e9   : > { %7302 = vmatprep.subr.bf16.mxu0 %v7905_v42  ;;  %v7977_v40 = vld [vmem:[%s9022_s9 + $0x560] sm:$0xff]  }
 0x1ea   : > { %4989 = vmatmul.mubr.bf16.gmra.mrb[76].mxu1 %v7882_v38  ;;  %5077 = vmatmul.mubr.bf16.gmra.mrb[80].mxu0 %v7885_v39  ;;  %v7954_v38 = vld [vmem:[%s10124_s0 + $0x1c8] ss:$100 sps:$4 sm:$0xff]   ;;  %v7957_v39 = vld [vmem:[%s10124_s0 + $0x1d0] ss:$100 sps:$4 sm:$0xff]  }
 0x1eb   : > { %4996 = vmatprep.mubr.bf16.mxu1 %v7890_v41  ;;  %5084 = vmatprep.mubr.bf16.mxu0 %v7893_v43  ;;  %v7962_v43 = vld [vmem:[%s10124_s0 + $0x294] ss:$100 sps:$4 sm:$0xff]  }
 0x1ec   : > { %7245 = vmatpush3.bf16.msra.mxu1 %v7899_v44  ;;  %7303 = vmatpush3.bf16.msra.mxu0 %v7907_v45 }
 0x1ed   : > { %7246 = vmatprep.subr.bf16.mxu1 %v7908_v46  ;;  %7304 = vmatprep.subr.bf16.mxu0 %v7913_v47  ;;  %v7965_v46 = vld [vmem:[%s10124_s0 + $0x29c] ss:$100 sps:$4 sm:$0xff]  }
 0x1f0   : > { %7247 = vmatpush3.bf16.msra.mxu1 %v7909_v48  ;;  %7305 = vmatpush3.bf16.msra.mxu0 %v7916_v49 }
 0x1f1   : > { %7248 = vmatprep.subr.bf16.mxu1 %v7918_v52  ;;  %7306 = vmatprep.subr.bf16.mxu0 %v7921_v53  ;;  %v7979_v52 = vld [vmem:[%s9022_s9 + $0x520] sm:$0xff]   ;;  %v7980_v53 = vld [vmem:[%s9022_s9 + $0x4e8] sm:$0xff]  }
 0x1f2   : > { %4997 = vmatmul.mubr.bf16.gmra.mrb[80].mxu1 %v7892_v50  ;;  %5085 = vmatmul.mubr.bf16.gmra.mrb[84].mxu0 %v7895_v51  ;;  %v7971_v51 = vld [vmem:[%s9022_s9 + $0x4a0] sm:$0xff]  }
 0x1f3   : > { %5004 = vmatprep.mubr.bf16.mxu1 %v7900_v54  ;;  %5092 = vmatprep.mubr.bf16.mxu0 %v7903_v55 }
 0x1f4   : > { %7249 = vmatpush3.bf16.msra.mxu1 %v7919_v56  ;;  %7307 = vmatpush3.bf16.msra.mxu0 %v7923_v57 }
 0x1f5   : > { %7250 = vmatprep.subr.bf16.mxu1 %v7925_v58  ;;  %7308 = vmatprep.subr.bf16.mxu0 %v7928_v59  ;;  %v7985_v58 = vld [vmem:[%s9022_s9 + $0x568] sm:$0xff]  }
 0x1f6   : > { %v7981_v59 = vld [vmem:[%s9022_s9 + $0x4a8] sm:$0xff]  }
 0x1f8   : > { %7251 = vmatpush3.bf16.msra.mxu1 %v7927_v60  ;;  %7309 = vmatpush3.bf16.msra.mxu0 %v7932_v61  ;;  %v7988_v60 = vld [vmem:[%s9022_s9 + $0x528] sm:$0xff]  }
 0x1f9   : > { %7352 = vmatprep.subr.bf16.mxu1 %v7933_v0  ;;  %7410 = vmatprep.subr.bf16.mxu0 %v7938_v1  ;;  %v7964_v61 = vld [vmem:[%s10124_s0 + $0x290] ss:$100 sps:$4 sm:$0xff]  }
 0x1fa   : > { %5005 = vmatmul.mubr.bf16.gmra.mrb[84].mxu1 %v7902_v62  ;;  %5093 = vmatmul.mubr.bf16.gmra.mrb[88].mxu0 %v7906_v63  ;;  %v7967_v62 = vld [vmem:[%s10124_s0 + $0x298] ss:$100 sps:$4 sm:$0xff]  }
 0x1fb   : > { %5012 = vmatprep.mubr.bf16.mxu1 %v7910_v2  ;;  %5100 = vmatprep.mubr.bf16.mxu0 %v7914_v3  ;;  %v7990_v63 = vld [vmem:[%s9022_s9 + $0x4f0] sm:$0xff]  }
 0x1fc   : > { %v7972_v2 = vld [vmem:[%s10124_s0 + $0x35c] ss:$100 sps:$4 sm:$0xff]  }
 0x1fd   : > { %v7993_v3 = vld [vmem:[%s9022_s9 + $0x570] sm:$0xff]  }
 0x202   : > { %5013 = vmatmul.mubr.bf16.gmra.mrb[88].mxu1 %v7912_v6  ;;  %5101 = vmatmul.mubr.bf16.gmra.mrb[92].mxu0 %v7917_v7  ;;  %v7975_v6 = vld [vmem:[%s10124_s0 + $0x364] ss:$100 sps:$4 sm:$0xff]   ;;  %v7991_v7 = vld [vmem:[%s9022_s9 + $0x4b0] sm:$0xff]  }
 0x203   : > { %5020 = vmatprep.mubr.bf16.mxu1 %v6551_v8  ;;  %5108 = vmatprep.mubr.bf16.mxu0 %v6553_v9 }
 0x20a   : > { %5021 = vmatmul.mubr.bf16.gmra.mrb[92].mxu1 %v6550_v10  ;;  %5109 = vmatmul.mubr.bf16.gmra.mrb[96].mxu0 %v6552_v11 }
 0x20b   : > { %5148 = vmatprep.mubr.bf16.mxu1 %v7931_v12  ;;  %5236 = vmatprep.mubr.bf16.mxu0 %v7936_v13 }
 0x212   : > { %5149 = vmatmul.mubr.bf16.vlgmr.msra.gmra.mrb[96].mxu1 %v7929_v14  ;;  %5237 = vmatmul.mubr.bf16.vlgmr.msra.gmra.mrb[100].mxu0 %v7934_v16  ;;  %v7995_v14 = vld [vmem:[%s9022_s9 + $0x530] sm:$0xff]   ;;  %v7997_v16 = vld [vmem:[%s9022_s9 + $0x4f8] sm:$0xff]  }
 0x213   : > { %7353 = vmatpush3.bf16.msra.mxu1 %v7937_v17  ;;  %7411 = vmatpush3.bf16.msra.mxu0 %v7939_v18 }
 0x214   : > { %5156 = vmatprep.mubr.bf16.mxu1 %v7940_v19  ;;  %7354 = vmatprep.subr.bf16.mxu1 %v7942_v20  ;;  %v8000_v19 = vld [vmem:[%s9022_s9 + $0x578] sm:$0xff]  }
 0x215   : > { %5244 = vmatprep.mubr.bf16.mxu0 %v7945_v21  ;;  %7412 = vmatprep.subr.bf16.mxu0 %v7948_v22  ;;  %v7999_v20 = vld [vmem:[%s9022_s9 + $0x4b8] sm:$0xff]   ;;  %v7974_v21 = vld [vmem:[%s10124_s0 + $0x358] ss:$100 sps:$4 sm:$0xff]  }
 0x216   : > { %v7978_v22 = vld [vmem:[%s10124_s0 + $0x360] ss:$100 sps:$4 sm:$0xff]  }
 0x217   : > { %7355 = vmatpush3.bf16.msra.mxu1 %v7944_v23  ;;  %7413 = vmatpush3.bf16.msra.mxu0 %v7949_v24  ;;  %v8004_v23 = vld [vmem:[%s9022_s9 + $0x538] sm:$0xff]  }
 0x218   : > { %7356 = vmatprep.subr.bf16.mxu1 %v7950_v25  ;;  %7414 = vmatprep.subr.bf16.mxu0 %v7958_v28 }
 0x21a   : > { %5157 = vmatmul.mubr.bf16.gmra.mrb[100].mxu1 %v7943_v26  ;;  %5245 = vmatmul.mubr.bf16.gmra.mrb[104].mxu0 %v7947_v27  ;;  %v7982_v26 = vld [vmem:[%s10124_s0 + $0x424] ss:$100 sps:$4 sm:$0xff]  }
 0x21b   : > { %5164 = vmatprep.mubr.bf16.mxu1 %v7951_v29  ;;  %7357 = vmatpush3.bf16.msra.mxu1 %v7953_v30  ;;  %v8005_v27 = vld [vmem:[%s9022_s9 + $0x5c0] sm:$0xff]  }
 0x21c   : > { %5252 = vmatprep.mubr.bf16.mxu0 %v7955_v31  ;;  %7415 = vmatpush3.bf16.msra.mxu0 %v7959_v32 }
 0x21d   : > { %v6870_v41 = vpop.f32.mrb[0].mxu1  ;;  %v6846_v42 = vpop.f32.mrb[0].mxu0  ;;  %7358 = vmatprep.subr.bf16.mxu1 %v7960_v33  ;;  %7416 = vmatprep.subr.bf16.mxu0 %v7968_v34  ;;  %v7986_v34 = vld [vmem:[%s10124_s0 + $0x42c] ss:$100 sps:$4 sm:$0xff]  }
 0x21e   : > { %v6871_v44 = vpop.f32.mrb[1].mxu1  ;;  %v6847_v45 = vpop.f32.mrb[1].mxu0 }
 0x21f   : > { %v9496_v47 = vadd.f32 %v6871_v44, %v6870_v41  ;;  %v6873_v48 = vpop.f32.mrb[2].mxu1  ;;  %v9498_v49 = vadd.f32 %v6847_v45, %v6846_v42  ;;  %v6849_v50 = vpop.f32.mrb[2].mxu0  ;;  %7359 = vmatpush3.bf16.msra.mxu1 %v7961_v35  ;;  %v7984_v42 = vld [vmem:[%s10124_s0 + $0x420] ss:$100 sps:$4 sm:$0xff]  }
 0x220   : > { %v6874_v54 = vpop.f32.mrb[3].mxu1  ;;  %v6850_v55 = vpop.f32.mrb[3].mxu0  ;;  %7417 = vmatpush3.bf16.msra.mxu0 %v7969_v36  ;;  %7360 = vmatprep.subr.bf16.mxu1 %v7970_v37 }
 0x221   : > { %v9503_v56 = vadd.f32 %v6874_v54, %v6873_v48  ;;  %v9505_v57 = vadd.f32 %v6850_v55, %v6849_v50  ;;  %7418 = vmatprep.subr.bf16.mxu0 %v7977_v40  ;;  %v8003_v54 = vld [vmem:[%s10124_s0 + $0x4c] ss:$100 sps:$4 sm:$0xff]   ;;  %v8008_v55 = vld [vmem:[%s10124_s0 + $0x54] ss:$100 sps:$4 sm:$0xff]  }
 0x222   : > { %5165 = vmatmul.mubr.bf16.gmra.mrb[104].mxu1 %v7954_v38  ;;  %5253 = vmatmul.mubr.bf16.gmra.mrb[108].mxu0 %v7957_v39  ;;  %v2050_v38 = vld [vmem:[%s10124_s0 + $0x4e8] sm:$0x11]  ;;  %v2051_v39 = vld [vmem:[%s10124_s0 + $0x4f0] sm:$0x11] }
 0x223   : > { %5172 = vmatprep.mubr.bf16.mxu1 %v7962_v43  ;;  %5260 = vmatprep.mubr.bf16.mxu0 %v7965_v46  ;;  %v7989_v43 = vld [vmem:[%s10124_s0 + $0x428] ss:$100 sps:$4 sm:$0xff]   ;;  %v6555_v46 = vcombine.high %v2050_v38, %v2050_v38  ;;  %v6557_v48 = vcombine.high %v2051_v39, %v2051_v39 }
 0x224   : > { %7361 = vmatpush3.bf16.msra.mxu1 %v7971_v51  ;;  %7419 = vmatpush3.bf16.msra.mxu0 %v7979_v52 }
 0x225   : > { %v6852_v0 = vpop.f32.mrb[4].mxu0  ;;  %v6876_v1 = vpop.f32.mrb[4].mxu1  ;;  %7362 = vmatprep.subr.bf16.mxu1 %v7980_v53  ;;  %7420 = vmatprep.subr.bf16.mxu0 %v7985_v58 }
 0x226   : > { %v6853_v4 = vpop.f32.mrb[5].mxu0  ;;  %v6877_v5 = vpop.f32.mrb[5].mxu1 }
 0x227   : > { %v9525_v8 = vadd.f32 %v6853_v4, %v6852_v0  ;;  %v6855_v9 = vpop.f32.mrb[6].mxu0  ;;  %v9527_v10 = vadd.f32 %v6877_v5, %v6876_v1  ;;  %v6879_v11 = vpop.f32.mrb[6].mxu1 }
 0x228   : > { %v6856_v12 = vpop.f32.mrb[7].mxu0  ;;  %v6880_v13 = vpop.f32.mrb[7].mxu1  ;;  %7363 = vmatpush3.bf16.msra.mxu1 %v7981_v59  ;;  %7421 = vmatpush3.bf16.msra.mxu0 %v7988_v60  ;;  %v6554_v60 = vcombine.low %v2050_v38, %v2050_v38 }
 0x229   : > { %v9531_v17 = vadd.f32 %v6856_v12, %v6855_v9  ;;  %v9533_v18 = vadd.f32 %v6880_v13, %v6879_v11  ;;  %7364 = vmatprep.subr.bf16.mxu1 %v7990_v63  ;;  %7422 = vmatprep.subr.bf16.mxu0 %v7993_v3  ;;  %v8001_v11 = vld [vmem:[%s10124_s0 + $0x48] ss:$100 sps:$4 sm:$0xff]  }
 0x22a   : > { %5173 = vmatmul.mubr.bf16.gmra.mrb[108].mxu1 %v7964_v61  ;;  %5261 = vmatmul.mubr.bf16.gmra.mrb[112].mxu0 %v7967_v62  ;;  %v6556_v61 = vcombine.low %v2051_v39, %v2051_v39  ;;  %v8019_v39 = vld [vmem:[%s9022_s9 + $0x608] sm:$0xff]  }
 0x22b   : > { %5180 = vmatprep.mubr.bf16.mxu1 %v7972_v2  ;;  %5268 = vmatprep.mubr.bf16.mxu0 %v7975_v6 }
 0x22c   : > { %7365 = vmatpush3.bf16.msra.mxu1 %v7991_v7  ;;  %7423 = vmatpush3.bf16.msra.mxu0 %v7995_v14  ;;  %v8006_v14 = vld [vmem:[%s10124_s0 + $0x50] ss:$100 sps:$4 sm:$0xff]  }
 0x22d   : > { %v6858_v24 = vpop.f32.mrb[8].mxu0  ;;  %v6882_v25 = vpop.f32.mrb[8].mxu1  ;;  %7366 = vmatprep.subr.bf16.mxu1 %v7997_v16  ;;  %7424 = vmatprep.subr.bf16.mxu0 %v8000_v19  ;;  %v8009_v16 = vld [vmem:[%s9022_s9 + $0x580] sm:$0xff]  }
 0x22e   : > { %v6859_v28 = vpop.f32.mrb[9].mxu0  ;;  %v6883_v29 = vpop.f32.mrb[9].mxu1 }
 0x22f   : > { %v9548_v30 = vadd.f32 %v6859_v28, %v6858_v24  ;;  %v6861_v31 = vpop.f32.mrb[10].mxu0  ;;  %v9550_v32 = vadd.f32 %v6883_v29, %v6882_v25  ;;  %v6885_v33 = vpop.f32.mrb[10].mxu1  ;;  %v8010_v25 = vld [vmem:[%s9022_s9 + $0x600] sm:$0xff]   ;;  %v8016_v29 = vld [vmem:[%s10124_s0 + $0x11c] ss:$100 sps:$4 sm:$0xff]  }
 0x230   : > { %v6862_v35 = vpop.f32.mrb[11].mxu0  ;;  %v6886_v36 = vpop.f32.mrb[11].mxu1  ;;  %7367 = vmatpush3.bf16.msra.mxu1 %v7999_v20  ;;  %7425 = vmatpush3.bf16.msra.mxu0 %v8004_v23  ;;  %v8011_v20 = vld [vmem:[%s10124_s0 + $0x114] ss:$100 sps:$4 sm:$0xff]  }
 0x231   : > { %v9555_v37 = vadd.f32 %v6862_v35, %v6861_v31  ;;  %7468 = vmatprep.subr.bf16.mxu1 %v8005_v27  ;;  %7541 = vmatprep.subr.bf16.mxu0 %v8137_v15  ;;  %v8015_v35 = vld [vmem:[%s9022_s9 + $0x588] sm:$0xff]  }
 0x232   : > { %5181 = vmatmul.mubr.bf16.gmra.mrb[112].mxu1 %v7974_v21  ;;  %5269 = vmatmul.mubr.bf16.gmra.mrb[116].mxu0 %v7978_v22 }
 0x233   : > { %5188 = vmatprep.mubr.bf16.mxu1 %v7982_v26  ;;  %5276 = vmatprep.mubr.bf16.mxu0 %v7986_v34  ;;  %v8013_v26 = vld [vmem:[%s9022_s9 + $0x5c8] sm:$0xff]  }
 0x235   : > { %v6864_v40 = vpop.f32.mrb[12].mxu0 }
 0x236   : > { %v6865_v41 = vpop.f32.mrb[13].mxu0 }
 0x237   : > { %v9570_v44 = vadd.f32 %v6865_v41, %v6864_v40  ;;  %v6867_v45 = vpop.f32.mrb[14].mxu0  ;;  %v8014_v40 = vld [vmem:[%s10124_s0 + $0x110] ss:$100 sps:$4 sm:$0xff]   ;;  %v8020_v41 = vld [vmem:[%s9022_s9 + $0x5d0] sm:$0xff]  }
 0x238   : > { %v6868_v50 = vpop.f32.mrb[15].mxu0 }
 0x239   : > { %v9572_v51 = vadd.f32 %v6868_v50, %v6867_v45  ;;  %v8021_v45 = vld [vmem:[%s10124_s0 + $0x1dc] ss:$100 sps:$4 sm:$0xff]  }
 0x23a   : > { %5189 = vmatmul.mubr.bf16.gmra.mrb[116].mxu1 %v7984_v42  ;;  %5277 = vmatmul.mubr.bf16.gmra.mrb[120].mxu0 %v7989_v43  ;;  %v8023_v50 = vld [vmem:[%s9022_s9 + $0x590] sm:$0xff]  }
 0x23b   : > { %5196 = vmatprep.mubr.bf16.mxu1 %v6555_v46  ;;  %5284 = vmatprep.mubr.bf16.mxu0 %v6557_v48 }
 0x23d   : > { %v6904_v52 = vpop.f32.mrb[12].mxu1  ;;  %v6962_v53 = vpop.f32.mrb[16].mxu0 }
 0x23e   : > { %v6905_v58 = vpop.f32.mrb[13].mxu1  ;;  %v6963_v59 = vpop.f32.mrb[17].mxu0 }
 0x23f   : > { %v6906_v62 = vadd.f32 %v6905_v58, %v6904_v52  ;;  %v6907_v63 = vpop.f32.mrb[14].mxu1  ;;  %v6964_v0 = vadd.f32 %v6963_v59, %v6962_v53  ;;  %v6965_v1 = vpop.f32.mrb[18].mxu0  ;;  %v8025_v58 = vld [vmem:[%s10124_s0 + $0x1e4] ss:$100 sps:$4 sm:$0xff]  }
 0x240   : > { %v6908_v2 = vpop.f32.mrb[15].mxu1  ;;  %v6966_v3 = vpop.f32.mrb[19].mxu0 }
 0x241   : > { %v4623_v4 = vadd.f32 %v6906_v62, %v9498_v49  ;;  %v6909_v5 = vadd.f32 %v6908_v2, %v6907_v63  ;;  %v6967_v6 = vadd.f32 %v6966_v3, %v6965_v1  ;;  %v8029_v1 = vld [vmem:[%s9022_s9 + $0x5d8] sm:$0xff]  }
 0x242   : > { %5197 = vmatmul.mubr.bf16.gmra.mrb[120].mxu1 %v6554_v60  ;;  %5285 = vmatmul.mubr.bf16.gmra.mrb[124].mxu0 %v6556_v61  ;;  %v8028_v61 = vld [vmem:[%s9022_s9 + $0x610] sm:$0xff]  }
 0x243   : > { %v4626_v7 = vadd.f32 %v6909_v5, %v9505_v57  ;;  %v9582_v9 = vadd.f32 %v6964_v0, %v4623_v4  ;;  %5324 = vmatprep.mubr.bf16.mxu1 %v8003_v54  ;;  %5412 = vmatprep.mubr.bf16.mxu0 %v8008_v55  ;;  %v8030_v4 = vld [vmem:[%s9022_s9 + $0x598] sm:$0xff]  }
 0x244   : > { %v8037_v5 = vld [vmem:[%s9022_s9 + $0x618] sm:$0xff]  }
 0x245   : > { %v9587_v12 = vadd.f32 %v6967_v6, %v4626_v7  ;;  %v6910_v13 = vpop.f32.mrb[16].mxu1  ;;  %v6968_v49 = vpop.f32.mrb[20].mxu0  ;;  %v8024_v6 = vld [vmem:[%s10124_s0 + $0x1d8] ss:$100 sps:$4 sm:$0xff]  }
 0x246   : > { %v6911_v57 = vpop.f32.mrb[17].mxu1  ;;  %v6969_v19 = vpop.f32.mrb[21].mxu0 }
 0x247   : > { %v6912_v21 = vadd.f32 %v6911_v57, %v6910_v13  ;;  %v6913_v22 = vpop.f32.mrb[18].mxu1  ;;  %v6970_v23 = vadd.f32 %v6969_v19, %v6968_v49  ;;  %v6971_v24 = vpop.f32.mrb[22].mxu0 }
 0x248   : > { %v6914_v27 = vpop.f32.mrb[19].mxu1  ;;  %v6972_v28 = vpop.f32.mrb[23].mxu0 }
 0x249   : > { %v4631_v31 = vadd.f32 %v6912_v21, %v9525_v8  ;;  %v6915_v33 = vadd.f32 %v6914_v27, %v6913_v22  ;;  %v6973_v34 = vadd.f32 %v6972_v28, %v6971_v24  ;;  %v8018_v8 = vld [vmem:[%s10124_s0 + $0x118] ss:$100 sps:$4 sm:$0xff]   ;;  %v8034_v22 = vld [vmem:[%s10124_s0 + $0x2ac] ss:$100 sps:$4 sm:$0xff]  }
 0x24a   : > { %5325 = vmatmul.mubr.bf16.vlgmr.msra.gmra.mrb[124].mxu1 %v8001_v11  ;;  %5413 = vmatmul.mubr.bf16.vlgmr.msra.gmra.mrb[128].mxu0 %v8006_v14 }
 0x24b   : > { %v4634_v36 = vadd.f32 %v6915_v33, %v9531_v17  ;;  %v9604_v38 = vadd.f32 %v6970_v23, %v4631_v31  ;;  %7469 = vmatpush3.bf16.msra.mxu1 %v8009_v16  ;;  %7542 = vmatpush3.bf16.msra.mxu0 %v8010_v25  ;;  %v8031_v16 = vld [vmem:[%s10124_s0 + $0x2a4] ss:$100 sps:$4 sm:$0xff]   ;;  %v8047_v31 = vld [vmem:[%s9022_s9 + $0x5e8] sm:$0xff]  }
 0x24c   : > { %5332 = vmatprep.mubr.bf16.mxu1 %v8011_v20  ;;  %7470 = vmatprep.subr.bf16.mxu1 %v8013_v26  ;;  %v8039_v25 = vld [vmem:[%s9022_s9 + $0x5a0] sm:$0xff]  }
 0x24d   : > { %v9614_v42 = vadd.f32 %v6973_v34, %v4634_v36  ;;  %v6916_v17 = vpop.f32.mrb[20].mxu1  ;;  %v6974_v43 = vpop.f32.mrb[24].mxu0  ;;  %5420 = vmatprep.mubr.bf16.mxu0 %v8016_v29  ;;  %7543 = vmatprep.subr.bf16.mxu0 %v8137_v15  ;;  %v8046_v26 = vld [vmem:[%s9022_s9 + $0x620] sm:$0xff]   ;;  %v8054_v36 = vld [vmem:[%s9022_s9 + $0x628] sm:$0xff]  }
 0x24e   : > { %v6917_v46 = vpop.f32.mrb[21].mxu1  ;;  %v6975_v48 = vpop.f32.mrb[25].mxu0 }
 0x24f   : > { %v6918_v52 = vadd.f32 %v6917_v46, %v6916_v17  ;;  %v6919_v53 = vpop.f32.mrb[22].mxu1  ;;  %v6976_v54 = vadd.f32 %v6975_v48, %v6974_v43  ;;  %v6977_v55 = vpop.f32.mrb[26].mxu0  ;;  %7471 = vmatpush3.bf16.msra.mxu1 %v8015_v35  ;;  %7544 = vmatpush3.bf16.msra.mxu0 %v8019_v39  ;;  %v8048_v35 = vld [vmem:[%s9022_s9 + $0x5a8] sm:$0xff]   ;;  %v8033_v17 = vld [vmem:[%s10124_s0 + $0x2a0] ss:$100 sps:$4 sm:$0xff]  }
 0x250   : > { %v6920_v59 = vpop.f32.mrb[23].mxu1  ;;  %v6978_v60 = vpop.f32.mrb[27].mxu0  ;;  %7472 = vmatprep.subr.bf16.mxu1 %v8020_v41  ;;  %7545 = vmatprep.subr.bf16.mxu0 %v8137_v15  ;;  %v8036_v43 = vld [vmem:[%s10124_s0 + $0x2a8] ss:$100 sps:$4 sm:$0xff]  }
 0x251   : > { %v4639_v62 = vadd.f32 %v6918_v52, %v9548_v30  ;;  %v6921_v63 = vadd.f32 %v6920_v59, %v6919_v53  ;;  %v6979_v0 = vadd.f32 %v6978_v60, %v6977_v55  ;;  %v8038_v30 = vld [vmem:[%s9022_s9 + $0x5e0] sm:$0xff]   ;;  %v8043_v53 = vld [vmem:[%s10124_s0 + $0x374] ss:$100 sps:$4 sm:$0xff]  }
 0x252   : > { %5333 = vmatmul.mubr.bf16.gmra.mrb[128].mxu1 %v8014_v40  ;;  %5421 = vmatmul.mubr.bf16.gmra.mrb[132].mxu0 %v8018_v8  ;;  %v8056_v8 = vld [vmem:[%s9022_s9 + $0x5f0] sm:$0xff]   ;;  %v8040_v52 = vld [vmem:[%s10124_s0 + $0x36c] ss:$100 sps:$4 sm:$0xff]  }
 0x253   : > { %v4642_v2 = vadd.f32 %v6921_v63, %v9555_v37  ;;  %v9629_v3 = vadd.f32 %v6976_v54, %v4639_v62  ;;  %5340 = vmatprep.mubr.bf16.mxu1 %v8021_v45  ;;  %7473 = vmatpush3.bf16.msra.mxu1 %v8023_v50  ;;  %v8027_v37 = vld [vmem:[%s10124_s0 + $0x1e0] ss:$100 sps:$4 sm:$0xff]   ;;  %v8060_v59 = vld [vmem:[%s9022_s9 + $0x630] sm:$0xff]  }
 0x254   : > { %5428 = vmatprep.mubr.bf16.mxu0 %v8025_v58  ;;  %7546 = vmatpush3.bf16.msra.mxu0 %v8028_v61  ;;  %v8057_v58 = vld [vmem:[%s9022_s9 + $0x5b0] sm:$0xff]   ;;  %v8062_v63 = vld [vmem:[%s9022_s9 + $0x5f8] sm:$0xff]  }
 0x255   : > { %v9637_v7 = vadd.f32 %v6979_v0, %v4642_v2  ;;  %v6922_v11 = vpop.f32.mrb[24].mxu1  ;;  %v6980_v13 = vpop.f32.mrb[28].mxu0  ;;  %7474 = vmatprep.subr.bf16.mxu1 %v8029_v1  ;;  %7547 = vmatprep.subr.bf16.mxu0 %v8137_v15  ;;  %v8064_v2 = vld [vmem:[%s9022_s9 + $0x5b8] sm:$0xff]  }
 0x256   : > { %v6923_v49 = vpop.f32.mrb[25].mxu1  ;;  %v6981_v14 = vpop.f32.mrb[29].mxu0 }
 0x257   : > { %v6924_v57 = vadd.f32 %v6923_v49, %v6922_v11  ;;  %v6925_v19 = vpop.f32.mrb[26].mxu1  ;;  %v6982_v20 = vadd.f32 %v6981_v14, %v6980_v13  ;;  %v6983_v21 = vpop.f32.mrb[30].mxu0  ;;  %7475 = vmatpush3.bf16.msra.mxu1 %v8030_v4  ;;  %v8068_v4 = vld [vmem:[%s9022_s9 + $0x638] sm:$0xff]   ;;  %v8045_v13 = vld [vmem:[%s10124_s0 + $0x370] ss:$100 sps:$4 sm:$0xff]  }
 0x258   : > { %v6926_v23 = vpop.f32.mrb[27].mxu1  ;;  %v6984_v24 = vpop.f32.mrb[31].mxu0  ;;  %7548 = vmatpush3.bf16.msra.mxu0 %v8037_v5  ;;  %7476 = vmatprep.subr.bf16.mxu1 %v8038_v30 }
 0x259   : > { %v4647_v27 = vadd.f32 %v6924_v57, %v9570_v44  ;;  %v6927_v28 = vadd.f32 %v6926_v23, %v6925_v19  ;;  %v6985_v29 = vadd.f32 %v6984_v24, %v6983_v21  ;;  %7549 = vmatprep.subr.bf16.mxu0 %v8137_v15  ;;  %v8049_v57 = vld [vmem:[%s10124_s0 + $0x434] ss:$100 sps:$4 sm:$0xff]   ;;  %v8052_v19 = vld [vmem:[%s10124_s0 + $0x43c] ss:$100 sps:$4 sm:$0xff]  }
 0x25a   : > { %5341 = vmatmul.mubr.bf16.gmra.mrb[132].mxu1 %v8024_v6  ;;  %5429 = vmatmul.mubr.bf16.gmra.mrb[136].mxu0 %v8027_v37 }
 0x25b   : > { %v4650_v33 = vadd.f32 %v6927_v28, %v9572_v51  ;;  %v9655_v34 = vadd.f32 %v6982_v20, %v4647_v27  ;;  %5348 = vmatprep.mubr.bf16.mxu1 %v8031_v16  ;;  %5436 = vmatprep.mubr.bf16.mxu0 %v8034_v22  ;;  %v2052_v27 = vld [vmem:[%s10124_s0 + $0x4f8] sm:$0x11]  ;;  %v2053_v28 = vld [vmem:[%s10124_s0 + $0x500] sm:$0x11] }
 0x25c   : > { %7477 = vmatpush3.bf16.msra.mxu1 %v8039_v25  ;;  %7550 = vmatpush3.bf16.msra.mxu0 %v8046_v26 }
 0x25d   : > { %v9659_v39 = vadd.f32 %v6985_v29, %v4650_v33  ;;  %v6928_v44 = vpop.f32.mrb[28].mxu1  ;;  %v6986_v40 = vpop.f32.mrb[32].mxu0  ;;  %7478 = vmatprep.subr.bf16.mxu1 %v8047_v31  ;;  %7551 = vmatprep.subr.bf16.mxu0 %v8137_v15 }
 0x25e   : > { %v6929_v41 = vpop.f32.mrb[29].mxu1  ;;  %v6987_v51 = vpop.f32.mrb[33].mxu0 }
 0x25f   : > { %v6930_v45 = vadd.f32 %v6929_v41, %v6928_v44  ;;  %v6931_v46 = vpop.f32.mrb[30].mxu1  ;;  %v6988_v48 = vadd.f32 %v6987_v51, %v6986_v40  ;;  %v6989_v50 = vpop.f32.mrb[34].mxu0  ;;  %v6559_v51 = vcombine.high %v2052_v27, %v2052_v27 }
 0x260   : > { %v6932_v54 = vpop.f32.mrb[31].mxu1  ;;  %v6990_v55 = vpop.f32.mrb[35].mxu0  ;;  %7479 = vmatpush3.bf16.msra.mxu1 %v8048_v35  ;;  %7552 = vmatpush3.bf16.msra.mxu0 %v8054_v36  ;;  %v8055_v36 = vld [vmem:[%s10124_s0 + $0x438] ss:$100 sps:$4 sm:$0xff]  }
 0x261   : > { %v4655_v60 = vadd.f32 %v6930_v45, %v9496_v47  ;;  %v6933_v61 = vadd.f32 %v6932_v54, %v6931_v46  ;;  %v6991_v62 = vadd.f32 %v6990_v55, %v6989_v50  ;;  %7480 = vmatprep.subr.bf16.mxu1 %v8056_v8  ;;  %7553 = vmatprep.subr.bf16.mxu0 %v8137_v15 }
 0x262   : > { %5349 = vmatmul.mubr.bf16.gmra.mrb[136].mxu1 %v8033_v17  ;;  %5437 = vmatmul.mubr.bf16.gmra.mrb[140].mxu0 %v8036_v43  ;;  %v6561_v17 = vcombine.high %v2053_v28, %v2053_v28  ;;  %v6558_v55 = vcombine.low %v2052_v27, %v2052_v27 }
 0x263   : > { %v4658_v0 = vadd.f32 %v6933_v61, %v9503_v56  ;;  %v9681_v1 = vadd.f32 %v6988_v48, %v4655_v60  ;;  %5356 = vmatprep.mubr.bf16.mxu1 %v8040_v52  ;;  %5444 = vmatprep.mubr.bf16.mxu0 %v8043_v53  ;;  %v8042_v56 = vld [vmem:[%s10124_s0 + $0x368] ss:$100 sps:$4 sm:$0xff]  }
 0x264   : > { %7481 = vmatpush3.bf16.msra.mxu1 %v8057_v58  ;;  %7554 = vmatpush3.bf16.msra.mxu0 %v8060_v59  ;;  %v6560_v58 = vcombine.low %v2053_v28, %v2053_v28 }
 0x265   : > { %v9685_v5 = vadd.f32 %v6991_v62, %v4658_v0  ;;  %v6934_v47 = vpop.f32.mrb[32].mxu1  ;;  %v6992_v6 = vpop.f32.mrb[36].mxu0  ;;  %7482 = vmatprep.subr.bf16.mxu1 %v8062_v63  ;;  %7555 = vmatprep.subr.bf16.mxu0 %v8137_v15 }
 0x266   : > { %v6935_v30 = vpop.f32.mrb[33].mxu1  ;;  %v6993_v11 = vpop.f32.mrb[37].mxu0 }
 0x267   : > { %v6936_v37 = vadd.f32 %v6935_v30, %v6934_v47  ;;  %v6937_v49 = vpop.f32.mrb[34].mxu1  ;;  %v6994_v14 = vadd.f32 %v6993_v11, %v6992_v6  ;;  %v6995_v16 = vpop.f32.mrb[38].mxu0 }
 0x268   : > { %v6938_v20 = vpop.f32.mrb[35].mxu1  ;;  %v6996_v21 = vpop.f32.mrb[39].mxu0  ;;  %7483 = vmatpush3.bf16.msra.mxu1 %v8064_v2  ;;  %7556 = vmatpush3.bf16.msra.mxu0 %v8068_v4 }
 0x269   : > { %v4663_v22 = vadd.f32 %v6936_v37, %v9527_v10  ;;  %v6939_v23 = vadd.f32 %v6938_v20, %v6937_v49  ;;  %v6997_v24 = vadd.f32 %v6996_v21, %v6995_v16  ;;  %v8070_v20 = vld [vmem:[%s10124_s0 + $0x124] ss:$100 sps:$4 sm:$0xff]  }
 0x26a   : > { %5357 = vmatmul.mubr.bf16.gmra.mrb[140].mxu1 %v8042_v56  ;;  %5445 = vmatmul.mubr.bf16.gmra.mrb[144].mxu0 %v8045_v13 }
 0x26b   : > { %v4666_v25 = vadd.f32 %v6939_v23, %v9533_v18  ;;  %v9702_v26 = vadd.f32 %v6994_v14, %v4663_v22  ;;  %5364 = vmatprep.mubr.bf16.mxu1 %v8049_v57  ;;  %5452 = vmatprep.mubr.bf16.mxu0 %v8052_v19  ;;  %v8051_v18 = vld [vmem:[%s10124_s0 + $0x430] ss:$100 sps:$4 sm:$0xff]  }
 0x26d   : > { %v9710_v29 = vadd.f32 %v6997_v24, %v4666_v25  ;;  %v6940_v10 = vpop.f32.mrb[36].mxu1  ;;  %v6998_v31 = vpop.f32.mrb[40].mxu0 }
 0x26e   : > { %v6941_v33 = vpop.f32.mrb[37].mxu1  ;;  %v6999_v35 = vpop.f32.mrb[41].mxu0 }
 0x26f   : > { %v6942_v44 = vadd.f32 %v6941_v33, %v6940_v10  ;;  %v6943_v40 = vpop.f32.mrb[38].mxu1  ;;  %v7000_v8 = vadd.f32 %v6999_v35, %v6998_v31  ;;  %v7001_v41 = vpop.f32.mrb[42].mxu0 }
 0x270   : > { %v6944_v43 = vpop.f32.mrb[39].mxu1  ;;  %v7002_v45 = vpop.f32.mrb[43].mxu0  ;;  %v8074_v41 = vld [vmem:[%s10124_s0 + $0x1ec] ss:$100 sps:$4 sm:$0xff]  }
 0x271   : > { %v4671_v46 = vadd.f32 %v6942_v44, %v9550_v32  ;;  %v8067_v32 = vld [vmem:[%s10124_s0 + $0x5c] ss:$100 sps:$4 sm:$0xff]  }
 0x272   : > { %5365 = vmatmul.mubr.bf16.gmra.mrb[144].mxu1 %v8051_v18  ;;  %5453 = vmatmul.mubr.bf16.gmra.mrb[148].mxu0 %v8055_v36 }
 0x273   : > { %v9719_v48 = vadd.f32 %v7000_v8, %v4671_v46  ;;  %5372 = vmatprep.mubr.bf16.mxu1 %v6559_v51  ;;  %5460 = vmatprep.mubr.bf16.mxu0 %v6561_v17 }
 0x275   : > { %v7020_v50 = vpop.f32.mrb[40].mxu1  ;;  %v7078_v52 = vpop.f32.mrb[44].mxu0 }
 0x276   : > { %v7021_v53 = vpop.f32.mrb[41].mxu1  ;;  %v7079_v54 = vpop.f32.mrb[45].mxu0 }
 0x277   : > { %v7022_v59 = vadd.f32 %v7021_v53, %v7020_v50  ;;  %v7023_v60 = vpop.f32.mrb[42].mxu1  ;;  %v7080_v61 = vadd.f32 %v7079_v54, %v7078_v52  ;;  %v7081_v62 = vpop.f32.mrb[46].mxu0 }
 0x278   : > { %v7024_v63 = vpop.f32.mrb[43].mxu1  ;;  %v7082_v0 = vpop.f32.mrb[47].mxu0 }
 0x279   : > { %v4799_v2 = vadd.f32 %v7022_v59, %v9582_v9  ;;  %v7025_v4 = vadd.f32 %v7024_v63, %v7023_v60  ;;  %v7083_v47 = vadd.f32 %v7082_v0, %v7081_v62  ;;  %v8065_v9 = vld [vmem:[%s10124_s0 + $0x58] ss:$100 sps:$4 sm:$0xff]  }
 0x27a   : > { %5373 = vmatmul.mubr.bf16.gmra.mrb[148].mxu1 %v6558_v55  ;;  %5461 = vmatmul.mubr.bf16.gmra.mrb[152].mxu0 %v6560_v58  ;;  %v8078_v63 = vld [vmem:[%s10124_s0 + $0x2b4] ss:$100 sps:$4 sm:$0xff]  }
 0x27b   : > { %v4802_v6 = vadd.f32 %v7025_v4, %v9587_v12  ;;  %v9726_v30 = vadd.f32 %v7080_v61, %v4799_v2  ;;  %5500 = vmatprep.mubr.bf16.mxu1 %v8067_v32  ;;  %7557 = vmatprep.mubr.msk.bf16.mxu0 %vm8138_vm0, %v8137_v15  ;;  %v8069_v12 = vld [vmem:[%s10124_s0 + $0x60] ss:$100 sps:$4 sm:$0xff]  }
 0x27d   : > { %v9730_v11 = vadd.f32 %v7083_v47, %v4802_v6  ;;  %v7026_v56 = vpop.f32.mrb[44].mxu1  ;;  %v7084_v13 = vpop.f32.mrb[48].mxu0 }
 0x27e   : > { %v7027_v37 = vpop.f32.mrb[45].mxu1  ;;  %v7085_v49 = vpop.f32.mrb[49].mxu0 }
 0x27f   : > { %v7028_v14 = vadd.f32 %v7027_v37, %v7026_v56  ;;  %v7029_v16 = vpop.f32.mrb[46].mxu1  ;;  %v7086_v57 = vadd.f32 %v7085_v49, %v7084_v13  ;;  %v7087_v19 = vpop.f32.mrb[50].mxu0 }
 0x280   : > { %v7030_v21 = vpop.f32.mrb[47].mxu1  ;;  %v7088_v22 = vpop.f32.mrb[51].mxu0 }
 0x281   : > { %v4807_v23 = vadd.f32 %v7028_v14, %v9604_v38  ;;  %v7031_v24 = vadd.f32 %v7030_v21, %v7029_v16  ;;  %v7089_v25 = vadd.f32 %v7088_v22, %v7087_v19  ;;  %v8072_v38 = vld [vmem:[%s10124_s0 + $0x120] ss:$100 sps:$4 sm:$0xff]  }
 0x282   : > { %5501 = vmatmul.mubr.bf16.vlgmr.msra.gmra.mrb[152].mxu1 %v8065_v9  ;;  %7558 = vmatmul.mubr.bf16.vlgmr.msra.gmra.mrb[156].mxu0 %v8069_v12  ;;  %v8082_v21 = vld [vmem:[%s10124_s0 + $0x37c] ss:$100 sps:$4 sm:$0xff]  }
 0x283   : > { %v4810_v27 = vadd.f32 %v7031_v24, %v9614_v42  ;;  %v9743_v28 = vadd.f32 %v7086_v57, %v4807_v23  ;;  %5508 = vmatprep.mubr.bf16.mxu1 %v8070_v20  ;;  %7561 = vmatprep.mubr.msk.bf16.mxu0 %vm8138_vm0, %v8137_v15  ;;  %v8073_v42 = vld [vmem:[%s10124_s0 + $0x128] ss:$100 sps:$4 sm:$0xff]  }
 0x285   : > { %v9747_v10 = vadd.f32 %v7089_v25, %v4810_v27  ;;  %v7032_v31 = vpop.f32.mrb[48].mxu1  ;;  %v7090_v33 = vpop.f32.mrb[52].mxu0 }
 0x286   : > { %v7033_v35 = vpop.f32.mrb[49].mxu1  ;;  %v7091_v18 = vpop.f32.mrb[53].mxu0 }
 0x287   : > { %v7034_v36 = vadd.f32 %v7033_v35, %v7032_v31  ;;  %v7035_v44 = vpop.f32.mrb[50].mxu1  ;;  %v7092_v40 = vadd.f32 %v7091_v18, %v7090_v33  ;;  %v7093_v8 = vpop.f32.mrb[54].mxu0 }
 0x288   : > { %v7036_v51 = vpop.f32.mrb[51].mxu1  ;;  %v7094_v17 = vpop.f32.mrb[55].mxu0 }
 0x289   : > { %v4815_v43 = vadd.f32 %v7034_v36, %v9629_v3  ;;  %v7037_v45 = vadd.f32 %v7036_v51, %v7035_v44  ;;  %v7095_v46 = vadd.f32 %v7094_v17, %v7093_v8  ;;  %v8076_v3 = vld [vmem:[%s10124_s0 + $0x1e8] ss:$100 sps:$4 sm:$0xff]  }
 0x28a   : > { %5509 = vmatmul.mubr.bf16.gmra.mrb[156].mxu1 %v8072_v38  ;;  %7562 = vmatmul.mubr.bf16.gmra.mrb[160].mxu0 %v8073_v42  ;;  %v8086_v51 = vld [vmem:[%s10124_s0 + $0x444] ss:$100 sps:$4 sm:$0xff]  }
 0x28b   : > { %v4818_v50 = vadd.f32 %v7037_v45, %v9637_v7  ;;  %v9760_v52 = vadd.f32 %v7092_v40, %v4815_v43  ;;  %5516 = vmatprep.mubr.bf16.mxu1 %v8074_v41  ;;  %7565 = vmatprep.mubr.msk.bf16.mxu0 %vm8138_vm0, %v8137_v15  ;;  %v8077_v7 = vld [vmem:[%s10124_s0 + $0x1f0] ss:$100 sps:$4 sm:$0xff]  }
 0x28d   : > { %v9764_v53 = vadd.f32 %v7095_v46, %v4818_v50  ;;  %v7038_v54 = vpop.f32.mrb[52].mxu1  ;;  %v7096_v55 = vpop.f32.mrb[56].mxu0 }
 0x28e   : > { %v7039_v58 = vpop.f32.mrb[53].mxu1  ;;  %v7097_v59 = vpop.f32.mrb[57].mxu0 }
 0x28f   : > { %v7040_v60 = vadd.f32 %v7039_v58, %v7038_v54  ;;  %v7041_v61 = vpop.f32.mrb[54].mxu1  ;;  %v7098_v62 = vadd.f32 %v7097_v59, %v7096_v55  ;;  %v7099_v32 = vpop.f32.mrb[58].mxu0  ;;  %v2054_v58 = vld [vmem:[%s10124_s0 + $0x508] sm:$0x11] }
 0x290   : > { %v7042_v0 = vpop.f32.mrb[55].mxu1  ;;  %v7100_v2 = vpop.f32.mrb[59].mxu0 }
 0x291   : > { %v4823_v4 = vadd.f32 %v7040_v60, %v9655_v34  ;;  %v7043_v47 = vadd.f32 %v7042_v0, %v7041_v61  ;;  %v7101_v6 = vadd.f32 %v7100_v2, %v7099_v32  ;;  %v8080_v34 = vld [vmem:[%s10124_s0 + $0x2b0] ss:$100 sps:$4 sm:$0xff]   ;;  %v8089_v61 = vld [vmem:[%s10124_s0 + $0x448] ss:$100 sps:$4 sm:$0xff]   ;;  %v6563_v2 = vcombine.high %v2054_v58, %v2054_v58 }
 0x292   : > { %5517 = vmatmul.mubr.bf16.gmra.mrb[160].mxu1 %v8076_v3  ;;  %7566 = vmatmul.mubr.bf16.gmra.mrb[164].mxu0 %v8077_v7 }
 0x293   : > { %v4826_v56 = vadd.f32 %v7043_v47, %v9659_v39  ;;  %v9777_v13 = vadd.f32 %v7098_v62, %v4823_v4  ;;  %5524 = vmatprep.mubr.bf16.mxu1 %v8078_v63  ;;  %7569 = vmatprep.mubr.msk.bf16.mxu0 %vm8138_vm0, %v8137_v15  ;;  %v8081_v39 = vld [vmem:[%s10124_s0 + $0x2b8] ss:$100 sps:$4 sm:$0xff]  }
 0x295   : > { %v9781_v37 = vadd.f32 %v7101_v6, %v4826_v56  ;;  %v7044_v49 = vpop.f32.mrb[56].mxu1  ;;  %v7102_v9 = vpop.f32.mrb[60].mxu0 }
 0x296   : > { %v7045_v12 = vpop.f32.mrb[57].mxu1  ;;  %v7103_v14 = vpop.f32.mrb[61].mxu0 }
 0x297   : > { %v7046_v16 = vadd.f32 %v7045_v12, %v7044_v49  ;;  %v7047_v57 = vpop.f32.mrb[58].mxu1  ;;  %v7104_v19 = vadd.f32 %v7103_v14, %v7102_v9  ;;  %v7105_v20 = vpop.f32.mrb[62].mxu0 }
 0x298   : > { %v7048_v22 = vpop.f32.mrb[59].mxu1  ;;  %v7106_v23 = vpop.f32.mrb[63].mxu0 }
 0x299   : > { %v4831_v24 = vadd.f32 %v7046_v16, %v9681_v1  ;;  %v7049_v25 = vadd.f32 %v7048_v22, %v7047_v57  ;;  %v7107_v27 = vadd.f32 %v7106_v23, %v7105_v20  ;;  %v8084_v1 = vld [vmem:[%s10124_s0 + $0x378] ss:$100 sps:$4 sm:$0xff]  }
 0x29a   : > { %5525 = vmatmul.mubr.bf16.gmra.mrb[164].mxu1 %v8080_v34  ;;  %7570 = vmatmul.mubr.bf16.gmra.mrb[168].mxu0 %v8081_v39  ;;  %v6562_v34 = vcombine.low %v2054_v58, %v2054_v58  ;;  %v8092_v39 = vld [vmem:[%s10124_s0 + $0x510] ss:$0 sps:$4 sm:$0x11]  }
 0x29b   : > { %v4834_v31 = vadd.f32 %v7049_v25, %v9685_v5  ;;  %v9794_v33 = vadd.f32 %v7104_v19, %v4831_v24  ;;  %5532 = vmatprep.mubr.bf16.mxu1 %v8082_v21  ;;  %7573 = vmatprep.mubr.msk.bf16.mxu0 %vm8138_vm0, %v8137_v15  ;;  %v8085_v5 = vld [vmem:[%s10124_s0 + $0x380] ss:$100 sps:$4 sm:$0xff]  }
 0x29d   : > { %v9798_v35 = vadd.f32 %v7107_v27, %v4834_v31  ;;  %v7050_v18 = vpop.f32.mrb[60].mxu1  ;;  %v7108_v38 = vpop.f32.mrb[64].mxu0 }
 0x29e   : > { %v7051_v42 = vpop.f32.mrb[61].mxu1  ;;  %v7109_v36 = vpop.f32.mrb[65].mxu0 }
 0x29f   : > { %v7052_v44 = vadd.f32 %v7051_v42, %v7050_v18  ;;  %v7053_v40 = vpop.f32.mrb[62].mxu1  ;;  %v7110_v8 = vadd.f32 %v7109_v36, %v7108_v38  ;;  %v7111_v41 = vpop.f32.mrb[66].mxu0 }
 0x2a0   : > { %v7054_v17 = vpop.f32.mrb[63].mxu1  ;;  %v7112_v43 = vpop.f32.mrb[67].mxu0 }
 0x2a1   : > { %v4839_v45 = vadd.f32 %v7052_v44, %v9702_v26  ;;  %v7055_v46 = vadd.f32 %v7054_v17, %v7053_v40  ;;  %v7113_v50 = vadd.f32 %v7112_v43, %v7111_v41 }
 0x2a2   : > { %5533 = vmatmul.mubr.bf16.gmra.mrb[168].mxu1 %v8084_v1  ;;  %7574 = vmatmul.mubr.bf16.gmra.mrb[172].mxu0 %v8085_v5 }
 0x2a3   : > { %v4842_v54 = vadd.f32 %v7055_v46, %v9710_v29  ;;  %v9811_v55 = vadd.f32 %v7110_v8, %v4839_v45  ;;  %5540 = vmatprep.mubr.bf16.mxu1 %v8086_v51  ;;  %7577 = vmatprep.mubr.msk.bf16.mxu0 %vm8138_vm0, %v8137_v15  ;;  %v8088_v29 = vld [vmem:[%s10124_s0 + $0x440] ss:$100 sps:$4 sm:$0xff]  }
 0x2a5   : > { %v9818_v59 = vadd.f32 %v7113_v50, %v4842_v54  ;;  %v7056_v3 = vpop.f32.mrb[64].mxu1  ;;  %v7114_v26 = vpop.f32.mrb[68].mxu0 }
 0x2a6   : > { %v7057_v7 = vpop.f32.mrb[65].mxu1  ;;  %v7115_v60 = vpop.f32.mrb[69].mxu0 }
 0x2a7   : > { %v7058_v62 = vadd.f32 %v7057_v7, %v7056_v3  ;;  %v7059_v32 = vpop.f32.mrb[66].mxu1  ;;  %v7116_v63 = vadd.f32 %v7115_v60, %v7114_v26  ;;  %v7117_v0 = vpop.f32.mrb[70].mxu0 }
 0x2a8   : > { %v7060_v4 = vpop.f32.mrb[67].mxu1  ;;  %v7118_v47 = vpop.f32.mrb[71].mxu0 }
 0x2a9   : > { %v4847_v6 = vadd.f32 %v7058_v62, %v9719_v48 }
 0x2aa   : > { %5541 = vmatmul.mubr.bf16.gmra.mrb[172].mxu1 %v8088_v29  ;;  %7578 = vmatmul.mubr.bf16.gmra.mrb[176].mxu0 %v8089_v61 }
 0x2ab   : > { %v9827_v56 = vadd.f32 %v7116_v63, %v4847_v6  ;;  %5548 = vmatprep.mubr.bf16.mxu1 %v6563_v2  ;;  %7581 = vmatprep.mubr.msk.bf16.mxu0 %vm8138_vm0, %v8137_v15 }
 0x2ad   : > { %v7136_v49 = vpop.f32.mrb[68].mxu1  ;;  %v7194_v9 = vpop.f32.mrb[72].mxu0 }
 0x2ae   : > { %v7137_v12 = vpop.f32.mrb[69].mxu1  ;;  %v7195_v14 = vpop.f32.mrb[73].mxu0 }
 0x2af   : > { %v7138_v16 = vadd.f32 %v7137_v12, %v7136_v49  ;;  %v7139_v57 = vpop.f32.mrb[70].mxu1  ;;  %v7196_v48 = vadd.f32 %v7195_v14, %v7194_v9  ;;  %v7197_v19 = vpop.f32.mrb[74].mxu0 }
 0x2b0   : > { %v7140_v20 = vpop.f32.mrb[71].mxu1  ;;  %v7198_v21 = vpop.f32.mrb[75].mxu0 }
 0x2b1   : > { %v4975_v22 = vadd.f32 %v7138_v16, %v9726_v30  ;;  %v7141_v23 = vadd.f32 %v7140_v20, %v7139_v57  ;;  %v7199_v24 = vadd.f32 %v7198_v21, %v7197_v19 }
 0x2b2   : > { %5549 = vmatmul.mubr.bf16.gmra.mrb[176].mxu1 %v6562_v34  ;;  %7582 = vmatmul.mubr.bf16.gmra.mrb[180].mxu0 %v8092_v39 }
 0x2b3   : > { %v4978_v15 = vadd.f32 %v7141_v23, %v9730_v11  ;;  %v9836_v25 = vadd.f32 %v7196_v48, %v4975_v22 }
 0x2b5   : > { %v9838_v27 = vadd.f32 %v7199_v24, %v4978_v15  ;;  %v7142_v31 = vpop.f32.mrb[72].mxu1  ;;  %v7200_v18 = vpop.f32.mrb[76].mxu0 }
 0x2b6   : > { %v7143_v38 = vpop.f32.mrb[73].mxu1  ;;  %v7201_v42 = vpop.f32.mrb[77].mxu0 }
 0x2b7   : > { %v7144_v36 = vadd.f32 %v7143_v38, %v7142_v31  ;;  %v7145_v1 = vpop.f32.mrb[74].mxu1  ;;  %v7202_v5 = vadd.f32 %v7201_v42, %v7200_v18  ;;  %v7203_v44 = vpop.f32.mrb[78].mxu0 }
 0x2b8   : > { %v7146_v40 = vpop.f32.mrb[75].mxu1  ;;  %v7204_v30 = vpop.f32.mrb[79].mxu0 }
 0x2b9   : > { %v4983_v8 = vadd.f32 %v7144_v36, %v9743_v28  ;;  %v7147_v41 = vadd.f32 %v7146_v40, %v7145_v1  ;;  %v7205_v51 = vadd.f32 %v7204_v30, %v7203_v44 }
 0x2bb   : > { %v4986_v11 = vadd.f32 %v7147_v41, %v9747_v10  ;;  %v9842_v17 = vadd.f32 %v7202_v5, %v4983_v8 }
 0x2bd   : > { %v9844_v43 = vadd.f32 %v7205_v51, %v4986_v11  ;;  %v7148_v45 = vpop.f32.mrb[76].mxu1  ;;  %v7206_v46 = vpop.f32.mrb[80].mxu0 }
 0x2be   : > { %v7149_v50 = vpop.f32.mrb[77].mxu1  ;;  %v7207_v54 = vpop.f32.mrb[81].mxu0 }
 0x2bf   : > { %v7150_v58 = vadd.f32 %v7149_v50, %v7148_v45  ;;  %v7151_v3 = vpop.f32.mrb[78].mxu1  ;;  %v7208_v26 = vadd.f32 %v7207_v54, %v7206_v46  ;;  %v7209_v7 = vpop.f32.mrb[82].mxu0 }
 0x2c0   : > { %v7152_v60 = vpop.f32.mrb[79].mxu1  ;;  %v7210_v29 = vpop.f32.mrb[83].mxu0 }
 0x2c1   : > { %v4991_v28 = vadd.f32 %v7150_v58, %v9760_v52  ;;  %v7153_v61 = vadd.f32 %v7152_v60, %v7151_v3  ;;  %v7211_v62 = vadd.f32 %v7210_v29, %v7209_v7 }
 0x2c3   : > { %v4994_v10 = vadd.f32 %v7153_v61, %v9764_v53  ;;  %v9848_v32 = vadd.f32 %v7208_v26, %v4991_v28 }
 0x2c5   : > { %v9850_v63 = vadd.f32 %v7211_v62, %v4994_v10  ;;  %v7154_v0 = vpop.f32.mrb[80].mxu1  ;;  %v7212_v2 = vpop.f32.mrb[84].mxu0 }
 0x2c6   : > { %v7155_v4 = vpop.f32.mrb[81].mxu1  ;;  %v7213_v47 = vpop.f32.mrb[85].mxu0 }
 0x2c7   : > { %v7156_v6 = vadd.f32 %v7155_v4, %v7154_v0  ;;  %v7157_v49 = vpop.f32.mrb[82].mxu1  ;;  %v7214_v9 = vadd.f32 %v7213_v47, %v7212_v2  ;;  %v7215_v12 = vpop.f32.mrb[86].mxu0 }
 0x2c8   : > { %v7158_v14 = vpop.f32.mrb[83].mxu1  ;;  %v7216_v34 = vpop.f32.mrb[87].mxu0 }
 0x2c9   : > { %v4999_v52 = vadd.f32 %v7156_v6, %v9777_v13  ;;  %v7159_v39 = vadd.f32 %v7158_v14, %v7157_v49  ;;  %v7217_v16 = vadd.f32 %v7216_v34, %v7215_v12 }
 0x2cb   : > { %v5002_v53 = vadd.f32 %v7159_v39, %v9781_v37  ;;  %v9854_v57 = vadd.f32 %v7214_v9, %v4999_v52 }
 0x2cd   : > { %v9856_v48 = vadd.f32 %v7217_v16, %v5002_v53  ;;  %v7160_v19 = vpop.f32.mrb[84].mxu1  ;;  %v7218_v20 = vpop.f32.mrb[88].mxu0 }
 0x2ce   : > { %v7161_v21 = vpop.f32.mrb[85].mxu1  ;;  %v7219_v22 = vpop.f32.mrb[89].mxu0 }
 0x2cf   : > { %v7162_v23 = vadd.f32 %v7161_v21, %v7160_v19  ;;  %v7163_v24 = vpop.f32.mrb[86].mxu1  ;;  %v7220_v15 = vadd.f32 %v7219_v22, %v7218_v20  ;;  %v7221_v31 = vpop.f32.mrb[90].mxu0 }
 0x2d0   : > { %v7164_v18 = vpop.f32.mrb[87].mxu1  ;;  %v7222_v38 = vpop.f32.mrb[91].mxu0 }
 0x2d1   : > { %v5007_v13 = vadd.f32 %v7162_v23, %v9794_v33  ;;  %v7165_v42 = vadd.f32 %v7164_v18, %v7163_v24  ;;  %v7223_v36 = vadd.f32 %v7222_v38, %v7221_v31 }
 0x2d3   : > { %v5010_v37 = vadd.f32 %v7165_v42, %v9798_v35  ;;  %v9860_v1 = vadd.f32 %v7220_v15, %v5007_v13 }
 0x2d5   : > { %v9862_v5 = vadd.f32 %v7223_v36, %v5010_v37  ;;  %v7166_v44 = vpop.f32.mrb[88].mxu1  ;;  %v7224_v40 = vpop.f32.mrb[92].mxu0 }
 0x2d6   : > { %v7167_v30 = vpop.f32.mrb[89].mxu1  ;;  %v7225_v8 = vpop.f32.mrb[93].mxu0 }
 0x2d7   : > { %v7168_v41 = vadd.f32 %v7167_v30, %v7166_v44  ;;  %v7169_v51 = vpop.f32.mrb[90].mxu1  ;;  %v7226_v11 = vadd.f32 %v7225_v8, %v7224_v40  ;;  %v7227_v45 = vpop.f32.mrb[94].mxu0 }
 0x2d8   : > { %v7170_v46 = vpop.f32.mrb[91].mxu1  ;;  %v7228_v50 = vpop.f32.mrb[95].mxu0 }
 0x2d9   : > { %v5015_v33 = vadd.f32 %v7168_v41, %v9811_v55  ;;  %v7171_v54 = vadd.f32 %v7170_v46, %v7169_v51  ;;  %v7229_v58 = vadd.f32 %v7228_v50, %v7227_v45 }
 0x2db   : > { %v5018_v35 = vadd.f32 %v7171_v54, %v9818_v59  ;;  %v9866_v3 = vadd.f32 %v7226_v11, %v5015_v33 }
 0x2dd   : > { %v9868_v26 = vadd.f32 %v7229_v58, %v5018_v35  ;;  %v7172_v7 = vpop.f32.mrb[92].mxu1  ;;  %v7230_v60 = vpop.f32.mrb[96].mxu0 }
 0x2de   : > { %v7173_v29 = vpop.f32.mrb[93].mxu1  ;;  %v7231_v28 = vpop.f32.mrb[97].mxu0 }
 0x2df   : > { %v7174_v61 = vadd.f32 %v7173_v29, %v7172_v7  ;;  %v7175_v62 = vpop.f32.mrb[94].mxu1  ;;  %v7232_v10 = vadd.f32 %v7231_v28, %v7230_v60  ;;  %v7233_v0 = vpop.f32.mrb[98].mxu0 }
 0x2e0   : > { %v7176_v2 = vpop.f32.mrb[95].mxu1  ;;  %v7234_v4 = vpop.f32.mrb[99].mxu0 }
 0x2e1   : > { %v5023_v55 = vadd.f32 %v7174_v61, %v9827_v56 }
 0x2e3   : > { %v9871_v47 = vadd.f32 %v7232_v10, %v5023_v55 }
 0x2e5   : > { %v7252_v6 = vpop.f32.mrb[96].mxu1  ;;  %v7310_v59 = vpop.f32.mrb[100].mxu0 }
 0x2e6   : > { %v7253_v49 = vpop.f32.mrb[97].mxu1  ;;  %v7311_v9 = vpop.f32.mrb[101].mxu0 }
 0x2e7   : > { %v7254_v12 = vadd.f32 %v7253_v49, %v7252_v6  ;;  %v7255_v14 = vpop.f32.mrb[98].mxu1  ;;  %v7312_v34 = vadd.f32 %v7311_v9, %v7310_v59  ;;  %v7313_v52 = vpop.f32.mrb[102].mxu0 }
 0x2e8   : > { %v7256_v39 = vpop.f32.mrb[99].mxu1  ;;  %v7314_v16 = vpop.f32.mrb[103].mxu0 }
 0x2e9   : > { %v5151_v53 = vadd.f32 %v7254_v12, %v9836_v25  ;;  %v7257_v19 = vadd.f32 %v7256_v39, %v7255_v14  ;;  %v7315_v20 = vadd.f32 %v7314_v16, %v7313_v52 }
 0x2eb   : > { %v5154_v21 = vadd.f32 %v7257_v19, %v9838_v27  ;;  %v9875_v22 = vadd.f32 %v7312_v34, %v5151_v53 }
 0x2ed   : > { %v9877_v56 = vadd.f32 %v7315_v20, %v5154_v21  ;;  %v7258_v23 = vpop.f32.mrb[100].mxu1  ;;  %v7316_v24 = vpop.f32.mrb[104].mxu0 }
 0x2ee   : > { %v7259_v15 = vpop.f32.mrb[101].mxu1  ;;  %v7317_v31 = vpop.f32.mrb[105].mxu0 }
 0x2ef   : > { %v7260_v18 = vadd.f32 %v7259_v15, %v7258_v23  ;;  %v7261_v38 = vpop.f32.mrb[102].mxu1  ;;  %v7318_v13 = vadd.f32 %v7317_v31, %v7316_v24  ;;  %v7319_v42 = vpop.f32.mrb[106].mxu0 }
 0x2f0   : > { %v7262_v36 = vpop.f32.mrb[103].mxu1  ;;  %v7320_v37 = vpop.f32.mrb[107].mxu0 }
 0x2f1   : > { %v5159_v25 = vadd.f32 %v7260_v18, %v9842_v17  ;;  %v7263_v44 = vadd.f32 %v7262_v36, %v7261_v38  ;;  %v7321_v40 = vadd.f32 %v7320_v37, %v7319_v42 }
 0x2f3   : > { %v5162_v27 = vadd.f32 %v7263_v44, %v9844_v43  ;;  %v9881_v30 = vadd.f32 %v7318_v13, %v5159_v25 }
 0x2f5   : > { %v9883_v8 = vadd.f32 %v7321_v40, %v5162_v27  ;;  %v7264_v41 = vpop.f32.mrb[104].mxu1  ;;  %v7322_v51 = vpop.f32.mrb[108].mxu0 }
 0x2f6   : > { %v7265_v11 = vpop.f32.mrb[105].mxu1  ;;  %v7323_v45 = vpop.f32.mrb[109].mxu0 }
 0x2f7   : > { %v7266_v46 = vadd.f32 %v7265_v11, %v7264_v41  ;;  %v7267_v50 = vpop.f32.mrb[106].mxu1  ;;  %v7324_v33 = vadd.f32 %v7323_v45, %v7322_v51  ;;  %v7325_v54 = vpop.f32.mrb[110].mxu0 }
 0x2f8   : > { %v7268_v58 = vpop.f32.mrb[107].mxu1  ;;  %v7326_v35 = vpop.f32.mrb[111].mxu0 }
 0x2f9   : > { %v5167_v17 = vadd.f32 %v7266_v46, %v9848_v32  ;;  %v7269_v7 = vadd.f32 %v7268_v58, %v7267_v50  ;;  %v7327_v60 = vadd.f32 %v7326_v35, %v7325_v54 }
 0x2fb   : > { %v5170_v43 = vadd.f32 %v7269_v7, %v9850_v63  ;;  %v9887_v29 = vadd.f32 %v7324_v33, %v5167_v17 }
 0x2fd   : > { %v9889_v28 = vadd.f32 %v7327_v60, %v5170_v43  ;;  %v7270_v61 = vpop.f32.mrb[108].mxu1  ;;  %v7328_v62 = vpop.f32.mrb[112].mxu0 }
 0x2fe   : > { %v7271_v10 = vpop.f32.mrb[109].mxu1  ;;  %v7329_v0 = vpop.f32.mrb[113].mxu0 }
 0x2ff   : > { %v7272_v2 = vadd.f32 %v7271_v10, %v7270_v61  ;;  %v7273_v4 = vpop.f32.mrb[110].mxu1  ;;  %v7330_v55 = vadd.f32 %v7329_v0, %v7328_v62  ;;  %v7331_v6 = vpop.f32.mrb[114].mxu0 }
 0x300   : > { %v7274_v59 = vpop.f32.mrb[111].mxu1  ;;  %v7332_v49 = vpop.f32.mrb[115].mxu0 }
 0x301   : > { %v5175_v32 = vadd.f32 %v7272_v2, %v9854_v57  ;;  %v7275_v9 = vadd.f32 %v7274_v59, %v7273_v4  ;;  %v7333_v12 = vadd.f32 %v7332_v49, %v7331_v6 }
 0x303   : > { %v5178_v63 = vadd.f32 %v7275_v9, %v9856_v48  ;;  %v9893_v14 = vadd.f32 %v7330_v55, %v5175_v32 }
 0x305   : > { %v9895_v34 = vadd.f32 %v7333_v12, %v5178_v63  ;;  %v7276_v52 = vpop.f32.mrb[112].mxu1  ;;  %v7334_v39 = vpop.f32.mrb[116].mxu0 }
 0x306   : > { %v7277_v16 = vpop.f32.mrb[113].mxu1  ;;  %v7335_v53 = vpop.f32.mrb[117].mxu0 }
 0x307   : > { %v7278_v19 = vadd.f32 %v7277_v16, %v7276_v52  ;;  %v7279_v20 = vpop.f32.mrb[114].mxu1  ;;  %v7336_v21 = vadd.f32 %v7335_v53, %v7334_v39  ;;  %v7337_v23 = vpop.f32.mrb[118].mxu0 }
 0x308   : > { %v7280_v24 = vpop.f32.mrb[115].mxu1  ;;  %v7338_v15 = vpop.f32.mrb[119].mxu0 }
 0x309   : > { %v5183_v57 = vadd.f32 %v7278_v19, %v9860_v1  ;;  %v7281_v31 = vadd.f32 %v7280_v24, %v7279_v20  ;;  %v7339_v18 = vadd.f32 %v7338_v15, %v7337_v23 }
 0x30b   : > { %v5186_v48 = vadd.f32 %v7281_v31, %v9862_v5  ;;  %v9899_v38 = vadd.f32 %v7336_v21, %v5183_v57 }
 0x30d   : > { %v9901_v13 = vadd.f32 %v7339_v18, %v5186_v48  ;;  %v7282_v42 = vpop.f32.mrb[116].mxu1  ;;  %v7340_v36 = vpop.f32.mrb[120].mxu0 }
 0x30e   : > { %v7283_v37 = vpop.f32.mrb[117].mxu1  ;;  %v7341_v25 = vpop.f32.mrb[121].mxu0 }
 0x30f   : > { %v7284_v44 = vadd.f32 %v7283_v37, %v7282_v42  ;;  %v7285_v40 = vpop.f32.mrb[118].mxu1  ;;  %v7342_v27 = vadd.f32 %v7341_v25, %v7340_v36  ;;  %v7343_v41 = vpop.f32.mrb[122].mxu0 }
 0x310   : > { %v7286_v51 = vpop.f32.mrb[119].mxu1  ;;  %v7344_v11 = vpop.f32.mrb[123].mxu0 }
 0x311   : > { %v5191_v1 = vadd.f32 %v7284_v44, %v9866_v3  ;;  %v7287_v45 = vadd.f32 %v7286_v51, %v7285_v40  ;;  %v7345_v46 = vadd.f32 %v7344_v11, %v7343_v41 }
 0x313   : > { %v5194_v5 = vadd.f32 %v7287_v45, %v9868_v26  ;;  %v9905_v50 = vadd.f32 %v7342_v27, %v5191_v1 }
 0x315   : > { %v9907_v33 = vadd.f32 %v7345_v46, %v5194_v5  ;;  %v7288_v54 = vpop.f32.mrb[120].mxu1  ;;  %v7346_v58 = vpop.f32.mrb[124].mxu0 }
 0x316   : > { %v7289_v35 = vpop.f32.mrb[121].mxu1  ;;  %v7347_v17 = vpop.f32.mrb[125].mxu0 }
 0x317   : > { %v7290_v7 = vadd.f32 %v7289_v35, %v7288_v54  ;;  %v7291_v60 = vpop.f32.mrb[122].mxu1  ;;  %v7348_v43 = vadd.f32 %v7347_v17, %v7346_v58  ;;  %v7349_v61 = vpop.f32.mrb[126].mxu0 }
 0x318   : > { %v7292_v62 = vpop.f32.mrb[123].mxu1  ;;  %v7350_v10 = vpop.f32.mrb[127].mxu0 }
 0x319   : > { %v5199_v3 = vadd.f32 %v7290_v7, %v9871_v47 }
 0x31b   : > { %v9910_v0 = vadd.f32 %v7348_v43, %v5199_v3 }
 0x31d   : > { %v7368_v2 = vpop.f32.mrb[124].mxu1  ;;  %v7426_v26 = vpop.f32.mrb[128].mxu0 }
 0x31e   : > { %v7369_v4 = vpop.f32.mrb[125].mxu1  ;;  %v7427_v55 = vpop.f32.mrb[129].mxu0 }
 0x31f   : > { %v7370_v6 = vadd.f32 %v7369_v4, %v7368_v2  ;;  %v7371_v59 = vpop.f32.mrb[126].mxu1  ;;  %v7428_v49 = vadd.f32 %v7427_v55, %v7426_v26  ;;  %v7429_v32 = vpop.f32.mrb[130].mxu0 }
 0x320   : > { %v7372_v9 = vpop.f32.mrb[127].mxu1  ;;  %v7430_v12 = vpop.f32.mrb[131].mxu0 }
 0x321   : > { %v5327_v63 = vadd.f32 %v7370_v6, %v9875_v22  ;;  %v7373_v52 = vadd.f32 %v7372_v9, %v7371_v59  ;;  %v7431_v39 = vadd.f32 %v7430_v12, %v7429_v32 }
 0x323   : > { %v5330_v16 = vadd.f32 %v7373_v52, %v9877_v56  ;;  %v9914_v53 = vadd.f32 %v7428_v49, %v5327_v63 }
 0x325   : > { %v9916_v47 = vadd.f32 %v7431_v39, %v5330_v16  ;;  %v7374_v19 = vpop.f32.mrb[128].mxu1  ;;  %v7432_v20 = vpop.f32.mrb[132].mxu0 }
 0x326   : > { %v7375_v21 = vpop.f32.mrb[129].mxu1  ;;  %v7433_v23 = vpop.f32.mrb[133].mxu0 }
 0x327   : > { %v7376_v24 = vadd.f32 %v7375_v21, %v7374_v19  ;;  %v7377_v15 = vpop.f32.mrb[130].mxu1  ;;  %v7434_v57 = vadd.f32 %v7433_v23, %v7432_v20  ;;  %v7435_v31 = vpop.f32.mrb[134].mxu0 }
 0x328   : > { %v7378_v18 = vpop.f32.mrb[131].mxu1  ;;  %v7436_v48 = vpop.f32.mrb[135].mxu0 }
 0x329   : > { %v5335_v22 = vadd.f32 %v7376_v24, %v9881_v30  ;;  %v7379_v42 = vadd.f32 %v7378_v18, %v7377_v15  ;;  %v7437_v36 = vadd.f32 %v7436_v48, %v7435_v31 }
 0x32b   : > { %v5338_v56 = vadd.f32 %v7379_v42, %v9883_v8  ;;  %v9920_v37 = vadd.f32 %v7434_v57, %v5335_v22 }
 0x32d   : > { %v9922_v25 = vadd.f32 %v7437_v36, %v5338_v56  ;;  %v7380_v44 = vpop.f32.mrb[132].mxu1  ;;  %v7438_v40 = vpop.f32.mrb[136].mxu0 }
 0x32e   : > { %v7381_v27 = vpop.f32.mrb[133].mxu1  ;;  %v7439_v41 = vpop.f32.mrb[137].mxu0 }
 0x32f   : > { %v7382_v51 = vadd.f32 %v7381_v27, %v7380_v44  ;;  %v7383_v11 = vpop.f32.mrb[134].mxu1  ;;  %v7440_v1 = vadd.f32 %v7439_v41, %v7438_v40  ;;  %v7441_v45 = vpop.f32.mrb[138].mxu0 }
 0x330   : > { %v7384_v46 = vpop.f32.mrb[135].mxu1  ;;  %v7442_v5 = vpop.f32.mrb[139].mxu0 }
 0x331   : > { %v5343_v30 = vadd.f32 %v7382_v51, %v9887_v29  ;;  %v7385_v54 = vadd.f32 %v7384_v46, %v7383_v11  ;;  %v7443_v58 = vadd.f32 %v7442_v5, %v7441_v45 }
 0x333   : > { %v5346_v8 = vadd.f32 %v7385_v54, %v9889_v28  ;;  %v9926_v35 = vadd.f32 %v7440_v1, %v5343_v30 }
 0x335   : > { %v9928_v17 = vadd.f32 %v7443_v58, %v5346_v8  ;;  %v7386_v7 = vpop.f32.mrb[136].mxu1  ;;  %v7444_v60 = vpop.f32.mrb[140].mxu0 }
 0x336   : > { %v7387_v43 = vpop.f32.mrb[137].mxu1  ;;  %v7445_v61 = vpop.f32.mrb[141].mxu0 }
 0x337   : > { %v7388_v62 = vadd.f32 %v7387_v43, %v7386_v7  ;;  %v7389_v10 = vpop.f32.mrb[138].mxu1  ;;  %v7446_v3 = vadd.f32 %v7445_v61, %v7444_v60  ;;  %v7447_v2 = vpop.f32.mrb[142].mxu0 }
 0x338   : > { %v7390_v26 = vpop.f32.mrb[139].mxu1  ;;  %v7448_v4 = vpop.f32.mrb[143].mxu0 }
 0x339   : > { %v5351_v29 = vadd.f32 %v7388_v62, %v9893_v14  ;;  %v7391_v55 = vadd.f32 %v7390_v26, %v7389_v10  ;;  %v7449_v6 = vadd.f32 %v7448_v4, %v7447_v2 }
 0x33b   : > { %v5354_v28 = vadd.f32 %v7391_v55, %v9895_v34  ;;  %v9932_v59 = vadd.f32 %v7446_v3, %v5351_v29 }
 0x33d   : > { %v9934_v49 = vadd.f32 %v7449_v6, %v5354_v28  ;;  %v7392_v32 = vpop.f32.mrb[140].mxu1  ;;  %v7450_v9 = vpop.f32.mrb[144].mxu0 }
 0x33e   : > { %v7393_v12 = vpop.f32.mrb[141].mxu1  ;;  %v7451_v63 = vpop.f32.mrb[145].mxu0 }
 0x33f   : > { %v7394_v52 = vadd.f32 %v7393_v12, %v7392_v32  ;;  %v7395_v39 = vpop.f32.mrb[142].mxu1  ;;  %v7452_v16 = vadd.f32 %v7451_v63, %v7450_v9  ;;  %v7453_v19 = vpop.f32.mrb[146].mxu0 }
 0x340   : > { %v7396_v20 = vpop.f32.mrb[143].mxu1  ;;  %v7454_v21 = vpop.f32.mrb[147].mxu0 }
 0x341   : > { %v5359_v14 = vadd.f32 %v7394_v52, %v9899_v38  ;;  %v7397_v23 = vadd.f32 %v7396_v20, %v7395_v39  ;;  %v7455_v24 = vadd.f32 %v7454_v21, %v7453_v19  ;;  %v9958_v52 = vld [vmem:[%s1855_s7] ss:$0 sm:$0xff] }
 0x343   : > { %v5362_v34 = vadd.f32 %v7397_v23, %v9901_v13  ;;  %v9938_v15 = vadd.f32 %v7452_v16, %v5359_v14 }
 0x345   : > { %v9940_v57 = vadd.f32 %v7455_v24, %v5362_v34  ;;  %v7398_v31 = vpop.f32.mrb[144].mxu1  ;;  %v7456_v18 = vpop.f32.mrb[148].mxu0 }
 0x346   : > { %v7399_v48 = vpop.f32.mrb[145].mxu1  ;;  %v7457_v22 = vpop.f32.mrb[149].mxu0 }
 0x347   : > { %v7400_v42 = vadd.f32 %v7399_v48, %v7398_v31  ;;  %v7401_v36 = vpop.f32.mrb[146].mxu1  ;;  %v7458_v56 = vadd.f32 %v7457_v22, %v7456_v18  ;;  %v7459_v44 = vpop.f32.mrb[150].mxu0 }
 0x348   : > { %v7402_v40 = vpop.f32.mrb[147].mxu1  ;;  %v7460_v27 = vpop.f32.mrb[151].mxu0 }
 0x349   : > { %v5367_v38 = vadd.f32 %v7400_v42, %v9905_v50  ;;  %v7403_v41 = vadd.f32 %v7402_v40, %v7401_v36  ;;  %v7461_v51 = vadd.f32 %v7460_v27, %v7459_v44 }
 0x34b   : > { %v5370_v13 = vadd.f32 %v7403_v41, %v9907_v33  ;;  %v9944_v11 = vadd.f32 %v7458_v56, %v5367_v38 }
 0x34d   : > { %v9946_v1 = vadd.f32 %v7461_v51, %v5370_v13  ;;  %v7404_v45 = vpop.f32.mrb[148].mxu1  ;;  %v7462_v46 = vpop.f32.mrb[152].mxu0 }
 0x34e   : > { %v7405_v5 = vpop.f32.mrb[149].mxu1  ;;  %v7463_v30 = vpop.f32.mrb[153].mxu0 }
 0x34f   : > { %v7406_v54 = vadd.f32 %v7405_v5, %v7404_v45  ;;  %v7407_v58 = vpop.f32.mrb[150].mxu1  ;;  %v7464_v8 = vadd.f32 %v7463_v30, %v7462_v46  ;;  %v7465_v7 = vpop.f32.mrb[154].mxu0  ;;  %v5706_v5 = vlaneseq }
 0x350   : > { %v7408_v60 = vpop.f32.mrb[151].mxu1  ;;  %v7466_v50 = vpop.f32.mrb[155].mxu0 }
 0x351   : > { %v5375_v43 = vadd.f32 %v7406_v54, %v9910_v0 }
 0x353   : > { %v9949_v61 = vadd.f32 %v7464_v8, %v5375_v43  ;;  %v9980_v43 = vshrl.u32 %v5706_v5, 7 }
 0x355   : > { %v7484_v33 = vpop.f32.mrb[152].mxu1  ;;  %v5590_v62 = vpop.f32.mrb[156].mxu0 }
 0x356   : > { %v7485_v10 = vpop.f32.mrb[153].mxu1  ;;  %v7559_v3 = vpop.f32.mrb[157].mxu0 }
 0x357   : > { %v7486_v2 = vadd.f32 %v7485_v10, %v7484_v33  ;;  %v7487_v26 = vpop.f32.mrb[154].mxu1  ;;  %v5593_v4 = vpop.f32.mrb[158].mxu0 }
 0x358   : > { %v7488_v29 = vpop.f32.mrb[155].mxu1  ;;  %v7560_v55 = vpop.f32.mrb[159].mxu0 }
 0x359   : > { %v7489_v6 = vadd.f32 %v7488_v29, %v7487_v26  ;;  %v5503_v28 = vadd.f32 %v7486_v2, %v9914_v53 }
 0x35b   : > { %v5591_v0 = vadd.f32 %v5590_v62, %v5503_v28  ;;  %v5506_v32 = vadd.f32 %v7489_v6, %v9916_v47  ;;  %v9991_v6 = vadd.s32 48, %v9980_v43 }
 0x35d   : > { %v5594_v9 = vadd.f32 %v5593_v4, %v5506_v32  ;;  %v7490_v12 = vpop.f32.mrb[156].mxu1  ;;  %v5598_v63 = vpop.f32.mrb[160].mxu0  ;;  %v9961_v53 = vadd.f32 %v9958_v52, %v5591_v0  ;;  %vm5739_vm1 = vcmp.lt.s32.totalorder %v9991_v6, 49  ;;  %vm5912_vm2 = vcmp.ge.s32.totalorder %v9991_v6, 49 }
 0x35e   : > { %v7491_v39 = vpop.f32.mrb[157].mxu1  ;;  %v7563_v16 = vpop.f32.mrb[161].mxu0 }
 0x35f   : > { %v7492_v19 = vadd.f32 %v7491_v39, %v7490_v12  ;;  %v7493_v20 = vpop.f32.mrb[158].mxu1  ;;  %v5601_v21 = vpop.f32.mrb[162].mxu0  ;;  %v9964_v24 = vadd.f32 %v9958_v52, %v5594_v9 }
 0x360   : > { %v7494_v14 = vpop.f32.mrb[159].mxu1  ;;  %v7564_v23 = vpop.f32.mrb[163].mxu0 }
 0x361   : > { %v7495_v34 = vadd.f32 %v7494_v14, %v7493_v20  ;;  %v5511_v47 = vadd.f32 %v7492_v19, %v9920_v37  ;;  %v5798_v31 = vadd.f32 %v9964_v24, %v9961_v53 }
 0x363   : > { %v5599_v18 = vadd.f32 %v5598_v63, %v5511_v47  ;;  %v5514_v48 = vadd.f32 %v7495_v34, %v9922_v25 }
 0x365   : > { %v5602_v22 = vadd.f32 %v5601_v21, %v5514_v48  ;;  %v7496_v42 = vpop.f32.mrb[160].mxu1  ;;  %v5606_v36 = vpop.f32.mrb[164].mxu0  ;;  %v9971_v40 = vadd.f32 %v9958_v52, %v5599_v18 }
 0x366   : > { %v7497_v56 = vpop.f32.mrb[161].mxu1  ;;  %v7567_v44 = vpop.f32.mrb[165].mxu0 }
 0x367   : > { %v7498_v27 = vadd.f32 %v7497_v56, %v7496_v42  ;;  %v7499_v38 = vpop.f32.mrb[162].mxu1  ;;  %v5609_v41 = vpop.f32.mrb[166].mxu0  ;;  %v5799_v37 = vadd.f32 %v5798_v31, %v9971_v40  ;;  %v9975_v45 = vadd.f32 %v9958_v52, %v5602_v22 }
 0x368   : > { %v7500_v51 = vpop.f32.mrb[163].mxu1  ;;  %v7568_v13 = vpop.f32.mrb[167].mxu0 }
 0x369   : > { %v7501_v46 = vadd.f32 %v7500_v51, %v7499_v38  ;;  %v5519_v25 = vadd.f32 %v7498_v27, %v9926_v35  ;;  %v5800_v30 = vadd.f32 %v5799_v37, %v9975_v45 }
 0x36b   : > { %v5607_v54 = vadd.f32 %v5606_v36, %v5519_v25  ;;  %v5522_v58 = vadd.f32 %v7501_v46, %v9928_v17 }
 0x36d   : > { %v5610_v8 = vadd.f32 %v5609_v41, %v5522_v58  ;;  %v7502_v7 = vpop.f32.mrb[164].mxu1  ;;  %v5614_v60 = vpop.f32.mrb[168].mxu0  ;;  %v9983_v62 = vadd.f32 %v9958_v52, %v5607_v54 }
 0x36e   : > { %v7503_v50 = vpop.f32.mrb[165].mxu1  ;;  %v7571_v33 = vpop.f32.mrb[169].mxu0 }
 0x36f   : > { %v7504_v10 = vadd.f32 %v7503_v50, %v7502_v7  ;;  %v7505_v3 = vpop.f32.mrb[166].mxu1  ;;  %v5617_v2 = vpop.f32.mrb[170].mxu0  ;;  %v5801_v4 = vadd.f32 %v5800_v30, %v9983_v62  ;;  %v9987_v29 = vadd.f32 %v9958_v52, %v5610_v8 }
 0x370   : > { %v7506_v35 = vpop.f32.mrb[167].mxu1  ;;  %v7572_v26 = vpop.f32.mrb[171].mxu0 }
 0x371   : > { %v7507_v17 = vadd.f32 %v7506_v35, %v7505_v3  ;;  %v5527_v55 = vadd.f32 %v7504_v10, %v9932_v59  ;;  %v5802_v28 = vadd.f32 %v5801_v4, %v9987_v29 }
 0x373   : > { %v5615_v0 = vadd.f32 %v5614_v60, %v5527_v55  ;;  %v5530_v32 = vadd.f32 %v7507_v17, %v9934_v49 }
 0x375   : > { %v5618_v9 = vadd.f32 %v5617_v2, %v5530_v32  ;;  %v7508_v12 = vpop.f32.mrb[168].mxu1  ;;  %v5622_v63 = vpop.f32.mrb[172].mxu0  ;;  %v9997_v19 = vadd.f32 %v9958_v52, %v5615_v0 }
 0x376   : > { %v7509_v39 = vpop.f32.mrb[169].mxu1  ;;  %v7575_v16 = vpop.f32.mrb[173].mxu0 }
 0x377   : > { %v7510_v20 = vadd.f32 %v7509_v39, %v7508_v12  ;;  %v7511_v59 = vpop.f32.mrb[170].mxu1  ;;  %v5625_v21 = vpop.f32.mrb[174].mxu0  ;;  %v5791_v34 = vsel %vm5739_vm1, %v9997_v19, 0.0  ;;  %v10003_v49 = vadd.f32 %v9958_v52, %v5618_v9  ;;  %v1886_v16 = vld [vmem:[#allocation2 + $0x60] sm:$0x3] }
 0x378   : > { %v7512_v14 = vpop.f32.mrb[171].mxu1  ;;  %v7576_v23 = vpop.f32.mrb[175].mxu0  ;;  %v5803_v18 = vadd.f32 %v5802_v28, %v5791_v34 }
 0x379   : > { %v7513_v47 = vadd.f32 %v7512_v14, %v7511_v59  ;;  %v5535_v31 = vadd.f32 %v7510_v20, %v9938_v15 }
 0x37a   : > { %v5812_v42 = vrot.slane %v5803_v18, 4 }
 0x37b   : > { %v5623_v48 = vadd.f32 %v5622_v63, %v5535_v31  ;;  %v5538_v22 = vadd.f32 %v7513_v47, %v9940_v57 }
 0x37c   : > { %v5813_v27 = vadd.f32 %v5812_v42, %v5803_v18 }
 0x37d   : > { %v5626_v36 = vadd.f32 %v5625_v21, %v5538_v22  ;;  %v7514_v56 = vpop.f32.mrb[172].mxu1  ;;  %v5630_v44 = vpop.f32.mrb[176].mxu0  ;;  %v10008_v51 = vadd.f32 %v9958_v52, %v5623_v48 }
 0x37e   : > { %v7515_v38 = vpop.f32.mrb[173].mxu1  ;;  %v7579_v41 = vpop.f32.mrb[177].mxu0  ;;  %v5814_v25 = vrot.slane %v5813_v27, 2 }
 0x37f   : > { %v7516_v13 = vadd.f32 %v7515_v38, %v7514_v56  ;;  %v7517_v37 = vpop.f32.mrb[174].mxu1  ;;  %v5633_v46 = vpop.f32.mrb[178].mxu0  ;;  %v10011_v30 = vadd.f32 %v9958_v52, %v5626_v36 }
 0x380   : > { %v7518_v5 = vpop.f32.mrb[175].mxu1  ;;  %v7580_v15 = vpop.f32.mrb[179].mxu0  ;;  %v5815_v58 = vadd.f32 %v5814_v25, %v5813_v27  ;;  %v10032_v25 = vadd.s32 96, %v9980_v43 }
 0x381   : > { %v7519_v57 = vadd.f32 %v7518_v5, %v7517_v37  ;;  %v5543_v54 = vadd.f32 %v7516_v13, %v9944_v11 }
 0x382   : > { %v5816_v60 = vrot.slane %v5815_v58, 1  ;;  %vm5931_vm9 = vcmp.lt.s32.totalorder %v10032_v25, 98 }
 0x383   : > { %v5631_v8 = vadd.f32 %v5630_v44, %v5543_v54  ;;  %v5546_v7 = vadd.f32 %v7519_v57, %v9946_v1 }
 0x384   : > { %v5817_v3 = vadd.f32 %v5816_v60, %v5815_v58 }
 0x385   : > { %v5634_v50 = vadd.f32 %v5633_v46, %v5546_v7  ;;  %v7520_v33 = vpop.f32.mrb[176].mxu1  ;;  %v5638_v10 = vpop.f32.mrb[180].mxu0  ;;  %v10016_v26 = vadd.f32 %v9958_v52, %v5631_v8 }
 0x386   : > { %v7521_v2 = vpop.f32.mrb[177].mxu1  ;;  %v7583_v35 = vpop.f32.mrb[181].mxu0  ;;  %v5818_v28 = vmul.f32 0.020408163, %v5817_v3 }
 0x387   : > { %v7522_v4 = vadd.f32 %v7521_v2, %v7520_v33  ;;  %v7523_v17 = vpop.f32.mrb[178].mxu1  ;;  %v5641_v55 = vpop.f32.mrb[182].mxu0  ;;  %v10019_v32 = vadd.f32 %v9958_v52, %v5634_v50 }
 0x388   : > { %v7524_v0 = vpop.f32.mrb[179].mxu1  ;;  %v7584_v11 = vpop.f32.mrb[183].mxu0  ;;  %v5819_v9 = vsub.f32 %v9961_v53, %v5818_v28  ;;  %v5820_v12 = vsub.f32 %v9964_v24, %v5818_v28  ;;  %v5821_v63 = vsub.f32 %v9971_v40, %v5818_v28  ;;  %v5822_v39 = vsub.f32 %v9975_v45, %v5818_v28 }
 0x389   : > { %v5551_v1 = vadd.f32 %v7522_v4, %v9949_v61  ;;  %v5823_v20 = vsub.f32 %v9983_v62, %v5818_v28  ;;  %v5824_v59 = vsub.f32 %v9987_v29, %v5818_v28  ;;  %v5825_v21 = vsub.f32 %v9997_v19, %v5818_v28 }
 0x38a   : > { %v5832_v23 = vmul.f32 %v5819_v9, %v5819_v9  ;;  %v5833_v34 = vmul.f32 %v5820_v12, %v5820_v12  ;;  %v5834_v61 = vmul.f32 %v5821_v63, %v5821_v63  ;;  %v5835_v53 = vmul.f32 %v5822_v39, %v5822_v39 }
 0x38b   : > { %v5639_v14 = vadd.f32 %v5638_v10, %v5551_v1  ;;  %v5836_v18 = vmul.f32 %v5823_v20, %v5823_v20  ;;  %v5838_v48 = vmul.f32 %v5825_v21, %v5825_v21  ;;  %v5837_v45 = vmul.f32 %v5824_v59, %v5824_v59 }
 0x38c   : > { %v5858_v31 = vadd.f32 %v5833_v34, %v5832_v23 }
 0x38d   : > { %v5656_v47 = vadd.f32 %v5639_v14, %v1886_v16  ;;  %v5851_v62 = vsel %vm5739_vm1, %v5838_v48, 0.0 }
 0x38e   : > { %v5859_v24 = vadd.f32 %v5858_v31, %v5834_v61 }
 0x38f   : > { %5669 = vst [vmem:[#allocation2 + $0x60] sm:$0x3] %v5656_v47 }
 0x390   : > { %v5860_v40 = vadd.f32 %v5859_v24, %v5835_v53 }
 0x392   : > { %v5861_v22 = vadd.f32 %v5860_v40, %v5836_v18 }
 0x394   : > { %v5862_v42 = vadd.f32 %v5861_v22, %v5837_v45 }
 0x396   : > { %v5863_v29 = vadd.f32 %v5862_v42, %v5851_v62  ;;  %v5685_v50 = vld [vmem:[#allocation2 + $0x60] sm:$0x3] }
 0x397   : > { %v10051_v16 = vadd.f32 %v9958_v52, %v5685_v50 }
 0x398   : > { %v5871_v36 = vrot.slane %v5863_v29, 4 }
 0x399   : > { %v5983_v52 = vsel %vm5931_vm9, %v10051_v16, 0.0 }
 0x39a   : > { %v5872_v56 = vadd.f32 %v5871_v36, %v5863_v29  ;;  %v5995_v14 = vsel %vm5809_vm10, %v5983_v52, 0.0 }
 0x39c   : > { %v5873_v44 = vrot.slane %v5872_v56, 2 }
 0x39e   : > { %v5874_v27 = vadd.f32 %v5873_v44, %v5872_v56 }
 0x3a0   : > { %v5875_v38 = vrot.slane %v5874_v27, 1 }
 0x3a2   : > { %v5876_v41 = vadd.f32 %v5875_v38, %v5874_v27 }
 0x3a4   : > { %v5877_v13 = vmul.f32 0.020408163, %v5876_v41 }
 0x3a6   : > { %v5878_v37 = vadd.f32 1e-05, %v5877_v13 }
 0x3a8   : > { %8093 = vrsqrt.f32 %v5878_v37 }
 0x3b2   : > { %v8094_v46 = vpop.eup %8093 }
 0x3b3   : > { %v5880_v5 = vmul.f32 %v8094_v46, %v5819_v9  ;;  %v5881_v15 = vmul.f32 %v8094_v46, %v5820_v12  ;;  %v5882_v57 = vmul.f32 %v8094_v46, %v5821_v63  ;;  %v5883_v54 = vmul.f32 %v8094_v46, %v5822_v39 }
 0x3b4   : > { %v5884_v58 = vmul.f32 %v8094_v46, %v5823_v20  ;;  %v5885_v8 = vmul.f32 %v8094_v46, %v5824_v59  ;;  %v5886_v7 = vmul.f32 %v8094_v46, %v5825_v21 }
 0x3b5   : > { %vm6091_vm3 = vcmp.ge.f32.partialorder %v5880_v5, 0.0  ;;  %vm6092_vm4 = vcmp.ge.f32.partialorder %v5881_v15, 0.0  ;;  %vm6093_vm5 = vcmp.ge.f32.partialorder %v5882_v57, 0.0  ;;  %vm6094_vm6 = vcmp.ge.f32.partialorder %v5883_v54, 0.0 }
 0x3b6   : > { %v10040_v43 = vsel %vm5739_vm1, %v5886_v7, %v9997_v19  ;;  %vm6095_vm7 = vcmp.ge.f32.partialorder %v5884_v58, 0.0  ;;  %vm6096_vm8 = vcmp.ge.f32.partialorder %v5885_v8, 0.0  ;;  %v6104_v60 = vmul.f32 0.2, %v5880_v5 }
 0x3b7   : > { %v6105_v33 = vmul.f32 0.2, %v5881_v15  ;;  %v6106_v10 = vmul.f32 0.2, %v5882_v57  ;;  %v6107_v3 = vmul.f32 0.2, %v5883_v54 }
 0x3b8   : > { %v6108_v2 = vmul.f32 0.2, %v5884_v58  ;;  %v6109_v35 = vmul.f32 0.2, %v5885_v8  ;;  %v6117_v4 = vsel %vm6091_vm3, %v5880_v5, %v6104_v60  ;;  %v5977_v17 = vsel %vm5912_vm2, %v10040_v43, 0.0 }
 0x3b9   : > { %v6118_v55 = vsel %vm6092_vm4, %v5881_v15, %v6105_v33  ;;  %v6119_v28 = vsel %vm6093_vm5, %v5882_v57, %v6106_v10  ;;  %v6120_v19 = vsel %vm6094_vm6, %v5883_v54, %v6107_v3  ;;  %v5990_v0 = vadd.f32 %v5977_v17, %v10003_v49 }
 0x3ba   : > { %v6121_v11 = vsel %vm6095_vm7, %v5884_v58, %v6108_v2  ;;  %v6122_v1 = vsel %vm6096_vm8, %v5885_v8, %v6109_v35  ;;  %v6798_v9 = vpack.c.bf16 %v6118_v55, %v6117_v4  ;;  %v6803_v12 = vpack.c.bf16 %v6120_v19, %v6119_v28 }
 0x3bb   : > { %v6808_v63 = vpack.c.bf16 %v6122_v1, %v6121_v11  ;;  %v5991_v39 = vadd.f32 %v5990_v0, %v10008_v51 }
 0x3bc   : > { %6799 = vst [vmem:[%s10054_s12] sm:$0xff] %v6798_v9   ;;  %6825 = vst [vmem:[%s10054_s12 + $0x8] sm:$0xff] %v6803_v12  }
 0x3bd   : > { %v5992_v20 = vadd.f32 %v5991_v39, %v10011_v30  ;;  %6826 = vst [vmem:[%s10054_s12 + $0x10] sm:$0xff] %v6808_v63  }
 0x3bf   : > { %v5993_v59 = vadd.f32 %v5992_v20, %v10016_v26 }
 0x3c1   : > { %v5994_v21 = vadd.f32 %v5993_v59, %v10019_v32 }
 0x3c3   : > { %v5996_v23 = vadd.f32 %v5995_v14, %v5994_v21 }
 0x3c5   : > { %v5997_v34 = vrot.slane %v5996_v23, 4 }
 0x3c7   : > { %v5998_v47 = vadd.f32 %v5997_v34, %v5996_v23 }
 0x3c9   : > { %v5999_v61 = vrot.slane %v5998_v47, 2 }
 0x3cb   : > { %v6000_v31 = vadd.f32 %v5999_v61, %v5998_v47  ;;  %v6220_v61 = vld [vmem:[%s10054_s12] sm:$0xf] (%p8194_p6) }
 0x3cc   : > { %6221 = vst [vmem:[%s6204_s18] sm:$0xf] (%p8194_p6), %v6220_v61 }
 0x3cd   : > { %v6001_v53 = vrot.slane %v6000_v31, 1 }
 0x3cf   : > { %v6002_v24 = vadd.f32 %v6001_v53, %v6000_v31  ;;  %v6222_v31 = vld [vmem:[%s10054_s12 + $0x4] sm:$0xf] (%p8194_p6)  ;;  %v6224_v53 = vld [vmem:[%s10054_s12 + $0x8] sm:$0xf] (%p8194_p6) }
 0x3d0   : > { %6223 = vst [vmem:[%s6204_s18 + $0x8] sm:$0xf] (%p8194_p6), %v6222_v31  ;;  %6225 = vst [vmem:[%s6204_s18 + $0x10] sm:$0xf] (%p8194_p6), %v6224_v53 }
 0x3d1   : > { %v6003_v18 = vmul.f32 0.020408163, %v6002_v24  ;;  %v6226_v24 = vld [vmem:[%s10054_s12 + $0xc] sm:$0xf] (%p8194_p6) }
 0x3d2   : > { %6227 = vst [vmem:[%s6204_s18 + $0x18] sm:$0xf] (%p8194_p6), %v6226_v24 }
 0x3d3   : > { %v6010_v40 = vsub.f32 %v10040_v43, %v6003_v18  ;;  %v6011_v48 = vsub.f32 %v10003_v49, %v6003_v18  ;;  %v6012_v45 = vsub.f32 %v10008_v51, %v6003_v18  ;;  %v6013_v22 = vsub.f32 %v10011_v30, %v6003_v18 }
 0x3d4   : > { %v6014_v42 = vsub.f32 %v10016_v26, %v6003_v18  ;;  %v6015_v62 = vsub.f32 %v10019_v32, %v6003_v18  ;;  %v6016_v56 = vsub.f32 %v10051_v16, %v6003_v18  ;;  %v6228_v18 = vld [vmem:[%s10054_s12 + $0x10] sm:$0xf] (%p8194_p6) }
 0x3d5   : > { %v6023_v29 = vmul.f32 %v6010_v40, %v6010_v40  ;;  %v6024_v36 = vmul.f32 %v6011_v48, %v6011_v48  ;;  %v6025_v27 = vmul.f32 %v6012_v45, %v6012_v45  ;;  %v6026_v41 = vmul.f32 %v6013_v22, %v6013_v22  ;;  %6229 = vst [vmem:[%s6204_s18 + $0x20] sm:$0xf] (%p8194_p6), %v6228_v18 }
 0x3d6   : > { %v6029_v13 = vmul.f32 %v6016_v56, %v6016_v56  ;;  %v6027_v37 = vmul.f32 %v6014_v42, %v6014_v42  ;;  %v6028_v46 = vmul.f32 %v6015_v62, %v6015_v62 }
 0x3d7   : > { %v6036_v44 = vsel %vm5912_vm2, %v6023_v29, 0.0 }
 0x3d8   : > { %v6049_v38 = vadd.f32 %v6036_v44, %v6024_v36  ;;  %v6042_v30 = vsel %vm5931_vm9, %v6029_v13, 0.0 }
 0x3d9   : > { %v6054_v5 = vsel %vm5809_vm10, %v6042_v30, 0.0 }
 0x3da   : > { %v6050_v49 = vadd.f32 %v6049_v38, %v6025_v27 }
 0x3dc   : > { %v6051_v51 = vadd.f32 %v6050_v49, %v6026_v41 }
 0x3de   : > { %v6052_v26 = vadd.f32 %v6051_v51, %v6027_v37 }
 0x3e0   : > { %v6053_v32 = vadd.f32 %v6052_v26, %v6028_v46 }
 0x3e2   : > { %v6055_v15 = vadd.f32 %v6054_v5, %v6053_v32 }
 0x3e4   : > { %v6056_v57 = vrot.slane %v6055_v15, 4 }
 0x3e6   : > { %v6057_v54 = vadd.f32 %v6056_v57, %v6055_v15 }
 0x3e8   : > { %v6058_v58 = vrot.slane %v6057_v54, 2 }
 0x3ea   : > { %v6059_v8 = vadd.f32 %v6058_v58, %v6057_v54 }
 0x3ec   : > { %v6060_v7 = vrot.slane %v6059_v8, 1 }
 0x3ee   : > { %v6061_v60 = vadd.f32 %v6060_v7, %v6059_v8 }
 0x3f0   : > { %v6062_v50 = vmul.f32 0.020408163, %v6061_v60 }
 0x3f2   : > { %v6063_v33 = vadd.f32 1e-05, %v6062_v50 }
 0x3f4   : > { %8095 = vrsqrt.f32 %v6063_v33 }
 0x3fe   : > { %v8096_v10 = vpop.eup %8095 }
 0x3ff   : > { %v6071_v3 = vmul.f32 %v8096_v10, %v6010_v40  ;;  %v6072_v2 = vmul.f32 %v8096_v10, %v6011_v48  ;;  %v6073_v35 = vmul.f32 %v8096_v10, %v6012_v45  ;;  %v6074_v4 = vmul.f32 %v8096_v10, %v6013_v22  ;;  %v6230_v40 = vld [vmem:[%s10054_s12 + $0x14] sm:$0xf] (%p8194_p6) }
 0x400   : > { %v6075_v17 = vmul.f32 %v8096_v10, %v6014_v42  ;;  %v6076_v55 = vmul.f32 %v8096_v10, %v6015_v62  ;;  %v6077_v28 = vmul.f32 %v8096_v10, %v6016_v56  ;;  %6231 = vst [vmem:[%s6204_s18 + $0x28] sm:$0xf] (%p8194_p6), %v6230_v40 }
 0x401   : > { %v6084_v19 = vsel %vm5912_vm2, %v6071_v3, %v10040_v43  ;;  %vm6098_vm11 = vcmp.ge.f32.partialorder %v6072_v2, 0.0  ;;  %vm6099_vm12 = vcmp.ge.f32.partialorder %v6073_v35, 0.0  ;;  %vm6100_vm14 = vcmp.ge.f32.partialorder %v6074_v4, 0.0 }
 0x402   : > { %v6090_v0 = vsel %vm5931_vm9, %v6077_v28, %v10051_v16  ;;  %vm6097_vm13 = vcmp.ge.f32.partialorder %v6084_v19, 0.0  ;;  %vm6101_vm15 = vcmp.ge.f32.partialorder %v6075_v17, 0.0  ;;  %vm6102_vm0 = vcmp.ge.f32.partialorder %v6076_v55, 0.0 }
 0x403   : > { %vm6103_vm1 = vcmp.ge.f32.partialorder %v6090_v0, 0.0  ;;  %v6110_v11 = vmul.f32 0.2, %v6084_v19  ;;  %v6111_v1 = vmul.f32 0.2, %v6072_v2 }
 0x404   : > { %v6112_v9 = vmul.f32 0.2, %v6073_v35  ;;  %v6113_v12 = vmul.f32 0.2, %v6074_v4  ;;  %v6114_v63 = vmul.f32 0.2, %v6075_v17 }
 0x405   : > { %v6115_v6 = vmul.f32 0.2, %v6076_v55  ;;  %v6116_v43 = vmul.f32 0.2, %v6090_v0  ;;  %v6123_v39 = vsel %vm6097_vm13, %v6084_v19, %v6110_v11  ;;  %v6124_v25 = vsel %vm6098_vm11, %v6072_v2, %v6111_v1  ;;  %6202 = sbr.rel (!%p8194_p6) target bundleno = 1045 (0x415), region = 85 }
 0x406   : > { %v6125_v16 = vsel %vm6099_vm12, %v6073_v35, %v6112_v9  ;;  %v6126_v20 = vsel %vm6100_vm14, %v6074_v4, %v6113_v12  ;;  %v6127_v59 = vsel %vm6101_vm15, %v6075_v17, %v6114_v63  ;;  %v6813_v52 = vpack.c.bf16 %v6124_v25, %v6123_v39 }
 0x407   : > { %v6128_v21 = vsel %vm6102_vm0, %v6076_v55, %v6115_v6  ;;  %v6129_v14 = vsel %vm6103_vm1, %v6090_v0, %v6116_v43  ;;  %v6818_v23 = vpack.c.bf16 %v6126_v20, %v6125_v16 }
 0x408   : > { %v6794_v34 = vpack.c.bf16 %v6129_v14, %v6129_v14  ;;  %6827 = vst [vmem:[%s10054_s12 + $0x18] sm:$0xff] %v6813_v52   ;;  %v6823_v47 = vpack.c.bf16 %v6128_v21, %v6127_v59 }
 0x409   : > { %6828 = vst [vmem:[%s10054_s12 + $0x20] sm:$0xff] %v6818_v23  }
 0x40a   : > { %6829 = vst [vmem:[%s10054_s12 + $0x28] sm:$0xff] %v6823_v47   ;;  %6195 = vst [vmem:[%s10054_s12 + $0x30] sm:$0x1] %v6794_v34 }
 0x40f   : > { %v6232_v48 = vld [vmem:[%s10054_s12 + $0x18] sm:$0xf]  ;;  %v6234_v45 = vld [vmem:[%s10054_s12 + $0x1c] sm:$0xf] }
 0x410   : > { %6233 = vst [vmem:[%s6204_s18 + $0x30] sm:$0xf] %v6232_v48  ;;  %6235 = vst [vmem:[%s6204_s18 + $0x38] sm:$0xf] %v6234_v45  ;;  %v6236_v22 = vld [vmem:[%s10054_s12 + $0x20] sm:$0xf] }
 0x411   : > { %v6238_v42 = vld [vmem:[%s10054_s12 + $0x24] sm:$0xf]  ;;  %v6240_v62 = vld [vmem:[%s10054_s12 + $0x28] sm:$0xf]  ;;  %6237 = vst [vmem:[%s6204_s18 + $0x40] sm:$0xf] %v6236_v22 }
 0x412   : > { %6239 = vst [vmem:[%s6204_s18 + $0x48] sm:$0xf] %v6238_v42  ;;  %6241 = vst [vmem:[%s6204_s18 + $0x50] sm:$0xf] %v6240_v62  ;;  %v6242_v29 = vld [vmem:[%s10054_s12 + $0x2c] sm:$0xf] }
 0x413   : > { %v6244_v36 = vld [vmem:[%s10054_s12 + $0x30] sm:$0xf]  ;;  %6243 = vst [vmem:[%s6204_s18 + $0x58] sm:$0xf] %v6242_v29 }
 0x414   : > { %6245 = vst [vmem:[%s6204_s18 + $0x60] sm:$0xf] %v6244_v36 }
 0x415 PF: > { %s13_s16 = sadd.s32 1, %s8135_s16   ;;  %s10129_s12 = smov %s8123_s13 }
 0x416   : > { %p10_p12 = scmp.ge.s32.totalorder %s13_s16, 4   ;;  %s10130_s13 = smov %s8199_s22 }
 0x417   : > { %s10131_s14 = smov %s8131_s15  ;;  %s10132_s15 = smov %s10134_s17 }
 0x418   :  { %12 = sbr.rel (!%p10_p12) target bundleno = 3 (0x3), region = 163 }

// kernel: discriminator2_pallas.5
= control target key start
LH: loop header
LB: loop body
LE: loop exit
PB: predicated region body
PF: predicated region fallthrough
CT: control target
= control target key end

     0   :  { %s10170_s0 = inlined_call_operand.vmem [shape: bf16[50,6400], index: 0, kind: input, shape index: {}]   ;;  %s10171_s1 = inlined_call_operand.vmem [shape: bf16[6400,512], index: 1, kind: input, shape index: {}]   ;;  %s10172_s2 = inlined_call_operand.vmem [shape: f32[1,512], index: 2, kind: input, shape index: {}]   ;;  %s10173_s3 = inlined_call_operand.vmem [shape: bf16[50,512], index: 3, kind: output, shape index: {}]  }
   0x1   :  { %10175 = sst [smem:[#allocation7_spill]] %s10170_s0 }
   0x2   :  { %10176 = sst [smem:[#allocation8_spill]] %s10171_s1 }
   0x3   :  { %s8334_s12 = smov 0   ;;  %s8336_s13 = smov 0  }
   0x4   :  { %s8338_s14 = smov 0   ;;  %s8340_s15 = smov 0  }
   0x5   :  { %s8342_s16 = smov 0   ;;  %s8344_s17 = smov 0  }
   0x6   :  { %s8346_s18 = smov 0   ;;  %s8348_s19 = smov 0  }
   0x7   :  { %s8350_s20 = smov 0   ;;  %s8352_s21 = smov 0  }
   0x8   :  { %s8354_s22 = smov 0  }
   0x9 LB: > { %s6678_s23 = sadd.s32 4294967295, %s8310_s22   ;;  %s22_s24 = sadd.s32 1, %s8302_s20  ;;  %s8310_s22 = sphi %s8354_s22, %s13_s22   ;;  %s8306_s21 = sphi %s8352_s21, %s10193_s21   ;;  %s8302_s20 = sphi %s8350_s20, %s10192_s20   ;;  %s8298_s19 = sphi %s8348_s19, %s10191_s19   ;;  %s8294_s18 = sphi %s8346_s18, %s10190_s18   ;;  %s8290_s17 = sphi %s8344_s17, %s10189_s17   ;;  %s8286_s16 = sphi %s8342_s16, %s10188_s16   ;;  %s8282_s15 = sphi %s8340_s15, %s10187_s15   ;;  %s8278_s14 = sphi %s8338_s14, %s10186_s14   ;;  %s8274_s13 = sphi %s8336_s13, %s10185_s13   ;;  %s8270_s12 = sphi %s8334_s12, %s10184_s12  }
   0xa   : > { %p23_p0 = scmp.ge.s32.totalorder %s22_s24, 2  ;;  %s25_s25 = sadd.s32 1, %s8306_s21 }
   0xb   : > { %s32_s26 = sadd.s32 1, %s8290_s17  ;;  %p39_p1 = scmp.ne.s32.totalorder %s8290_s17, %s8286_s16 }
   0xc   : > { %s10195_s24 = smov (%p23_p0, %s22_s24), 0  ;;  %s10197_s25 = smov (!%p23_p0, %s25_s25), %s8306_s21 }
   0xd   : > { %s29_s27 = ssub.s32 %s8302_s20, %s10195_s24  ;;  %p40_p2 = scmp.eq.s32.totalorder %s8310_s22, 0 }
   0xe   : > { %p27_p3 = scmp.ge.s32.totalorder %s10197_s25, 2  ;;  %p30_p4 = scmp.eq.s32.totalorder %s29_s27, 0 }
   0xf   : > { %p8401_p5 = por %p40_p2, %p39_p1  ;;  %s60_s29 = sadd.s32 1, %s8282_s15 }
  0x10   : > { %s10199_s25 = smov (%p27_p3, %s10197_s25), 0  ;;  %p67_p6 = scmp.ne.s32.totalorder %s8282_s15, %s8278_s14 }
  0x11   : > { %10178 = sst [smem:[#allocation6_spill]] %s10199_s25  ;;  %s56_s4 = ssub.s32 %s8306_s21, %s10199_s25 }
  0x12   : > { %s8409_s30 = scalar_select %p30_p4, %s8290_s17, %s32_s26  }
  0x13   : > { %s57_s5 = sor.u32 %s56_s4, %s29_s27  ;;  %p110_p7 = scmp.eq.s32.totalorder %s56_s4, 0 }
  0x14   : > { %p58_p8 = scmp.eq.s32.totalorder %s57_s5, 0  ;;  %p8415_p9 = por %p67_p6, %p40_p2 }
  0x15   : > { %s112_s7 = sadd.s32 1, %s8274_s13  ;;  %p122_p10 = scmp.ne.s32.totalorder %s8274_s13, %s8270_s12 }
  0x16   : > { %s8423_s8 = scalar_select %p58_p8, %s8282_s15, %s60_s29  }
  0x17   : > { %s8426_s9 = scalar_select %p110_p7, %s8274_s13, %s112_s7  }
  0x18   : > { %p123_p11 = scmp.eq.s32.totalorder %s6678_s23, 3  ;;  %p6681_p13 = scmp.ge.s32.totalorder %s8310_s22, 4 }
  0x1a   : > { %p8428_p12 = por %p123_p11, %p122_p10  ;;  %145 = sbr.rel (%p6681_p13) target bundleno = 298 (0x12a), region = 16 }
  0x21   : > { %148 = sbr.rel (!%p8401_p5) target bundleno = 88 (0x58), region = 20  ;;  %s150_s11 = sand.u32 (%p8401_p5), 1, %s8290_s17  }
  0x22   : > { %s7215_s26 = smul.u32 (%p8401_p5), 100, %s8302_s20  ;;  %s10181_s0 = sld [smem:[#allocation7_spill]] (%p8401_p5) }
  0x23   : > { %s7385_s27 = smul.u32 (%p8401_p5), 700, %s150_s11 }
  0x25   : > { %s8445_s23 = scalar_lea.vmem (%p8401_p5), [#allocation3], %s7385_s27 }
  0x28   : > { %s8440_s5 = scalar_lea.vmem %s10181_s0, %s7215_s26 }
  0x29   : > { %v170_v0 = vld [vmem:[%s8440_s5] sm:$0xff]  ;;  %v172_v1 = vld [vmem:[%s8440_s5 + $0x8] sm:$0xff]  ;;  %v174_v2 = vld [vmem:[%s8440_s5 + $0x10] sm:$0xff] }
  0x2a   : > { %171 = vst [vmem:[%s8445_s23] sm:$0xff] %v170_v0  ;;  %173 = vst [vmem:[%s8445_s23 + $0x8] sm:$0xff] %v172_v1  ;;  %v176_v3 = vld [vmem:[%s8440_s5 + $0x18] sm:$0xff]  ;;  %v178_v4 = vld [vmem:[%s8440_s5 + $0x20] sm:$0xff] }
  0x2b   : > { %175 = vst [vmem:[%s8445_s23 + $0x10] sm:$0xff] %v174_v2  ;;  %v180_v5 = vld [vmem:[%s8440_s5 + $0x28] sm:$0xff]  ;;  %177 = vst [vmem:[%s8445_s23 + $0x18] sm:$0xff] %v176_v3  ;;  %v182_v6 = vld [vmem:[%s8440_s5 + $0x30] sm:$0xff] }
  0x2c   : > { %179 = vst [vmem:[%s8445_s23 + $0x20] sm:$0xff] %v178_v4  ;;  %181 = vst [vmem:[%s8445_s23 + $0x28] sm:$0xff] %v180_v5  ;;  %v184_v7 = vld [vmem:[%s8440_s5 + $0x38] sm:$0xff]  ;;  %v186_v8 = vld [vmem:[%s8440_s5 + $0x40] sm:$0xff] }
  0x2d   : > { %183 = vst [vmem:[%s8445_s23 + $0x30] sm:$0xff] %v182_v6  ;;  %185 = vst [vmem:[%s8445_s23 + $0x38] sm:$0xff] %v184_v7  ;;  %v188_v9 = vld [vmem:[%s8440_s5 + $0x48] sm:$0xff]  ;;  %v190_v10 = vld [vmem:[%s8440_s5 + $0x50] sm:$0xff] }
  0x2e   : > { %187 = vst [vmem:[%s8445_s23 + $0x40] sm:$0xff] %v186_v8  ;;  %v192_v11 = vld [vmem:[%s8440_s5 + $0x58] sm:$0xff]  ;;  %189 = vst [vmem:[%s8445_s23 + $0x48] sm:$0xff] %v188_v9  ;;  %v194_v12 = vld [vmem:[%s8440_s5 + $0xc8] sm:$0xff] }
  0x2f   : > { %191 = vst [vmem:[%s8445_s23 + $0x50] sm:$0xff] %v190_v10  ;;  %193 = vst [vmem:[%s8445_s23 + $0x58] sm:$0xff] %v192_v11  ;;  %v196_v13 = vld [vmem:[%s8440_s5 + $0xd0] sm:$0xff]  ;;  %v198_v14 = vld [vmem:[%s8440_s5 + $0xd8] sm:$0xff] }
  0x30   : > { %195 = vst [vmem:[%s8445_s23 + $0x64] sm:$0xff] %v194_v12  ;;  %197 = vst [vmem:[%s8445_s23 + $0x6c] sm:$0xff] %v196_v13  ;;  %v200_v15 = vld [vmem:[%s8440_s5 + $0xe0] sm:$0xff]  ;;  %v202_v16 = vld [vmem:[%s8440_s5 + $0xe8] sm:$0xff] }
  0x31   : > { %199 = vst [vmem:[%s8445_s23 + $0x74] sm:$0xff] %v198_v14  ;;  %v204_v17 = vld [vmem:[%s8440_s5 + $0xf0] sm:$0xff]  ;;  %201 = vst [vmem:[%s8445_s23 + $0x7c] sm:$0xff] %v200_v15  ;;  %v206_v18 = vld [vmem:[%s8440_s5 + $0xf8] sm:$0xff] }
  0x32   : > { %203 = vst [vmem:[%s8445_s23 + $0x84] sm:$0xff] %v202_v16  ;;  %205 = vst [vmem:[%s8445_s23 + $0x8c] sm:$0xff] %v204_v17  ;;  %v208_v19 = vld [vmem:[%s8440_s5 + $0x100] sm:$0xff]  ;;  %v210_v20 = vld [vmem:[%s8440_s5 + $0x108] sm:$0xff] }
  0x33   : > { %207 = vst [vmem:[%s8445_s23 + $0x94] sm:$0xff] %v206_v18  ;;  %209 = vst [vmem:[%s8445_s23 + $0x9c] sm:$0xff] %v208_v19  ;;  %v212_v21 = vld [vmem:[%s8440_s5 + $0x110] sm:$0xff]  ;;  %v214_v22 = vld [vmem:[%s8440_s5 + $0x118] sm:$0xff] }
  0x34   : > { %211 = vst [vmem:[%s8445_s23 + $0xa4] sm:$0xff] %v210_v20  ;;  %v216_v23 = vld [vmem:[%s8440_s5 + $0x120] sm:$0xff]  ;;  %213 = vst [vmem:[%s8445_s23 + $0xac] sm:$0xff] %v212_v21  ;;  %v218_v24 = vld [vmem:[%s8440_s5 + $0x190] sm:$0xff] }
  0x35   : > { %215 = vst [vmem:[%s8445_s23 + $0xb4] sm:$0xff] %v214_v22  ;;  %217 = vst [vmem:[%s8445_s23 + $0xbc] sm:$0xff] %v216_v23  ;;  %v220_v25 = vld [vmem:[%s8440_s5 + $0x198] sm:$0xff]  ;;  %v222_v26 = vld [vmem:[%s8440_s5 + $0x1a0] sm:$0xff] }
  0x36   : > { %219 = vst [vmem:[%s8445_s23 + $0xc8] sm:$0xff] %v218_v24  ;;  %221 = vst [vmem:[%s8445_s23 + $0xd0] sm:$0xff] %v220_v25  ;;  %v224_v27 = vld [vmem:[%s8440_s5 + $0x1a8] sm:$0xff]  ;;  %v226_v28 = vld [vmem:[%s8440_s5 + $0x1b0] sm:$0xff] }
  0x37   : > { %223 = vst [vmem:[%s8445_s23 + $0xd8] sm:$0xff] %v222_v26  ;;  %v228_v29 = vld [vmem:[%s8440_s5 + $0x1b8] sm:$0xff]  ;;  %225 = vst [vmem:[%s8445_s23 + $0xe0] sm:$0xff] %v224_v27  ;;  %v230_v30 = vld [vmem:[%s8440_s5 + $0x1c0] sm:$0xff] }
  0x38   : > { %227 = vst [vmem:[%s8445_s23 + $0xe8] sm:$0xff] %v226_v28  ;;  %229 = vst [vmem:[%s8445_s23 + $0xf0] sm:$0xff] %v228_v29  ;;  %v232_v31 = vld [vmem:[%s8440_s5 + $0x1c8] sm:$0xff]  ;;  %v234_v32 = vld [vmem:[%s8440_s5 + $0x1d0] sm:$0xff] }
  0x39   : > { %231 = vst [vmem:[%s8445_s23 + $0xf8] sm:$0xff] %v230_v30  ;;  %233 = vst [vmem:[%s8445_s23 + $0x100] sm:$0xff] %v232_v31  ;;  %v236_v33 = vld [vmem:[%s8440_s5 + $0x1d8] sm:$0xff]  ;;  %v238_v34 = vld [vmem:[%s8440_s5 + $0x1e0] sm:$0xff] }
  0x3a   : > { %235 = vst [vmem:[%s8445_s23 + $0x108] sm:$0xff] %v234_v32  ;;  %v240_v35 = vld [vmem:[%s8440_s5 + $0x1e8] sm:$0xff]  ;;  %237 = vst [vmem:[%s8445_s23 + $0x110] sm:$0xff] %v236_v33  ;;  %v242_v36 = vld [vmem:[%s8440_s5 + $0x258] sm:$0xff] }
  0x3b   : > { %239 = vst [vmem:[%s8445_s23 + $0x118] sm:$0xff] %v238_v34  ;;  %241 = vst [vmem:[%s8445_s23 + $0x120] sm:$0xff] %v240_v35  ;;  %v244_v37 = vld [vmem:[%s8440_s5 + $0x260] sm:$0xff]  ;;  %v246_v38 = vld [vmem:[%s8440_s5 + $0x268] sm:$0xff] }
  0x3c   : > { %243 = vst [vmem:[%s8445_s23 + $0x12c] sm:$0xff] %v242_v36  ;;  %245 = vst [vmem:[%s8445_s23 + $0x134] sm:$0xff] %v244_v37  ;;  %v248_v39 = vld [vmem:[%s8440_s5 + $0x270] sm:$0xff]  ;;  %v250_v40 = vld [vmem:[%s8440_s5 + $0x278] sm:$0xff] }
  0x3d   : > { %247 = vst [vmem:[%s8445_s23 + $0x13c] sm:$0xff] %v246_v38  ;;  %v252_v41 = vld [vmem:[%s8440_s5 + $0x280] sm:$0xff]  ;;  %249 = vst [vmem:[%s8445_s23 + $0x144] sm:$0xff] %v248_v39  ;;  %v254_v42 = vld [vmem:[%s8440_s5 + $0x288] sm:$0xff] }
  0x3e   : > { %251 = vst [vmem:[%s8445_s23 + $0x14c] sm:$0xff] %v250_v40  ;;  %253 = vst [vmem:[%s8445_s23 + $0x154] sm:$0xff] %v252_v41  ;;  %v256_v43 = vld [vmem:[%s8440_s5 + $0x290] sm:$0xff]  ;;  %v258_v44 = vld [vmem:[%s8440_s5 + $0x298] sm:$0xff] }
  0x3f   : > { %255 = vst [vmem:[%s8445_s23 + $0x15c] sm:$0xff] %v254_v42  ;;  %257 = vst [vmem:[%s8445_s23 + $0x164] sm:$0xff] %v256_v43  ;;  %v260_v45 = vld [vmem:[%s8440_s5 + $0x2a0] sm:$0xff]  ;;  %v262_v46 = vld [vmem:[%s8440_s5 + $0x2a8] sm:$0xff] }
  0x40   : > { %259 = vst [vmem:[%s8445_s23 + $0x16c] sm:$0xff] %v258_v44  ;;  %v264_v47 = vld [vmem:[%s8440_s5 + $0x2b0] sm:$0xff]  ;;  %261 = vst [vmem:[%s8445_s23 + $0x174] sm:$0xff] %v260_v45  ;;  %v266_v48 = vld [vmem:[%s8440_s5 + $0x320] sm:$0xff] }
  0x41   : > { %263 = vst [vmem:[%s8445_s23 + $0x17c] sm:$0xff] %v262_v46  ;;  %265 = vst [vmem:[%s8445_s23 + $0x184] sm:$0xff] %v264_v47  ;;  %v268_v49 = vld [vmem:[%s8440_s5 + $0x328] sm:$0xff]  ;;  %v270_v50 = vld [vmem:[%s8440_s5 + $0x330] sm:$0xff] }
  0x42   : > { %267 = vst [vmem:[%s8445_s23 + $0x190] sm:$0xff] %v266_v48  ;;  %269 = vst [vmem:[%s8445_s23 + $0x198] sm:$0xff] %v268_v49  ;;  %v272_v51 = vld [vmem:[%s8440_s5 + $0x338] sm:$0xff]  ;;  %v274_v52 = vld [vmem:[%s8440_s5 + $0x340] sm:$0xff] }
  0x43   : > { %271 = vst [vmem:[%s8445_s23 + $0x1a0] sm:$0xff] %v270_v50  ;;  %v276_v53 = vld [vmem:[%s8440_s5 + $0x348] sm:$0xff]  ;;  %273 = vst [vmem:[%s8445_s23 + $0x1a8] sm:$0xff] %v272_v51  ;;  %v278_v54 = vld [vmem:[%s8440_s5 + $0x350] sm:$0xff] }
  0x44   : > { %275 = vst [vmem:[%s8445_s23 + $0x1b0] sm:$0xff] %v274_v52  ;;  %277 = vst [vmem:[%s8445_s23 + $0x1b8] sm:$0xff] %v276_v53  ;;  %v280_v55 = vld [vmem:[%s8440_s5 + $0x358] sm:$0xff]  ;;  %v282_v56 = vld [vmem:[%s8440_s5 + $0x360] sm:$0xff] }
  0x45   : > { %279 = vst [vmem:[%s8445_s23 + $0x1c0] sm:$0xff] %v278_v54  ;;  %281 = vst [vmem:[%s8445_s23 + $0x1c8] sm:$0xff] %v280_v55  ;;  %v284_v57 = vld [vmem:[%s8440_s5 + $0x368] sm:$0xff]  ;;  %v286_v58 = vld [vmem:[%s8440_s5 + $0x370] sm:$0xff] }
  0x46   : > { %283 = vst [vmem:[%s8445_s23 + $0x1d0] sm:$0xff] %v282_v56  ;;  %v288_v59 = vld [vmem:[%s8440_s5 + $0x378] sm:$0xff]  ;;  %285 = vst [vmem:[%s8445_s23 + $0x1d8] sm:$0xff] %v284_v57  ;;  %v290_v60 = vld [vmem:[%s8440_s5 + $0x3e8] sm:$0xff] }
  0x47   : > { %287 = vst [vmem:[%s8445_s23 + $0x1e0] sm:$0xff] %v286_v58  ;;  %289 = vst [vmem:[%s8445_s23 + $0x1e8] sm:$0xff] %v288_v59  ;;  %v292_v61 = vld [vmem:[%s8440_s5 + $0x3f0] sm:$0xff]  ;;  %v294_v62 = vld [vmem:[%s8440_s5 + $0x3f8] sm:$0xff] }
  0x48   : > { %291 = vst [vmem:[%s8445_s23 + $0x1f4] sm:$0xff] %v290_v60  ;;  %293 = vst [vmem:[%s8445_s23 + $0x1fc] sm:$0xff] %v292_v61  ;;  %v296_v63 = vld [vmem:[%s8440_s5 + $0x400] sm:$0xff]  ;;  %v298_v0 = vld [vmem:[%s8440_s5 + $0x408] sm:$0xff] }
  0x49   : > { %295 = vst [vmem:[%s8445_s23 + $0x204] sm:$0xff] %v294_v62  ;;  %v300_v1 = vld [vmem:[%s8440_s5 + $0x410] sm:$0xff]  ;;  %297 = vst [vmem:[%s8445_s23 + $0x20c] sm:$0xff] %v296_v63  ;;  %v302_v2 = vld [vmem:[%s8440_s5 + $0x418] sm:$0xff] }
  0x4a   : > { %299 = vst [vmem:[%s8445_s23 + $0x214] sm:$0xff] %v298_v0  ;;  %301 = vst [vmem:[%s8445_s23 + $0x21c] sm:$0xff] %v300_v1  ;;  %v304_v3 = vld [vmem:[%s8440_s5 + $0x420] sm:$0xff]  ;;  %v306_v4 = vld [vmem:[%s8440_s5 + $0x428] sm:$0xff] }
  0x4b   : > { %303 = vst [vmem:[%s8445_s23 + $0x224] sm:$0xff] %v302_v2  ;;  %305 = vst [vmem:[%s8445_s23 + $0x22c] sm:$0xff] %v304_v3  ;;  %v308_v5 = vld [vmem:[%s8440_s5 + $0x430] sm:$0xff]  ;;  %v310_v6 = vld [vmem:[%s8440_s5 + $0x438] sm:$0xff] }
  0x4c   : > { %307 = vst [vmem:[%s8445_s23 + $0x234] sm:$0xff] %v306_v4  ;;  %v312_v7 = vld [vmem:[%s8440_s5 + $0x440] sm:$0xff]  ;;  %309 = vst [vmem:[%s8445_s23 + $0x23c] sm:$0xff] %v308_v5  ;;  %v314_v8 = vld [vmem:[%s8440_s5 + $0x4b0] sm:$0xff] }
  0x4d   : > { %311 = vst [vmem:[%s8445_s23 + $0x244] sm:$0xff] %v310_v6  ;;  %313 = vst [vmem:[%s8445_s23 + $0x24c] sm:$0xff] %v312_v7  ;;  %v316_v9 = vld [vmem:[%s8440_s5 + $0x4b8] sm:$0xff]  ;;  %v318_v10 = vld [vmem:[%s8440_s5 + $0x4c0] sm:$0xff] }
  0x4e   : > { %315 = vst [vmem:[%s8445_s23 + $0x258] sm:$0xff] %v314_v8  ;;  %317 = vst [vmem:[%s8445_s23 + $0x260] sm:$0xff] %v316_v9  ;;  %v320_v11 = vld [vmem:[%s8440_s5 + $0x4c8] sm:$0xff]  ;;  %v322_v12 = vld [vmem:[%s8440_s5 + $0x4d0] sm:$0xff] }
  0x4f   : > { %319 = vst [vmem:[%s8445_s23 + $0x268] sm:$0xff] %v318_v10  ;;  %v324_v13 = vld [vmem:[%s8440_s5 + $0x4d8] sm:$0xff]  ;;  %321 = vst [vmem:[%s8445_s23 + $0x270] sm:$0xff] %v320_v11  ;;  %v326_v14 = vld [vmem:[%s8440_s5 + $0x4e0] sm:$0xff] }
  0x50   : > { %323 = vst [vmem:[%s8445_s23 + $0x278] sm:$0xff] %v322_v12  ;;  %325 = vst [vmem:[%s8445_s23 + $0x280] sm:$0xff] %v324_v13  ;;  %v328_v15 = vld [vmem:[%s8440_s5 + $0x4e8] sm:$0xff]  ;;  %v330_v16 = vld [vmem:[%s8440_s5 + $0x4f0] sm:$0xff] }
  0x51   : > { %327 = vst [vmem:[%s8445_s23 + $0x288] sm:$0xff] %v326_v14  ;;  %329 = vst [vmem:[%s8445_s23 + $0x290] sm:$0xff] %v328_v15  ;;  %v332_v17 = vld [vmem:[%s8440_s5 + $0x4f8] sm:$0xff]  ;;  %v334_v18 = vld [vmem:[%s8440_s5 + $0x500] sm:$0xff] }
  0x52   : > { %331 = vst [vmem:[%s8445_s23 + $0x298] sm:$0xff] %v330_v16  ;;  %v336_v19 = vld [vmem:[%s8440_s5 + $0x508] sm:$0xff]  ;;  %333 = vst [vmem:[%s8445_s23 + $0x2a0] sm:$0xff] %v332_v17  ;;  %v6683_v20 = vld [vmem:[%s8440_s5 + $0x60] sm:$0xf] }
  0x53   : > { %335 = vst [vmem:[%s8445_s23 + $0x2a8] sm:$0xff] %v334_v18  ;;  %337 = vst [vmem:[%s8445_s23 + $0x2b0] sm:$0xff] %v336_v19  ;;  %v6685_v21 = vld [vmem:[%s8440_s5 + $0x128] sm:$0xf]  ;;  %v6687_v22 = vld [vmem:[%s8440_s5 + $0x1f0] sm:$0xf] }
  0x54   : > { %6684 = vst [vmem:[%s8445_s23 + $0x60] sm:$0xf] %v6683_v20  ;;  %6686 = vst [vmem:[%s8445_s23 + $0xc4] sm:$0xf] %v6685_v21  ;;  %v6689_v23 = vld [vmem:[%s8440_s5 + $0x2b8] sm:$0xf] }
  0x55   : > { %6688 = vst [vmem:[%s8445_s23 + $0x128] sm:$0xf] %v6687_v22  ;;  %v6691_v24 = vld [vmem:[%s8440_s5 + $0x380] sm:$0xf]  ;;  %v6693_v25 = vld [vmem:[%s8440_s5 + $0x448] sm:$0xf] }
  0x56   : > { %6690 = vst [vmem:[%s8445_s23 + $0x18c] sm:$0xf] %v6689_v23  ;;  %6692 = vst [vmem:[%s8445_s23 + $0x1f0] sm:$0xf] %v6691_v24  ;;  %v6695_v26 = vld [vmem:[%s8440_s5 + $0x510] sm:$0xf] }
  0x57   : > { %6694 = vst [vmem:[%s8445_s23 + $0x254] sm:$0xf] %v6693_v25  ;;  %6696 = vst [vmem:[%s8445_s23 + $0x2b8] sm:$0xf] %v6695_v26 }
  0x58 PF: > { %364 = sbr.rel (!%p8415_p9) target bundleno = 298 (0x12a), region = 46  ;;  %s366_s28 = sand.u32 (%p8415_p9), 1, %s8282_s15  }
  0x59   : > { %s7386_s7 = smul.u32 (%p8415_p9), 3200, %s366_s28  ;;  %s6697_s11 = sshll.u32 (%p8415_p9), %s8306_s21, 1 }
  0x5a   : > { %s7216_s26 = smul.u32 (%p8415_p9), 1600, %s8302_s20  ;;  %s10182_s1 = sld [smem:[#allocation8_spill]] (%p8415_p9) }
  0x5b   : > { %s8639_s6 = scalar_lea.vmem (%p8415_p9), [#allocation4], %s7386_s7 }
  0x5c   : > { %s372_s27 = sadd.s32 (%p8415_p9), %s7216_s26, %s6697_s11 }
  0x5d   : > { %s6699_s29 = sshll.u32 (%p8415_p9), %s372_s27, 2 }
  0x60   : > { %s8634_s25 = scalar_lea.vmem %s10182_s1, %s6699_s29 }
  0x61   : > { %v1200_v27 = vld [vmem:[%s8634_s25] sm:$0xff]  ;;  %v1202_v28 = vld [vmem:[%s8634_s25 + $0x10] sm:$0xff] }
  0x62   : > { %v1204_v29 = vld [vmem:[%s8634_s25 + $0x20] sm:$0xff]  ;;  %1201 = vst [vmem:[%s8639_s6] sm:$0xff] %v1200_v27  ;;  %1203 = vst [vmem:[%s8639_s6 + $0x8] sm:$0xff] %v1202_v28  ;;  %v1206_v30 = vld [vmem:[%s8634_s25 + $0x30] sm:$0xff] }
  0x63   : > { %1205 = vst [vmem:[%s8639_s6 + $0x10] sm:$0xff] %v1204_v29  ;;  %v1208_v31 = vld [vmem:[%s8634_s25 + $0x40] sm:$0xff]  ;;  %v1210_v32 = vld [vmem:[%s8634_s25 + $0x50] sm:$0xff]  ;;  %1207 = vst [vmem:[%s8639_s6 + $0x18] sm:$0xff] %v1206_v30 }
  0x64   : > { %1209 = vst [vmem:[%s8639_s6 + $0x20] sm:$0xff] %v1208_v31  ;;  %1211 = vst [vmem:[%s8639_s6 + $0x28] sm:$0xff] %v1210_v32  ;;  %v1212_v33 = vld [vmem:[%s8634_s25 + $0x60] sm:$0xff]  ;;  %v1214_v34 = vld [vmem:[%s8634_s25 + $0x70] sm:$0xff] }
  0x65   : > { %v1216_v35 = vld [vmem:[%s8634_s25 + $0x80] sm:$0xff]  ;;  %1213 = vst [vmem:[%s8639_s6 + $0x30] sm:$0xff] %v1212_v33  ;;  %1215 = vst [vmem:[%s8639_s6 + $0x38] sm:$0xff] %v1214_v34  ;;  %v1218_v36 = vld [vmem:[%s8634_s25 + $0x90] sm:$0xff] }
  0x66   : > { %1217 = vst [vmem:[%s8639_s6 + $0x40] sm:$0xff] %v1216_v35  ;;  %v1220_v37 = vld [vmem:[%s8634_s25 + $0xa0] sm:$0xff]  ;;  %v1222_v38 = vld [vmem:[%s8634_s25 + $0xb0] sm:$0xff]  ;;  %1219 = vst [vmem:[%s8639_s6 + $0x48] sm:$0xff] %v1218_v36 }
  0x67   : > { %1221 = vst [vmem:[%s8639_s6 + $0x50] sm:$0xff] %v1220_v37  ;;  %1223 = vst [vmem:[%s8639_s6 + $0x58] sm:$0xff] %v1222_v38  ;;  %v1224_v39 = vld [vmem:[%s8634_s25 + $0xc0] sm:$0xff]  ;;  %v1226_v40 = vld [vmem:[%s8634_s25 + $0xd0] sm:$0xff] }
  0x68   : > { %v1228_v41 = vld [vmem:[%s8634_s25 + $0xe0] sm:$0xff]  ;;  %1225 = vst [vmem:[%s8639_s6 + $0x60] sm:$0xff] %v1224_v39  ;;  %1227 = vst [vmem:[%s8639_s6 + $0x68] sm:$0xff] %v1226_v40  ;;  %v1230_v42 = vld [vmem:[%s8634_s25 + $0xf0] sm:$0xff] }
  0x69   : > { %1229 = vst [vmem:[%s8639_s6 + $0x70] sm:$0xff] %v1228_v41  ;;  %v1232_v43 = vld [vmem:[%s8634_s25 + $0x100] sm:$0xff]  ;;  %v1234_v44 = vld [vmem:[%s8634_s25 + $0x110] sm:$0xff]  ;;  %1231 = vst [vmem:[%s8639_s6 + $0x78] sm:$0xff] %v1230_v42 }
  0x6a   : > { %1233 = vst [vmem:[%s8639_s6 + $0x80] sm:$0xff] %v1232_v43  ;;  %1235 = vst [vmem:[%s8639_s6 + $0x88] sm:$0xff] %v1234_v44  ;;  %v1236_v45 = vld [vmem:[%s8634_s25 + $0x120] sm:$0xff]  ;;  %v1238_v46 = vld [vmem:[%s8634_s25 + $0x130] sm:$0xff] }
  0x6b   : > { %v1240_v47 = vld [vmem:[%s8634_s25 + $0x140] sm:$0xff]  ;;  %1237 = vst [vmem:[%s8639_s6 + $0x90] sm:$0xff] %v1236_v45  ;;  %1239 = vst [vmem:[%s8639_s6 + $0x98] sm:$0xff] %v1238_v46  ;;  %v1242_v48 = vld [vmem:[%s8634_s25 + $0x150] sm:$0xff] }
  0x6c   : > { %1241 = vst [vmem:[%s8639_s6 + $0xa0] sm:$0xff] %v1240_v47  ;;  %v1244_v49 = vld [vmem:[%s8634_s25 + $0x160] sm:$0xff]  ;;  %v1246_v50 = vld [vmem:[%s8634_s25 + $0x170] sm:$0xff]  ;;  %1243 = vst [vmem:[%s8639_s6 + $0xa8] sm:$0xff] %v1242_v48 }
  0x6d   : > { %1245 = vst [vmem:[%s8639_s6 + $0xb0] sm:$0xff] %v1244_v49  ;;  %1247 = vst [vmem:[%s8639_s6 + $0xb8] sm:$0xff] %v1246_v50  ;;  %v1248_v51 = vld [vmem:[%s8634_s25 + $0x180] sm:$0xff]  ;;  %v1250_v52 = vld [vmem:[%s8634_s25 + $0x190] sm:$0xff] }
  0x6e   : > { %v1252_v53 = vld [vmem:[%s8634_s25 + $0x1a0] sm:$0xff]  ;;  %1249 = vst [vmem:[%s8639_s6 + $0xc0] sm:$0xff] %v1248_v51  ;;  %1251 = vst [vmem:[%s8639_s6 + $0xc8] sm:$0xff] %v1250_v52  ;;  %v1254_v54 = vld [vmem:[%s8634_s25 + $0x1b0] sm:$0xff] }
  0x6f   : > { %1253 = vst [vmem:[%s8639_s6 + $0xd0] sm:$0xff] %v1252_v53  ;;  %v1256_v55 = vld [vmem:[%s8634_s25 + $0x1c0] sm:$0xff]  ;;  %v1258_v56 = vld [vmem:[%s8634_s25 + $0x1d0] sm:$0xff]  ;;  %1255 = vst [vmem:[%s8639_s6 + $0xd8] sm:$0xff] %v1254_v54 }
  0x70   : > { %1257 = vst [vmem:[%s8639_s6 + $0xe0] sm:$0xff] %v1256_v55  ;;  %1259 = vst [vmem:[%s8639_s6 + $0xe8] sm:$0xff] %v1258_v56  ;;  %v1260_v57 = vld [vmem:[%s8634_s25 + $0x1e0] sm:$0xff]  ;;  %v1262_v58 = vld [vmem:[%s8634_s25 + $0x1f0] sm:$0xff] }
  0x71   : > { %v1264_v59 = vld [vmem:[%s8634_s25 + $0x200] sm:$0xff]  ;;  %1261 = vst [vmem:[%s8639_s6 + $0xf0] sm:$0xff] %v1260_v57  ;;  %1263 = vst [vmem:[%s8639_s6 + $0xf8] sm:$0xff] %v1262_v58  ;;  %v1266_v60 = vld [vmem:[%s8634_s25 + $0x210] sm:$0xff] }
  0x72   : > { %1265 = vst [vmem:[%s8639_s6 + $0x100] sm:$0xff] %v1264_v59  ;;  %v1268_v61 = vld [vmem:[%s8634_s25 + $0x220] sm:$0xff]  ;;  %v1270_v62 = vld [vmem:[%s8634_s25 + $0x230] sm:$0xff]  ;;  %1267 = vst [vmem:[%s8639_s6 + $0x108] sm:$0xff] %v1266_v60 }
  0x73   : > { %1269 = vst [vmem:[%s8639_s6 + $0x110] sm:$0xff] %v1268_v61  ;;  %1271 = vst [vmem:[%s8639_s6 + $0x118] sm:$0xff] %v1270_v62  ;;  %v1272_v63 = vld [vmem:[%s8634_s25 + $0x240] sm:$0xff]  ;;  %v1274_v0 = vld [vmem:[%s8634_s25 + $0x250] sm:$0xff] }
  0x74   : > { %v1276_v1 = vld [vmem:[%s8634_s25 + $0x260] sm:$0xff]  ;;  %1273 = vst [vmem:[%s8639_s6 + $0x120] sm:$0xff] %v1272_v63  ;;  %1275 = vst [vmem:[%s8639_s6 + $0x128] sm:$0xff] %v1274_v0  ;;  %v1278_v2 = vld [vmem:[%s8634_s25 + $0x270] sm:$0xff] }
  0x75   : > { %1277 = vst [vmem:[%s8639_s6 + $0x130] sm:$0xff] %v1276_v1  ;;  %v1280_v3 = vld [vmem:[%s8634_s25 + $0x280] sm:$0xff]  ;;  %v1282_v4 = vld [vmem:[%s8634_s25 + $0x290] sm:$0xff]  ;;  %1279 = vst [vmem:[%s8639_s6 + $0x138] sm:$0xff] %v1278_v2 }
  0x76   : > { %1281 = vst [vmem:[%s8639_s6 + $0x140] sm:$0xff] %v1280_v3  ;;  %1283 = vst [vmem:[%s8639_s6 + $0x148] sm:$0xff] %v1282_v4  ;;  %v1284_v5 = vld [vmem:[%s8634_s25 + $0x2a0] sm:$0xff]  ;;  %v1286_v6 = vld [vmem:[%s8634_s25 + $0x2b0] sm:$0xff] }
  0x77   : > { %v1288_v7 = vld [vmem:[%s8634_s25 + $0x2c0] sm:$0xff]  ;;  %1285 = vst [vmem:[%s8639_s6 + $0x150] sm:$0xff] %v1284_v5  ;;  %1287 = vst [vmem:[%s8639_s6 + $0x158] sm:$0xff] %v1286_v6  ;;  %v1290_v8 = vld [vmem:[%s8634_s25 + $0x2d0] sm:$0xff] }
  0x78   : > { %1289 = vst [vmem:[%s8639_s6 + $0x160] sm:$0xff] %v1288_v7  ;;  %v1292_v9 = vld [vmem:[%s8634_s25 + $0x2e0] sm:$0xff]  ;;  %v1294_v10 = vld [vmem:[%s8634_s25 + $0x2f0] sm:$0xff]  ;;  %1291 = vst [vmem:[%s8639_s6 + $0x168] sm:$0xff] %v1290_v8 }
  0x79   : > { %1293 = vst [vmem:[%s8639_s6 + $0x170] sm:$0xff] %v1292_v9  ;;  %1295 = vst [vmem:[%s8639_s6 + $0x178] sm:$0xff] %v1294_v10  ;;  %v1296_v11 = vld [vmem:[%s8634_s25 + $0x300] sm:$0xff]  ;;  %v1298_v12 = vld [vmem:[%s8634_s25 + $0x310] sm:$0xff] }
  0x7a   : > { %v1300_v13 = vld [vmem:[%s8634_s25 + $0x320] sm:$0xff]  ;;  %1297 = vst [vmem:[%s8639_s6 + $0x180] sm:$0xff] %v1296_v11  ;;  %1299 = vst [vmem:[%s8639_s6 + $0x188] sm:$0xff] %v1298_v12  ;;  %v1302_v14 = vld [vmem:[%s8634_s25 + $0x330] sm:$0xff] }
  0x7b   : > { %1301 = vst [vmem:[%s8639_s6 + $0x190] sm:$0xff] %v1300_v13  ;;  %v1304_v15 = vld [vmem:[%s8634_s25 + $0x340] sm:$0xff]  ;;  %v1306_v16 = vld [vmem:[%s8634_s25 + $0x350] sm:$0xff]  ;;  %1303 = vst [vmem:[%s8639_s6 + $0x198] sm:$0xff] %v1302_v14 }
  0x7c   : > { %1305 = vst [vmem:[%s8639_s6 + $0x1a0] sm:$0xff] %v1304_v15  ;;  %1307 = vst [vmem:[%s8639_s6 + $0x1a8] sm:$0xff] %v1306_v16  ;;  %v1308_v17 = vld [vmem:[%s8634_s25 + $0x360] sm:$0xff]  ;;  %v1310_v18 = vld [vmem:[%s8634_s25 + $0x370] sm:$0xff] }
  0x7d   : > { %v1312_v19 = vld [vmem:[%s8634_s25 + $0x380] sm:$0xff]  ;;  %1309 = vst [vmem:[%s8639_s6 + $0x1b0] sm:$0xff] %v1308_v17  ;;  %1311 = vst [vmem:[%s8639_s6 + $0x1b8] sm:$0xff] %v1310_v18  ;;  %v1314_v20 = vld [vmem:[%s8634_s25 + $0x390] sm:$0xff] }
  0x7e   : > { %1313 = vst [vmem:[%s8639_s6 + $0x1c0] sm:$0xff] %v1312_v19  ;;  %v1316_v21 = vld [vmem:[%s8634_s25 + $0x3a0] sm:$0xff]  ;;  %v1318_v22 = vld [vmem:[%s8634_s25 + $0x3b0] sm:$0xff]  ;;  %1315 = vst [vmem:[%s8639_s6 + $0x1c8] sm:$0xff] %v1314_v20 }
  0x7f   : > { %1317 = vst [vmem:[%s8639_s6 + $0x1d0] sm:$0xff] %v1316_v21  ;;  %1319 = vst [vmem:[%s8639_s6 + $0x1d8] sm:$0xff] %v1318_v22  ;;  %v1320_v23 = vld [vmem:[%s8634_s25 + $0x3c0] sm:$0xff]  ;;  %v1322_v24 = vld [vmem:[%s8634_s25 + $0x3d0] sm:$0xff] }
  0x80   : > { %v1324_v25 = vld [vmem:[%s8634_s25 + $0x3e0] sm:$0xff]  ;;  %1321 = vst [vmem:[%s8639_s6 + $0x1e0] sm:$0xff] %v1320_v23  ;;  %1323 = vst [vmem:[%s8639_s6 + $0x1e8] sm:$0xff] %v1322_v24  ;;  %v1326_v26 = vld [vmem:[%s8634_s25 + $0x3f0] sm:$0xff] }
  0x81   : > { %1325 = vst [vmem:[%s8639_s6 + $0x1f0] sm:$0xff] %v1324_v25  ;;  %v1328_v27 = vld [vmem:[%s8634_s25 + $0x400] sm:$0xff]  ;;  %v1330_v28 = vld [vmem:[%s8634_s25 + $0x410] sm:$0xff]  ;;  %1327 = vst [vmem:[%s8639_s6 + $0x1f8] sm:$0xff] %v1326_v26 }
  0x82   : > { %1329 = vst [vmem:[%s8639_s6 + $0x200] sm:$0xff] %v1328_v27  ;;  %1331 = vst [vmem:[%s8639_s6 + $0x208] sm:$0xff] %v1330_v28  ;;  %v1332_v29 = vld [vmem:[%s8634_s25 + $0x420] sm:$0xff]  ;;  %v1334_v30 = vld [vmem:[%s8634_s25 + $0x430] sm:$0xff] }
  0x83   : > { %v1336_v31 = vld [vmem:[%s8634_s25 + $0x440] sm:$0xff]  ;;  %1333 = vst [vmem:[%s8639_s6 + $0x210] sm:$0xff] %v1332_v29  ;;  %1335 = vst [vmem:[%s8639_s6 + $0x218] sm:$0xff] %v1334_v30  ;;  %v1338_v32 = vld [vmem:[%s8634_s25 + $0x450] sm:$0xff] }
  0x84   : > { %1337 = vst [vmem:[%s8639_s6 + $0x220] sm:$0xff] %v1336_v31  ;;  %v1340_v33 = vld [vmem:[%s8634_s25 + $0x460] sm:$0xff]  ;;  %v1342_v34 = vld [vmem:[%s8634_s25 + $0x470] sm:$0xff]  ;;  %1339 = vst [vmem:[%s8639_s6 + $0x228] sm:$0xff] %v1338_v32 }
  0x85   : > { %1341 = vst [vmem:[%s8639_s6 + $0x230] sm:$0xff] %v1340_v33  ;;  %1343 = vst [vmem:[%s8639_s6 + $0x238] sm:$0xff] %v1342_v34  ;;  %v1344_v35 = vld [vmem:[%s8634_s25 + $0x480] sm:$0xff]  ;;  %v1346_v36 = vld [vmem:[%s8634_s25 + $0x490] sm:$0xff] }
  0x86   : > { %v1348_v37 = vld [vmem:[%s8634_s25 + $0x4a0] sm:$0xff]  ;;  %1345 = vst [vmem:[%s8639_s6 + $0x240] sm:$0xff] %v1344_v35  ;;  %1347 = vst [vmem:[%s8639_s6 + $0x248] sm:$0xff] %v1346_v36  ;;  %v1350_v38 = vld [vmem:[%s8634_s25 + $0x4b0] sm:$0xff] }
  0x87   : > { %1349 = vst [vmem:[%s8639_s6 + $0x250] sm:$0xff] %v1348_v37  ;;  %v1352_v39 = vld [vmem:[%s8634_s25 + $0x4c0] sm:$0xff]  ;;  %v1354_v40 = vld [vmem:[%s8634_s25 + $0x4d0] sm:$0xff]  ;;  %1351 = vst [vmem:[%s8639_s6 + $0x258] sm:$0xff] %v1350_v38 }
  0x88   : > { %1353 = vst [vmem:[%s8639_s6 + $0x260] sm:$0xff] %v1352_v39  ;;  %1355 = vst [vmem:[%s8639_s6 + $0x268] sm:$0xff] %v1354_v40  ;;  %v1356_v41 = vld [vmem:[%s8634_s25 + $0x4e0] sm:$0xff]  ;;  %v1358_v42 = vld [vmem:[%s8634_s25 + $0x4f0] sm:$0xff] }
  0x89   : > { %v1360_v43 = vld [vmem:[%s8634_s25 + $0x500] sm:$0xff]  ;;  %1357 = vst [vmem:[%s8639_s6 + $0x270] sm:$0xff] %v1356_v41  ;;  %1359 = vst [vmem:[%s8639_s6 + $0x278] sm:$0xff] %v1358_v42  ;;  %v1362_v44 = vld [vmem:[%s8634_s25 + $0x510] sm:$0xff] }
  0x8a   : > { %1361 = vst [vmem:[%s8639_s6 + $0x280] sm:$0xff] %v1360_v43  ;;  %v1364_v45 = vld [vmem:[%s8634_s25 + $0x520] sm:$0xff]  ;;  %v1366_v46 = vld [vmem:[%s8634_s25 + $0x530] sm:$0xff]  ;;  %1363 = vst [vmem:[%s8639_s6 + $0x288] sm:$0xff] %v1362_v44 }
  0x8b   : > { %1365 = vst [vmem:[%s8639_s6 + $0x290] sm:$0xff] %v1364_v45  ;;  %1367 = vst [vmem:[%s8639_s6 + $0x298] sm:$0xff] %v1366_v46  ;;  %v1368_v47 = vld [vmem:[%s8634_s25 + $0x540] sm:$0xff]  ;;  %v1370_v48 = vld [vmem:[%s8634_s25 + $0x550] sm:$0xff] }
  0x8c   : > { %v1372_v49 = vld [vmem:[%s8634_s25 + $0x560] sm:$0xff]  ;;  %1369 = vst [vmem:[%s8639_s6 + $0x2a0] sm:$0xff] %v1368_v47  ;;  %1371 = vst [vmem:[%s8639_s6 + $0x2a8] sm:$0xff] %v1370_v48  ;;  %v1374_v50 = vld [vmem:[%s8634_s25 + $0x570] sm:$0xff] }
  0x8d   : > { %1373 = vst [vmem:[%s8639_s6 + $0x2b0] sm:$0xff] %v1372_v49  ;;  %v1376_v51 = vld [vmem:[%s8634_s25 + $0x580] sm:$0xff]  ;;  %v1378_v52 = vld [vmem:[%s8634_s25 + $0x590] sm:$0xff]  ;;  %1375 = vst [vmem:[%s8639_s6 + $0x2b8] sm:$0xff] %v1374_v50 }
  0x8e   : > { %1377 = vst [vmem:[%s8639_s6 + $0x2c0] sm:$0xff] %v1376_v51  ;;  %1379 = vst [vmem:[%s8639_s6 + $0x2c8] sm:$0xff] %v1378_v52  ;;  %v1380_v53 = vld [vmem:[%s8634_s25 + $0x5a0] sm:$0xff]  ;;  %v1382_v54 = vld [vmem:[%s8634_s25 + $0x5b0] sm:$0xff] }
  0x8f   : > { %v1384_v55 = vld [vmem:[%s8634_s25 + $0x5c0] sm:$0xff]  ;;  %1381 = vst [vmem:[%s8639_s6 + $0x2d0] sm:$0xff] %v1380_v53  ;;  %1383 = vst [vmem:[%s8639_s6 + $0x2d8] sm:$0xff] %v1382_v54  ;;  %v1386_v56 = vld [vmem:[%s8634_s25 + $0x5d0] sm:$0xff] }
  0x90   : > { %1385 = vst [vmem:[%s8639_s6 + $0x2e0] sm:$0xff] %v1384_v55  ;;  %v1388_v57 = vld [vmem:[%s8634_s25 + $0x5e0] sm:$0xff]  ;;  %v1390_v58 = vld [vmem:[%s8634_s25 + $0x5f0] sm:$0xff]  ;;  %1387 = vst [vmem:[%s8639_s6 + $0x2e8] sm:$0xff] %v1386_v56 }
  0x91   : > { %1389 = vst [vmem:[%s8639_s6 + $0x2f0] sm:$0xff] %v1388_v57  ;;  %1391 = vst [vmem:[%s8639_s6 + $0x2f8] sm:$0xff] %v1390_v58  ;;  %v1392_v59 = vld [vmem:[%s8634_s25 + $0x600] sm:$0xff]  ;;  %v1394_v60 = vld [vmem:[%s8634_s25 + $0x610] sm:$0xff] }
  0x92   : > { %v1396_v61 = vld [vmem:[%s8634_s25 + $0x620] sm:$0xff]  ;;  %1393 = vst [vmem:[%s8639_s6 + $0x300] sm:$0xff] %v1392_v59  ;;  %1395 = vst [vmem:[%s8639_s6 + $0x308] sm:$0xff] %v1394_v60  ;;  %v1398_v62 = vld [vmem:[%s8634_s25 + $0x630] sm:$0xff] }
  0x93   : > { %1397 = vst [vmem:[%s8639_s6 + $0x310] sm:$0xff] %v1396_v61  ;;  %v1400_v63 = vld [vmem:[%s8634_s25 + $0x640] sm:$0xff]  ;;  %v1402_v0 = vld [vmem:[%s8634_s25 + $0x650] sm:$0xff]  ;;  %1399 = vst [vmem:[%s8639_s6 + $0x318] sm:$0xff] %v1398_v62 }
  0x94   : > { %1401 = vst [vmem:[%s8639_s6 + $0x320] sm:$0xff] %v1400_v63  ;;  %1403 = vst [vmem:[%s8639_s6 + $0x328] sm:$0xff] %v1402_v0  ;;  %v1404_v1 = vld [vmem:[%s8634_s25 + $0x660] sm:$0xff]  ;;  %v1406_v2 = vld [vmem:[%s8634_s25 + $0x670] sm:$0xff] }
  0x95   : > { %v1408_v3 = vld [vmem:[%s8634_s25 + $0x680] sm:$0xff]  ;;  %1405 = vst [vmem:[%s8639_s6 + $0x330] sm:$0xff] %v1404_v1  ;;  %1407 = vst [vmem:[%s8639_s6 + $0x338] sm:$0xff] %v1406_v2  ;;  %v1410_v4 = vld [vmem:[%s8634_s25 + $0x690] sm:$0xff] }
  0x96   : > { %1409 = vst [vmem:[%s8639_s6 + $0x340] sm:$0xff] %v1408_v3  ;;  %v1412_v5 = vld [vmem:[%s8634_s25 + $0x6a0] sm:$0xff]  ;;  %v1414_v6 = vld [vmem:[%s8634_s25 + $0x6b0] sm:$0xff]  ;;  %1411 = vst [vmem:[%s8639_s6 + $0x348] sm:$0xff] %v1410_v4 }
  0x97   : > { %1413 = vst [vmem:[%s8639_s6 + $0x350] sm:$0xff] %v1412_v5  ;;  %1415 = vst [vmem:[%s8639_s6 + $0x358] sm:$0xff] %v1414_v6  ;;  %v1416_v7 = vld [vmem:[%s8634_s25 + $0x6c0] sm:$0xff]  ;;  %v1418_v8 = vld [vmem:[%s8634_s25 + $0x6d0] sm:$0xff] }
  0x98   : > { %v1420_v9 = vld [vmem:[%s8634_s25 + $0x6e0] sm:$0xff]  ;;  %1417 = vst [vmem:[%s8639_s6 + $0x360] sm:$0xff] %v1416_v7  ;;  %1419 = vst [vmem:[%s8639_s6 + $0x368] sm:$0xff] %v1418_v8  ;;  %v1422_v10 = vld [vmem:[%s8634_s25 + $0x6f0] sm:$0xff] }
  0x99   : > { %1421 = vst [vmem:[%s8639_s6 + $0x370] sm:$0xff] %v1420_v9  ;;  %v1424_v11 = vld [vmem:[%s8634_s25 + $0x700] sm:$0xff]  ;;  %v1426_v12 = vld [vmem:[%s8634_s25 + $0x710] sm:$0xff]  ;;  %1423 = vst [vmem:[%s8639_s6 + $0x378] sm:$0xff] %v1422_v10 }
  0x9a   : > { %1425 = vst [vmem:[%s8639_s6 + $0x380] sm:$0xff] %v1424_v11  ;;  %1427 = vst [vmem:[%s8639_s6 + $0x388] sm:$0xff] %v1426_v12  ;;  %v1428_v13 = vld [vmem:[%s8634_s25 + $0x720] sm:$0xff]  ;;  %v1430_v14 = vld [vmem:[%s8634_s25 + $0x730] sm:$0xff] }
  0x9b   : > { %v1432_v15 = vld [vmem:[%s8634_s25 + $0x740] sm:$0xff]  ;;  %1429 = vst [vmem:[%s8639_s6 + $0x390] sm:$0xff] %v1428_v13  ;;  %1431 = vst [vmem:[%s8639_s6 + $0x398] sm:$0xff] %v1430_v14  ;;  %v1434_v16 = vld [vmem:[%s8634_s25 + $0x750] sm:$0xff] }
  0x9c   : > { %1433 = vst [vmem:[%s8639_s6 + $0x3a0] sm:$0xff] %v1432_v15  ;;  %v1436_v17 = vld [vmem:[%s8634_s25 + $0x760] sm:$0xff]  ;;  %v1438_v18 = vld [vmem:[%s8634_s25 + $0x770] sm:$0xff]  ;;  %1435 = vst [vmem:[%s8639_s6 + $0x3a8] sm:$0xff] %v1434_v16 }
  0x9d   : > { %1437 = vst [vmem:[%s8639_s6 + $0x3b0] sm:$0xff] %v1436_v17  ;;  %1439 = vst [vmem:[%s8639_s6 + $0x3b8] sm:$0xff] %v1438_v18  ;;  %v1440_v19 = vld [vmem:[%s8634_s25 + $0x780] sm:$0xff]  ;;  %v1442_v20 = vld [vmem:[%s8634_s25 + $0x790] sm:$0xff] }
  0x9e   : > { %v1444_v21 = vld [vmem:[%s8634_s25 + $0x7a0] sm:$0xff]  ;;  %1441 = vst [vmem:[%s8639_s6 + $0x3c0] sm:$0xff] %v1440_v19  ;;  %1443 = vst [vmem:[%s8639_s6 + $0x3c8] sm:$0xff] %v1442_v20  ;;  %v1446_v22 = vld [vmem:[%s8634_s25 + $0x7b0] sm:$0xff] }
  0x9f   : > { %1445 = vst [vmem:[%s8639_s6 + $0x3d0] sm:$0xff] %v1444_v21  ;;  %v1448_v23 = vld [vmem:[%s8634_s25 + $0x7c0] sm:$0xff]  ;;  %v1450_v24 = vld [vmem:[%s8634_s25 + $0x7d0] sm:$0xff]  ;;  %1447 = vst [vmem:[%s8639_s6 + $0x3d8] sm:$0xff] %v1446_v22 }
  0xa0   : > { %1449 = vst [vmem:[%s8639_s6 + $0x3e0] sm:$0xff] %v1448_v23  ;;  %1451 = vst [vmem:[%s8639_s6 + $0x3e8] sm:$0xff] %v1450_v24  ;;  %v1452_v25 = vld [vmem:[%s8634_s25 + $0x7e0] sm:$0xff]  ;;  %v1454_v26 = vld [vmem:[%s8634_s25 + $0x7f0] sm:$0xff] }
  0xa1   : > { %v1456_v27 = vld [vmem:[%s8634_s25 + $0x800] sm:$0xff]  ;;  %1453 = vst [vmem:[%s8639_s6 + $0x3f0] sm:$0xff] %v1452_v25  ;;  %1455 = vst [vmem:[%s8639_s6 + $0x3f8] sm:$0xff] %v1454_v26  ;;  %v1458_v28 = vld [vmem:[%s8634_s25 + $0x810] sm:$0xff] }
  0xa2   : > { %1457 = vst [vmem:[%s8639_s6 + $0x400] sm:$0xff] %v1456_v27  ;;  %v1460_v29 = vld [vmem:[%s8634_s25 + $0x820] sm:$0xff]  ;;  %v1462_v30 = vld [vmem:[%s8634_s25 + $0x830] sm:$0xff]  ;;  %1459 = vst [vmem:[%s8639_s6 + $0x408] sm:$0xff] %v1458_v28 }
  0xa3   : > { %1461 = vst [vmem:[%s8639_s6 + $0x410] sm:$0xff] %v1460_v29  ;;  %1463 = vst [vmem:[%s8639_s6 + $0x418] sm:$0xff] %v1462_v30  ;;  %v1464_v31 = vld [vmem:[%s8634_s25 + $0x840] sm:$0xff]  ;;  %v1466_v32 = vld [vmem:[%s8634_s25 + $0x850] sm:$0xff] }
  0xa4   : > { %v1468_v33 = vld [vmem:[%s8634_s25 + $0x860] sm:$0xff]  ;;  %1465 = vst [vmem:[%s8639_s6 + $0x420] sm:$0xff] %v1464_v31  ;;  %1467 = vst [vmem:[%s8639_s6 + $0x428] sm:$0xff] %v1466_v32  ;;  %v1470_v34 = vld [vmem:[%s8634_s25 + $0x870] sm:$0xff] }
  0xa5   : > { %1469 = vst [vmem:[%s8639_s6 + $0x430] sm:$0xff] %v1468_v33  ;;  %v1472_v35 = vld [vmem:[%s8634_s25 + $0x880] sm:$0xff]  ;;  %v1474_v36 = vld [vmem:[%s8634_s25 + $0x890] sm:$0xff]  ;;  %1471 = vst [vmem:[%s8639_s6 + $0x438] sm:$0xff] %v1470_v34 }
  0xa6   : > { %1473 = vst [vmem:[%s8639_s6 + $0x440] sm:$0xff] %v1472_v35  ;;  %1475 = vst [vmem:[%s8639_s6 + $0x448] sm:$0xff] %v1474_v36  ;;  %v1476_v37 = vld [vmem:[%s8634_s25 + $0x8a0] sm:$0xff]  ;;  %v1478_v38 = vld [vmem:[%s8634_s25 + $0x8b0] sm:$0xff] }
  0xa7   : > { %v1480_v39 = vld [vmem:[%s8634_s25 + $0x8c0] sm:$0xff]  ;;  %1477 = vst [vmem:[%s8639_s6 + $0x450] sm:$0xff] %v1476_v37  ;;  %1479 = vst [vmem:[%s8639_s6 + $0x458] sm:$0xff] %v1478_v38  ;;  %v1482_v40 = vld [vmem:[%s8634_s25 + $0x8d0] sm:$0xff] }
  0xa8   : > { %1481 = vst [vmem:[%s8639_s6 + $0x460] sm:$0xff] %v1480_v39  ;;  %v1484_v41 = vld [vmem:[%s8634_s25 + $0x8e0] sm:$0xff]  ;;  %v1486_v42 = vld [vmem:[%s8634_s25 + $0x8f0] sm:$0xff]  ;;  %1483 = vst [vmem:[%s8639_s6 + $0x468] sm:$0xff] %v1482_v40 }
  0xa9   : > { %1485 = vst [vmem:[%s8639_s6 + $0x470] sm:$0xff] %v1484_v41  ;;  %1487 = vst [vmem:[%s8639_s6 + $0x478] sm:$0xff] %v1486_v42  ;;  %v1488_v43 = vld [vmem:[%s8634_s25 + $0x900] sm:$0xff]  ;;  %v1490_v44 = vld [vmem:[%s8634_s25 + $0x910] sm:$0xff] }
  0xaa   : > { %v1492_v45 = vld [vmem:[%s8634_s25 + $0x920] sm:$0xff]  ;;  %1489 = vst [vmem:[%s8639_s6 + $0x480] sm:$0xff] %v1488_v43  ;;  %1491 = vst [vmem:[%s8639_s6 + $0x488] sm:$0xff] %v1490_v44  ;;  %v1494_v46 = vld [vmem:[%s8634_s25 + $0x930] sm:$0xff] }
  0xab   : > { %1493 = vst [vmem:[%s8639_s6 + $0x490] sm:$0xff] %v1492_v45  ;;  %v1496_v47 = vld [vmem:[%s8634_s25 + $0x940] sm:$0xff]  ;;  %v1498_v48 = vld [vmem:[%s8634_s25 + $0x950] sm:$0xff]  ;;  %1495 = vst [vmem:[%s8639_s6 + $0x498] sm:$0xff] %v1494_v46 }
  0xac   : > { %1497 = vst [vmem:[%s8639_s6 + $0x4a0] sm:$0xff] %v1496_v47  ;;  %1499 = vst [vmem:[%s8639_s6 + $0x4a8] sm:$0xff] %v1498_v48  ;;  %v1500_v49 = vld [vmem:[%s8634_s25 + $0x960] sm:$0xff]  ;;  %v1502_v50 = vld [vmem:[%s8634_s25 + $0x970] sm:$0xff] }
  0xad   : > { %v1504_v51 = vld [vmem:[%s8634_s25 + $0x980] sm:$0xff]  ;;  %1501 = vst [vmem:[%s8639_s6 + $0x4b0] sm:$0xff] %v1500_v49  ;;  %1503 = vst [vmem:[%s8639_s6 + $0x4b8] sm:$0xff] %v1502_v50  ;;  %v1506_v52 = vld [vmem:[%s8634_s25 + $0x990] sm:$0xff] }
  0xae   : > { %1505 = vst [vmem:[%s8639_s6 + $0x4c0] sm:$0xff] %v1504_v51  ;;  %v1508_v53 = vld [vmem:[%s8634_s25 + $0x9a0] sm:$0xff]  ;;  %v1510_v54 = vld [vmem:[%s8634_s25 + $0x9b0] sm:$0xff]  ;;  %1507 = vst [vmem:[%s8639_s6 + $0x4c8] sm:$0xff] %v1506_v52 }
  0xaf   : > { %1509 = vst [vmem:[%s8639_s6 + $0x4d0] sm:$0xff] %v1508_v53  ;;  %1511 = vst [vmem:[%s8639_s6 + $0x4d8] sm:$0xff] %v1510_v54  ;;  %v1512_v55 = vld [vmem:[%s8634_s25 + $0x9c0] sm:$0xff]  ;;  %v1514_v56 = vld [vmem:[%s8634_s25 + $0x9d0] sm:$0xff] }
  0xb0   : > { %v1516_v57 = vld [vmem:[%s8634_s25 + $0x9e0] sm:$0xff]  ;;  %1513 = vst [vmem:[%s8639_s6 + $0x4e0] sm:$0xff] %v1512_v55  ;;  %1515 = vst [vmem:[%s8639_s6 + $0x4e8] sm:$0xff] %v1514_v56  ;;  %v1518_v58 = vld [vmem:[%s8634_s25 + $0x9f0] sm:$0xff] }
  0xb1   : > { %1517 = vst [vmem:[%s8639_s6 + $0x4f0] sm:$0xff] %v1516_v57  ;;  %v1520_v59 = vld [vmem:[%s8634_s25 + $0xa00] sm:$0xff]  ;;  %v1522_v60 = vld [vmem:[%s8634_s25 + $0xa10] sm:$0xff]  ;;  %1519 = vst [vmem:[%s8639_s6 + $0x4f8] sm:$0xff] %v1518_v58 }
  0xb2   : > { %1521 = vst [vmem:[%s8639_s6 + $0x500] sm:$0xff] %v1520_v59  ;;  %1523 = vst [vmem:[%s8639_s6 + $0x508] sm:$0xff] %v1522_v60  ;;  %v1524_v61 = vld [vmem:[%s8634_s25 + $0xa20] sm:$0xff]  ;;  %v1526_v62 = vld [vmem:[%s8634_s25 + $0xa30] sm:$0xff] }
  0xb3   : > { %v1528_v63 = vld [vmem:[%s8634_s25 + $0xa40] sm:$0xff]  ;;  %1525 = vst [vmem:[%s8639_s6 + $0x510] sm:$0xff] %v1524_v61  ;;  %1527 = vst [vmem:[%s8639_s6 + $0x518] sm:$0xff] %v1526_v62  ;;  %v1530_v0 = vld [vmem:[%s8634_s25 + $0xa50] sm:$0xff] }
  0xb4   : > { %1529 = vst [vmem:[%s8639_s6 + $0x520] sm:$0xff] %v1528_v63  ;;  %v1532_v1 = vld [vmem:[%s8634_s25 + $0xa60] sm:$0xff]  ;;  %v1534_v2 = vld [vmem:[%s8634_s25 + $0xa70] sm:$0xff]  ;;  %1531 = vst [vmem:[%s8639_s6 + $0x528] sm:$0xff] %v1530_v0 }
  0xb5   : > { %1533 = vst [vmem:[%s8639_s6 + $0x530] sm:$0xff] %v1532_v1  ;;  %1535 = vst [vmem:[%s8639_s6 + $0x538] sm:$0xff] %v1534_v2  ;;  %v1536_v3 = vld [vmem:[%s8634_s25 + $0xa80] sm:$0xff]  ;;  %v1538_v4 = vld [vmem:[%s8634_s25 + $0xa90] sm:$0xff] }
  0xb6   : > { %v1540_v5 = vld [vmem:[%s8634_s25 + $0xaa0] sm:$0xff]  ;;  %1537 = vst [vmem:[%s8639_s6 + $0x540] sm:$0xff] %v1536_v3  ;;  %1539 = vst [vmem:[%s8639_s6 + $0x548] sm:$0xff] %v1538_v4  ;;  %v1542_v6 = vld [vmem:[%s8634_s25 + $0xab0] sm:$0xff] }
  0xb7   : > { %1541 = vst [vmem:[%s8639_s6 + $0x550] sm:$0xff] %v1540_v5  ;;  %v1544_v7 = vld [vmem:[%s8634_s25 + $0xac0] sm:$0xff]  ;;  %v1546_v8 = vld [vmem:[%s8634_s25 + $0xad0] sm:$0xff]  ;;  %1543 = vst [vmem:[%s8639_s6 + $0x558] sm:$0xff] %v1542_v6 }
  0xb8   : > { %1545 = vst [vmem:[%s8639_s6 + $0x560] sm:$0xff] %v1544_v7  ;;  %1547 = vst [vmem:[%s8639_s6 + $0x568] sm:$0xff] %v1546_v8  ;;  %v1548_v9 = vld [vmem:[%s8634_s25 + $0xae0] sm:$0xff]  ;;  %v1550_v10 = vld [vmem:[%s8634_s25 + $0xaf0] sm:$0xff] }
  0xb9   : > { %v1552_v11 = vld [vmem:[%s8634_s25 + $0xb00] sm:$0xff]  ;;  %1549 = vst [vmem:[%s8639_s6 + $0x570] sm:$0xff] %v1548_v9  ;;  %1551 = vst [vmem:[%s8639_s6 + $0x578] sm:$0xff] %v1550_v10  ;;  %v1554_v12 = vld [vmem:[%s8634_s25 + $0xb10] sm:$0xff] }
  0xba   : > { %1553 = vst [vmem:[%s8639_s6 + $0x580] sm:$0xff] %v1552_v11  ;;  %v1556_v13 = vld [vmem:[%s8634_s25 + $0xb20] sm:$0xff]  ;;  %v1558_v14 = vld [vmem:[%s8634_s25 + $0xb30] sm:$0xff]  ;;  %1555 = vst [vmem:[%s8639_s6 + $0x588] sm:$0xff] %v1554_v12 }
  0xbb   : > { %1557 = vst [vmem:[%s8639_s6 + $0x590] sm:$0xff] %v1556_v13  ;;  %1559 = vst [vmem:[%s8639_s6 + $0x598] sm:$0xff] %v1558_v14  ;;  %v1560_v15 = vld [vmem:[%s8634_s25 + $0xb40] sm:$0xff]  ;;  %v1562_v16 = vld [vmem:[%s8634_s25 + $0xb50] sm:$0xff] }
  0xbc   : > { %v1564_v17 = vld [vmem:[%s8634_s25 + $0xb60] sm:$0xff]  ;;  %1561 = vst [vmem:[%s8639_s6 + $0x5a0] sm:$0xff] %v1560_v15  ;;  %1563 = vst [vmem:[%s8639_s6 + $0x5a8] sm:$0xff] %v1562_v16  ;;  %v1566_v18 = vld [vmem:[%s8634_s25 + $0xb70] sm:$0xff] }
  0xbd   : > { %1565 = vst [vmem:[%s8639_s6 + $0x5b0] sm:$0xff] %v1564_v17  ;;  %v1568_v19 = vld [vmem:[%s8634_s25 + $0xb80] sm:$0xff]  ;;  %v1570_v20 = vld [vmem:[%s8634_s25 + $0xb90] sm:$0xff]  ;;  %1567 = vst [vmem:[%s8639_s6 + $0x5b8] sm:$0xff] %v1566_v18 }
  0xbe   : > { %1569 = vst [vmem:[%s8639_s6 + $0x5c0] sm:$0xff] %v1568_v19  ;;  %1571 = vst [vmem:[%s8639_s6 + $0x5c8] sm:$0xff] %v1570_v20  ;;  %v1572_v21 = vld [vmem:[%s8634_s25 + $0xba0] sm:$0xff]  ;;  %v1574_v22 = vld [vmem:[%s8634_s25 + $0xbb0] sm:$0xff] }
  0xbf   : > { %v1576_v23 = vld [vmem:[%s8634_s25 + $0xbc0] sm:$0xff]  ;;  %1573 = vst [vmem:[%s8639_s6 + $0x5d0] sm:$0xff] %v1572_v21  ;;  %1575 = vst [vmem:[%s8639_s6 + $0x5d8] sm:$0xff] %v1574_v22  ;;  %v1578_v24 = vld [vmem:[%s8634_s25 + $0xbd0] sm:$0xff] }
  0xc0   : > { %1577 = vst [vmem:[%s8639_s6 + $0x5e0] sm:$0xff] %v1576_v23  ;;  %v1580_v25 = vld [vmem:[%s8634_s25 + $0xbe0] sm:$0xff]  ;;  %v1582_v26 = vld [vmem:[%s8634_s25 + $0xbf0] sm:$0xff]  ;;  %1579 = vst [vmem:[%s8639_s6 + $0x5e8] sm:$0xff] %v1578_v24 }
  0xc1   : > { %1581 = vst [vmem:[%s8639_s6 + $0x5f0] sm:$0xff] %v1580_v25  ;;  %1583 = vst [vmem:[%s8639_s6 + $0x5f8] sm:$0xff] %v1582_v26  ;;  %v1584_v27 = vld [vmem:[%s8634_s25 + $0xc00] sm:$0xff]  ;;  %v1586_v28 = vld [vmem:[%s8634_s25 + $0xc10] sm:$0xff] }
  0xc2   : > { %v1588_v29 = vld [vmem:[%s8634_s25 + $0xc20] sm:$0xff]  ;;  %1585 = vst [vmem:[%s8639_s6 + $0x600] sm:$0xff] %v1584_v27  ;;  %1587 = vst [vmem:[%s8639_s6 + $0x608] sm:$0xff] %v1586_v28  ;;  %v1590_v30 = vld [vmem:[%s8634_s25 + $0xc30] sm:$0xff] }
  0xc3   : > { %1589 = vst [vmem:[%s8639_s6 + $0x610] sm:$0xff] %v1588_v29  ;;  %v1592_v31 = vld [vmem:[%s8634_s25 + $0xc40] sm:$0xff]  ;;  %v1594_v32 = vld [vmem:[%s8634_s25 + $0xc50] sm:$0xff]  ;;  %1591 = vst [vmem:[%s8639_s6 + $0x618] sm:$0xff] %v1590_v30 }
  0xc4   : > { %1593 = vst [vmem:[%s8639_s6 + $0x620] sm:$0xff] %v1592_v31  ;;  %1595 = vst [vmem:[%s8639_s6 + $0x628] sm:$0xff] %v1594_v32  ;;  %v1596_v33 = vld [vmem:[%s8634_s25 + $0xc60] sm:$0xff]  ;;  %v1598_v34 = vld [vmem:[%s8634_s25 + $0xc70] sm:$0xff] }
  0xc5   : > { %v1600_v35 = vld [vmem:[%s8634_s25 + $0xc80] sm:$0xff]  ;;  %1597 = vst [vmem:[%s8639_s6 + $0x630] sm:$0xff] %v1596_v33  ;;  %1599 = vst [vmem:[%s8639_s6 + $0x638] sm:$0xff] %v1598_v34  ;;  %v1602_v36 = vld [vmem:[%s8634_s25 + $0xc90] sm:$0xff] }
  0xc6   : > { %1601 = vst [vmem:[%s8639_s6 + $0x640] sm:$0xff] %v1600_v35  ;;  %v1604_v37 = vld [vmem:[%s8634_s25 + $0xca0] sm:$0xff]  ;;  %v1606_v38 = vld [vmem:[%s8634_s25 + $0xcb0] sm:$0xff]  ;;  %1603 = vst [vmem:[%s8639_s6 + $0x648] sm:$0xff] %v1602_v36 }
  0xc7   : > { %1605 = vst [vmem:[%s8639_s6 + $0x650] sm:$0xff] %v1604_v37  ;;  %1607 = vst [vmem:[%s8639_s6 + $0x658] sm:$0xff] %v1606_v38  ;;  %v1608_v39 = vld [vmem:[%s8634_s25 + $0xcc0] sm:$0xff]  ;;  %v1610_v40 = vld [vmem:[%s8634_s25 + $0xcd0] sm:$0xff] }
  0xc8   : > { %v1612_v41 = vld [vmem:[%s8634_s25 + $0xce0] sm:$0xff]  ;;  %1609 = vst [vmem:[%s8639_s6 + $0x660] sm:$0xff] %v1608_v39  ;;  %1611 = vst [vmem:[%s8639_s6 + $0x668] sm:$0xff] %v1610_v40  ;;  %v1614_v42 = vld [vmem:[%s8634_s25 + $0xcf0] sm:$0xff] }
  0xc9   : > { %1613 = vst [vmem:[%s8639_s6 + $0x670] sm:$0xff] %v1612_v41  ;;  %v1616_v43 = vld [vmem:[%s8634_s25 + $0xd00] sm:$0xff]  ;;  %v1618_v44 = vld [vmem:[%s8634_s25 + $0xd10] sm:$0xff]  ;;  %1615 = vst [vmem:[%s8639_s6 + $0x678] sm:$0xff] %v1614_v42 }
  0xca   : > { %1617 = vst [vmem:[%s8639_s6 + $0x680] sm:$0xff] %v1616_v43  ;;  %1619 = vst [vmem:[%s8639_s6 + $0x688] sm:$0xff] %v1618_v44  ;;  %v1620_v45 = vld [vmem:[%s8634_s25 + $0xd20] sm:$0xff]  ;;  %v1622_v46 = vld [vmem:[%s8634_s25 + $0xd30] sm:$0xff] }
  0xcb   : > { %v1624_v47 = vld [vmem:[%s8634_s25 + $0xd40] sm:$0xff]  ;;  %1621 = vst [vmem:[%s8639_s6 + $0x690] sm:$0xff] %v1620_v45  ;;  %1623 = vst [vmem:[%s8639_s6 + $0x698] sm:$0xff] %v1622_v46  ;;  %v1626_v48 = vld [vmem:[%s8634_s25 + $0xd50] sm:$0xff] }
  0xcc   : > { %1625 = vst [vmem:[%s8639_s6 + $0x6a0] sm:$0xff] %v1624_v47  ;;  %v1628_v49 = vld [vmem:[%s8634_s25 + $0xd60] sm:$0xff]  ;;  %v1630_v50 = vld [vmem:[%s8634_s25 + $0xd70] sm:$0xff]  ;;  %1627 = vst [vmem:[%s8639_s6 + $0x6a8] sm:$0xff] %v1626_v48 }
  0xcd   : > { %1629 = vst [vmem:[%s8639_s6 + $0x6b0] sm:$0xff] %v1628_v49  ;;  %1631 = vst [vmem:[%s8639_s6 + $0x6b8] sm:$0xff] %v1630_v50  ;;  %v1632_v51 = vld [vmem:[%s8634_s25 + $0xd80] sm:$0xff]  ;;  %v1634_v52 = vld [vmem:[%s8634_s25 + $0xd90] sm:$0xff] }
  0xce   : > { %v1636_v53 = vld [vmem:[%s8634_s25 + $0xda0] sm:$0xff]  ;;  %1633 = vst [vmem:[%s8639_s6 + $0x6c0] sm:$0xff] %v1632_v51  ;;  %1635 = vst [vmem:[%s8639_s6 + $0x6c8] sm:$0xff] %v1634_v52  ;;  %v1638_v54 = vld [vmem:[%s8634_s25 + $0xdb0] sm:$0xff] }
  0xcf   : > { %1637 = vst [vmem:[%s8639_s6 + $0x6d0] sm:$0xff] %v1636_v53  ;;  %v1640_v55 = vld [vmem:[%s8634_s25 + $0xdc0] sm:$0xff]  ;;  %v1642_v56 = vld [vmem:[%s8634_s25 + $0xdd0] sm:$0xff]  ;;  %1639 = vst [vmem:[%s8639_s6 + $0x6d8] sm:$0xff] %v1638_v54 }
  0xd0   : > { %1641 = vst [vmem:[%s8639_s6 + $0x6e0] sm:$0xff] %v1640_v55  ;;  %1643 = vst [vmem:[%s8639_s6 + $0x6e8] sm:$0xff] %v1642_v56  ;;  %v1644_v57 = vld [vmem:[%s8634_s25 + $0xde0] sm:$0xff]  ;;  %v1646_v58 = vld [vmem:[%s8634_s25 + $0xdf0] sm:$0xff] }
  0xd1   : > { %v1648_v59 = vld [vmem:[%s8634_s25 + $0xe00] sm:$0xff]  ;;  %1645 = vst [vmem:[%s8639_s6 + $0x6f0] sm:$0xff] %v1644_v57  ;;  %1647 = vst [vmem:[%s8639_s6 + $0x6f8] sm:$0xff] %v1646_v58  ;;  %v1650_v60 = vld [vmem:[%s8634_s25 + $0xe10] sm:$0xff] }
  0xd2   : > { %1649 = vst [vmem:[%s8639_s6 + $0x700] sm:$0xff] %v1648_v59  ;;  %v1652_v61 = vld [vmem:[%s8634_s25 + $0xe20] sm:$0xff]  ;;  %v1654_v62 = vld [vmem:[%s8634_s25 + $0xe30] sm:$0xff]  ;;  %1651 = vst [vmem:[%s8639_s6 + $0x708] sm:$0xff] %v1650_v60 }
  0xd3   : > { %1653 = vst [vmem:[%s8639_s6 + $0x710] sm:$0xff] %v1652_v61  ;;  %1655 = vst [vmem:[%s8639_s6 + $0x718] sm:$0xff] %v1654_v62  ;;  %v1656_v63 = vld [vmem:[%s8634_s25 + $0xe40] sm:$0xff]  ;;  %v1658_v0 = vld [vmem:[%s8634_s25 + $0xe50] sm:$0xff] }
  0xd4   : > { %v1660_v1 = vld [vmem:[%s8634_s25 + $0xe60] sm:$0xff]  ;;  %1657 = vst [vmem:[%s8639_s6 + $0x720] sm:$0xff] %v1656_v63  ;;  %1659 = vst [vmem:[%s8639_s6 + $0x728] sm:$0xff] %v1658_v0  ;;  %v1662_v2 = vld [vmem:[%s8634_s25 + $0xe70] sm:$0xff] }
  0xd5   : > { %1661 = vst [vmem:[%s8639_s6 + $0x730] sm:$0xff] %v1660_v1  ;;  %v1664_v3 = vld [vmem:[%s8634_s25 + $0xe80] sm:$0xff]  ;;  %v1666_v4 = vld [vmem:[%s8634_s25 + $0xe90] sm:$0xff]  ;;  %1663 = vst [vmem:[%s8639_s6 + $0x738] sm:$0xff] %v1662_v2 }
  0xd6   : > { %1665 = vst [vmem:[%s8639_s6 + $0x740] sm:$0xff] %v1664_v3  ;;  %1667 = vst [vmem:[%s8639_s6 + $0x748] sm:$0xff] %v1666_v4  ;;  %v1668_v5 = vld [vmem:[%s8634_s25 + $0xea0] sm:$0xff]  ;;  %v1670_v6 = vld [vmem:[%s8634_s25 + $0xeb0] sm:$0xff] }
  0xd7   : > { %v1672_v7 = vld [vmem:[%s8634_s25 + $0xec0] sm:$0xff]  ;;  %1669 = vst [vmem:[%s8639_s6 + $0x750] sm:$0xff] %v1668_v5  ;;  %1671 = vst [vmem:[%s8639_s6 + $0x758] sm:$0xff] %v1670_v6  ;;  %v1674_v8 = vld [vmem:[%s8634_s25 + $0xed0] sm:$0xff] }
  0xd8   : > { %1673 = vst [vmem:[%s8639_s6 + $0x760] sm:$0xff] %v1672_v7  ;;  %v1676_v9 = vld [vmem:[%s8634_s25 + $0xee0] sm:$0xff]  ;;  %v1678_v10 = vld [vmem:[%s8634_s25 + $0xef0] sm:$0xff]  ;;  %1675 = vst [vmem:[%s8639_s6 + $0x768] sm:$0xff] %v1674_v8 }
  0xd9   : > { %1677 = vst [vmem:[%s8639_s6 + $0x770] sm:$0xff] %v1676_v9  ;;  %1679 = vst [vmem:[%s8639_s6 + $0x778] sm:$0xff] %v1678_v10  ;;  %v1680_v11 = vld [vmem:[%s8634_s25 + $0xf00] sm:$0xff]  ;;  %v1682_v12 = vld [vmem:[%s8634_s25 + $0xf10] sm:$0xff] }
  0xda   : > { %v1684_v13 = vld [vmem:[%s8634_s25 + $0xf20] sm:$0xff]  ;;  %1681 = vst [vmem:[%s8639_s6 + $0x780] sm:$0xff] %v1680_v11  ;;  %1683 = vst [vmem:[%s8639_s6 + $0x788] sm:$0xff] %v1682_v12  ;;  %v1686_v14 = vld [vmem:[%s8634_s25 + $0xf30] sm:$0xff] }
  0xdb   : > { %1685 = vst [vmem:[%s8639_s6 + $0x790] sm:$0xff] %v1684_v13  ;;  %v1688_v15 = vld [vmem:[%s8634_s25 + $0xf40] sm:$0xff]  ;;  %v1690_v16 = vld [vmem:[%s8634_s25 + $0xf50] sm:$0xff]  ;;  %1687 = vst [vmem:[%s8639_s6 + $0x798] sm:$0xff] %v1686_v14 }
  0xdc   : > { %1689 = vst [vmem:[%s8639_s6 + $0x7a0] sm:$0xff] %v1688_v15  ;;  %1691 = vst [vmem:[%s8639_s6 + $0x7a8] sm:$0xff] %v1690_v16  ;;  %v1692_v17 = vld [vmem:[%s8634_s25 + $0xf60] sm:$0xff]  ;;  %v1694_v18 = vld [vmem:[%s8634_s25 + $0xf70] sm:$0xff] }
  0xdd   : > { %v1696_v19 = vld [vmem:[%s8634_s25 + $0xf80] sm:$0xff]  ;;  %1693 = vst [vmem:[%s8639_s6 + $0x7b0] sm:$0xff] %v1692_v17  ;;  %1695 = vst [vmem:[%s8639_s6 + $0x7b8] sm:$0xff] %v1694_v18  ;;  %v1698_v20 = vld [vmem:[%s8634_s25 + $0xf90] sm:$0xff] }
  0xde   : > { %1697 = vst [vmem:[%s8639_s6 + $0x7c0] sm:$0xff] %v1696_v19  ;;  %v1700_v21 = vld [vmem:[%s8634_s25 + $0xfa0] sm:$0xff]  ;;  %v1702_v22 = vld [vmem:[%s8634_s25 + $0xfb0] sm:$0xff]  ;;  %1699 = vst [vmem:[%s8639_s6 + $0x7c8] sm:$0xff] %v1698_v20 }
  0xdf   : > { %1701 = vst [vmem:[%s8639_s6 + $0x7d0] sm:$0xff] %v1700_v21  ;;  %1703 = vst [vmem:[%s8639_s6 + $0x7d8] sm:$0xff] %v1702_v22  ;;  %v1704_v23 = vld [vmem:[%s8634_s25 + $0xfc0] sm:$0xff]  ;;  %v1706_v24 = vld [vmem:[%s8634_s25 + $0xfd0] sm:$0xff] }
  0xe0   : > { %v1708_v25 = vld [vmem:[%s8634_s25 + $0xfe0] sm:$0xff]  ;;  %1705 = vst [vmem:[%s8639_s6 + $0x7e0] sm:$0xff] %v1704_v23  ;;  %1707 = vst [vmem:[%s8639_s6 + $0x7e8] sm:$0xff] %v1706_v24  ;;  %v1710_v26 = vld [vmem:[%s8634_s25 + $0xff0] sm:$0xff] }
  0xe1   : > { %1709 = vst [vmem:[%s8639_s6 + $0x7f0] sm:$0xff] %v1708_v25  ;;  %v1712_v27 = vld [vmem:[%s8634_s25 + $0x1000] sm:$0xff]  ;;  %v1714_v28 = vld [vmem:[%s8634_s25 + $0x1010] sm:$0xff]  ;;  %1711 = vst [vmem:[%s8639_s6 + $0x7f8] sm:$0xff] %v1710_v26 }
  0xe2   : > { %1713 = vst [vmem:[%s8639_s6 + $0x800] sm:$0xff] %v1712_v27  ;;  %1715 = vst [vmem:[%s8639_s6 + $0x808] sm:$0xff] %v1714_v28  ;;  %v1716_v29 = vld [vmem:[%s8634_s25 + $0x1020] sm:$0xff]  ;;  %v1718_v30 = vld [vmem:[%s8634_s25 + $0x1030] sm:$0xff] }
  0xe3   : > { %v1720_v31 = vld [vmem:[%s8634_s25 + $0x1040] sm:$0xff]  ;;  %1717 = vst [vmem:[%s8639_s6 + $0x810] sm:$0xff] %v1716_v29  ;;  %1719 = vst [vmem:[%s8639_s6 + $0x818] sm:$0xff] %v1718_v30  ;;  %v1722_v32 = vld [vmem:[%s8634_s25 + $0x1050] sm:$0xff] }
  0xe4   : > { %1721 = vst [vmem:[%s8639_s6 + $0x820] sm:$0xff] %v1720_v31  ;;  %v1724_v33 = vld [vmem:[%s8634_s25 + $0x1060] sm:$0xff]  ;;  %v1726_v34 = vld [vmem:[%s8634_s25 + $0x1070] sm:$0xff]  ;;  %1723 = vst [vmem:[%s8639_s6 + $0x828] sm:$0xff] %v1722_v32 }
  0xe5   : > { %1725 = vst [vmem:[%s8639_s6 + $0x830] sm:$0xff] %v1724_v33  ;;  %1727 = vst [vmem:[%s8639_s6 + $0x838] sm:$0xff] %v1726_v34  ;;  %v1728_v35 = vld [vmem:[%s8634_s25 + $0x1080] sm:$0xff]  ;;  %v1730_v36 = vld [vmem:[%s8634_s25 + $0x1090] sm:$0xff] }
  0xe6   : > { %v1732_v37 = vld [vmem:[%s8634_s25 + $0x10a0] sm:$0xff]  ;;  %1729 = vst [vmem:[%s8639_s6 + $0x840] sm:$0xff] %v1728_v35  ;;  %1731 = vst [vmem:[%s8639_s6 + $0x848] sm:$0xff] %v1730_v36  ;;  %v1734_v38 = vld [vmem:[%s8634_s25 + $0x10b0] sm:$0xff] }
  0xe7   : > { %1733 = vst [vmem:[%s8639_s6 + $0x850] sm:$0xff] %v1732_v37  ;;  %v1736_v39 = vld [vmem:[%s8634_s25 + $0x10c0] sm:$0xff]  ;;  %v1738_v40 = vld [vmem:[%s8634_s25 + $0x10d0] sm:$0xff]  ;;  %1735 = vst [vmem:[%s8639_s6 + $0x858] sm:$0xff] %v1734_v38 }
  0xe8   : > { %1737 = vst [vmem:[%s8639_s6 + $0x860] sm:$0xff] %v1736_v39  ;;  %1739 = vst [vmem:[%s8639_s6 + $0x868] sm:$0xff] %v1738_v40  ;;  %v1740_v41 = vld [vmem:[%s8634_s25 + $0x10e0] sm:$0xff]  ;;  %v1742_v42 = vld [vmem:[%s8634_s25 + $0x10f0] sm:$0xff] }
  0xe9   : > { %v1744_v43 = vld [vmem:[%s8634_s25 + $0x1100] sm:$0xff]  ;;  %1741 = vst [vmem:[%s8639_s6 + $0x870] sm:$0xff] %v1740_v41  ;;  %1743 = vst [vmem:[%s8639_s6 + $0x878] sm:$0xff] %v1742_v42  ;;  %v1746_v44 = vld [vmem:[%s8634_s25 + $0x1110] sm:$0xff] }
  0xea   : > { %1745 = vst [vmem:[%s8639_s6 + $0x880] sm:$0xff] %v1744_v43  ;;  %v1748_v45 = vld [vmem:[%s8634_s25 + $0x1120] sm:$0xff]  ;;  %v1750_v46 = vld [vmem:[%s8634_s25 + $0x1130] sm:$0xff]  ;;  %1747 = vst [vmem:[%s8639_s6 + $0x888] sm:$0xff] %v1746_v44 }
  0xeb   : > { %1749 = vst [vmem:[%s8639_s6 + $0x890] sm:$0xff] %v1748_v45  ;;  %1751 = vst [vmem:[%s8639_s6 + $0x898] sm:$0xff] %v1750_v46  ;;  %v1752_v47 = vld [vmem:[%s8634_s25 + $0x1140] sm:$0xff]  ;;  %v1754_v48 = vld [vmem:[%s8634_s25 + $0x1150] sm:$0xff] }
  0xec   : > { %v1756_v49 = vld [vmem:[%s8634_s25 + $0x1160] sm:$0xff]  ;;  %1753 = vst [vmem:[%s8639_s6 + $0x8a0] sm:$0xff] %v1752_v47  ;;  %1755 = vst [vmem:[%s8639_s6 + $0x8a8] sm:$0xff] %v1754_v48  ;;  %v1758_v50 = vld [vmem:[%s8634_s25 + $0x1170] sm:$0xff] }
  0xed   : > { %1757 = vst [vmem:[%s8639_s6 + $0x8b0] sm:$0xff] %v1756_v49  ;;  %v1760_v51 = vld [vmem:[%s8634_s25 + $0x1180] sm:$0xff]  ;;  %v1762_v52 = vld [vmem:[%s8634_s25 + $0x1190] sm:$0xff]  ;;  %1759 = vst [vmem:[%s8639_s6 + $0x8b8] sm:$0xff] %v1758_v50 }
  0xee   : > { %1761 = vst [vmem:[%s8639_s6 + $0x8c0] sm:$0xff] %v1760_v51  ;;  %1763 = vst [vmem:[%s8639_s6 + $0x8c8] sm:$0xff] %v1762_v52  ;;  %v1764_v53 = vld [vmem:[%s8634_s25 + $0x11a0] sm:$0xff]  ;;  %v1766_v54 = vld [vmem:[%s8634_s25 + $0x11b0] sm:$0xff] }
  0xef   : > { %v1768_v55 = vld [vmem:[%s8634_s25 + $0x11c0] sm:$0xff]  ;;  %1765 = vst [vmem:[%s8639_s6 + $0x8d0] sm:$0xff] %v1764_v53  ;;  %1767 = vst [vmem:[%s8639_s6 + $0x8d8] sm:$0xff] %v1766_v54  ;;  %v1770_v56 = vld [vmem:[%s8634_s25 + $0x11d0] sm:$0xff] }
  0xf0   : > { %1769 = vst [vmem:[%s8639_s6 + $0x8e0] sm:$0xff] %v1768_v55  ;;  %v1772_v57 = vld [vmem:[%s8634_s25 + $0x11e0] sm:$0xff]  ;;  %v1774_v58 = vld [vmem:[%s8634_s25 + $0x11f0] sm:$0xff]  ;;  %1771 = vst [vmem:[%s8639_s6 + $0x8e8] sm:$0xff] %v1770_v56 }
  0xf1   : > { %1773 = vst [vmem:[%s8639_s6 + $0x8f0] sm:$0xff] %v1772_v57  ;;  %1775 = vst [vmem:[%s8639_s6 + $0x8f8] sm:$0xff] %v1774_v58  ;;  %v1776_v59 = vld [vmem:[%s8634_s25 + $0x1200] sm:$0xff]  ;;  %v1778_v60 = vld [vmem:[%s8634_s25 + $0x1210] sm:$0xff] }
  0xf2   : > { %v1780_v61 = vld [vmem:[%s8634_s25 + $0x1220] sm:$0xff]  ;;  %1777 = vst [vmem:[%s8639_s6 + $0x900] sm:$0xff] %v1776_v59  ;;  %1779 = vst [vmem:[%s8639_s6 + $0x908] sm:$0xff] %v1778_v60  ;;  %v1782_v62 = vld [vmem:[%s8634_s25 + $0x1230] sm:$0xff] }
  0xf3   : > { %1781 = vst [vmem:[%s8639_s6 + $0x910] sm:$0xff] %v1780_v61  ;;  %v1784_v63 = vld [vmem:[%s8634_s25 + $0x1240] sm:$0xff]  ;;  %v1786_v0 = vld [vmem:[%s8634_s25 + $0x1250] sm:$0xff]  ;;  %1783 = vst [vmem:[%s8639_s6 + $0x918] sm:$0xff] %v1782_v62 }
  0xf4   : > { %1785 = vst [vmem:[%s8639_s6 + $0x920] sm:$0xff] %v1784_v63  ;;  %1787 = vst [vmem:[%s8639_s6 + $0x928] sm:$0xff] %v1786_v0  ;;  %v1788_v1 = vld [vmem:[%s8634_s25 + $0x1260] sm:$0xff]  ;;  %v1790_v2 = vld [vmem:[%s8634_s25 + $0x1270] sm:$0xff] }
  0xf5   : > { %v1792_v3 = vld [vmem:[%s8634_s25 + $0x1280] sm:$0xff]  ;;  %1789 = vst [vmem:[%s8639_s6 + $0x930] sm:$0xff] %v1788_v1  ;;  %1791 = vst [vmem:[%s8639_s6 + $0x938] sm:$0xff] %v1790_v2  ;;  %v1794_v4 = vld [vmem:[%s8634_s25 + $0x1290] sm:$0xff] }
  0xf6   : > { %1793 = vst [vmem:[%s8639_s6 + $0x940] sm:$0xff] %v1792_v3  ;;  %v1796_v5 = vld [vmem:[%s8634_s25 + $0x12a0] sm:$0xff]  ;;  %v1798_v6 = vld [vmem:[%s8634_s25 + $0x12b0] sm:$0xff]  ;;  %1795 = vst [vmem:[%s8639_s6 + $0x948] sm:$0xff] %v1794_v4 }
  0xf7   : > { %1797 = vst [vmem:[%s8639_s6 + $0x950] sm:$0xff] %v1796_v5  ;;  %1799 = vst [vmem:[%s8639_s6 + $0x958] sm:$0xff] %v1798_v6  ;;  %v1800_v7 = vld [vmem:[%s8634_s25 + $0x12c0] sm:$0xff]  ;;  %v1802_v8 = vld [vmem:[%s8634_s25 + $0x12d0] sm:$0xff] }
  0xf8   : > { %v1804_v9 = vld [vmem:[%s8634_s25 + $0x12e0] sm:$0xff]  ;;  %1801 = vst [vmem:[%s8639_s6 + $0x960] sm:$0xff] %v1800_v7  ;;  %1803 = vst [vmem:[%s8639_s6 + $0x968] sm:$0xff] %v1802_v8  ;;  %v1806_v10 = vld [vmem:[%s8634_s25 + $0x12f0] sm:$0xff] }
  0xf9   : > { %1805 = vst [vmem:[%s8639_s6 + $0x970] sm:$0xff] %v1804_v9  ;;  %v1808_v11 = vld [vmem:[%s8634_s25 + $0x1300] sm:$0xff]  ;;  %v1810_v12 = vld [vmem:[%s8634_s25 + $0x1310] sm:$0xff]  ;;  %1807 = vst [vmem:[%s8639_s6 + $0x978] sm:$0xff] %v1806_v10 }
  0xfa   : > { %1809 = vst [vmem:[%s8639_s6 + $0x980] sm:$0xff] %v1808_v11  ;;  %1811 = vst [vmem:[%s8639_s6 + $0x988] sm:$0xff] %v1810_v12  ;;  %v1812_v13 = vld [vmem:[%s8634_s25 + $0x1320] sm:$0xff]  ;;  %v1814_v14 = vld [vmem:[%s8634_s25 + $0x1330] sm:$0xff] }
  0xfb   : > { %v1816_v15 = vld [vmem:[%s8634_s25 + $0x1340] sm:$0xff]  ;;  %1813 = vst [vmem:[%s8639_s6 + $0x990] sm:$0xff] %v1812_v13  ;;  %1815 = vst [vmem:[%s8639_s6 + $0x998] sm:$0xff] %v1814_v14  ;;  %v1818_v16 = vld [vmem:[%s8634_s25 + $0x1350] sm:$0xff] }
  0xfc   : > { %1817 = vst [vmem:[%s8639_s6 + $0x9a0] sm:$0xff] %v1816_v15  ;;  %v1820_v17 = vld [vmem:[%s8634_s25 + $0x1360] sm:$0xff]  ;;  %v1822_v18 = vld [vmem:[%s8634_s25 + $0x1370] sm:$0xff]  ;;  %1819 = vst [vmem:[%s8639_s6 + $0x9a8] sm:$0xff] %v1818_v16 }
  0xfd   : > { %1821 = vst [vmem:[%s8639_s6 + $0x9b0] sm:$0xff] %v1820_v17  ;;  %1823 = vst [vmem:[%s8639_s6 + $0x9b8] sm:$0xff] %v1822_v18  ;;  %v1824_v19 = vld [vmem:[%s8634_s25 + $0x1380] sm:$0xff]  ;;  %v1826_v20 = vld [vmem:[%s8634_s25 + $0x1390] sm:$0xff] }
  0xfe   : > { %v1828_v21 = vld [vmem:[%s8634_s25 + $0x13a0] sm:$0xff]  ;;  %1825 = vst [vmem:[%s8639_s6 + $0x9c0] sm:$0xff] %v1824_v19  ;;  %1827 = vst [vmem:[%s8639_s6 + $0x9c8] sm:$0xff] %v1826_v20  ;;  %v1830_v22 = vld [vmem:[%s8634_s25 + $0x13b0] sm:$0xff] }
  0xff   : > { %1829 = vst [vmem:[%s8639_s6 + $0x9d0] sm:$0xff] %v1828_v21  ;;  %v1832_v23 = vld [vmem:[%s8634_s25 + $0x13c0] sm:$0xff]  ;;  %v1834_v24 = vld [vmem:[%s8634_s25 + $0x13d0] sm:$0xff]  ;;  %1831 = vst [vmem:[%s8639_s6 + $0x9d8] sm:$0xff] %v1830_v22 }
 0x100   : > { %1833 = vst [vmem:[%s8639_s6 + $0x9e0] sm:$0xff] %v1832_v23  ;;  %1835 = vst [vmem:[%s8639_s6 + $0x9e8] sm:$0xff] %v1834_v24  ;;  %v1836_v25 = vld [vmem:[%s8634_s25 + $0x13e0] sm:$0xff]  ;;  %v1838_v26 = vld [vmem:[%s8634_s25 + $0x13f0] sm:$0xff] }
 0x101   : > { %v1840_v27 = vld [vmem:[%s8634_s25 + $0x1400] sm:$0xff]  ;;  %1837 = vst [vmem:[%s8639_s6 + $0x9f0] sm:$0xff] %v1836_v25  ;;  %1839 = vst [vmem:[%s8639_s6 + $0x9f8] sm:$0xff] %v1838_v26  ;;  %v1842_v28 = vld [vmem:[%s8634_s25 + $0x1410] sm:$0xff] }
 0x102   : > { %1841 = vst [vmem:[%s8639_s6 + $0xa00] sm:$0xff] %v1840_v27  ;;  %v1844_v29 = vld [vmem:[%s8634_s25 + $0x1420] sm:$0xff]  ;;  %v1846_v30 = vld [vmem:[%s8634_s25 + $0x1430] sm:$0xff]  ;;  %1843 = vst [vmem:[%s8639_s6 + $0xa08] sm:$0xff] %v1842_v28 }
 0x103   : > { %1845 = vst [vmem:[%s8639_s6 + $0xa10] sm:$0xff] %v1844_v29  ;;  %1847 = vst [vmem:[%s8639_s6 + $0xa18] sm:$0xff] %v1846_v30  ;;  %v1848_v31 = vld [vmem:[%s8634_s25 + $0x1440] sm:$0xff]  ;;  %v1850_v32 = vld [vmem:[%s8634_s25 + $0x1450] sm:$0xff] }
 0x104   : > { %v1852_v33 = vld [vmem:[%s8634_s25 + $0x1460] sm:$0xff]  ;;  %1849 = vst [vmem:[%s8639_s6 + $0xa20] sm:$0xff] %v1848_v31  ;;  %1851 = vst [vmem:[%s8639_s6 + $0xa28] sm:$0xff] %v1850_v32  ;;  %v1854_v34 = vld [vmem:[%s8634_s25 + $0x1470] sm:$0xff] }
 0x105   : > { %1853 = vst [vmem:[%s8639_s6 + $0xa30] sm:$0xff] %v1852_v33  ;;  %v1856_v35 = vld [vmem:[%s8634_s25 + $0x1480] sm:$0xff]  ;;  %v1858_v36 = vld [vmem:[%s8634_s25 + $0x1490] sm:$0xff]  ;;  %1855 = vst [vmem:[%s8639_s6 + $0xa38] sm:$0xff] %v1854_v34 }
 0x106   : > { %1857 = vst [vmem:[%s8639_s6 + $0xa40] sm:$0xff] %v1856_v35  ;;  %1859 = vst [vmem:[%s8639_s6 + $0xa48] sm:$0xff] %v1858_v36  ;;  %v1860_v37 = vld [vmem:[%s8634_s25 + $0x14a0] sm:$0xff]  ;;  %v1862_v38 = vld [vmem:[%s8634_s25 + $0x14b0] sm:$0xff] }
 0x107   : > { %v1864_v39 = vld [vmem:[%s8634_s25 + $0x14c0] sm:$0xff]  ;;  %1861 = vst [vmem:[%s8639_s6 + $0xa50] sm:$0xff] %v1860_v37  ;;  %1863 = vst [vmem:[%s8639_s6 + $0xa58] sm:$0xff] %v1862_v38  ;;  %v1866_v40 = vld [vmem:[%s8634_s25 + $0x14d0] sm:$0xff] }
 0x108   : > { %1865 = vst [vmem:[%s8639_s6 + $0xa60] sm:$0xff] %v1864_v39  ;;  %v1868_v41 = vld [vmem:[%s8634_s25 + $0x14e0] sm:$0xff]  ;;  %v1870_v42 = vld [vmem:[%s8634_s25 + $0x14f0] sm:$0xff]  ;;  %1867 = vst [vmem:[%s8639_s6 + $0xa68] sm:$0xff] %v1866_v40 }
 0x109   : > { %1869 = vst [vmem:[%s8639_s6 + $0xa70] sm:$0xff] %v1868_v41  ;;  %1871 = vst [vmem:[%s8639_s6 + $0xa78] sm:$0xff] %v1870_v42  ;;  %v1872_v43 = vld [vmem:[%s8634_s25 + $0x1500] sm:$0xff]  ;;  %v1874_v44 = vld [vmem:[%s8634_s25 + $0x1510] sm:$0xff] }
 0x10a   : > { %v1876_v45 = vld [vmem:[%s8634_s25 + $0x1520] sm:$0xff]  ;;  %1873 = vst [vmem:[%s8639_s6 + $0xa80] sm:$0xff] %v1872_v43  ;;  %1875 = vst [vmem:[%s8639_s6 + $0xa88] sm:$0xff] %v1874_v44  ;;  %v1878_v46 = vld [vmem:[%s8634_s25 + $0x1530] sm:$0xff] }
 0x10b   : > { %1877 = vst [vmem:[%s8639_s6 + $0xa90] sm:$0xff] %v1876_v45  ;;  %v1880_v47 = vld [vmem:[%s8634_s25 + $0x1540] sm:$0xff]  ;;  %v1882_v48 = vld [vmem:[%s8634_s25 + $0x1550] sm:$0xff]  ;;  %1879 = vst [vmem:[%s8639_s6 + $0xa98] sm:$0xff] %v1878_v46 }
 0x10c   : > { %1881 = vst [vmem:[%s8639_s6 + $0xaa0] sm:$0xff] %v1880_v47  ;;  %1883 = vst [vmem:[%s8639_s6 + $0xaa8] sm:$0xff] %v1882_v48  ;;  %v1884_v49 = vld [vmem:[%s8634_s25 + $0x1560] sm:$0xff]  ;;  %v1886_v50 = vld [vmem:[%s8634_s25 + $0x1570] sm:$0xff] }
 0x10d   : > { %v1888_v51 = vld [vmem:[%s8634_s25 + $0x1580] sm:$0xff]  ;;  %1885 = vst [vmem:[%s8639_s6 + $0xab0] sm:$0xff] %v1884_v49  ;;  %1887 = vst [vmem:[%s8639_s6 + $0xab8] sm:$0xff] %v1886_v50  ;;  %v1890_v52 = vld [vmem:[%s8634_s25 + $0x1590] sm:$0xff] }
 0x10e   : > { %1889 = vst [vmem:[%s8639_s6 + $0xac0] sm:$0xff] %v1888_v51  ;;  %v1892_v53 = vld [vmem:[%s8634_s25 + $0x15a0] sm:$0xff]  ;;  %v1894_v54 = vld [vmem:[%s8634_s25 + $0x15b0] sm:$0xff]  ;;  %1891 = vst [vmem:[%s8639_s6 + $0xac8] sm:$0xff] %v1890_v52 }
 0x10f   : > { %1893 = vst [vmem:[%s8639_s6 + $0xad0] sm:$0xff] %v1892_v53  ;;  %1895 = vst [vmem:[%s8639_s6 + $0xad8] sm:$0xff] %v1894_v54  ;;  %v1896_v55 = vld [vmem:[%s8634_s25 + $0x15c0] sm:$0xff]  ;;  %v1898_v56 = vld [vmem:[%s8634_s25 + $0x15d0] sm:$0xff] }
 0x110   : > { %v1900_v57 = vld [vmem:[%s8634_s25 + $0x15e0] sm:$0xff]  ;;  %1897 = vst [vmem:[%s8639_s6 + $0xae0] sm:$0xff] %v1896_v55  ;;  %1899 = vst [vmem:[%s8639_s6 + $0xae8] sm:$0xff] %v1898_v56  ;;  %v1902_v58 = vld [vmem:[%s8634_s25 + $0x15f0] sm:$0xff] }
 0x111   : > { %1901 = vst [vmem:[%s8639_s6 + $0xaf0] sm:$0xff] %v1900_v57  ;;  %v1904_v59 = vld [vmem:[%s8634_s25 + $0x1600] sm:$0xff]  ;;  %v1906_v60 = vld [vmem:[%s8634_s25 + $0x1610] sm:$0xff]  ;;  %1903 = vst [vmem:[%s8639_s6 + $0xaf8] sm:$0xff] %v1902_v58 }
 0x112   : > { %1905 = vst [vmem:[%s8639_s6 + $0xb00] sm:$0xff] %v1904_v59  ;;  %1907 = vst [vmem:[%s8639_s6 + $0xb08] sm:$0xff] %v1906_v60  ;;  %v1908_v61 = vld [vmem:[%s8634_s25 + $0x1620] sm:$0xff]  ;;  %v1910_v62 = vld [vmem:[%s8634_s25 + $0x1630] sm:$0xff] }
 0x113   : > { %v1912_v63 = vld [vmem:[%s8634_s25 + $0x1640] sm:$0xff]  ;;  %1909 = vst [vmem:[%s8639_s6 + $0xb10] sm:$0xff] %v1908_v61  ;;  %1911 = vst [vmem:[%s8639_s6 + $0xb18] sm:$0xff] %v1910_v62  ;;  %v1914_v0 = vld [vmem:[%s8634_s25 + $0x1650] sm:$0xff] }
 0x114   : > { %1913 = vst [vmem:[%s8639_s6 + $0xb20] sm:$0xff] %v1912_v63  ;;  %v1916_v1 = vld [vmem:[%s8634_s25 + $0x1660] sm:$0xff]  ;;  %v1918_v2 = vld [vmem:[%s8634_s25 + $0x1670] sm:$0xff]  ;;  %1915 = vst [vmem:[%s8639_s6 + $0xb28] sm:$0xff] %v1914_v0 }
 0x115   : > { %1917 = vst [vmem:[%s8639_s6 + $0xb30] sm:$0xff] %v1916_v1  ;;  %1919 = vst [vmem:[%s8639_s6 + $0xb38] sm:$0xff] %v1918_v2  ;;  %v1920_v3 = vld [vmem:[%s8634_s25 + $0x1680] sm:$0xff]  ;;  %v1922_v4 = vld [vmem:[%s8634_s25 + $0x1690] sm:$0xff] }
 0x116   : > { %v1924_v5 = vld [vmem:[%s8634_s25 + $0x16a0] sm:$0xff]  ;;  %1921 = vst [vmem:[%s8639_s6 + $0xb40] sm:$0xff] %v1920_v3  ;;  %1923 = vst [vmem:[%s8639_s6 + $0xb48] sm:$0xff] %v1922_v4  ;;  %v1926_v6 = vld [vmem:[%s8634_s25 + $0x16b0] sm:$0xff] }
 0x117   : > { %1925 = vst [vmem:[%s8639_s6 + $0xb50] sm:$0xff] %v1924_v5  ;;  %v1928_v7 = vld [vmem:[%s8634_s25 + $0x16c0] sm:$0xff]  ;;  %v1930_v8 = vld [vmem:[%s8634_s25 + $0x16d0] sm:$0xff]  ;;  %1927 = vst [vmem:[%s8639_s6 + $0xb58] sm:$0xff] %v1926_v6 }
 0x118   : > { %1929 = vst [vmem:[%s8639_s6 + $0xb60] sm:$0xff] %v1928_v7  ;;  %1931 = vst [vmem:[%s8639_s6 + $0xb68] sm:$0xff] %v1930_v8  ;;  %v1932_v9 = vld [vmem:[%s8634_s25 + $0x16e0] sm:$0xff]  ;;  %v1934_v10 = vld [vmem:[%s8634_s25 + $0x16f0] sm:$0xff] }
 0x119   : > { %v1936_v11 = vld [vmem:[%s8634_s25 + $0x1700] sm:$0xff]  ;;  %1933 = vst [vmem:[%s8639_s6 + $0xb70] sm:$0xff] %v1932_v9  ;;  %1935 = vst [vmem:[%s8639_s6 + $0xb78] sm:$0xff] %v1934_v10  ;;  %v1938_v12 = vld [vmem:[%s8634_s25 + $0x1710] sm:$0xff] }
 0x11a   : > { %1937 = vst [vmem:[%s8639_s6 + $0xb80] sm:$0xff] %v1936_v11  ;;  %v1940_v13 = vld [vmem:[%s8634_s25 + $0x1720] sm:$0xff]  ;;  %v1942_v14 = vld [vmem:[%s8634_s25 + $0x1730] sm:$0xff]  ;;  %1939 = vst [vmem:[%s8639_s6 + $0xb88] sm:$0xff] %v1938_v12 }
 0x11b   : > { %1941 = vst [vmem:[%s8639_s6 + $0xb90] sm:$0xff] %v1940_v13  ;;  %1943 = vst [vmem:[%s8639_s6 + $0xb98] sm:$0xff] %v1942_v14  ;;  %v1944_v15 = vld [vmem:[%s8634_s25 + $0x1740] sm:$0xff]  ;;  %v1946_v16 = vld [vmem:[%s8634_s25 + $0x1750] sm:$0xff] }
 0x11c   : > { %v1948_v17 = vld [vmem:[%s8634_s25 + $0x1760] sm:$0xff]  ;;  %1945 = vst [vmem:[%s8639_s6 + $0xba0] sm:$0xff] %v1944_v15  ;;  %1947 = vst [vmem:[%s8639_s6 + $0xba8] sm:$0xff] %v1946_v16  ;;  %v1950_v18 = vld [vmem:[%s8634_s25 + $0x1770] sm:$0xff] }
 0x11d   : > { %1949 = vst [vmem:[%s8639_s6 + $0xbb0] sm:$0xff] %v1948_v17  ;;  %v1952_v19 = vld [vmem:[%s8634_s25 + $0x1780] sm:$0xff]  ;;  %v1954_v20 = vld [vmem:[%s8634_s25 + $0x1790] sm:$0xff]  ;;  %1951 = vst [vmem:[%s8639_s6 + $0xbb8] sm:$0xff] %v1950_v18 }
 0x11e   : > { %1953 = vst [vmem:[%s8639_s6 + $0xbc0] sm:$0xff] %v1952_v19  ;;  %1955 = vst [vmem:[%s8639_s6 + $0xbc8] sm:$0xff] %v1954_v20  ;;  %v1956_v21 = vld [vmem:[%s8634_s25 + $0x17a0] sm:$0xff]  ;;  %v1958_v22 = vld [vmem:[%s8634_s25 + $0x17b0] sm:$0xff] }
 0x11f   : > { %v1960_v23 = vld [vmem:[%s8634_s25 + $0x17c0] sm:$0xff]  ;;  %1957 = vst [vmem:[%s8639_s6 + $0xbd0] sm:$0xff] %v1956_v21  ;;  %1959 = vst [vmem:[%s8639_s6 + $0xbd8] sm:$0xff] %v1958_v22  ;;  %v1962_v24 = vld [vmem:[%s8634_s25 + $0x17d0] sm:$0xff] }
 0x120   : > { %1961 = vst [vmem:[%s8639_s6 + $0xbe0] sm:$0xff] %v1960_v23  ;;  %v1964_v25 = vld [vmem:[%s8634_s25 + $0x17e0] sm:$0xff]  ;;  %v1966_v26 = vld [vmem:[%s8634_s25 + $0x17f0] sm:$0xff]  ;;  %1963 = vst [vmem:[%s8639_s6 + $0xbe8] sm:$0xff] %v1962_v24 }
 0x121   : > { %1965 = vst [vmem:[%s8639_s6 + $0xbf0] sm:$0xff] %v1964_v25  ;;  %1967 = vst [vmem:[%s8639_s6 + $0xbf8] sm:$0xff] %v1966_v26  ;;  %v1968_v27 = vld [vmem:[%s8634_s25 + $0x1800] sm:$0xff]  ;;  %v1970_v28 = vld [vmem:[%s8634_s25 + $0x1810] sm:$0xff] }
 0x122   : > { %v1972_v29 = vld [vmem:[%s8634_s25 + $0x1820] sm:$0xff]  ;;  %1969 = vst [vmem:[%s8639_s6 + $0xc00] sm:$0xff] %v1968_v27  ;;  %1971 = vst [vmem:[%s8639_s6 + $0xc08] sm:$0xff] %v1970_v28  ;;  %v1974_v30 = vld [vmem:[%s8634_s25 + $0x1830] sm:$0xff] }
 0x123   : > { %1973 = vst [vmem:[%s8639_s6 + $0xc10] sm:$0xff] %v1972_v29  ;;  %v1976_v31 = vld [vmem:[%s8634_s25 + $0x1840] sm:$0xff]  ;;  %v1978_v32 = vld [vmem:[%s8634_s25 + $0x1850] sm:$0xff]  ;;  %1975 = vst [vmem:[%s8639_s6 + $0xc18] sm:$0xff] %v1974_v30 }
 0x124   : > { %1977 = vst [vmem:[%s8639_s6 + $0xc20] sm:$0xff] %v1976_v31  ;;  %1979 = vst [vmem:[%s8639_s6 + $0xc28] sm:$0xff] %v1978_v32  ;;  %v1980_v33 = vld [vmem:[%s8634_s25 + $0x1860] sm:$0xff]  ;;  %v1982_v34 = vld [vmem:[%s8634_s25 + $0x1870] sm:$0xff] }
 0x125   : > { %v1984_v35 = vld [vmem:[%s8634_s25 + $0x1880] sm:$0xff]  ;;  %1981 = vst [vmem:[%s8639_s6 + $0xc30] sm:$0xff] %v1980_v33  ;;  %1983 = vst [vmem:[%s8639_s6 + $0xc38] sm:$0xff] %v1982_v34  ;;  %v1986_v36 = vld [vmem:[%s8634_s25 + $0x1890] sm:$0xff] }
 0x126   : > { %1985 = vst [vmem:[%s8639_s6 + $0xc40] sm:$0xff] %v1984_v35  ;;  %v1988_v37 = vld [vmem:[%s8634_s25 + $0x18a0] sm:$0xff]  ;;  %v1990_v38 = vld [vmem:[%s8634_s25 + $0x18b0] sm:$0xff]  ;;  %1987 = vst [vmem:[%s8639_s6 + $0xc48] sm:$0xff] %v1986_v36 }
 0x127   : > { %1989 = vst [vmem:[%s8639_s6 + $0xc50] sm:$0xff] %v1988_v37  ;;  %1991 = vst [vmem:[%s8639_s6 + $0xc58] sm:$0xff] %v1990_v38  ;;  %v1992_v39 = vld [vmem:[%s8634_s25 + $0x18c0] sm:$0xff]  ;;  %v1994_v40 = vld [vmem:[%s8634_s25 + $0x18d0] sm:$0xff] }
 0x128   : > { %v1996_v41 = vld [vmem:[%s8634_s25 + $0x18e0] sm:$0xff]  ;;  %1993 = vst [vmem:[%s8639_s6 + $0xc60] sm:$0xff] %v1992_v39  ;;  %1995 = vst [vmem:[%s8639_s6 + $0xc68] sm:$0xff] %v1994_v40  ;;  %v1998_v42 = vld [vmem:[%s8634_s25 + $0x18f0] sm:$0xff] }
 0x129   : > { %1997 = vst [vmem:[%s8639_s6 + $0xc70] sm:$0xff] %v1996_v41  ;;  %1999 = vst [vmem:[%s8639_s6 + $0xc78] sm:$0xff] %v1998_v42 }
 0x12a PF: > { %p6700_p0 = scmp.ge.s32.totalorder %s8310_s22, 1  ;;  %p2012_p1 = scmp.lt.s32.totalorder %s8310_s22, 5 }
 0x12c   : > { %p2013_p2 = pnand %p6700_p0, %p2012_p1 }
 0x12d   : > { %s2019_s0 = sand.u32 (!%p2013_p2), 1, %s8286_s16   ;;  %s2026_s5 = sand.u32 (!%p2013_p2), 1, %s8278_s14  }
 0x12e   : > { %2016 = sbr.rel (%p2013_p2) target bundleno = 1115 (0x45b), region = 88  ;;  %s2053_s28 = sand.u32 (!%p2013_p2), 1, %s8270_s12  }
 0x12f   : > { %s7387_s23 = smul.u32 (!%p2013_p2), 700, %s2019_s0  ;;  %s6701_s11 = sshll.u32 (!%p2013_p2), %s8298_s19, 1 }
 0x130   : > { %s7388_s7 = smul.u32 (!%p2013_p2), 3200, %s2026_s5  ;;  %p2060_p3 = scmp.lt.s32.totalorder (!%p2013_p2), %s6701_s11, 3 }
 0x131   : > { %s7389_s25 = smul.u32 (!%p2013_p2), 56, %s2053_s28  ;;  %s9450_s4 = scalar_lea.vmem (!%p2013_p2), [#allocation3], %s7387_s23 }
 0x132   : > { %s9452_s6 = scalar_lea.vmem (!%p2013_p2), [#allocation4], %s7388_s7  ;;  %p6702_p4 = scmp.ne.s32.totalorder (!%p2013_p2), %s8294_s18, 0 }
 0x133   : > { %s9454_s1 = scalar_lea.vmem (!%p2013_p2), [#allocation5], %s7389_s25 }
 0x135   : > { %s10201_s11 = smov (!%p2060_p3, %s6701_s11), 3  ;;  %2069 = sbr.rel (%p6702_p4) target bundleno = 318 (0x13e), region = 100 }
 0x136   : > { %s2062_s29 = scalar_lea.vmem %s10172_s2, %s10201_s11  ;;  %v8312_v43 = vmov (!%p6702_p4), 0.0  }
 0x137   : > { %2070 = vst [vmem:[#allocation2] sm:$0xff] (!%p6702_p4), %v8312_v43  ;;  %2071 = vst [vmem:[#allocation2 + $0x8] sm:$0xff] (!%p6702_p4), %v8312_v43 }
 0x138   : > { %2072 = vst [vmem:[#allocation2 + $0x10] sm:$0xff] (!%p6702_p4), %v8312_v43  ;;  %2073 = vst [vmem:[#allocation2 + $0x18] sm:$0xff] (!%p6702_p4), %v8312_v43 }
 0x139   : > { %2074 = vst [vmem:[#allocation2 + $0x20] sm:$0xff] (!%p6702_p4), %v8312_v43  ;;  %2075 = vst [vmem:[#allocation2 + $0x28] sm:$0xff] (!%p6702_p4), %v8312_v43 }
 0x13a   : > { %2076 = vst [vmem:[#allocation2 + $0x30] sm:$0xff] (!%p6702_p4), %v8312_v43  ;;  %2077 = vst [vmem:[#allocation2 + $0x38] sm:$0xff] (!%p6702_p4), %v8312_v43 }
 0x13b   : > { %2078 = vst [vmem:[#allocation2 + $0x40] sm:$0xff] (!%p6702_p4), %v8312_v43  ;;  %2079 = vst [vmem:[#allocation2 + $0x48] sm:$0xff] (!%p6702_p4), %v8312_v43 }
 0x13c   : > { %2080 = vst [vmem:[#allocation2 + $0x50] sm:$0xff] %v8312_v43  ;;  %2081 = vst [vmem:[#allocation2 + $0x58] sm:$0xff] %v8312_v43 }
 0x13d   : > { %2082 = vst [vmem:[#allocation2 + $0x60] sm:$0x3] %v8312_v43  ;;  %2083 = vst [vmem:[#allocation2 + $0x68] sm:$0x3] %v8312_v43 }
 0x13e PF: > { %v7480_v44 = vld [vmem:[%s9452_s6 + $0x4] ss:$8 sps:$4 sm:$0xff]   ;;  %v7484_v46 = vld [vmem:[%s9452_s6] ss:$8 sps:$4 sm:$0xff]   ;;  %v7486_v48 = vld [vmem:[%s9452_s6 + $0x14] ss:$8 sps:$4 sm:$0xff]  }
 0x13f   : > { %v7482_v45 = vld [vmem:[%s9452_s6 + $0x604] ss:$8 sps:$4 sm:$0xff]   ;;  %5055 = vmatprep.subr.bf16.mxu1 %v7480_v44  ;;  %v7485_v47 = vld [vmem:[%s9452_s6 + $0x600] ss:$8 sps:$4 sm:$0xff]   ;;  %v7488_v49 = vld [vmem:[%s9452_s6 + $0x614] ss:$8 sps:$4 sm:$0xff]  }
 0x140   : > { %5481 = vmatprep.subr.bf16.mxu0 %v7482_v45  ;;  %5056 = vmatpush1.bf16.msra.mxu1 %v7484_v46  ;;  %v7490_v50 = vld [vmem:[%s9452_s6 + $0x10] ss:$8 sps:$4 sm:$0xff]   ;;  %v7492_v52 = vld [vmem:[%s9452_s6 + $0x24] ss:$8 sps:$4 sm:$0xff]   ;;  %v7496_v54 = vld [vmem:[%s9452_s6 + $0x20] ss:$8 sps:$4 sm:$0xff]  }
 0x141   : > { %5482 = vmatpush1.bf16.msra.mxu0 %v7485_v47  ;;  %5057 = vmatprep.subr.bf16.mxu1 %v7486_v48  ;;  %v7491_v51 = vld [vmem:[%s9452_s6 + $0x610] ss:$8 sps:$4 sm:$0xff]   ;;  %v7494_v53 = vld [vmem:[%s9452_s6 + $0x624] ss:$8 sps:$4 sm:$0xff]   ;;  %v7497_v55 = vld [vmem:[%s9452_s6 + $0x620] ss:$8 sps:$4 sm:$0xff]  }
 0x142   : > { %5483 = vmatprep.subr.bf16.mxu0 %v7488_v49  ;;  %v7498_v56 = vld [vmem:[%s9452_s6 + $0x34] ss:$8 sps:$4 sm:$0xff]   ;;  %v7502_v58 = vld [vmem:[%s9452_s6 + $0x30] ss:$8 sps:$4 sm:$0xff]   ;;  %v7504_v60 = vld [vmem:[%s9452_s6 + $0x44] ss:$8 sps:$4 sm:$0xff]  }
 0x143   : > { %v7500_v57 = vld [vmem:[%s9452_s6 + $0x634] ss:$8 sps:$4 sm:$0xff]   ;;  %v7503_v59 = vld [vmem:[%s9452_s6 + $0x630] ss:$8 sps:$4 sm:$0xff]   ;;  %v7506_v61 = vld [vmem:[%s9452_s6 + $0x644] ss:$8 sps:$4 sm:$0xff]  }
 0x144   : > { %5058 = vmatpush1.bf16.msra.mxu1 %v7490_v50  ;;  %v7508_v62 = vld [vmem:[%s9452_s6 + $0x40] ss:$8 sps:$4 sm:$0xff]   ;;  %v7510_v0 = vld [vmem:[%s9452_s6 + $0x54] ss:$8 sps:$4 sm:$0xff]   ;;  %v7514_v2 = vld [vmem:[%s9452_s6 + $0x50] ss:$8 sps:$4 sm:$0xff]  }
 0x145   : > { %5484 = vmatpush1.bf16.msra.mxu0 %v7491_v51  ;;  %5059 = vmatprep.subr.bf16.mxu1 %v7492_v52  ;;  %v7509_v63 = vld [vmem:[%s9452_s6 + $0x640] ss:$8 sps:$4 sm:$0xff]   ;;  %v7512_v1 = vld [vmem:[%s9452_s6 + $0x654] ss:$8 sps:$4 sm:$0xff]   ;;  %v7515_v3 = vld [vmem:[%s9452_s6 + $0x650] ss:$8 sps:$4 sm:$0xff]  }
 0x146   : > { %5485 = vmatprep.subr.bf16.mxu0 %v7494_v53  ;;  %v7516_v4 = vld [vmem:[%s9452_s6 + $0x64] ss:$8 sps:$4 sm:$0xff]   ;;  %v7520_v6 = vld [vmem:[%s9452_s6 + $0x60] ss:$8 sps:$4 sm:$0xff]   ;;  %v7522_v8 = vld [vmem:[%s9452_s6 + $0x74] ss:$8 sps:$4 sm:$0xff]  }
 0x147   : > { %v7518_v5 = vld [vmem:[%s9452_s6 + $0x664] ss:$8 sps:$4 sm:$0xff]   ;;  %v7521_v7 = vld [vmem:[%s9452_s6 + $0x660] ss:$8 sps:$4 sm:$0xff]   ;;  %v7524_v9 = vld [vmem:[%s9452_s6 + $0x674] ss:$8 sps:$4 sm:$0xff]  }
 0x148   : > { %5060 = vmatpush1.bf16.msra.mxu1 %v7496_v54  ;;  %v7526_v10 = vld [vmem:[%s9452_s6 + $0x70] ss:$8 sps:$4 sm:$0xff]   ;;  %v7528_v12 = vld [vmem:[%s9452_s6 + $0x84] ss:$8 sps:$4 sm:$0xff]   ;;  %v7532_v14 = vld [vmem:[%s9452_s6 + $0x80] ss:$8 sps:$4 sm:$0xff]  }
 0x149   : > { %5486 = vmatpush1.bf16.msra.mxu0 %v7497_v55  ;;  %5061 = vmatprep.subr.bf16.mxu1 %v7498_v56  ;;  %v7527_v11 = vld [vmem:[%s9452_s6 + $0x670] ss:$8 sps:$4 sm:$0xff]   ;;  %v7530_v13 = vld [vmem:[%s9452_s6 + $0x684] ss:$8 sps:$4 sm:$0xff]   ;;  %v7533_v15 = vld [vmem:[%s9452_s6 + $0x680] ss:$8 sps:$4 sm:$0xff]  }
 0x14a   : > { %5487 = vmatprep.subr.bf16.mxu0 %v7500_v57  ;;  %v7534_v16 = vld [vmem:[%s9452_s6 + $0x94] ss:$8 sps:$4 sm:$0xff]   ;;  %v7538_v18 = vld [vmem:[%s9452_s6 + $0x90] ss:$8 sps:$4 sm:$0xff]   ;;  %v7540_v20 = vld [vmem:[%s9452_s6 + $0xa4] ss:$8 sps:$4 sm:$0xff]  }
 0x14b   : > { %v7536_v17 = vld [vmem:[%s9452_s6 + $0x694] ss:$8 sps:$4 sm:$0xff]   ;;  %v7539_v19 = vld [vmem:[%s9452_s6 + $0x690] ss:$8 sps:$4 sm:$0xff]   ;;  %v7542_v21 = vld [vmem:[%s9452_s6 + $0x6a4] ss:$8 sps:$4 sm:$0xff]  }
 0x14c   : > { %5062 = vmatpush1.bf16.msra.mxu1 %v7502_v58  ;;  %v7544_v22 = vld [vmem:[%s9452_s6 + $0xa0] ss:$8 sps:$4 sm:$0xff]   ;;  %v7546_v24 = vld [vmem:[%s9452_s6 + $0xb4] ss:$8 sps:$4 sm:$0xff]   ;;  %v7550_v26 = vld [vmem:[%s9452_s6 + $0xb0] ss:$8 sps:$4 sm:$0xff]  }
 0x14d   : > { %5488 = vmatpush1.bf16.msra.mxu0 %v7503_v59  ;;  %5063 = vmatprep.subr.bf16.mxu1 %v7504_v60  ;;  %v7545_v23 = vld [vmem:[%s9452_s6 + $0x6a0] ss:$8 sps:$4 sm:$0xff]   ;;  %v7548_v25 = vld [vmem:[%s9452_s6 + $0x6b4] ss:$8 sps:$4 sm:$0xff]   ;;  %v7551_v27 = vld [vmem:[%s9452_s6 + $0x6b0] ss:$8 sps:$4 sm:$0xff]  }
 0x14e   : > { %5489 = vmatprep.subr.bf16.mxu0 %v7506_v61  ;;  %v7578_v28 = vld [vmem:[%s9450_s4 + $0x4] ss:$100 sps:$4 sm:$0xff]   ;;  %v7584_v31 = vld [vmem:[%s9450_s4 + $0x34] ss:$100 sps:$4 sm:$0xff]   ;;  %p7203_p5 = scmp.ne.s32.totalorder %s8294_s18, 1 }
 0x14f   : > { %v7552_v29 = vld [vmem:[%s9452_s6 + $0xc4] ss:$8 sps:$4 sm:$0xff]   ;;  %5087 = vmatprep.mubr.bf16.mxu1 %v7578_v28  ;;  %v7556_v32 = vld [vmem:[%s9452_s6 + $0xc0] ss:$8 sps:$4 sm:$0xff]   ;;  %v7558_v34 = vld [vmem:[%s9452_s6 + $0xd4] ss:$8 sps:$4 sm:$0xff]   ;;  %5513 = vmatprep.mubr.bf16.mxu0 %v7584_v31 }
 0x150   : > { %5064 = vmatpush1.bf16.msra.mxu1 %v7508_v62  ;;  %v7554_v30 = vld [vmem:[%s9452_s6 + $0x6c4] ss:$8 sps:$4 sm:$0xff]   ;;  %v7557_v33 = vld [vmem:[%s9452_s6 + $0x6c0] ss:$8 sps:$4 sm:$0xff]   ;;  %v7560_v35 = vld [vmem:[%s9452_s6 + $0x6d4] ss:$8 sps:$4 sm:$0xff]  }
 0x151   : > { %5490 = vmatpush1.bf16.msra.mxu0 %v7509_v63  ;;  %5065 = vmatprep.subr.bf16.mxu1 %v7510_v0  ;;  %v7562_v36 = vld [vmem:[%s9452_s6 + $0xd0] ss:$8 sps:$4 sm:$0xff]   ;;  %v7564_v38 = vld [vmem:[%s9452_s6 + $0xe4] ss:$8 sps:$4 sm:$0xff]   ;;  %v7568_v40 = vld [vmem:[%s9452_s6 + $0xe0] ss:$8 sps:$4 sm:$0xff]  }
 0x152   : > { %5491 = vmatprep.subr.bf16.mxu0 %v7512_v1  ;;  %v7563_v37 = vld [vmem:[%s9452_s6 + $0x6d0] ss:$8 sps:$4 sm:$0xff]   ;;  %v7566_v39 = vld [vmem:[%s9452_s6 + $0x6e4] ss:$8 sps:$4 sm:$0xff]   ;;  %v7569_v41 = vld [vmem:[%s9452_s6 + $0x6e0] ss:$8 sps:$4 sm:$0xff]  }
 0x153   : > { %v7570_v42 = vld [vmem:[%s9452_s6 + $0xf4] ss:$8 sps:$4 sm:$0xff]   ;;  %v7574_v44 = vld [vmem:[%s9452_s6 + $0xf0] ss:$8 sps:$4 sm:$0xff]   ;;  %v7581_v46 = vld [vmem:[%s9452_s6 + $0x104] ss:$8 sps:$4 sm:$0xff]  }
 0x154   : > { %5066 = vmatpush1.bf16.msra.mxu1 %v7514_v2  ;;  %v7572_v43 = vld [vmem:[%s9452_s6 + $0x6f4] ss:$8 sps:$4 sm:$0xff]   ;;  %v7575_v45 = vld [vmem:[%s9452_s6 + $0x6f0] ss:$8 sps:$4 sm:$0xff]   ;;  %v7587_v47 = vld [vmem:[%s9452_s6 + $0x704] ss:$8 sps:$4 sm:$0xff]  }
 0x155   : > { %5492 = vmatpush1.bf16.msra.mxu0 %v7515_v3  ;;  %5067 = vmatprep.subr.bf16.mxu1 %v7516_v4  ;;  %v7576_v48 = vld [vmem:[%s9450_s4] ss:$100 sps:$4 sm:$0xff]   ;;  %v7582_v50 = vld [vmem:[%s9450_s4 + $0x30] ss:$100 sps:$4 sm:$0xff]   ;;  %v7644_v63 = vld [vmem:[%s9450_s4 + $0xf8] ss:$100 sps:$4 sm:$0xff]  }
 0x156   : > { %5493 = vmatprep.subr.bf16.mxu0 %v7518_v5  ;;  %v7579_v49 = vld [vmem:[%s9452_s6 + $0x100] ss:$8 sps:$4 sm:$0xff]   ;;  %v7590_v52 = vld [vmem:[%s9452_s6 + $0x114] ss:$8 sps:$4 sm:$0xff]   ;;  %v7588_v54 = vld [vmem:[%s9452_s6 + $0x110] ss:$8 sps:$4 sm:$0xff]  }
 0x157   : > { %v7585_v51 = vld [vmem:[%s9452_s6 + $0x700] ss:$8 sps:$4 sm:$0xff]   ;;  %v7593_v53 = vld [vmem:[%s9452_s6 + $0x714] ss:$8 sps:$4 sm:$0xff]   ;;  %v7591_v55 = vld [vmem:[%s9452_s6 + $0x710] ss:$8 sps:$4 sm:$0xff]  }
 0x158   : > { %5068 = vmatpush1.bf16.msra.mxu1 %v7520_v6  ;;  %v7596_v56 = vld [vmem:[%s9452_s6 + $0x124] ss:$8 sps:$4 sm:$0xff]   ;;  %v7594_v58 = vld [vmem:[%s9452_s6 + $0x120] ss:$8 sps:$4 sm:$0xff]   ;;  %v7602_v60 = vld [vmem:[%s9452_s6 + $0x134] ss:$8 sps:$4 sm:$0xff]  }
 0x159   : > { %5494 = vmatpush1.bf16.msra.mxu0 %v7521_v7  ;;  %5069 = vmatprep.subr.bf16.mxu1 %v7522_v8  ;;  %v7599_v57 = vld [vmem:[%s9452_s6 + $0x724] ss:$8 sps:$4 sm:$0xff]   ;;  %v7597_v59 = vld [vmem:[%s9452_s6 + $0x720] ss:$8 sps:$4 sm:$0xff]   ;;  %v7605_v61 = vld [vmem:[%s9452_s6 + $0x734] ss:$8 sps:$4 sm:$0xff]  }
 0x15a   : > { %5495 = vmatprep.subr.bf16.mxu0 %v7524_v9  ;;  %v7642_v62 = vld [vmem:[%s9450_s4 + $0xfc] ss:$100 sps:$4 sm:$0xff]   ;;  %v7600_v0 = vld [vmem:[%s9452_s6 + $0x130] ss:$8 sps:$4 sm:$0xff]   ;;  %v7614_v8 = vld [vmem:[%s9452_s6 + $0x154] ss:$8 sps:$4 sm:$0xff]  }
 0x15b   : > { %v7645_v1 = vld [vmem:[%s9450_s4 + $0xcc] ss:$100 sps:$4 sm:$0xff]   ;;  %v7608_v4 = vld [vmem:[%s9452_s6 + $0x144] ss:$8 sps:$4 sm:$0xff]   ;;  %v7606_v6 = vld [vmem:[%s9452_s6 + $0x140] ss:$8 sps:$4 sm:$0xff]  }
 0x15c   : > { %5070 = vmatpush1.bf16.msra.mxu1 %v7526_v10  ;;  %v7603_v2 = vld [vmem:[%s9452_s6 + $0x730] ss:$8 sps:$4 sm:$0xff]   ;;  %v7611_v5 = vld [vmem:[%s9452_s6 + $0x744] ss:$8 sps:$4 sm:$0xff]   ;;  %v7609_v7 = vld [vmem:[%s9452_s6 + $0x740] ss:$8 sps:$4 sm:$0xff]  }
 0x15d   : > { %5496 = vmatpush1.bf16.msra.mxu0 %v7527_v11  ;;  %5071 = vmatprep.subr.bf16.mxu1 %v7528_v12  ;;  %v7647_v3 = vld [vmem:[%s9450_s4 + $0xc8] ss:$100 sps:$4 sm:$0xff]   ;;  %v7662_v11 = vld [vmem:[%s9450_s4 + $0x1c0] ss:$100 sps:$4 sm:$0xff]   ;;  %vm6112_vm2 = vcmask (!%p7203_p5), 1041408  }
 0x15e   : > { %5497 = vmatprep.subr.bf16.mxu0 %v7530_v13  ;;  %v7617_v9 = vld [vmem:[%s9452_s6 + $0x754] ss:$8 sps:$4 sm:$0xff]   ;;  %v7660_v10 = vld [vmem:[%s9450_s4 + $0x1c4] ss:$100 sps:$4 sm:$0xff]  }
 0x15f   : > { %v7612_v12 = vld [vmem:[%s9452_s6 + $0x150] ss:$8 sps:$4 sm:$0xff]   ;;  %v7635_v31 = vld [vmem:[%s9452_s6 + $0x784] ss:$8 sps:$4 sm:$0xff]  }
 0x160   : > { %5072 = vmatpush1.bf16.msra.mxu1 %v7532_v14  ;;  %v7663_v13 = vld [vmem:[%s9450_s4 + $0x194] ss:$100 sps:$4 sm:$0xff]  }
 0x161   : > { %5498 = vmatpush1.bf16.msra.mxu0 %v7533_v15  ;;  %5073 = vmatprep.subr.bf16.mxu1 %v7534_v16  ;;  %v7615_v14 = vld [vmem:[%s9452_s6 + $0x750] ss:$8 sps:$4 sm:$0xff]   ;;  %v7620_v16 = vld [vmem:[%s9452_s6 + $0x164] ss:$8 sps:$4 sm:$0xff]  }
 0x162   : > { %5499 = vmatprep.subr.bf16.mxu0 %v7536_v17  ;;  %v7665_v15 = vld [vmem:[%s9450_s4 + $0x190] ss:$100 sps:$4 sm:$0xff]   ;;  %v7623_v17 = vld [vmem:[%s9452_s6 + $0x764] ss:$8 sps:$4 sm:$0xff]  }
 0x163   : > { %v7624_v28 = vld [vmem:[%s9452_s6 + $0x170] ss:$8 sps:$4 sm:$0xff]  }
 0x164   : > { %5074 = vmatpush1.bf16.msra.mxu1 %v7538_v18  ;;  %v7618_v18 = vld [vmem:[%s9452_s6 + $0x160] ss:$8 sps:$4 sm:$0xff]  }
 0x165   : > { %5500 = vmatpush1.bf16.msra.mxu0 %v7539_v19  ;;  %5075 = vmatprep.subr.bf16.mxu1 %v7540_v20  ;;  %v7621_v19 = vld [vmem:[%s9452_s6 + $0x760] ss:$8 sps:$4 sm:$0xff]   ;;  %v2182_v20 = vld [vmem:[%s9450_s4 + $0x288] sm:$0x11] }
 0x166   : > { %5501 = vmatprep.subr.bf16.mxu0 %v7542_v21  ;;  %v2176_v21 = vld [vmem:[%s9450_s4 + $0x258] sm:$0x11] }
 0x168   : > { %5076 = vmatpush1.bf16.msra.mxu1 %v7544_v22  ;;  %v7626_v22 = vld [vmem:[%s9452_s6 + $0x174] ss:$8 sps:$4 sm:$0xff]  }
 0x169   : > { %5502 = vmatpush1.bf16.msra.mxu0 %v7545_v23  ;;  %5077 = vmatprep.subr.bf16.mxu1 %v7546_v24  ;;  %v7629_v23 = vld [vmem:[%s9452_s6 + $0x774] ss:$8 sps:$4 sm:$0xff]   ;;  %v6791_v24 = vcombine.high %v2182_v20, %v2182_v20 }
 0x16a   : > { %5503 = vmatprep.subr.bf16.mxu0 %v7548_v25  ;;  %v6779_v25 = vcombine.high %v2176_v21, %v2176_v21 }
 0x16c   : > { %5078 = vmatpush1.bf16.msra.mxu1 %v7550_v26  ;;  %v6790_v26 = vcombine.low %v2182_v20, %v2182_v20  ;;  %v7727_v20 = vld [vmem:[%s9450_s4 + $0x19c] ss:$100 sps:$4 sm:$0xff]  }
 0x16d   : > { %5504 = vmatpush1.bf16.msra.mxu0 %v7551_v27  ;;  %5079 = vmatprep.subr.bf16.mxu1 %v7552_v29  ;;  %v6778_v27 = vcombine.low %v2176_v21, %v2176_v21  ;;  %v7627_v29 = vld [vmem:[%s9452_s6 + $0x770] ss:$8 sps:$4 sm:$0xff]  }
 0x16e   : > { %5505 = vmatprep.subr.bf16.mxu0 %v7554_v30  ;;  %v7632_v30 = vld [vmem:[%s9452_s6 + $0x184] ss:$8 sps:$4 sm:$0xff]   ;;  %v7783_v21 = vld [vmem:[%s9450_s4 + $0x1cc] ss:$100 sps:$4 sm:$0xff]  }
 0x170   : > { %5080 = vmatpush1.bf16.msra.mxu1 %v7556_v32  ;;  %v7630_v32 = vld [vmem:[%s9452_s6 + $0x180] ss:$8 sps:$4 sm:$0xff]  }
 0x171   : > { %5506 = vmatpush1.bf16.msra.mxu0 %v7557_v33  ;;  %5081 = vmatprep.subr.bf16.mxu1 %v7558_v34  ;;  %v7696_v33 = vld [vmem:[%s9450_s4 + $0xc] ss:$100 sps:$4 sm:$0xff]   ;;  %v7633_v34 = vld [vmem:[%s9452_s6 + $0x780] ss:$8 sps:$4 sm:$0xff]  }
 0x172   : > { %5507 = vmatprep.subr.bf16.mxu0 %v7560_v35  ;;  %v7638_v35 = vld [vmem:[%s9452_s6 + $0x194] ss:$8 sps:$4 sm:$0xff]  }
 0x174   : > { %5082 = vmatpush1.bf16.msra.mxu1 %v7562_v36  ;;  %v7641_v36 = vld [vmem:[%s9452_s6 + $0x794] ss:$8 sps:$4 sm:$0xff]  }
 0x175   : > { %5508 = vmatpush1.bf16.msra.mxu0 %v7563_v37  ;;  %5083 = vmatprep.subr.bf16.mxu1 %v7564_v38  ;;  %v7702_v37 = vld [vmem:[%s9450_s4 + $0x3c] ss:$100 sps:$4 sm:$0xff]   ;;  %v7636_v38 = vld [vmem:[%s9452_s6 + $0x190] ss:$8 sps:$4 sm:$0xff]  }
 0x176   : > { %5509 = vmatprep.subr.bf16.mxu0 %v7566_v39  ;;  %v7639_v39 = vld [vmem:[%s9452_s6 + $0x790] ss:$8 sps:$4 sm:$0xff]  }
 0x178   : > { %5084 = vmatpush1.bf16.msra.mxu1 %v7568_v40  ;;  %v7650_v40 = vld [vmem:[%s9452_s6 + $0x1a4] ss:$8 sps:$4 sm:$0xff]  }
 0x179   : > { %5510 = vmatpush1.bf16.msra.mxu0 %v7569_v41  ;;  %5085 = vmatprep.subr.bf16.mxu1 %v7570_v42  ;;  %v7653_v41 = vld [vmem:[%s9452_s6 + $0x7a4] ss:$8 sps:$4 sm:$0xff]   ;;  %v7648_v42 = vld [vmem:[%s9452_s6 + $0x1a0] ss:$8 sps:$4 sm:$0xff]  }
 0x17a   : > { %5511 = vmatprep.subr.bf16.mxu0 %v7572_v43  ;;  %v7651_v43 = vld [vmem:[%s9452_s6 + $0x7a0] ss:$8 sps:$4 sm:$0xff]  }
 0x17c   : > { %5086 = vmatpush1.bf16.msra.mxu1 %v7574_v44  ;;  %v7656_v44 = vld [vmem:[%s9452_s6 + $0x1b4] ss:$8 sps:$4 sm:$0xff]  }
 0x17d   : > { %5512 = vmatpush1.bf16.msra.mxu0 %v7575_v45  ;;  %5126 = vmatprep.subr.bf16.mxu1 %v7581_v46  ;;  %v7659_v45 = vld [vmem:[%s9452_s6 + $0x7b4] ss:$8 sps:$4 sm:$0xff]   ;;  %v7654_v46 = vld [vmem:[%s9452_s6 + $0x1b0] ss:$8 sps:$4 sm:$0xff]  }
 0x17e   : > { %5552 = vmatprep.subr.bf16.mxu0 %v7587_v47  ;;  %v7657_v47 = vld [vmem:[%s9452_s6 + $0x7b0] ss:$8 sps:$4 sm:$0xff]  }
 0x17f   : > { %5088 = vmatmul.mubr.bf16.vlgmr.msra.gmra.mrb[0].mxu1 %v7576_v48  ;;  %v7668_v48 = vld [vmem:[%s9452_s6 + $0x1c4] ss:$8 sps:$4 sm:$0xff]  }
 0x180   : > { %5514 = vmatmul.mubr.bf16.vlgmr.msra.gmra.mrb[0].mxu0 %v7582_v50  ;;  %5127 = vmatpush1.bf16.msra.mxu1 %v7579_v49  ;;  %v7671_v49 = vld [vmem:[%s9452_s6 + $0x7c4] ss:$8 sps:$4 sm:$0xff]   ;;  %v7666_v50 = vld [vmem:[%s9452_s6 + $0x1c0] ss:$8 sps:$4 sm:$0xff]  }
 0x181   : > { %5553 = vmatpush1.bf16.msra.mxu0 %v7585_v51  ;;  %5128 = vmatprep.subr.bf16.mxu1 %v7590_v52  ;;  %v7669_v51 = vld [vmem:[%s9452_s6 + $0x7c0] ss:$8 sps:$4 sm:$0xff]   ;;  %v7674_v52 = vld [vmem:[%s9452_s6 + $0x1d4] ss:$8 sps:$4 sm:$0xff]  }
 0x182   : > { %5554 = vmatprep.subr.bf16.mxu0 %v7593_v53  ;;  %5523 = vmatprep.mubr.bf16.mxu0 %v7642_v62  ;;  %v7677_v53 = vld [vmem:[%s9452_s6 + $0x7d4] ss:$8 sps:$4 sm:$0xff]   ;;  %v7688_v62 = vld [vmem:[%s9452_s6 + $0x1f0] ss:$8 sps:$4 sm:$0xff]  }
 0x183   : > { %5097 = vmatprep.mubr.bf16.mxu1 %v7645_v1  ;;  %v7694_v1 = vld [vmem:[%s9450_s4 + $0x8] ss:$100 sps:$4 sm:$0xff]  }
 0x184   : > { %5129 = vmatpush1.bf16.msra.mxu1 %v7588_v54  ;;  %v7672_v54 = vld [vmem:[%s9452_s6 + $0x1d0] ss:$8 sps:$4 sm:$0xff]  }
 0x185   : > { %5555 = vmatpush1.bf16.msra.mxu0 %v7591_v55  ;;  %5130 = vmatprep.subr.bf16.mxu1 %v7596_v56  ;;  %v7675_v55 = vld [vmem:[%s9452_s6 + $0x7d0] ss:$8 sps:$4 sm:$0xff]   ;;  %v7684_v56 = vld [vmem:[%s9452_s6 + $0x1e4] ss:$8 sps:$4 sm:$0xff]  }
 0x186   : > { %5556 = vmatprep.subr.bf16.mxu0 %v7599_v57  ;;  %v7687_v57 = vld [vmem:[%s9452_s6 + $0x7e4] ss:$8 sps:$4 sm:$0xff]  }
 0x187   : > { %5098 = vmatmul.mubr.bf16.gmra.mrb[4].mxu1 %v7647_v3  ;;  %v7697_v3 = vld [vmem:[%s9452_s6 + $0x200] ss:$8 sps:$4 sm:$0xff]  }
 0x188   : > { %5524 = vmatmul.mubr.bf16.gmra.mrb[4].mxu0 %v7644_v63  ;;  %5131 = vmatpush1.bf16.msra.mxu1 %v7594_v58  ;;  %v7682_v58 = vld [vmem:[%s9452_s6 + $0x1e0] ss:$8 sps:$4 sm:$0xff]   ;;  %v7691_v63 = vld [vmem:[%s9452_s6 + $0x7f0] ss:$8 sps:$4 sm:$0xff]  }
 0x189   : > { %5557 = vmatpush1.bf16.msra.mxu0 %v7597_v59  ;;  %5132 = vmatprep.subr.bf16.mxu1 %v7602_v60  ;;  %v7685_v59 = vld [vmem:[%s9452_s6 + $0x7e0] ss:$8 sps:$4 sm:$0xff]   ;;  %v7690_v60 = vld [vmem:[%s9452_s6 + $0x1f4] ss:$8 sps:$4 sm:$0xff]  }
 0x18a   : > { %5558 = vmatprep.subr.bf16.mxu0 %v7605_v61  ;;  %5533 = vmatprep.mubr.bf16.mxu0 %v7660_v10  ;;  %v7693_v61 = vld [vmem:[%s9452_s6 + $0x7f4] ss:$8 sps:$4 sm:$0xff]   ;;  %v7706_v10 = vld [vmem:[%s9452_s6 + $0x210] ss:$8 sps:$4 sm:$0xff]  }
 0x18b   : > { %5107 = vmatprep.mubr.bf16.mxu1 %v7663_v13  ;;  %v7714_v13 = vld [vmem:[%s9450_s4 + $0xd0] ss:$100 sps:$4 sm:$0xff]  }
 0x18c   : > { %5133 = vmatpush1.bf16.msra.mxu1 %v7600_v0  ;;  %v7699_v0 = vld [vmem:[%s9452_s6 + $0x204] ss:$8 sps:$4 sm:$0xff]  }
 0x18d   : > { %5559 = vmatpush1.bf16.msra.mxu0 %v7603_v2  ;;  %5134 = vmatprep.subr.bf16.mxu1 %v7608_v4  ;;  %v7705_v2 = vld [vmem:[%s9452_s6 + $0x804] ss:$8 sps:$4 sm:$0xff]  }
 0x18e   : > { %5560 = vmatprep.subr.bf16.mxu0 %v7611_v5  ;;  %v7700_v4 = vld [vmem:[%s9450_s4 + $0x38] ss:$100 sps:$4 sm:$0xff]  }
 0x18f   : > { %5108 = vmatmul.mubr.bf16.gmra.mrb[8].mxu1 %v7665_v15  ;;  %v7703_v5 = vld [vmem:[%s9452_s6 + $0x800] ss:$8 sps:$4 sm:$0xff]  }
 0x190   : > { %5534 = vmatmul.mubr.bf16.gmra.mrb[8].mxu0 %v7662_v11  ;;  %5135 = vmatpush1.bf16.msra.mxu1 %v7606_v6  ;;  %v7708_v6 = vld [vmem:[%s9452_s6 + $0x214] ss:$8 sps:$4 sm:$0xff]   ;;  %v7709_v11 = vld [vmem:[%s9452_s6 + $0x810] ss:$8 sps:$4 sm:$0xff]   ;;  %v7715_v15 = vld [vmem:[%s9452_s6 + $0x220] ss:$8 sps:$4 sm:$0xff]  }
 0x191   : > { %5561 = vmatpush1.bf16.msra.mxu0 %v7609_v7  ;;  %5136 = vmatprep.subr.bf16.mxu1 %v7614_v8  ;;  %v7711_v7 = vld [vmem:[%s9452_s6 + $0x814] ss:$8 sps:$4 sm:$0xff]  }
 0x192   : > { %5562 = vmatprep.subr.bf16.mxu0 %v7617_v9  ;;  %5543 = vmatprep.mubr.bf16.mxu0 %v6791_v24  ;;  %v7712_v8 = vld [vmem:[%s9450_s4 + $0xd4] ss:$100 sps:$4 sm:$0xff]   ;;  %v7768_v9 = vld [vmem:[%s9450_s4 + $0x104] ss:$100 sps:$4 sm:$0xff]  }
 0x193   : > { %5117 = vmatprep.mubr.bf16.mxu1 %v6779_v25  ;;  %v7732_v24 = vld [vmem:[%s9452_s6 + $0x244] ss:$8 sps:$4 sm:$0xff]  }
 0x194   : > { %5137 = vmatpush1.bf16.msra.mxu1 %v7612_v12  ;;  %v7717_v12 = vld [vmem:[%s9452_s6 + $0x224] ss:$8 sps:$4 sm:$0xff]  }
 0x195   : > { %5563 = vmatpush1.bf16.msra.mxu0 %v7615_v14  ;;  %5138 = vmatprep.subr.bf16.mxu1 %v7620_v16  ;;  %v7720_v14 = vld [vmem:[%s9452_s6 + $0x824] ss:$8 sps:$4 sm:$0xff]   ;;  %v7718_v16 = vld [vmem:[%s9452_s6 + $0x820] ss:$8 sps:$4 sm:$0xff]  }
 0x196   : > { %5564 = vmatprep.subr.bf16.mxu0 %v7623_v17  ;;  %v7770_v17 = vld [vmem:[%s9450_s4 + $0x100] ss:$100 sps:$4 sm:$0xff]   ;;  %v7729_v25 = vld [vmem:[%s9450_s4 + $0x198] ss:$100 sps:$4 sm:$0xff]  }
 0x197   : > { %5118 = vmatmul.mubr.bf16.gmra.mrb[12].mxu1 %v6778_v27  ;;  %v7730_v27 = vld [vmem:[%s9452_s6 + $0x240] ss:$8 sps:$4 sm:$0xff]  }
 0x198   : > { %5139 = vmatpush1.bf16.msra.mxu1 %v7618_v18  ;;  %5544 = vmatmul.mubr.bf16.gmra.mrb[12].mxu0 %v6790_v26  ;;  %v7723_v18 = vld [vmem:[%s9452_s6 + $0x234] ss:$8 sps:$4 sm:$0xff]   ;;  %v7735_v26 = vld [vmem:[%s9452_s6 + $0x844] ss:$8 sps:$4 sm:$0xff]  }
 0x199   : > { %5565 = vmatpush1.bf16.msra.mxu0 %v7621_v19  ;;  %5140 = vmatprep.subr.bf16.mxu1 %v7626_v22  ;;  %v7726_v19 = vld [vmem:[%s9452_s6 + $0x834] ss:$8 sps:$4 sm:$0xff]   ;;  %v7721_v22 = vld [vmem:[%s9452_s6 + $0x230] ss:$8 sps:$4 sm:$0xff]  }
 0x19a   : > { %5566 = vmatprep.subr.bf16.mxu0 %v7629_v23  ;;  %5158 = vmatprep.mubr.bf16.mxu1 %v7696_v33  ;;  %v7724_v23 = vld [vmem:[%s9452_s6 + $0x830] ss:$8 sps:$4 sm:$0xff]   ;;  %v7741_v33 = vld [vmem:[%s9452_s6 + $0x854] ss:$8 sps:$4 sm:$0xff]  }
 0x19b   : > { %5584 = vmatprep.mubr.bf16.mxu0 %v7702_v37  ;;  %v7739_v37 = vld [vmem:[%s9452_s6 + $0x850] ss:$8 sps:$4 sm:$0xff]  }
 0x19c   : > { %5141 = vmatpush1.bf16.msra.mxu1 %v7624_v28  ;;  %v7733_v28 = vld [vmem:[%s9452_s6 + $0x840] ss:$8 sps:$4 sm:$0xff]  }
 0x19d   : > { %5567 = vmatpush1.bf16.msra.mxu0 %v7627_v29  ;;  %5142 = vmatprep.subr.bf16.mxu1 %v7632_v30  ;;  %v2177_v29 = vld [vmem:[%s9450_s4 + $0x260] sm:$0x11]  ;;  %v7785_v30 = vld [vmem:[%s9450_s4 + $0x1c8] ss:$100 sps:$4 sm:$0xff]  }
 0x19e   : > { %5568 = vmatprep.subr.bf16.mxu0 %v7635_v31  ;;  %v2183_v31 = vld [vmem:[%s9450_s4 + $0x290] sm:$0x11] }
 0x1a0   : > { %5143 = vmatpush1.bf16.msra.mxu1 %v7630_v32  ;;  %v7738_v32 = vld [vmem:[%s9452_s6 + $0x254] ss:$8 sps:$4 sm:$0xff]  }
 0x1a1   : > { %5569 = vmatpush1.bf16.msra.mxu0 %v7633_v34  ;;  %5144 = vmatprep.subr.bf16.mxu1 %v7638_v35  ;;  %v6781_v34 = vcombine.high %v2177_v29, %v2177_v29  ;;  %v6793_v35 = vcombine.high %v2183_v31, %v2183_v31 }
 0x1a2   : > { %5570 = vmatprep.subr.bf16.mxu0 %v7641_v36  ;;  %v7736_v36 = vld [vmem:[%s9452_s6 + $0x250] ss:$8 sps:$4 sm:$0xff]  }
 0x1a4   : > { %5145 = vmatpush1.bf16.msra.mxu1 %v7636_v38  ;;  %v7746_v38 = vld [vmem:[%s9452_s6 + $0x264] ss:$8 sps:$4 sm:$0xff]  }
 0x1a5   : > { %5571 = vmatpush1.bf16.msra.mxu0 %v7639_v39  ;;  %5146 = vmatprep.subr.bf16.mxu1 %v7650_v40  ;;  %v7749_v39 = vld [vmem:[%s9452_s6 + $0x864] ss:$8 sps:$4 sm:$0xff]   ;;  %v6780_v40 = vcombine.low %v2177_v29, %v2177_v29  ;;  %v7827_v29 = vld [vmem:[%s9452_s6 + $0x910] ss:$8 sps:$4 sm:$0xff]  }
 0x1a6   : > { %5572 = vmatprep.subr.bf16.mxu0 %v7653_v41  ;;  %v7744_v41 = vld [vmem:[%s9452_s6 + $0x260] ss:$8 sps:$4 sm:$0xff]  }
 0x1a8   : > { %5147 = vmatpush1.bf16.msra.mxu1 %v7648_v42  ;;  %v7747_v42 = vld [vmem:[%s9452_s6 + $0x860] ss:$8 sps:$4 sm:$0xff]  }
 0x1a9   : > { %5573 = vmatpush1.bf16.msra.mxu0 %v7651_v43  ;;  %5148 = vmatprep.subr.bf16.mxu1 %v7656_v44  ;;  %v6792_v43 = vcombine.low %v2183_v31, %v2183_v31  ;;  %v7752_v44 = vld [vmem:[%s9452_s6 + $0x274] ss:$8 sps:$4 sm:$0xff]   ;;  %v7835_v31 = vld [vmem:[%s9452_s6 + $0x324] ss:$8 sps:$4 sm:$0xff]  }
 0x1aa   : > { %5574 = vmatprep.subr.bf16.mxu0 %v7659_v45  ;;  %v7755_v45 = vld [vmem:[%s9452_s6 + $0x874] ss:$8 sps:$4 sm:$0xff]  }
 0x1ac   : > { %5149 = vmatpush1.bf16.msra.mxu1 %v7654_v46  ;;  %v7814_v46 = vld [vmem:[%s9450_s4 + $0x14] ss:$100 sps:$4 sm:$0xff]  }
 0x1ad   : > { %5575 = vmatpush1.bf16.msra.mxu0 %v7657_v47  ;;  %5150 = vmatprep.subr.bf16.mxu1 %v7668_v48  ;;  %v7820_v47 = vld [vmem:[%s9450_s4 + $0x44] ss:$100 sps:$4 sm:$0xff]  }
 0x1ae   : > { %5576 = vmatprep.subr.bf16.mxu0 %v7671_v49  ;;  %v7750_v48 = vld [vmem:[%s9452_s6 + $0x270] ss:$8 sps:$4 sm:$0xff]  }
 0x1af   : > { %v7753_v49 = vld [vmem:[%s9452_s6 + $0x870] ss:$8 sps:$4 sm:$0xff]  }
 0x1b0   : > { %5151 = vmatpush1.bf16.msra.mxu1 %v7666_v50  ;;  %v7758_v50 = vld [vmem:[%s9452_s6 + $0x284] ss:$8 sps:$4 sm:$0xff]  }
 0x1b1   : > { %5577 = vmatpush1.bf16.msra.mxu0 %v7669_v51  ;;  %5152 = vmatprep.subr.bf16.mxu1 %v7674_v52  ;;  %v7761_v51 = vld [vmem:[%s9452_s6 + $0x884] ss:$8 sps:$4 sm:$0xff]   ;;  %v7756_v52 = vld [vmem:[%s9452_s6 + $0x280] ss:$8 sps:$4 sm:$0xff]  }
 0x1b2   : > { %5578 = vmatprep.subr.bf16.mxu0 %v7677_v53  ;;  %v7759_v53 = vld [vmem:[%s9452_s6 + $0x880] ss:$8 sps:$4 sm:$0xff]  }
 0x1b4   : > { %5153 = vmatpush1.bf16.msra.mxu1 %v7672_v54  ;;  %v7764_v54 = vld [vmem:[%s9452_s6 + $0x294] ss:$8 sps:$4 sm:$0xff]  }
 0x1b5   : > { %5579 = vmatpush1.bf16.msra.mxu0 %v7675_v55  ;;  %5154 = vmatprep.subr.bf16.mxu1 %v7684_v56  ;;  %v7767_v55 = vld [vmem:[%s9452_s6 + $0x894] ss:$8 sps:$4 sm:$0xff]   ;;  %v7762_v56 = vld [vmem:[%s9452_s6 + $0x290] ss:$8 sps:$4 sm:$0xff]  }
 0x1b6   : > { %5580 = vmatprep.subr.bf16.mxu0 %v7687_v57  ;;  %v7765_v57 = vld [vmem:[%s9452_s6 + $0x890] ss:$8 sps:$4 sm:$0xff]  }
 0x1b8   : > { %5155 = vmatpush1.bf16.msra.mxu1 %v7682_v58  ;;  %v7773_v58 = vld [vmem:[%s9452_s6 + $0x2a4] ss:$8 sps:$4 sm:$0xff]  }
 0x1b9   : > { %5581 = vmatpush1.bf16.msra.mxu0 %v7685_v59  ;;  %5156 = vmatprep.subr.bf16.mxu1 %v7690_v60  ;;  %v7776_v59 = vld [vmem:[%s9452_s6 + $0x8a4] ss:$8 sps:$4 sm:$0xff]   ;;  %v7771_v60 = vld [vmem:[%s9452_s6 + $0x2a0] ss:$8 sps:$4 sm:$0xff]  }
 0x1ba   : > { %5582 = vmatprep.subr.bf16.mxu0 %v7693_v61  ;;  %v7774_v61 = vld [vmem:[%s9452_s6 + $0x8a0] ss:$8 sps:$4 sm:$0xff]  }
 0x1bc   : > { %5157 = vmatpush1.bf16.msra.mxu1 %v7688_v62  ;;  %v7779_v62 = vld [vmem:[%s9452_s6 + $0x2b4] ss:$8 sps:$4 sm:$0xff]  }
 0x1bd   : > { %5583 = vmatpush1.bf16.msra.mxu0 %v7691_v63  ;;  %5197 = vmatprep.subr.bf16.mxu1 %v7699_v0  ;;  %v7782_v63 = vld [vmem:[%s9452_s6 + $0x8b4] ss:$8 sps:$4 sm:$0xff]   ;;  %v7777_v0 = vld [vmem:[%s9452_s6 + $0x2b0] ss:$8 sps:$4 sm:$0xff]  }
 0x1be   : > { %5623 = vmatprep.subr.bf16.mxu0 %v7705_v2  ;;  %v7788_v2 = vld [vmem:[%s9452_s6 + $0x2c4] ss:$8 sps:$4 sm:$0xff]  }
 0x1bf   : > { %5159 = vmatmul.mubr.bf16.vlgmr.msra.gmra.mrb[0].mxu1 %v7694_v1  ;;  %v7780_v1 = vld [vmem:[%s9452_s6 + $0x8b0] ss:$8 sps:$4 sm:$0xff]  }
 0x1c0   : > { %5585 = vmatmul.mubr.bf16.vlgmr.msra.gmra.mrb[0].mxu0 %v7700_v4  ;;  %5198 = vmatpush1.bf16.msra.mxu1 %v7697_v3  ;;  %v7791_v3 = vld [vmem:[%s9452_s6 + $0x8c4] ss:$8 sps:$4 sm:$0xff]   ;;  %v7786_v4 = vld [vmem:[%s9452_s6 + $0x2c0] ss:$8 sps:$4 sm:$0xff]  }
 0x1c1   : > { %5624 = vmatpush1.bf16.msra.mxu0 %v7703_v5  ;;  %5199 = vmatprep.subr.bf16.mxu1 %v7708_v6  ;;  %v7789_v5 = vld [vmem:[%s9452_s6 + $0x8c0] ss:$8 sps:$4 sm:$0xff]   ;;  %v7794_v6 = vld [vmem:[%s9452_s6 + $0x2d4] ss:$8 sps:$4 sm:$0xff]  }
 0x1c2   : > { %5625 = vmatprep.subr.bf16.mxu0 %v7711_v7  ;;  %5168 = vmatprep.mubr.bf16.mxu1 %v7712_v8  ;;  %v7797_v7 = vld [vmem:[%s9452_s6 + $0x8d4] ss:$8 sps:$4 sm:$0xff]   ;;  %v7792_v8 = vld [vmem:[%s9452_s6 + $0x2d0] ss:$8 sps:$4 sm:$0xff]  }
 0x1c3   : > { %5594 = vmatprep.mubr.bf16.mxu0 %v7768_v9  ;;  %v7795_v9 = vld [vmem:[%s9452_s6 + $0x8d0] ss:$8 sps:$4 sm:$0xff]  }
 0x1c4   : > { %5200 = vmatpush1.bf16.msra.mxu1 %v7706_v10  ;;  %v7802_v10 = vld [vmem:[%s9452_s6 + $0x2e4] ss:$8 sps:$4 sm:$0xff]  }
 0x1c5   : > { %5626 = vmatpush1.bf16.msra.mxu0 %v7709_v11  ;;  %5201 = vmatprep.subr.bf16.mxu1 %v7717_v12  ;;  %v7805_v11 = vld [vmem:[%s9452_s6 + $0x8e4] ss:$8 sps:$4 sm:$0xff]   ;;  %v7800_v12 = vld [vmem:[%s9452_s6 + $0x2e0] ss:$8 sps:$4 sm:$0xff]  }
 0x1c6   : > { %5627 = vmatprep.subr.bf16.mxu0 %v7720_v14  ;;  %v7808_v14 = vld [vmem:[%s9452_s6 + $0x2f4] ss:$8 sps:$4 sm:$0xff]  }
 0x1c7   : > { %5169 = vmatmul.mubr.bf16.gmra.mrb[4].mxu1 %v7714_v13  ;;  %v7803_v13 = vld [vmem:[%s9452_s6 + $0x8e0] ss:$8 sps:$4 sm:$0xff]  }
 0x1c8   : > { %5595 = vmatmul.mubr.bf16.gmra.mrb[4].mxu0 %v7770_v17  ;;  %5202 = vmatpush1.bf16.msra.mxu1 %v7715_v15  ;;  %v7811_v15 = vld [vmem:[%s9452_s6 + $0x8f4] ss:$8 sps:$4 sm:$0xff]   ;;  %v7809_v17 = vld [vmem:[%s9452_s6 + $0x8f0] ss:$8 sps:$4 sm:$0xff]  }
 0x1c9   : > { %5628 = vmatpush1.bf16.msra.mxu0 %v7718_v16  ;;  %5203 = vmatprep.subr.bf16.mxu1 %v7723_v18  ;;  %v7806_v16 = vld [vmem:[%s9452_s6 + $0x2f0] ss:$8 sps:$4 sm:$0xff]   ;;  %v7817_v18 = vld [vmem:[%s9452_s6 + $0x304] ss:$8 sps:$4 sm:$0xff]  }
 0x1ca   : > { %5629 = vmatprep.subr.bf16.mxu0 %v7726_v19  ;;  %5178 = vmatprep.mubr.bf16.mxu1 %v7727_v20  ;;  %v7823_v19 = vld [vmem:[%s9452_s6 + $0x904] ss:$8 sps:$4 sm:$0xff]   ;;  %v7812_v20 = vld [vmem:[%s9450_s4 + $0x10] ss:$100 sps:$4 sm:$0xff]  }
 0x1cb   : > { %5604 = vmatprep.mubr.bf16.mxu0 %v7783_v21  ;;  %v7815_v21 = vld [vmem:[%s9452_s6 + $0x300] ss:$8 sps:$4 sm:$0xff]  }
 0x1cc   : > { %5204 = vmatpush1.bf16.msra.mxu1 %v7721_v22  ;;  %v7818_v22 = vld [vmem:[%s9450_s4 + $0x40] ss:$100 sps:$4 sm:$0xff]  }
 0x1cd   : > { %5630 = vmatpush1.bf16.msra.mxu0 %v7724_v23  ;;  %5205 = vmatprep.subr.bf16.mxu1 %v7732_v24  ;;  %v7821_v23 = vld [vmem:[%s9452_s6 + $0x900] ss:$8 sps:$4 sm:$0xff]   ;;  %v7826_v24 = vld [vmem:[%s9452_s6 + $0x314] ss:$8 sps:$4 sm:$0xff]  }
 0x1ce   : > { %5631 = vmatprep.subr.bf16.mxu0 %v7735_v26  ;;  %v7830_v26 = vld [vmem:[%s9450_s4 + $0xdc] ss:$100 sps:$4 sm:$0xff]  }
 0x1cf   : > { %5179 = vmatmul.mubr.bf16.gmra.mrb[8].mxu1 %v7729_v25  ;;  %v7829_v25 = vld [vmem:[%s9452_s6 + $0x914] ss:$8 sps:$4 sm:$0xff]  }
 0x1d0   : > { %5605 = vmatmul.mubr.bf16.gmra.mrb[8].mxu0 %v7785_v30  ;;  %5206 = vmatpush1.bf16.msra.mxu1 %v7730_v27  ;;  %v7886_v27 = vld [vmem:[%s9450_s4 + $0x10c] ss:$100 sps:$4 sm:$0xff]   ;;  %v7832_v30 = vld [vmem:[%s9450_s4 + $0xd8] ss:$100 sps:$4 sm:$0xff]  }
 0x1d1   : > { %5632 = vmatpush1.bf16.msra.mxu0 %v7733_v28  ;;  %5207 = vmatprep.subr.bf16.mxu1 %v7738_v32  ;;  %v7824_v28 = vld [vmem:[%s9452_s6 + $0x310] ss:$8 sps:$4 sm:$0xff]   ;;  %v7838_v32 = vld [vmem:[%s9452_s6 + $0x924] ss:$8 sps:$4 sm:$0xff]  }
 0x1d2   : > { %5633 = vmatprep.subr.bf16.mxu0 %v7741_v33  ;;  %5188 = vmatprep.mubr.bf16.mxu1 %v6781_v34  ;;  %v7833_v33 = vld [vmem:[%s9452_s6 + $0x320] ss:$8 sps:$4 sm:$0xff]   ;;  %v7888_v34 = vld [vmem:[%s9450_s4 + $0x108] ss:$100 sps:$4 sm:$0xff]  }
 0x1d3   : > { %5614 = vmatprep.mubr.bf16.mxu0 %v6793_v35  ;;  %v7836_v35 = vld [vmem:[%s9452_s6 + $0x920] ss:$8 sps:$4 sm:$0xff]  }
 0x1d4   : > { %5208 = vmatpush1.bf16.msra.mxu1 %v7736_v36  ;;  %v7841_v36 = vld [vmem:[%s9452_s6 + $0x334] ss:$8 sps:$4 sm:$0xff]  }
 0x1d5   : > { %5634 = vmatpush1.bf16.msra.mxu0 %v7739_v37  ;;  %5209 = vmatprep.subr.bf16.mxu1 %v7746_v38  ;;  %v7844_v37 = vld [vmem:[%s9452_s6 + $0x934] ss:$8 sps:$4 sm:$0xff]   ;;  %v7845_v38 = vld [vmem:[%s9450_s4 + $0x1a4] ss:$100 sps:$4 sm:$0xff]  }
 0x1d6   : > { %5635 = vmatprep.subr.bf16.mxu0 %v7749_v39  ;;  %v7901_v39 = vld [vmem:[%s9450_s4 + $0x1d4] ss:$100 sps:$4 sm:$0xff]  }
 0x1d7   : > { %5189 = vmatmul.mubr.bf16.gmra.mrb[16].mxu1 %v6780_v40  ;;  %v7839_v40 = vld [vmem:[%s9452_s6 + $0x330] ss:$8 sps:$4 sm:$0xff]  }
 0x1d8   : > { %5615 = vmatmul.mubr.bf16.gmra.mrb[16].mxu0 %v6792_v43  ;;  %5210 = vmatpush1.bf16.msra.mxu1 %v7744_v41  ;;  %v7842_v41 = vld [vmem:[%s9452_s6 + $0x930] ss:$8 sps:$4 sm:$0xff]   ;;  %v7847_v43 = vld [vmem:[%s9450_s4 + $0x1a0] ss:$100 sps:$4 sm:$0xff]  }
 0x1d9   : > { %5636 = vmatpush1.bf16.msra.mxu0 %v7747_v42  ;;  %5211 = vmatprep.subr.bf16.mxu1 %v7752_v44  ;;  %v7850_v42 = vld [vmem:[%s9452_s6 + $0x344] ss:$8 sps:$4 sm:$0xff]  }
 0x1da   : > { %5637 = vmatprep.subr.bf16.mxu0 %v7755_v45  ;;  %5229 = vmatprep.mubr.bf16.mxu1 %v7814_v46  ;;  %v7853_v44 = vld [vmem:[%s9452_s6 + $0x944] ss:$8 sps:$4 sm:$0xff]   ;;  %v7903_v46 = vld [vmem:[%s9450_s4 + $0x1d0] ss:$100 sps:$4 sm:$0xff]  }
 0x1db   : > { %5655 = vmatprep.mubr.bf16.mxu0 %v7820_v47  ;;  %v2178_v45 = vld [vmem:[%s9450_s4 + $0x268] sm:$0x11]  ;;  %v2184_v47 = vld [vmem:[%s9450_s4 + $0x298] sm:$0x11] }
 0x1dc   : > { %5212 = vmatpush1.bf16.msra.mxu1 %v7750_v48  ;;  %v7848_v48 = vld [vmem:[%s9452_s6 + $0x340] ss:$8 sps:$4 sm:$0xff]  }
 0x1dd   : > { %5638 = vmatpush1.bf16.msra.mxu0 %v7753_v49  ;;  %5213 = vmatprep.subr.bf16.mxu1 %v7758_v50  ;;  %v7851_v49 = vld [vmem:[%s9452_s6 + $0x940] ss:$8 sps:$4 sm:$0xff]   ;;  %v7856_v50 = vld [vmem:[%s9452_s6 + $0x354] ss:$8 sps:$4 sm:$0xff]  }
 0x1de   : > { %5639 = vmatprep.subr.bf16.mxu0 %v7761_v51  ;;  %v7859_v51 = vld [vmem:[%s9452_s6 + $0x954] ss:$8 sps:$4 sm:$0xff]  }
 0x1e0   : > { %5214 = vmatpush1.bf16.msra.mxu1 %v7756_v52  ;;  %v6783_v52 = vcombine.high %v2178_v45, %v2178_v45 }
 0x1e1   : > { %5640 = vmatpush1.bf16.msra.mxu0 %v7759_v53  ;;  %5215 = vmatprep.subr.bf16.mxu1 %v7764_v54  ;;  %v6795_v53 = vcombine.high %v2184_v47, %v2184_v47  ;;  %v7854_v54 = vld [vmem:[%s9452_s6 + $0x350] ss:$8 sps:$4 sm:$0xff]  }
 0x1e2   : > { %5641 = vmatprep.subr.bf16.mxu0 %v7767_v55  ;;  %v7857_v55 = vld [vmem:[%s9452_s6 + $0x950] ss:$8 sps:$4 sm:$0xff]  }
 0x1e4   : > { %5216 = vmatpush1.bf16.msra.mxu1 %v7762_v56  ;;  %v7864_v56 = vld [vmem:[%s9452_s6 + $0x364] ss:$8 sps:$4 sm:$0xff]  }
 0x1e5   : > { %5642 = vmatpush1.bf16.msra.mxu0 %v7765_v57  ;;  %5217 = vmatprep.subr.bf16.mxu1 %v7773_v58  ;;  %v7867_v57 = vld [vmem:[%s9452_s6 + $0x964] ss:$8 sps:$4 sm:$0xff]   ;;  %v6782_v58 = vcombine.low %v2178_v45, %v2178_v45  ;;  %v8004_v45 = vld [vmem:[%s9450_s4 + $0x114] ss:$100 sps:$4 sm:$0xff]  }
 0x1e6   : > { %5643 = vmatprep.subr.bf16.mxu0 %v7776_v59  ;;  %v7862_v59 = vld [vmem:[%s9452_s6 + $0x360] ss:$8 sps:$4 sm:$0xff]  }
 0x1e8   : > { %5218 = vmatpush1.bf16.msra.mxu1 %v7771_v60  ;;  %v6794_v60 = vcombine.low %v2184_v47, %v2184_v47  ;;  %v7945_v47 = vld [vmem:[%s9452_s6 + $0xa10] ss:$8 sps:$4 sm:$0xff]  }
 0x1e9   : > { %5644 = vmatpush1.bf16.msra.mxu0 %v7774_v61  ;;  %5219 = vmatprep.subr.bf16.mxu1 %v7779_v62  ;;  %v7865_v61 = vld [vmem:[%s9452_s6 + $0x960] ss:$8 sps:$4 sm:$0xff]   ;;  %v7870_v62 = vld [vmem:[%s9452_s6 + $0x374] ss:$8 sps:$4 sm:$0xff]  }
 0x1ea   : > { %5645 = vmatprep.subr.bf16.mxu0 %v7782_v63  ;;  %v7873_v63 = vld [vmem:[%s9452_s6 + $0x974] ss:$8 sps:$4 sm:$0xff]  }
 0x1ec   : > { %5220 = vmatpush1.bf16.msra.mxu1 %v7777_v0  ;;  %v7932_v0 = vld [vmem:[%s9450_s4 + $0x1c] ss:$100 sps:$4 sm:$0xff]  }
 0x1ed   : > { %5646 = vmatpush1.bf16.msra.mxu0 %v7780_v1  ;;  %5221 = vmatprep.subr.bf16.mxu1 %v7788_v2  ;;  %v7938_v1 = vld [vmem:[%s9450_s4 + $0x4c] ss:$100 sps:$4 sm:$0xff]  }
 0x1ee   : > { %5647 = vmatprep.subr.bf16.mxu0 %v7791_v3  ;;  %v7868_v2 = vld [vmem:[%s9452_s6 + $0x370] ss:$8 sps:$4 sm:$0xff]  }
 0x1ef   : > { %v7871_v3 = vld [vmem:[%s9452_s6 + $0x970] ss:$8 sps:$4 sm:$0xff]  }
 0x1f0   : > { %5222 = vmatpush1.bf16.msra.mxu1 %v7786_v4  ;;  %v7876_v4 = vld [vmem:[%s9452_s6 + $0x384] ss:$8 sps:$4 sm:$0xff]  }
 0x1f1   : > { %5648 = vmatpush1.bf16.msra.mxu0 %v7789_v5  ;;  %5223 = vmatprep.subr.bf16.mxu1 %v7794_v6  ;;  %v7879_v5 = vld [vmem:[%s9452_s6 + $0x984] ss:$8 sps:$4 sm:$0xff]   ;;  %v7874_v6 = vld [vmem:[%s9452_s6 + $0x380] ss:$8 sps:$4 sm:$0xff]  }
 0x1f2   : > { %5649 = vmatprep.subr.bf16.mxu0 %v7797_v7  ;;  %v7877_v7 = vld [vmem:[%s9452_s6 + $0x980] ss:$8 sps:$4 sm:$0xff]  }
 0x1f4   : > { %5224 = vmatpush1.bf16.msra.mxu1 %v7792_v8  ;;  %v7882_v8 = vld [vmem:[%s9452_s6 + $0x394] ss:$8 sps:$4 sm:$0xff]  }
 0x1f5   : > { %5650 = vmatpush1.bf16.msra.mxu0 %v7795_v9  ;;  %5225 = vmatprep.subr.bf16.mxu1 %v7802_v10  ;;  %v7885_v9 = vld [vmem:[%s9452_s6 + $0x994] ss:$8 sps:$4 sm:$0xff]   ;;  %v7880_v10 = vld [vmem:[%s9452_s6 + $0x390] ss:$8 sps:$4 sm:$0xff]  }
 0x1f6   : > { %5651 = vmatprep.subr.bf16.mxu0 %v7805_v11  ;;  %v7883_v11 = vld [vmem:[%s9452_s6 + $0x990] ss:$8 sps:$4 sm:$0xff]  }
 0x1f8   : > { %5226 = vmatpush1.bf16.msra.mxu1 %v7800_v12  ;;  %v7891_v12 = vld [vmem:[%s9452_s6 + $0x3a4] ss:$8 sps:$4 sm:$0xff]  }
 0x1f9   : > { %5652 = vmatpush1.bf16.msra.mxu0 %v7803_v13  ;;  %5227 = vmatprep.subr.bf16.mxu1 %v7808_v14  ;;  %v7894_v13 = vld [vmem:[%s9452_s6 + $0x9a4] ss:$8 sps:$4 sm:$0xff]   ;;  %v7889_v14 = vld [vmem:[%s9452_s6 + $0x3a0] ss:$8 sps:$4 sm:$0xff]  }
 0x1fa   : > { %5653 = vmatprep.subr.bf16.mxu0 %v7811_v15  ;;  %v7892_v15 = vld [vmem:[%s9452_s6 + $0x9a0] ss:$8 sps:$4 sm:$0xff]  }
 0x1fc   : > { %5228 = vmatpush1.bf16.msra.mxu1 %v7806_v16  ;;  %v7897_v16 = vld [vmem:[%s9452_s6 + $0x3b4] ss:$8 sps:$4 sm:$0xff]  }
 0x1fd   : > { %5654 = vmatpush1.bf16.msra.mxu0 %v7809_v17  ;;  %5268 = vmatprep.subr.bf16.mxu1 %v7817_v18  ;;  %v7900_v17 = vld [vmem:[%s9452_s6 + $0x9b4] ss:$8 sps:$4 sm:$0xff]   ;;  %v7895_v18 = vld [vmem:[%s9452_s6 + $0x3b0] ss:$8 sps:$4 sm:$0xff]  }
 0x1fe   : > { %5694 = vmatprep.subr.bf16.mxu0 %v7823_v19  ;;  %v7898_v19 = vld [vmem:[%s9452_s6 + $0x9b0] ss:$8 sps:$4 sm:$0xff]  }
 0x1ff   : > { %5230 = vmatmul.mubr.bf16.vlgmr.msra.gmra.mrb[0].mxu1 %v7812_v20  ;;  %v7906_v20 = vld [vmem:[%s9452_s6 + $0x3c4] ss:$8 sps:$4 sm:$0xff]  }
 0x200   : > { %5656 = vmatmul.mubr.bf16.vlgmr.msra.gmra.mrb[0].mxu0 %v7818_v22  ;;  %5269 = vmatpush1.bf16.msra.mxu1 %v7815_v21  ;;  %v7909_v21 = vld [vmem:[%s9452_s6 + $0x9c4] ss:$8 sps:$4 sm:$0xff]   ;;  %v7904_v22 = vld [vmem:[%s9452_s6 + $0x3c0] ss:$8 sps:$4 sm:$0xff]  }
 0x201   : > { %5695 = vmatpush1.bf16.msra.mxu0 %v7821_v23  ;;  %5270 = vmatprep.subr.bf16.mxu1 %v7826_v24  ;;  %v7907_v23 = vld [vmem:[%s9452_s6 + $0x9c0] ss:$8 sps:$4 sm:$0xff]   ;;  %v7912_v24 = vld [vmem:[%s9452_s6 + $0x3d4] ss:$8 sps:$4 sm:$0xff]  }
 0x202   : > { %5696 = vmatprep.subr.bf16.mxu0 %v7829_v25  ;;  %5239 = vmatprep.mubr.bf16.mxu1 %v7830_v26  ;;  %v7915_v25 = vld [vmem:[%s9452_s6 + $0x9d4] ss:$8 sps:$4 sm:$0xff]   ;;  %v7910_v26 = vld [vmem:[%s9452_s6 + $0x3d0] ss:$8 sps:$4 sm:$0xff]  }
 0x203   : > { %5665 = vmatprep.mubr.bf16.mxu0 %v7886_v27  ;;  %v7913_v27 = vld [vmem:[%s9452_s6 + $0x9d0] ss:$8 sps:$4 sm:$0xff]  }
 0x204   : > { %5271 = vmatpush1.bf16.msra.mxu1 %v7824_v28  ;;  %v7920_v28 = vld [vmem:[%s9452_s6 + $0x3e4] ss:$8 sps:$4 sm:$0xff]  }
 0x205   : > { %5697 = vmatpush1.bf16.msra.mxu0 %v7827_v29  ;;  %5272 = vmatprep.subr.bf16.mxu1 %v7835_v31  ;;  %v7923_v29 = vld [vmem:[%s9452_s6 + $0x9e4] ss:$8 sps:$4 sm:$0xff]   ;;  %v7921_v31 = vld [vmem:[%s9452_s6 + $0x9e0] ss:$8 sps:$4 sm:$0xff]  }
 0x206   : > { %5698 = vmatprep.subr.bf16.mxu0 %v7838_v32  ;;  %v7926_v32 = vld [vmem:[%s9452_s6 + $0x3f4] ss:$8 sps:$4 sm:$0xff]  }
 0x207   : > { %5240 = vmatmul.mubr.bf16.gmra.mrb[4].mxu1 %v7832_v30  ;;  %v7918_v30 = vld [vmem:[%s9452_s6 + $0x3e0] ss:$8 sps:$4 sm:$0xff]  }
 0x208   : > { %5666 = vmatmul.mubr.bf16.gmra.mrb[4].mxu0 %v7888_v34  ;;  %5273 = vmatpush1.bf16.msra.mxu1 %v7833_v33  ;;  %v7929_v33 = vld [vmem:[%s9452_s6 + $0x9f4] ss:$8 sps:$4 sm:$0xff]   ;;  %v7924_v34 = vld [vmem:[%s9452_s6 + $0x3f0] ss:$8 sps:$4 sm:$0xff]  }
 0x209   : > { %5699 = vmatpush1.bf16.msra.mxu0 %v7836_v35  ;;  %5274 = vmatprep.subr.bf16.mxu1 %v7841_v36  ;;  %v7927_v35 = vld [vmem:[%s9452_s6 + $0x9f0] ss:$8 sps:$4 sm:$0xff]   ;;  %v7935_v36 = vld [vmem:[%s9452_s6 + $0x404] ss:$8 sps:$4 sm:$0xff]  }
 0x20a   : > { %5700 = vmatprep.subr.bf16.mxu0 %v7844_v37  ;;  %5249 = vmatprep.mubr.bf16.mxu1 %v7845_v38  ;;  %v7941_v37 = vld [vmem:[%s9452_s6 + $0xa04] ss:$8 sps:$4 sm:$0xff]  }
 0x20b   : > { %5675 = vmatprep.mubr.bf16.mxu0 %v7901_v39  ;;  %v7930_v38 = vld [vmem:[%s9450_s4 + $0x18] ss:$100 sps:$4 sm:$0xff]  }
 0x20c   : > { %5275 = vmatpush1.bf16.msra.mxu1 %v7839_v40  ;;  %v7933_v39 = vld [vmem:[%s9452_s6 + $0x400] ss:$8 sps:$4 sm:$0xff]   ;;  %v7936_v40 = vld [vmem:[%s9450_s4 + $0x48] ss:$100 sps:$4 sm:$0xff]  }
 0x20d   : > { %5701 = vmatpush1.bf16.msra.mxu0 %v7842_v41  ;;  %5276 = vmatprep.subr.bf16.mxu1 %v7850_v42  ;;  %v7939_v41 = vld [vmem:[%s9452_s6 + $0xa00] ss:$8 sps:$4 sm:$0xff]   ;;  %v7944_v42 = vld [vmem:[%s9452_s6 + $0x414] ss:$8 sps:$4 sm:$0xff]  }
 0x20e   : > { %5702 = vmatprep.subr.bf16.mxu0 %v7853_v44  ;;  %v7948_v44 = vld [vmem:[%s9450_s4 + $0xe4] ss:$100 sps:$4 sm:$0xff]  }
 0x20f   : > { %5250 = vmatmul.mubr.bf16.gmra.mrb[8].mxu1 %v7847_v43  ;;  %v7947_v43 = vld [vmem:[%s9452_s6 + $0xa14] ss:$8 sps:$4 sm:$0xff]  }
 0x210   : > { %5676 = vmatmul.mubr.bf16.gmra.mrb[8].mxu0 %v7903_v46  ;;  %5277 = vmatpush1.bf16.msra.mxu1 %v7848_v48  ;;  %v7942_v46 = vld [vmem:[%s9452_s6 + $0x410] ss:$8 sps:$4 sm:$0xff]   ;;  %v7953_v48 = vld [vmem:[%s9452_s6 + $0x424] ss:$8 sps:$4 sm:$0xff]  }
 0x211   : > { %5703 = vmatpush1.bf16.msra.mxu0 %v7851_v49  ;;  %5278 = vmatprep.subr.bf16.mxu1 %v7856_v50  ;;  %v7956_v49 = vld [vmem:[%s9452_s6 + $0xa24] ss:$8 sps:$4 sm:$0xff]  }
 0x212   : > { %5704 = vmatprep.subr.bf16.mxu0 %v7859_v51  ;;  %5259 = vmatprep.mubr.bf16.mxu1 %v6783_v52  ;;  %v7950_v50 = vld [vmem:[%s9450_s4 + $0xe0] ss:$100 sps:$4 sm:$0xff]  }
 0x213   : > { %5685 = vmatprep.mubr.bf16.mxu0 %v6795_v53  ;;  %v7951_v51 = vld [vmem:[%s9452_s6 + $0x420] ss:$8 sps:$4 sm:$0xff]   ;;  %v8006_v53 = vld [vmem:[%s9450_s4 + $0x110] ss:$100 sps:$4 sm:$0xff]  }
 0x214   : > { %5279 = vmatpush1.bf16.msra.mxu1 %v7854_v54  ;;  %v7954_v52 = vld [vmem:[%s9452_s6 + $0xa20] ss:$8 sps:$4 sm:$0xff]   ;;  %v7959_v54 = vld [vmem:[%s9452_s6 + $0x434] ss:$8 sps:$4 sm:$0xff]  }
 0x215   : > { %5705 = vmatpush1.bf16.msra.mxu0 %v7857_v55  ;;  %5280 = vmatprep.subr.bf16.mxu1 %v7864_v56  ;;  %v7962_v55 = vld [vmem:[%s9452_s6 + $0xa34] ss:$8 sps:$4 sm:$0xff]  }
 0x216   : > { %5706 = vmatprep.subr.bf16.mxu0 %v7867_v57  ;;  %v7963_v56 = vld [vmem:[%s9450_s4 + $0x1ac] ss:$100 sps:$4 sm:$0xff]   ;;  %v8019_v57 = vld [vmem:[%s9450_s4 + $0x1dc] ss:$100 sps:$4 sm:$0xff]  }
 0x217   : > { %5260 = vmatmul.mubr.bf16.gmra.mrb[20].mxu1 %v6782_v58  ;;  %v7957_v58 = vld [vmem:[%s9452_s6 + $0x430] ss:$8 sps:$4 sm:$0xff]  }
 0x218   : > { %5686 = vmatmul.mubr.bf16.gmra.mrb[20].mxu0 %v6794_v60  ;;  %5281 = vmatpush1.bf16.msra.mxu1 %v7862_v59  ;;  %v7960_v59 = vld [vmem:[%s9452_s6 + $0xa30] ss:$8 sps:$4 sm:$0xff]  }
 0x219   : > { %5707 = vmatpush1.bf16.msra.mxu0 %v7865_v61  ;;  %5282 = vmatprep.subr.bf16.mxu1 %v7870_v62  ;;  %v7965_v60 = vld [vmem:[%s9450_s4 + $0x1a8] ss:$100 sps:$4 sm:$0xff]  }
 0x21a   : > { %5708 = vmatprep.subr.bf16.mxu0 %v7873_v63  ;;  %5300 = vmatprep.mubr.bf16.mxu1 %v7932_v0  ;;  %v7968_v61 = vld [vmem:[%s9452_s6 + $0x444] ss:$8 sps:$4 sm:$0xff]   ;;  %v7966_v63 = vld [vmem:[%s9452_s6 + $0x440] ss:$8 sps:$4 sm:$0xff]   ;;  %v2179_v0 = vld [vmem:[%s9450_s4 + $0x270] sm:$0x11] }
 0x21b   : > { %5726 = vmatprep.mubr.bf16.mxu0 %v7938_v1  ;;  %v7971_v62 = vld [vmem:[%s9452_s6 + $0xa44] ss:$8 sps:$4 sm:$0xff]  }
 0x21c   : > { %5283 = vmatpush1.bf16.msra.mxu1 %v7868_v2  ;;  %v8021_v1 = vld [vmem:[%s9450_s4 + $0x1d8] ss:$100 sps:$4 sm:$0xff]   ;;  %v2185_v2 = vld [vmem:[%s9450_s4 + $0x2a0] sm:$0x11] }
 0x21d   : > { %5709 = vmatpush1.bf16.msra.mxu0 %v7871_v3  ;;  %5284 = vmatprep.subr.bf16.mxu1 %v7876_v4  ;;  %v7969_v3 = vld [vmem:[%s9452_s6 + $0xa40] ss:$8 sps:$4 sm:$0xff]   ;;  %v7974_v4 = vld [vmem:[%s9452_s6 + $0x454] ss:$8 sps:$4 sm:$0xff]  }
 0x21e   : > { %5710 = vmatprep.subr.bf16.mxu0 %v7879_v5  ;;  %v7977_v5 = vld [vmem:[%s9452_s6 + $0xa54] ss:$8 sps:$4 sm:$0xff]  }
 0x220   : > { %5285 = vmatpush1.bf16.msra.mxu1 %v7874_v6  ;;  %v6785_v6 = vcombine.high %v2179_v0, %v2179_v0 }
 0x221   : > { %5711 = vmatpush1.bf16.msra.mxu0 %v7877_v7  ;;  %5286 = vmatprep.subr.bf16.mxu1 %v7882_v8  ;;  %v6797_v7 = vcombine.high %v2185_v2, %v2185_v2  ;;  %v7972_v8 = vld [vmem:[%s9452_s6 + $0x450] ss:$8 sps:$4 sm:$0xff]  }
 0x222   : > { %5712 = vmatprep.subr.bf16.mxu0 %v7885_v9  ;;  %v7975_v9 = vld [vmem:[%s9452_s6 + $0xa50] ss:$8 sps:$4 sm:$0xff]  }
 0x224   : > { %5287 = vmatpush1.bf16.msra.mxu1 %v7880_v10  ;;  %v7982_v10 = vld [vmem:[%s9452_s6 + $0x464] ss:$8 sps:$4 sm:$0xff]  }
 0x225   : > { %5713 = vmatpush1.bf16.msra.mxu0 %v7883_v11  ;;  %5288 = vmatprep.subr.bf16.mxu1 %v7891_v12  ;;  %v7985_v11 = vld [vmem:[%s9452_s6 + $0xa64] ss:$8 sps:$4 sm:$0xff]   ;;  %v6784_v12 = vcombine.low %v2179_v0, %v2179_v0 }
 0x226   : > { %5714 = vmatprep.subr.bf16.mxu0 %v7894_v13  ;;  %v7980_v13 = vld [vmem:[%s9452_s6 + $0x460] ss:$8 sps:$4 sm:$0xff]   ;;  %v8059_v0 = vld [vmem:[%s9452_s6 + $0xb04] ss:$8 sps:$4 sm:$0xff]  }
 0x228   : > { %5289 = vmatpush1.bf16.msra.mxu1 %v7889_v14  ;;  %v6796_v14 = vcombine.low %v2185_v2, %v2185_v2  ;;  %v8054_v2 = vld [vmem:[%s9450_s4 + $0x50] ss:$100 sps:$4 sm:$0xff]  }
 0x229   : > { %5715 = vmatpush1.bf16.msra.mxu0 %v7892_v15  ;;  %5290 = vmatprep.subr.bf16.mxu1 %v7897_v16  ;;  %v7983_v15 = vld [vmem:[%s9452_s6 + $0xa60] ss:$8 sps:$4 sm:$0xff]   ;;  %v7988_v16 = vld [vmem:[%s9452_s6 + $0x474] ss:$8 sps:$4 sm:$0xff]  }
 0x22a   : > { %5716 = vmatprep.subr.bf16.mxu0 %v7900_v17  ;;  %v7991_v17 = vld [vmem:[%s9452_s6 + $0xa74] ss:$8 sps:$4 sm:$0xff]  }
 0x22c   : > { %5291 = vmatpush1.bf16.msra.mxu1 %v7895_v18  ;;  %v8050_v18 = vld [vmem:[%s9450_s4 + $0x24] ss:$100 sps:$4 sm:$0xff]  }
 0x22d   : > { %5717 = vmatpush1.bf16.msra.mxu0 %v7898_v19  ;;  %5292 = vmatprep.subr.bf16.mxu1 %v7906_v20  ;;  %v8056_v19 = vld [vmem:[%s9450_s4 + $0x54] ss:$100 sps:$4 sm:$0xff]  }
 0x22e   : > { %5718 = vmatprep.subr.bf16.mxu0 %v7909_v21  ;;  %v7986_v20 = vld [vmem:[%s9452_s6 + $0x470] ss:$8 sps:$4 sm:$0xff]  }
 0x22f   : > { %v7989_v21 = vld [vmem:[%s9452_s6 + $0xa70] ss:$8 sps:$4 sm:$0xff]  }
 0x230   : > { %5293 = vmatpush1.bf16.msra.mxu1 %v7904_v22  ;;  %v7994_v22 = vld [vmem:[%s9452_s6 + $0x484] ss:$8 sps:$4 sm:$0xff]  }
 0x231   : > { %5719 = vmatpush1.bf16.msra.mxu0 %v7907_v23  ;;  %5294 = vmatprep.subr.bf16.mxu1 %v7912_v24  ;;  %v7997_v23 = vld [vmem:[%s9452_s6 + $0xa84] ss:$8 sps:$4 sm:$0xff]   ;;  %v7992_v24 = vld [vmem:[%s9452_s6 + $0x480] ss:$8 sps:$4 sm:$0xff]  }
 0x232   : > { %5720 = vmatprep.subr.bf16.mxu0 %v7915_v25  ;;  %v7995_v25 = vld [vmem:[%s9452_s6 + $0xa80] ss:$8 sps:$4 sm:$0xff]  }
 0x234   : > { %5295 = vmatpush1.bf16.msra.mxu1 %v7910_v26  ;;  %v8000_v26 = vld [vmem:[%s9452_s6 + $0x494] ss:$8 sps:$4 sm:$0xff]  }
 0x235   : > { %5721 = vmatpush1.bf16.msra.mxu0 %v7913_v27  ;;  %5296 = vmatprep.subr.bf16.mxu1 %v7920_v28  ;;  %v8003_v27 = vld [vmem:[%s9452_s6 + $0xa94] ss:$8 sps:$4 sm:$0xff]   ;;  %v7998_v28 = vld [vmem:[%s9452_s6 + $0x490] ss:$8 sps:$4 sm:$0xff]  }
 0x236   : > { %5722 = vmatprep.subr.bf16.mxu0 %v7923_v29  ;;  %v8001_v29 = vld [vmem:[%s9452_s6 + $0xa90] ss:$8 sps:$4 sm:$0xff]  }
 0x238   : > { %5297 = vmatpush1.bf16.msra.mxu1 %v7918_v30  ;;  %v8009_v30 = vld [vmem:[%s9452_s6 + $0x4a4] ss:$8 sps:$4 sm:$0xff]  }
 0x239   : > { %5723 = vmatpush1.bf16.msra.mxu0 %v7921_v31  ;;  %5298 = vmatprep.subr.bf16.mxu1 %v7926_v32  ;;  %v8012_v31 = vld [vmem:[%s9452_s6 + $0xaa4] ss:$8 sps:$4 sm:$0xff]   ;;  %v8007_v32 = vld [vmem:[%s9452_s6 + $0x4a0] ss:$8 sps:$4 sm:$0xff]  }
 0x23a   : > { %5724 = vmatprep.subr.bf16.mxu0 %v7929_v33  ;;  %v8010_v33 = vld [vmem:[%s9452_s6 + $0xaa0] ss:$8 sps:$4 sm:$0xff]  }
 0x23c   : > { %5299 = vmatpush1.bf16.msra.mxu1 %v7924_v34  ;;  %v8015_v34 = vld [vmem:[%s9452_s6 + $0x4b4] ss:$8 sps:$4 sm:$0xff]  }
 0x23d   : > { %5725 = vmatpush1.bf16.msra.mxu0 %v7927_v35  ;;  %5339 = vmatprep.subr.bf16.mxu1 %v7935_v36  ;;  %v8018_v35 = vld [vmem:[%s9452_s6 + $0xab4] ss:$8 sps:$4 sm:$0xff]   ;;  %v8013_v36 = vld [vmem:[%s9452_s6 + $0x4b0] ss:$8 sps:$4 sm:$0xff]  }
 0x23e   : > { %5765 = vmatprep.subr.bf16.mxu0 %v7941_v37  ;;  %v8016_v37 = vld [vmem:[%s9452_s6 + $0xab0] ss:$8 sps:$4 sm:$0xff]  }
 0x23f   : > { %5301 = vmatmul.mubr.bf16.vlgmr.msra.gmra.mrb[0].mxu1 %v7930_v38  ;;  %v8024_v38 = vld [vmem:[%s9452_s6 + $0x4c4] ss:$8 sps:$4 sm:$0xff]  }
 0x240   : > { %5727 = vmatmul.mubr.bf16.vlgmr.msra.gmra.mrb[0].mxu0 %v7936_v40  ;;  %5340 = vmatpush1.bf16.msra.mxu1 %v7933_v39  ;;  %v8027_v39 = vld [vmem:[%s9452_s6 + $0xac4] ss:$8 sps:$4 sm:$0xff]   ;;  %v8022_v40 = vld [vmem:[%s9452_s6 + $0x4c0] ss:$8 sps:$4 sm:$0xff]  }
 0x241   : > { %5766 = vmatpush1.bf16.msra.mxu0 %v7939_v41  ;;  %5341 = vmatprep.subr.bf16.mxu1 %v7944_v42  ;;  %v8025_v41 = vld [vmem:[%s9452_s6 + $0xac0] ss:$8 sps:$4 sm:$0xff]   ;;  %v8030_v42 = vld [vmem:[%s9452_s6 + $0x4d4] ss:$8 sps:$4 sm:$0xff]  }
 0x242   : > { %5767 = vmatprep.subr.bf16.mxu0 %v7947_v43  ;;  %5310 = vmatprep.mubr.bf16.mxu1 %v7948_v44  ;;  %v8033_v43 = vld [vmem:[%s9452_s6 + $0xad4] ss:$8 sps:$4 sm:$0xff]  }
 0x243   : > { %5736 = vmatprep.mubr.bf16.mxu0 %v8004_v45 }
 0x244   : > { %5342 = vmatpush1.bf16.msra.mxu1 %v7942_v46 }
 0x245   : > { %5768 = vmatpush1.bf16.msra.mxu0 %v7945_v47  ;;  %5343 = vmatprep.subr.bf16.mxu1 %v7953_v48  ;;  %v8028_v47 = vld [vmem:[%s9452_s6 + $0x4d0] ss:$8 sps:$4 sm:$0xff]  }
 0x246   : > { %5769 = vmatprep.subr.bf16.mxu0 %v7956_v49 }
 0x247   : > { %5311 = vmatmul.mubr.bf16.gmra.mrb[4].mxu1 %v7950_v50  ;;  %v8031_v50 = vld [vmem:[%s9452_s6 + $0xad0] ss:$8 sps:$4 sm:$0xff]  }
 0x248   : > { %5737 = vmatmul.mubr.bf16.gmra.mrb[4].mxu0 %v8006_v53  ;;  %5344 = vmatpush1.bf16.msra.mxu1 %v7951_v51  ;;  %v8038_v53 = vld [vmem:[%s9452_s6 + $0x4e4] ss:$8 sps:$4 sm:$0xff]  }
 0x249   : > { %5770 = vmatpush1.bf16.msra.mxu0 %v7954_v52  ;;  %5345 = vmatprep.subr.bf16.mxu1 %v7959_v54  ;;  %v8041_v54 = vld [vmem:[%s9452_s6 + $0xae4] ss:$8 sps:$4 sm:$0xff]  }
 0x24a   : > { %5771 = vmatprep.subr.bf16.mxu0 %v7962_v55  ;;  %5320 = vmatprep.mubr.bf16.mxu1 %v7963_v56  ;;  %v8036_v56 = vld [vmem:[%s9452_s6 + $0x4e0] ss:$8 sps:$4 sm:$0xff]  }
 0x24b   : > { %5746 = vmatprep.mubr.bf16.mxu0 %v8019_v57  ;;  %v8039_v57 = vld [vmem:[%s9452_s6 + $0xae0] ss:$8 sps:$4 sm:$0xff]  }
 0x24c   : > { %5346 = vmatpush1.bf16.msra.mxu1 %v7957_v58  ;;  %v8044_v58 = vld [vmem:[%s9452_s6 + $0x4f4] ss:$8 sps:$4 sm:$0xff]  }
 0x24d   : > { %5772 = vmatpush1.bf16.msra.mxu0 %v7960_v59  ;;  %5347 = vmatprep.subr.bf16.mxu1 %v7968_v61  ;;  %v8047_v59 = vld [vmem:[%s9452_s6 + $0xaf4] ss:$8 sps:$4 sm:$0xff]   ;;  %v8045_v61 = vld [vmem:[%s9452_s6 + $0xaf0] ss:$8 sps:$4 sm:$0xff]  }
 0x24e   : > { %5773 = vmatprep.subr.bf16.mxu0 %v7971_v62  ;;  %v8048_v62 = vld [vmem:[%s9450_s4 + $0x20] ss:$100 sps:$4 sm:$0xff]  }
 0x24f   : > { %5321 = vmatmul.mubr.bf16.gmra.mrb[8].mxu1 %v7965_v60  ;;  %v8042_v60 = vld [vmem:[%s9452_s6 + $0x4f0] ss:$8 sps:$4 sm:$0xff]  }
 0x250   : > { %5747 = vmatmul.mubr.bf16.gmra.mrb[8].mxu0 %v8021_v1  ;;  %5348 = vmatpush1.bf16.msra.mxu1 %v7966_v63  ;;  %v8053_v63 = vld [vmem:[%s9452_s6 + $0x504] ss:$8 sps:$4 sm:$0xff]   ;;  %v8051_v1 = vld [vmem:[%s9452_s6 + $0x500] ss:$8 sps:$4 sm:$0xff]  }
 0x251   : > { %5774 = vmatpush1.bf16.msra.mxu0 %v7969_v3  ;;  %5349 = vmatprep.subr.bf16.mxu1 %v7974_v4  ;;  %v8057_v3 = vld [vmem:[%s9452_s6 + $0xb00] ss:$8 sps:$4 sm:$0xff]   ;;  %v8062_v4 = vld [vmem:[%s9452_s6 + $0x514] ss:$8 sps:$4 sm:$0xff]  }
 0x252   : > { %5775 = vmatprep.subr.bf16.mxu0 %v7977_v5  ;;  %5330 = vmatprep.mubr.bf16.mxu1 %v6785_v6  ;;  %v8065_v5 = vld [vmem:[%s9452_s6 + $0xb14] ss:$8 sps:$4 sm:$0xff]  }
 0x253   : > { %5756 = vmatprep.mubr.bf16.mxu0 %v6797_v7  ;;  %v8066_v6 = vld [vmem:[%s9450_s4 + $0xec] ss:$100 sps:$4 sm:$0xff]   ;;  %v8122_v7 = vld [vmem:[%s9450_s4 + $0x11c] ss:$100 sps:$4 sm:$0xff]  }
 0x254   : > { %5350 = vmatpush1.bf16.msra.mxu1 %v7972_v8  ;;  %v8060_v8 = vld [vmem:[%s9452_s6 + $0x510] ss:$8 sps:$4 sm:$0xff]  }
 0x255   : > { %5776 = vmatpush1.bf16.msra.mxu0 %v7975_v9  ;;  %5351 = vmatprep.subr.bf16.mxu1 %v7982_v10  ;;  %v8063_v9 = vld [vmem:[%s9452_s6 + $0xb10] ss:$8 sps:$4 sm:$0xff]   ;;  %v8071_v10 = vld [vmem:[%s9452_s6 + $0x524] ss:$8 sps:$4 sm:$0xff]  }
 0x256   : > { %5777 = vmatprep.subr.bf16.mxu0 %v7985_v11  ;;  %v8074_v11 = vld [vmem:[%s9452_s6 + $0xb24] ss:$8 sps:$4 sm:$0xff]  }
 0x257   : > { %5331 = vmatmul.mubr.bf16.gmra.mrb[24].mxu1 %v6784_v12  ;;  %v8068_v12 = vld [vmem:[%s9450_s4 + $0xe8] ss:$100 sps:$4 sm:$0xff]  }
 0x258   : > { %5757 = vmatmul.mubr.bf16.gmra.mrb[24].mxu0 %v6796_v14  ;;  %5352 = vmatpush1.bf16.msra.mxu1 %v7980_v13  ;;  %v8124_v13 = vld [vmem:[%s9450_s4 + $0x118] ss:$100 sps:$4 sm:$0xff]  }
 0x259   : > { %5778 = vmatpush1.bf16.msra.mxu0 %v7983_v15  ;;  %5353 = vmatprep.subr.bf16.mxu1 %v7988_v16  ;;  %v8069_v14 = vld [vmem:[%s9452_s6 + $0x520] ss:$8 sps:$4 sm:$0xff]   ;;  %v8077_v16 = vld [vmem:[%s9452_s6 + $0x534] ss:$8 sps:$4 sm:$0xff]  }
 0x25a   : > { %5779 = vmatprep.subr.bf16.mxu0 %v7991_v17  ;;  %5371 = vmatprep.mubr.bf16.mxu1 %v8050_v18  ;;  %v8072_v15 = vld [vmem:[%s9452_s6 + $0xb20] ss:$8 sps:$4 sm:$0xff]   ;;  %v8080_v17 = vld [vmem:[%s9452_s6 + $0xb34] ss:$8 sps:$4 sm:$0xff]  }
 0x25b   : > { %5797 = vmatprep.mubr.bf16.mxu0 %v8056_v19  ;;  %v8081_v18 = vld [vmem:[%s9450_s4 + $0x1b4] ss:$100 sps:$4 sm:$0xff]   ;;  %v8137_v19 = vld [vmem:[%s9450_s4 + $0x1e4] ss:$100 sps:$4 sm:$0xff]  }
 0x25c   : > { %5354 = vmatpush1.bf16.msra.mxu1 %v7986_v20  ;;  %v8075_v20 = vld [vmem:[%s9452_s6 + $0x530] ss:$8 sps:$4 sm:$0xff]  }
 0x25d   : > { %5780 = vmatpush1.bf16.msra.mxu0 %v7989_v21  ;;  %5355 = vmatprep.subr.bf16.mxu1 %v7994_v22  ;;  %v8078_v21 = vld [vmem:[%s9452_s6 + $0xb30] ss:$8 sps:$4 sm:$0xff]   ;;  %v8086_v22 = vld [vmem:[%s9452_s6 + $0x544] ss:$8 sps:$4 sm:$0xff]  }
 0x25e   : > { %5781 = vmatprep.subr.bf16.mxu0 %v7997_v23  ;;  %v8089_v23 = vld [vmem:[%s9452_s6 + $0xb44] ss:$8 sps:$4 sm:$0xff]  }
 0x260   : > { %5356 = vmatpush1.bf16.msra.mxu1 %v7992_v24  ;;  %v8083_v24 = vld [vmem:[%s9450_s4 + $0x1b0] ss:$100 sps:$4 sm:$0xff]  }
 0x261   : > { %5782 = vmatpush1.bf16.msra.mxu0 %v7995_v25  ;;  %5357 = vmatprep.subr.bf16.mxu1 %v8000_v26  ;;  %v2180_v25 = vld [vmem:[%s9450_s4 + $0x278] sm:$0x11]  ;;  %v8139_v26 = vld [vmem:[%s9450_s4 + $0x1e0] ss:$100 sps:$4 sm:$0xff]  }
 0x262   : > { %5783 = vmatprep.subr.bf16.mxu0 %v8003_v27  ;;  %v2186_v27 = vld [vmem:[%s9450_s4 + $0x2a8] sm:$0x11] }
 0x264   : > { %5358 = vmatpush1.bf16.msra.mxu1 %v7998_v28  ;;  %v8084_v28 = vld [vmem:[%s9452_s6 + $0x540] ss:$8 sps:$4 sm:$0xff]  }
 0x265   : > { %5784 = vmatpush1.bf16.msra.mxu0 %v8001_v29  ;;  %5359 = vmatprep.subr.bf16.mxu1 %v8009_v30  ;;  %v8087_v29 = vld [vmem:[%s9452_s6 + $0xb40] ss:$8 sps:$4 sm:$0xff]   ;;  %v8092_v30 = vld [vmem:[%s9452_s6 + $0x554] ss:$8 sps:$4 sm:$0xff]  }
 0x266   : > { %5785 = vmatprep.subr.bf16.mxu0 %v8012_v31  ;;  %v8095_v31 = vld [vmem:[%s9452_s6 + $0xb54] ss:$8 sps:$4 sm:$0xff]  }
 0x268   : > { %5360 = vmatpush1.bf16.msra.mxu1 %v8007_v32  ;;  %v6787_v32 = vcombine.high %v2180_v25, %v2180_v25 }
 0x269   : > { %5786 = vmatpush1.bf16.msra.mxu0 %v8010_v33  ;;  %5361 = vmatprep.subr.bf16.mxu1 %v8015_v34  ;;  %v6799_v33 = vcombine.high %v2186_v27, %v2186_v27  ;;  %v8090_v34 = vld [vmem:[%s9452_s6 + $0x550] ss:$8 sps:$4 sm:$0xff]  }
 0x26a   : > { %5787 = vmatprep.subr.bf16.mxu0 %v8018_v35  ;;  %v9829_v46 = vpop.f32.mrb[12].mxu1  ;;  %v8093_v35 = vld [vmem:[%s9452_s6 + $0xb50] ss:$8 sps:$4 sm:$0xff]  }
 0x26b   : > { %v9825_v44 = vpop.f32.mrb[12].mxu0  ;;  %v9832_v49 = vpop.f32.mrb[13].mxu1 }
 0x26c   : > { %5362 = vmatpush1.bf16.msra.mxu1 %v8013_v36  ;;  %v9827_v45 = vpop.f32.mrb[13].mxu0  ;;  %v5123_v52 = vpop.f32.mrb[14].mxu1  ;;  %v8100_v36 = vld [vmem:[%s9452_s6 + $0x564] ss:$8 sps:$4 sm:$0xff]  }
 0x26d   : > { %5788 = vmatpush1.bf16.msra.mxu0 %v8016_v37  ;;  %5363 = vmatprep.subr.bf16.mxu1 %v8024_v38  ;;  %v5549_v48 = vpop.f32.mrb[14].mxu0  ;;  %v5124_v55 = vpop.f32.mrb[15].mxu1  ;;  %v8103_v37 = vld [vmem:[%s9452_s6 + $0xb64] ss:$8 sps:$4 sm:$0xff]   ;;  %v6786_v38 = vcombine.low %v2180_v25, %v2180_v25  ;;  %v8165_v25 = vld [vmem:[%s9452_s6 + $0xbf4] ss:$8 sps:$4 sm:$0xff]  }
 0x26e   : > { %5789 = vmatprep.subr.bf16.mxu0 %v8027_v39  ;;  %v5550_v51 = vpop.f32.mrb[15].mxu0  ;;  %v6798_v39 = vcombine.low %v2186_v27, %v2186_v27  ;;  %v8171_v48 = vld [vmem:[%s9450_s4 + $0x5c] ss:$100 sps:$4 sm:$0xff]   ;;  %v8163_v27 = vld [vmem:[%s9452_s6 + $0xbf0] ss:$8 sps:$4 sm:$0xff]  }
 0x26f   : > { %v8107_v51 = vld [vmem:[%s9452_s6 + $0xb70] ss:$8 sps:$4 sm:$0xff]   ;;  %v8112_v52 = vld [vmem:[%s9452_s6 + $0x584] ss:$8 sps:$4 sm:$0xff]   ;;  %v8113_v55 = vld [vmem:[%s9452_s6 + $0xb80] ss:$8 sps:$4 sm:$0xff]  }
 0x270   : > { %5364 = vmatpush1.bf16.msra.mxu1 %v8022_v40  ;;  %v8098_v40 = vld [vmem:[%s9452_s6 + $0x560] ss:$8 sps:$4 sm:$0xff]  }
 0x271   : > { %5790 = vmatpush1.bf16.msra.mxu0 %v8025_v41  ;;  %5365 = vmatprep.subr.bf16.mxu1 %v8030_v42  ;;  %v8101_v41 = vld [vmem:[%s9452_s6 + $0xb60] ss:$8 sps:$4 sm:$0xff]   ;;  %v8106_v42 = vld [vmem:[%s9452_s6 + $0x574] ss:$8 sps:$4 sm:$0xff]  }
 0x272   : > { %5791 = vmatprep.subr.bf16.mxu0 %v8033_v43  ;;  %v8109_v43 = vld [vmem:[%s9452_s6 + $0xb74] ss:$8 sps:$4 sm:$0xff]  }
 0x274   : > { %5366 = vmatpush1.bf16.msra.mxu1 %v8028_v47  ;;  %v8168_v47 = vld [vmem:[%s9450_s4 + $0x2c] ss:$100 sps:$4 sm:$0xff]  }
 0x275   : > { %5792 = vmatpush1.bf16.msra.mxu0 %v8031_v50  ;;  %5367 = vmatprep.subr.bf16.mxu1 %v8038_v53  ;;  %v8104_v50 = vld [vmem:[%s9452_s6 + $0x570] ss:$8 sps:$4 sm:$0xff]   ;;  %v8115_v53 = vld [vmem:[%s9452_s6 + $0xb84] ss:$8 sps:$4 sm:$0xff]  }
 0x276   : > { %5793 = vmatprep.subr.bf16.mxu0 %v8041_v54  ;;  %v8110_v54 = vld [vmem:[%s9452_s6 + $0x580] ss:$8 sps:$4 sm:$0xff]  }
 0x278   : > { %5368 = vmatpush1.bf16.msra.mxu1 %v8036_v56  ;;  %v8118_v56 = vld [vmem:[%s9452_s6 + $0x594] ss:$8 sps:$4 sm:$0xff]  }
 0x279   : > { %5794 = vmatpush1.bf16.msra.mxu0 %v8039_v57  ;;  %5369 = vmatprep.subr.bf16.mxu1 %v8044_v58  ;;  %v8121_v57 = vld [vmem:[%s9452_s6 + $0xb94] ss:$8 sps:$4 sm:$0xff]   ;;  %v8116_v58 = vld [vmem:[%s9452_s6 + $0x590] ss:$8 sps:$4 sm:$0xff]  }
 0x27a   : > { %5795 = vmatprep.subr.bf16.mxu0 %v8047_v59  ;;  %v8119_v59 = vld [vmem:[%s9452_s6 + $0xb90] ss:$8 sps:$4 sm:$0xff]  }
 0x27c   : > { %5370 = vmatpush1.bf16.msra.mxu1 %v8042_v60  ;;  %v8127_v60 = vld [vmem:[%s9452_s6 + $0x5a4] ss:$8 sps:$4 sm:$0xff]  }
 0x27d   : > { %5796 = vmatpush1.bf16.msra.mxu0 %v8045_v61  ;;  %5410 = vmatprep.subr.bf16.mxu1 %v8053_v63  ;;  %v8130_v61 = vld [vmem:[%s9452_s6 + $0xba4] ss:$8 sps:$4 sm:$0xff]   ;;  %v8128_v63 = vld [vmem:[%s9452_s6 + $0xba0] ss:$8 sps:$4 sm:$0xff]  }
 0x27e   : > { %5836 = vmatprep.subr.bf16.mxu0 %v8059_v0  ;;  %v8133_v0 = vld [vmem:[%s9452_s6 + $0x5b4] ss:$8 sps:$4 sm:$0xff]  }
 0x27f   : > { %5372 = vmatmul.mubr.bf16.vlgmr.msra.gmra.mrb[0].mxu1 %v8048_v62  ;;  %v8125_v62 = vld [vmem:[%s9452_s6 + $0x5a0] ss:$8 sps:$4 sm:$0xff]  }
 0x280   : > { %5798 = vmatmul.mubr.bf16.vlgmr.msra.gmra.mrb[0].mxu0 %v8054_v2  ;;  %5411 = vmatpush1.bf16.msra.mxu1 %v8051_v1  ;;  %v8136_v1 = vld [vmem:[%s9452_s6 + $0xbb4] ss:$8 sps:$4 sm:$0xff]   ;;  %v8131_v2 = vld [vmem:[%s9452_s6 + $0x5b0] ss:$8 sps:$4 sm:$0xff]  }
 0x281   : > { %5837 = vmatpush1.bf16.msra.mxu0 %v8057_v3  ;;  %5412 = vmatprep.subr.bf16.mxu1 %v8062_v4  ;;  %v8134_v3 = vld [vmem:[%s9452_s6 + $0xbb0] ss:$8 sps:$4 sm:$0xff]   ;;  %v8142_v4 = vld [vmem:[%s9452_s6 + $0x5c4] ss:$8 sps:$4 sm:$0xff]  }
 0x282   : > { %5838 = vmatprep.subr.bf16.mxu0 %v8065_v5  ;;  %5381 = vmatprep.mubr.bf16.mxu1 %v8066_v6  ;;  %v8145_v5 = vld [vmem:[%s9452_s6 + $0xbc4] ss:$8 sps:$4 sm:$0xff]  }
 0x283   : > { %5807 = vmatprep.mubr.bf16.mxu0 %v8122_v7 }
 0x284   : > { %5413 = vmatpush1.bf16.msra.mxu1 %v8060_v8 }
 0x285   : > { %5839 = vmatpush1.bf16.msra.mxu0 %v8063_v9  ;;  %5414 = vmatprep.subr.bf16.mxu1 %v8071_v10 }
 0x286   : > { %5840 = vmatprep.subr.bf16.mxu0 %v8074_v11 }
 0x287   : > { %5382 = vmatmul.mubr.bf16.gmra.mrb[4].mxu1 %v8068_v12  ;;  %v8140_v12 = vld [vmem:[%s9452_s6 + $0x5c0] ss:$8 sps:$4 sm:$0xff]  }
 0x288   : > { %5808 = vmatmul.mubr.bf16.gmra.mrb[4].mxu0 %v8124_v13  ;;  %5415 = vmatpush1.bf16.msra.mxu1 %v8069_v14  ;;  %v8143_v13 = vld [vmem:[%s9452_s6 + $0xbc0] ss:$8 sps:$4 sm:$0xff]  }
 0x289   : > { %5841 = vmatpush1.bf16.msra.mxu0 %v8072_v15  ;;  %5416 = vmatprep.subr.bf16.mxu1 %v8077_v16  ;;  %v8151_v16 = vld [vmem:[%s9452_s6 + $0xbd4] ss:$8 sps:$4 sm:$0xff]  }
 0x28a   : > { %5842 = vmatprep.subr.bf16.mxu0 %v8080_v17  ;;  %5391 = vmatprep.mubr.bf16.mxu1 %v8081_v18 }
 0x28b   : > { %5817 = vmatprep.mubr.bf16.mxu0 %v8137_v19  ;;  %v8149_v19 = vld [vmem:[%s9452_s6 + $0xbd0] ss:$8 sps:$4 sm:$0xff]  }
 0x28c   : > { %5417 = vmatpush1.bf16.msra.mxu1 %v8075_v20  ;;  %v8156_v20 = vld [vmem:[%s9452_s6 + $0x5e4] ss:$8 sps:$4 sm:$0xff]  }
 0x28d   : > { %5843 = vmatpush1.bf16.msra.mxu0 %v8078_v21  ;;  %5418 = vmatprep.subr.bf16.mxu1 %v8086_v22  ;;  %v8159_v21 = vld [vmem:[%s9452_s6 + $0xbe4] ss:$8 sps:$4 sm:$0xff]   ;;  %v8154_v22 = vld [vmem:[%s9452_s6 + $0x5e0] ss:$8 sps:$4 sm:$0xff]  }
 0x28e   : > { %5844 = vmatprep.subr.bf16.mxu0 %v8089_v23  ;;  %v8157_v23 = vld [vmem:[%s9452_s6 + $0xbe0] ss:$8 sps:$4 sm:$0xff]  }
 0x28f   : > { %5392 = vmatmul.mubr.bf16.gmra.mrb[8].mxu1 %v8083_v24  ;;  %v8162_v24 = vld [vmem:[%s9452_s6 + $0x5f4] ss:$8 sps:$4 sm:$0xff]  }
 0x290   : > { %5818 = vmatmul.mubr.bf16.gmra.mrb[8].mxu0 %v8139_v26  ;;  %5419 = vmatpush1.bf16.msra.mxu1 %v8084_v28  ;;  %v8160_v26 = vld [vmem:[%s9452_s6 + $0x5f0] ss:$8 sps:$4 sm:$0xff]   ;;  %v8174_v28 = vld [vmem:[%s9452_s6 + $0xc04] ss:$8 sps:$4 sm:$0xff]  }
 0x291   : > { %5845 = vmatpush1.bf16.msra.mxu0 %v8087_v29  ;;  %5420 = vmatprep.subr.bf16.mxu1 %v8092_v30  ;;  %v8166_v29 = vld [vmem:[%s9450_s4 + $0x28] ss:$100 sps:$4 sm:$0xff]   ;;  %v8169_v30 = vld [vmem:[%s9450_s4 + $0x58] ss:$100 sps:$4 sm:$0xff]  }
 0x292   : > { %5846 = vmatprep.subr.bf16.mxu0 %v8095_v31  ;;  %5401 = vmatprep.mubr.bf16.mxu1 %v6787_v32  ;;  %v8172_v31 = vld [vmem:[%s9452_s6 + $0xc00] ss:$8 sps:$4 sm:$0xff]   ;;  %v8177_v32 = vld [vmem:[%s9452_s6 + $0xc14] ss:$8 sps:$4 sm:$0xff]  }
 0x293   : > { %5827 = vmatprep.mubr.bf16.mxu0 %v6799_v33  ;;  %v8178_v33 = vld [vmem:[%s9450_s4 + $0xf4] ss:$100 sps:$4 sm:$0xff]  }
 0x294   : > { %5421 = vmatpush1.bf16.msra.mxu1 %v8090_v34  ;;  %v8180_v34 = vld [vmem:[%s9450_s4 + $0x124] ss:$100 sps:$4 sm:$0xff]  }
 0x295   : > { %5847 = vmatpush1.bf16.msra.mxu0 %v8093_v35  ;;  %5422 = vmatprep.subr.bf16.mxu1 %v8100_v36  ;;  %v8175_v35 = vld [vmem:[%s9452_s6 + $0xc10] ss:$8 sps:$4 sm:$0xff]   ;;  %v8186_v36 = vld [vmem:[%s9452_s6 + $0xc24] ss:$8 sps:$4 sm:$0xff]  }
 0x296   : > { %5848 = vmatprep.subr.bf16.mxu0 %v8103_v37  ;;  %v8182_v37 = vld [vmem:[%s9450_s4 + $0xf0] ss:$100 sps:$4 sm:$0xff]  }
 0x297   : > { %5402 = vmatmul.mubr.bf16.gmra.mrb[28].mxu1 %v6786_v38  ;;  %v8183_v38 = vld [vmem:[%s9450_s4 + $0x120] ss:$100 sps:$4 sm:$0xff]  }
 0x298   : > { %5828 = vmatmul.mubr.bf16.gmra.mrb[28].mxu0 %v6798_v39  ;;  %5423 = vmatpush1.bf16.msra.mxu1 %v8098_v40  ;;  %v8184_v39 = vld [vmem:[%s9452_s6 + $0xc20] ss:$8 sps:$4 sm:$0xff]   ;;  %v8189_v40 = vld [vmem:[%s9452_s6 + $0xc34] ss:$8 sps:$4 sm:$0xff]  }
 0x299   : > { %5849 = vmatpush1.bf16.msra.mxu0 %v8101_v41  ;;  %5424 = vmatprep.subr.bf16.mxu1 %v8106_v42  ;;  %v8190_v41 = vld [vmem:[%s9450_s4 + $0x1bc] ss:$100 sps:$4 sm:$0xff]   ;;  %v8192_v42 = vld [vmem:[%s9450_s4 + $0x1ec] ss:$100 sps:$4 sm:$0xff]  }
 0x29a   : > { %5850 = vmatprep.subr.bf16.mxu0 %v8109_v43  ;;  %5442 = vmatprep.mubr.bf16.mxu1 %v8168_v47  ;;  %v8187_v43 = vld [vmem:[%s9452_s6 + $0xc30] ss:$8 sps:$4 sm:$0xff]   ;;  %v8198_v47 = vld [vmem:[%s9452_s6 + $0xc44] ss:$8 sps:$4 sm:$0xff]  }
 0x29b   : > { %5868 = vmatprep.mubr.bf16.mxu0 %v8171_v48  ;;  %v8194_v48 = vld [vmem:[%s9450_s4 + $0x1b8] ss:$100 sps:$4 sm:$0xff]  }
 0x29c   : > { %5425 = vmatpush1.bf16.msra.mxu1 %v8104_v50  ;;  %v8195_v50 = vld [vmem:[%s9450_s4 + $0x1e8] ss:$100 sps:$4 sm:$0xff]  }
 0x29d   : > { %5851 = vmatpush1.bf16.msra.mxu0 %v8107_v51  ;;  %5426 = vmatprep.subr.bf16.mxu1 %v8112_v52  ;;  %v2181_v51 = vld [vmem:[%s9450_s4 + $0x280] sm:$0x11]  ;;  %v2187_v52 = vld [vmem:[%s9450_s4 + $0x2b0] sm:$0x11] }
 0x29e   : > { %5852 = vmatprep.subr.bf16.mxu0 %v8115_v53  ;;  %v8196_v53 = vld [vmem:[%s9452_s6 + $0xc40] ss:$8 sps:$4 sm:$0xff]  }
 0x2a0   : > { %5427 = vmatpush1.bf16.msra.mxu1 %v8110_v54  ;;  %v8201_v54 = vld [vmem:[%s9452_s6 + $0xc54] ss:$8 sps:$4 sm:$0xff]  }
 0x2a1   : > { %5853 = vmatpush1.bf16.msra.mxu0 %v8113_v55  ;;  %5428 = vmatprep.subr.bf16.mxu1 %v8118_v56  ;;  %v6789_v55 = vcombine.high %v2181_v51, %v2181_v51  ;;  %v6801_v56 = vcombine.high %v2187_v52, %v2187_v52 }
 0x2a2   : > { %5854 = vmatprep.subr.bf16.mxu0 %v8121_v57  ;;  %v8199_v57 = vld [vmem:[%s9452_s6 + $0xc50] ss:$8 sps:$4 sm:$0xff]  }
 0x2a4   : > { %5429 = vmatpush1.bf16.msra.mxu1 %v8116_v58  ;;  %v8208_v58 = vld [vmem:[%s9452_s6 + $0xc64] ss:$8 sps:$4 sm:$0xff]  }
 0x2a5   : > { %5855 = vmatpush1.bf16.msra.mxu0 %v8119_v59  ;;  %5430 = vmatprep.subr.bf16.mxu1 %v8127_v60  ;;  %v6788_v59 = vcombine.low %v2181_v51, %v2181_v51  ;;  %v6800_v60 = vcombine.low %v2187_v52, %v2187_v52 }
 0x2a6   : > { %5856 = vmatprep.subr.bf16.mxu0 %v8130_v61  ;;  %v8206_v61 = vld [vmem:[%s9452_s6 + $0xc60] ss:$8 sps:$4 sm:$0xff]  }
 0x2a8   : > { %5431 = vmatpush1.bf16.msra.mxu1 %v8125_v62  ;;  %v8211_v62 = vld [vmem:[%s9452_s6 + $0xc74] ss:$8 sps:$4 sm:$0xff]  }
 0x2a9   : > { %5857 = vmatpush1.bf16.msra.mxu0 %v8128_v63  ;;  %5432 = vmatprep.subr.bf16.mxu1 %v8133_v0  ;;  %v8209_v63 = vld [vmem:[%s9452_s6 + $0xc70] ss:$8 sps:$4 sm:$0xff]   ;;  %v8313_v0 = vmov 0  }
 0x2aa   : > { %5858 = vmatprep.subr.bf16.mxu0 %v8136_v1  ;;  %v5190_v6 = vpop.f32.mrb[16].mxu1  ;;  %v8212_v1 = vld [vmem:[%s9450_s4 + $0x60] ss:$100 sps:$4 sm:$0xff]  }
 0x2ab   : > { %v9907_v7 = vpop.f32.mrb[16].mxu0  ;;  %v9910_v8 = vadd.f32 %v5190_v6, %v9829_v46  ;;  %v5192_v9 = vpop.f32.mrb[17].mxu1  ;;  %v8148_v46 = vld [vmem:[%s9452_s6 + $0x5d4] ss:$8 sps:$4 sm:$0xff]  }
 0x2ac   : > { %v9912_v10 = vpop.f32.mrb[17].mxu0  ;;  %v9915_v11 = vadd.f32 %v5192_v9, %v9832_v49  ;;  %5433 = vmatpush1.bf16.msra.mxu1 %v8131_v2  ;;  %v5194_v15 = vpop.f32.mrb[18].mxu1  ;;  %v8146_v49 = vld [vmem:[%s9452_s6 + $0x5d0] ss:$8 sps:$4 sm:$0xff]  }
 0x2ad   : > { %5859 = vmatpush1.bf16.msra.mxu0 %v8134_v3  ;;  %v5620_v14 = vpop.f32.mrb[18].mxu0  ;;  %5434 = vmatprep.subr.bf16.mxu1 %v8142_v4  ;;  %v5195_v18 = vpop.f32.mrb[19].mxu1  ;;  %v8213_v2 = vld [vmem:[%s9450_s4 + $0x1f0] ss:$100 sps:$4 sm:$0xff]   ;;  %v8214_v3 = vld [vmem:[%s9450_s4 + $0x128] ss:$100 sps:$4 sm:$0xff]  }
 0x2ae   : > { %5860 = vmatprep.subr.bf16.mxu0 %v8145_v5  ;;  %v5621_v17 = vpop.f32.mrb[19].mxu0  ;;  %v8215_v4 = vld [vmem:[%s9450_s4 + $0x2b8] ss:$0 sps:$4 sm:$0x11]  }
 0x2b0   : > { %5435 = vmatpush1.bf16.msra.mxu1 %v8140_v12 }
 0x2b1   : > { %5861 = vmatpush1.bf16.msra.mxu0 %v8143_v13  ;;  %5436 = vmatprep.subr.bf16.mxu1 %v8148_v46 }
 0x2b2   : > { %5862 = vmatprep.subr.bf16.mxu0 %v8151_v16 }
 0x2b4   : > { %5437 = vmatpush1.bf16.msra.mxu1 %v8146_v49 }
 0x2b5   : > { %5863 = vmatpush1.bf16.msra.mxu0 %v8149_v19  ;;  %5438 = vmatprep.subr.bf16.mxu1 %v8156_v20 }
 0x2b6   : > { %5864 = vmatprep.subr.bf16.mxu0 %v8159_v21 }
 0x2b8   : > { %5439 = vmatpush1.bf16.msra.mxu1 %v8154_v22 }
 0x2b9   : > { %5865 = vmatpush1.bf16.msra.mxu0 %v8157_v23  ;;  %5440 = vmatprep.subr.bf16.mxu1 %v8162_v24 }
 0x2ba   : > { %5866 = vmatprep.subr.bf16.mxu0 %v8165_v25 }
 0x2bc   : > { %5441 = vmatpush1.bf16.msra.mxu1 %v8160_v26 }
 0x2bd   : > { %5867 = vmatpush1.bf16.msra.mxu0 %v8163_v27  ;;  %7225 = vmatprep.subr.bf16.mxu1 %v8174_v28 }
 0x2be   : > { %5907 = vmatprep.subr.bf16.mxu0 %v8174_v28 }
 0x2bf   : > { %5443 = vmatmul.mubr.bf16.vlgmr.msra.gmra.mrb[0].mxu1 %v8166_v29 }
 0x2c0   : > { %5869 = vmatmul.mubr.bf16.vlgmr.msra.gmra.mrb[0].mxu0 %v8169_v30  ;;  %7233 = vmatpush1.bf16.msra.mxu1 %v8172_v31 }
 0x2c1   : > { %5908 = vmatpush1.bf16.msra.mxu0 %v8172_v31  ;;  %7226 = vmatprep.subr.bf16.mxu1 %v8177_v32 }
 0x2c2   : > { %5909 = vmatprep.subr.bf16.mxu0 %v8177_v32  ;;  %5452 = vmatprep.mubr.bf16.mxu1 %v8178_v33 }
 0x2c3   : > { %5878 = vmatprep.mubr.bf16.mxu0 %v8180_v34 }
 0x2c4   : > { %7234 = vmatpush1.bf16.msra.mxu1 %v8175_v35 }
 0x2c5   : > { %5910 = vmatpush1.bf16.msra.mxu0 %v8175_v35  ;;  %7227 = vmatprep.subr.bf16.mxu1 %v8186_v36 }
 0x2c6   : > { %5911 = vmatprep.subr.bf16.mxu0 %v8186_v36 }
 0x2c7   : > { %5453 = vmatmul.mubr.bf16.gmra.mrb[4].mxu1 %v8182_v37 }
 0x2c8   : > { %5879 = vmatmul.mubr.bf16.gmra.mrb[4].mxu0 %v8183_v38  ;;  %7235 = vmatpush1.bf16.msra.mxu1 %v8184_v39 }
 0x2c9   : > { %5912 = vmatpush1.bf16.msra.mxu0 %v8184_v39  ;;  %7228 = vmatprep.subr.bf16.mxu1 %v8189_v40 }
 0x2ca   : > { %5913 = vmatprep.subr.bf16.mxu0 %v8189_v40  ;;  %5462 = vmatprep.mubr.bf16.mxu1 %v8190_v41 }
 0x2cb   : > { %5888 = vmatprep.mubr.bf16.mxu0 %v8192_v42 }
 0x2cc   : > { %7236 = vmatpush1.bf16.msra.mxu1 %v8187_v43 }
 0x2cd   : > { %5914 = vmatpush1.bf16.msra.mxu0 %v8187_v43  ;;  %7229 = vmatprep.subr.bf16.mxu1 %v8198_v47 }
 0x2ce   : > { %5915 = vmatprep.subr.bf16.mxu0 %v8198_v47 }
 0x2cf   : > { %5463 = vmatmul.mubr.bf16.gmra.mrb[8].mxu1 %v8194_v48 }
 0x2d0   : > { %5889 = vmatmul.mubr.bf16.gmra.mrb[8].mxu0 %v8195_v50  ;;  %7237 = vmatpush1.bf16.msra.mxu1 %v8196_v53 }
 0x2d1   : > { %5916 = vmatpush1.bf16.msra.mxu0 %v8196_v53  ;;  %7230 = vmatprep.subr.bf16.mxu1 %v8201_v54 }
 0x2d2   : > { %5917 = vmatprep.subr.bf16.mxu0 %v8201_v54  ;;  %5472 = vmatprep.mubr.bf16.mxu1 %v6789_v55 }
 0x2d3   : > { %5898 = vmatprep.mubr.bf16.mxu0 %v6801_v56 }
 0x2d4   : > { %7238 = vmatpush1.bf16.msra.mxu1 %v8199_v57 }
 0x2d5   : > { %5918 = vmatpush1.bf16.msra.mxu0 %v8199_v57  ;;  %7231 = vmatprep.subr.bf16.mxu1 %v8208_v58 }
 0x2d6   : > { %5919 = vmatprep.subr.bf16.mxu0 %v8208_v58 }
 0x2d7   : > { %5473 = vmatmul.mubr.bf16.gmra.mrb[32].mxu1 %v6788_v59 }
 0x2d8   : > { %5899 = vmatmul.mubr.bf16.gmra.mrb[32].mxu0 %v6800_v60  ;;  %7239 = vmatpush1.bf16.msra.mxu1 %v8206_v61 }
 0x2d9   : > { %5920 = vmatpush1.bf16.msra.mxu0 %v8206_v61  ;;  %7232 = vmatprep.subr.bf16.mxu1 %v8211_v62 }
 0x2da   : > { %5921 = vmatprep.subr.bf16.mxu0 %v8211_v62  ;;  %5939 = vmatprep.mubr.bf16.mxu0 %v8313_v0 }
 0x2db   : > { %5959 = vmatprep.mubr.bf16.mxu1 %v8313_v0 }
 0x2dc   : > { %7240 = vmatpush1.bf16.msra.mxu1 %v8209_v63 }
 0x2dd   : > { %5922 = vmatpush1.bf16.msra.mxu0 %v8209_v63 }
 0x2df   : > { %5960 = vmatmul.mubr.bf16.vlgmr.msra.gmra.mrb[36].mxu1 %v8213_v2 }
 0x2e0   : > { %5940 = vmatmul.mubr.bf16.vlgmr.msra.gmra.mrb[0].mxu0 %v8212_v1  ;;  %5969 = vmatprep.mubr.bf16.mxu1 %v8313_v0 }
 0x2e1   : > { %5949 = vmatprep.mubr.bf16.mxu0 %v8313_v0 }
 0x2e7   : > { %5970 = vmatmul.mubr.bf16.gmra.mrb[40].mxu1 %v8215_v4 }
 0x2e8   : > { %5950 = vmatmul.mubr.bf16.gmra.mrb[4].mxu0 %v8214_v3 }
 0x2ea   : > { %v5261_v5 = vpop.f32.mrb[20].mxu1 }
 0x2eb   : > { %v9963_v6 = vpop.f32.mrb[20].mxu0  ;;  %v5262_v9 = vadd.f32 %v5261_v5, %v9910_v8  ;;  %v5263_v12 = vpop.f32.mrb[21].mxu1 }
 0x2ec   : > { %v5689_v13 = vpop.f32.mrb[21].mxu0  ;;  %v5264_v14 = vadd.f32 %v5263_v12, %v9915_v11  ;;  %v5265_v46 = vpop.f32.mrb[22].mxu1 }
 0x2ed   : > { %v5691_v15 = vpop.f32.mrb[22].mxu0  ;;  %v5266_v17 = vpop.f32.mrb[23].mxu1 }
 0x2ee   : > { %v5692_v16 = vpop.f32.mrb[23].mxu0 }
 0x2ef   : > { %v2084_v16 = vld [vmem:[#allocation2] sm:$0xff] }
 0x32a   : > { %v5332_v18 = vpop.f32.mrb[24].mxu1 }
 0x32b   : > { %v5758_v49 = vpop.f32.mrb[24].mxu0  ;;  %v5333_v19 = vadd.f32 %v5332_v18, %v5262_v9  ;;  %v5334_v20 = vpop.f32.mrb[25].mxu1  ;;  %v2092_v18 = vld [vmem:[#allocation2 + $0x40] sm:$0xff] }
 0x32c   : > { %v9967_v21 = vpop.f32.mrb[25].mxu0  ;;  %v5335_v22 = vadd.f32 %v5334_v20, %v5264_v14  ;;  %v5336_v24 = vpop.f32.mrb[26].mxu1 }
 0x32d   : > { %v5762_v23 = vpop.f32.mrb[26].mxu0  ;;  %v5337_v26 = vpop.f32.mrb[27].mxu1  ;;  %v2085_v24 = vld [vmem:[#allocation2 + $0x8] sm:$0xff] }
 0x32e   : > { %v5763_v25 = vpop.f32.mrb[27].mxu0 }
 0x32f   : > { %v2093_v25 = vld [vmem:[#allocation2 + $0x48] sm:$0xff] }
 0x36a   : > { %v5403_v8 = vpop.f32.mrb[28].mxu1 }
 0x36b   : > { %v5829_v27 = vpop.f32.mrb[28].mxu0  ;;  %v5404_v28 = vadd.f32 %v5403_v8, %v5333_v19  ;;  %v5405_v29 = vpop.f32.mrb[29].mxu1 }
 0x36c   : > { %v9969_v11 = vpop.f32.mrb[29].mxu0  ;;  %v5406_v30 = vadd.f32 %v5405_v29, %v5335_v22  ;;  %v5407_v32 = vpop.f32.mrb[30].mxu1 }
 0x36d   : > { %v5833_v31 = vpop.f32.mrb[30].mxu0  ;;  %v5408_v34 = vpop.f32.mrb[31].mxu1  ;;  %v2094_v32 = vld [vmem:[#allocation2 + $0x50] sm:$0xff] }
 0x36e   : > { %v5834_v33 = vpop.f32.mrb[31].mxu0 }
 0x392   : > { %v5444_v35 = vpop.f32.mrb[0].mxu1 }
 0x393   : > { %v5446_v36 = vpop.f32.mrb[1].mxu1 }
 0x394   : > { %v5448_v37 = vpop.f32.mrb[2].mxu1 }
 0x395   : > { %v9971_v38 = vpop.f32.mrb[3].mxu1 }
 0x39a   : > { %v9973_v39 = vpop.f32.mrb[4].mxu1 }
 0x39b   : > { %v9975_v40 = vpop.f32.mrb[5].mxu1 }
 0x39c   : > { %v9977_v41 = vpop.f32.mrb[6].mxu1 }
 0x39d   : > { %v9979_v42 = vpop.f32.mrb[7].mxu1 }
 0x3a2   : > { %v5464_v43 = vpop.f32.mrb[8].mxu1 }
 0x3a3   : > { %v5890_v47 = vpop.f32.mrb[8].mxu0  ;;  %v5466_v50 = vpop.f32.mrb[9].mxu1 }
 0x3a4   : > { %v7249_v48 = vadd.f32 %v5890_v47, %v5464_v43  ;;  %v5892_v51 = vpop.f32.mrb[9].mxu0  ;;  %v5468_v53 = vpop.f32.mrb[10].mxu1 }
 0x3a5   : > { %v7251_v52 = vadd.f32 %v5892_v51, %v5466_v50  ;;  %v5894_v54 = vpop.f32.mrb[10].mxu0  ;;  %v5470_v56 = vpop.f32.mrb[11].mxu1  ;;  %v2095_v50 = vld [vmem:[#allocation2 + $0x58] sm:$0xff] }
 0x3a6   : > { %v7253_v55 = vadd.f32 %v5894_v54, %v5468_v53  ;;  %v5896_v57 = vpop.f32.mrb[11].mxu0 }
 0x3a7   : > { %v7255_v58 = vadd.f32 %v5896_v57, %v5470_v56 }
 0x3aa   : > { %v5474_v59 = vpop.f32.mrb[32].mxu1 }
 0x3ab   : > { %v5900_v60 = vpop.f32.mrb[32].mxu0  ;;  %v5475_v61 = vadd.f32 %v5474_v59, %v5404_v28  ;;  %v5476_v62 = vpop.f32.mrb[33].mxu1  ;;  %v2086_v28 = vld [vmem:[#allocation2 + $0x10] sm:$0xff] }
 0x3ac   : > { %v5902_v63 = vpop.f32.mrb[33].mxu0  ;;  %v5477_v0 = vadd.f32 %v5476_v62, %v5406_v30  ;;  %v5478_v1 = vpop.f32.mrb[34].mxu1 }
 0x3ad   : > { %v5904_v2 = vpop.f32.mrb[34].mxu0  ;;  %v5546_v3 = vadd.f32 %v9825_v44, %v5475_v61  ;;  %v5479_v4 = vpop.f32.mrb[35].mxu1  ;;  %v2089_v61 = vld [vmem:[#allocation2 + $0x28] sm:$0xff]  ;;  %v2090_v1 = vld [vmem:[#allocation2 + $0x30] sm:$0xff] }
 0x3ae   : > { %v5905_v5 = vpop.f32.mrb[35].mxu0  ;;  %v5548_v9 = vadd.f32 %v9827_v45, %v5477_v0 }
 0x3af   : > { %v5617_v12 = vadd.f32 %v9907_v7, %v5546_v3 }
 0x3b0   : > { %v5619_v14 = vadd.f32 %v9912_v10, %v5548_v9 }
 0x3b1   : > { %v5688_v15 = vadd.f32 %v9963_v6, %v5617_v12  ;;  %v2091_v12 = vld [vmem:[#allocation2 + $0x38] sm:$0xff] }
 0x3b2   : > { %v5690_v46 = vadd.f32 %v5689_v13, %v5619_v14  ;;  %v5961_v19 = vpop.f32.mrb[36].mxu1 }
 0x3b3   : > { %v5941_v17 = vpop.f32.mrb[0].mxu0  ;;  %v5759_v20 = vadd.f32 %v5758_v49, %v5688_v15  ;;  %v7250_v23 = vadd.f32 %v7249_v48, %v5961_v19  ;;  %v5963_v26 = vpop.f32.mrb[37].mxu1  ;;  %v2087_v48 = vld [vmem:[#allocation2 + $0x18] sm:$0xff]  ;;  %v6024_v19 = vld [vmem:[%s2062_s29] sm:$0x3] (!%p7203_p5) }
 0x3b4   : > { %v7241_v22 = vadd.f32 %v5941_v17, %v5444_v35  ;;  %v5943_v44 = vpop.f32.mrb[1].mxu0  ;;  %v5761_v45 = vadd.f32 %v9967_v21, %v5690_v46  ;;  %v7252_v7 = vadd.f32 %v7251_v52, %v5963_v26  ;;  %v5965_v29 = vpop.f32.mrb[38].mxu1 }
 0x3b5   : > { %v7242_v8 = vadd.f32 %v5943_v44, %v5446_v36  ;;  %v5945_v10 = vpop.f32.mrb[2].mxu0  ;;  %v5830_v6 = vadd.f32 %v5829_v27, %v5759_v20  ;;  %v5986_v30 = vadd.f32 %v7250_v23, %v2092_v18  ;;  %v5967_v49 = vpop.f32.mrb[39].mxu1  ;;  %v7254_v47 = vadd.f32 %v7253_v55, %v5965_v29  ;;  %v2096_v55 = vld [vmem:[#allocation2 + $0x60] sm:$0x3] }
 0x3b6   : > { %v5978_v13 = vadd.f32 %v7241_v22, %v2084_v16  ;;  %v7243_v31 = vadd.f32 %v5945_v10, %v5448_v37  ;;  %v5947_v33 = vpop.f32.mrb[3].mxu0  ;;  %v5832_v34 = vadd.f32 %v9969_v11, %v5761_v45  ;;  %v5987_v43 = vadd.f32 %v7252_v7, %v2093_v25  ;;  %v2088_v11 = vld [vmem:[#allocation2 + $0x20] sm:$0xff] }
 0x3b7   : > { %v5979_v35 = vadd.f32 %v7242_v8, %v2085_v24  ;;  %v5901_v21 = vadd.f32 %v5900_v60, %v5830_v6  ;;  %6000 = vst [vmem:[#allocation2 + $0x40] sm:$0xff] %v5986_v30  ;;  %v7244_v51 = vadd.f32 %v5947_v33, %v9971_v38  ;;  %v7256_v27 = vadd.f32 %v7255_v58, %v5967_v49  ;;  %v2097_v58 = vld [vmem:[#allocation2 + $0x68] sm:$0x3] }
 0x3b8   : > { %5992 = vst [vmem:[#allocation2] sm:$0xff] %v5978_v13  ;;  %v5980_v36 = vadd.f32 %v7243_v31, %v2086_v28  ;;  %v5903_v52 = vadd.f32 %v5902_v63, %v5832_v34  ;;  %6001 = vst [vmem:[#allocation2 + $0x48] sm:$0xff] %v5987_v43  ;;  %v5988_v37 = vadd.f32 %v7254_v47, %v2094_v32  ;;  %v6026_v18 = vlaneseq (!%p7203_p5) }
 0x3b9   : > { %5993 = vst [vmem:[#allocation2 + $0x8] sm:$0xff] %v5979_v35  ;;  %v5981_v53 = vadd.f32 %v7244_v51, %v2087_v48  ;;  %v5989_v54 = vadd.f32 %v7256_v27, %v2095_v50 }
 0x3ba   : > { %5994 = vst [vmem:[#allocation2 + $0x10] sm:$0xff] %v5980_v36  ;;  %6002 = vst [vmem:[#allocation2 + $0x50] sm:$0xff] %v5988_v37  ;;  %v5971_v57 = vpop.f32.mrb[40].mxu1 }
 0x3bb   : > { %v5951_v56 = vpop.f32.mrb[4].mxu0  ;;  %5995 = vst [vmem:[#allocation2 + $0x18] sm:$0xff] %v5981_v53  ;;  %6003 = vst [vmem:[#allocation2 + $0x58] sm:$0xff] %v5989_v54  ;;  %v5972_v60 = vadd.f32 %v5971_v57, %v5901_v21  ;;  %v5973_v62 = vpop.f32.mrb[41].mxu1 }
 0x3bc   : > { %v7245_v59 = vadd.f32 %v5951_v56, %v9973_v39  ;;  %v5953_v38 = vpop.f32.mrb[5].mxu0  ;;  %v5974_v0 = vadd.f32 %v5973_v62, %v5903_v52  ;;  %v5975_v3 = vpop.f32.mrb[42].mxu1 }
 0x3bd   : > { %v7246_v63 = vadd.f32 %v5953_v38, %v9975_v40  ;;  %v5955_v2 = vpop.f32.mrb[6].mxu0  ;;  %v5990_v5 = vadd.f32 %v5972_v60, %v2096_v55  ;;  %v5976_v15 = vpop.f32.mrb[43].mxu1  ;;  %6009 = sbr.rel (%p7203_p5) target bundleno = 1107 (0x453), region = 104 }
 0x3be   : > { %v5982_v4 = vadd.f32 %v7245_v59, %v2088_v11  ;;  %v7247_v9 = vadd.f32 %v5955_v2, %v9977_v41  ;;  %v5957_v14 = vpop.f32.mrb[7].mxu0  ;;  %v5991_v39 = vadd.f32 %v5974_v0, %v2097_v58  ;;  %v6027_v41 = vshrl.u32 (!%p7203_p5), %v6026_v18, 7 }
 0x3bf   : > { %v5983_v46 = vadd.f32 %v7246_v63, %v2089_v61  ;;  %v7248_v16 = vadd.f32 %v5957_v14, %v9979_v42  ;;  %6004 = vst [vmem:[#allocation2 + $0x60] sm:$0x3] %v5990_v5  ;;  %v6010_v42 = vld [vmem:[#allocation2] sm:$0xff] (!%p7203_p5) }
 0x3c0   : > { %5996 = vst [vmem:[#allocation2 + $0x20] sm:$0xff] %v5982_v4  ;;  %v5984_v17 = vadd.f32 %v7247_v9, %v2090_v1  ;;  %6005 = vst [vmem:[#allocation2 + $0x68] sm:$0x3] %v5991_v39  ;;  %v6011_v20 = vld [vmem:[#allocation2 + $0x8] sm:$0xff] (!%p7203_p5)  ;;  %v6028_v22 = vsub.s32 (!%p7203_p5), 0, %v6027_v41  ;;  %v6032_v23 = vsub.s32 (!%p7203_p5), 1, %v6027_v41 }
 0x3c1   : > { %5997 = vst [vmem:[#allocation2 + $0x28] sm:$0xff] %v5983_v46  ;;  %v5985_v40 = vadd.f32 %v7248_v16, %v2091_v12  ;;  %v9999_v24 = vadd.s32 (!%p7203_p5), 24, %v6027_v41  ;;  %v6012_v44 = vld [vmem:[#allocation2 + $0x10] sm:$0xff] (!%p7203_p5)  ;;  %v10006_v29 = vadd.s32 (!%p7203_p5), 48, %v6027_v41 }
 0x3c2   : > { %5998 = vst [vmem:[#allocation2 + $0x30] sm:$0xff] %v5984_v17  ;;  %v6013_v25 = vld [vmem:[#allocation2 + $0x18] sm:$0xff] (!%p7203_p5)  ;;  %v10001_v28 = vrot.slane (!%p7203_p5), %v6024_v19, %v6028_v22  ;;  %v10003_v10 = vrot.slane (!%p7203_p5), %v6024_v19, %v6032_v23 }
 0x3c3   : > { %5999 = vst [vmem:[#allocation2 + $0x38] sm:$0xff] %v5985_v40  ;;  %vm6068_vm0 = vcmp.lt.s32.totalorder (!%p7203_p5), %v9999_v24, 25  ;;  %vm6251_vm1 = vcmp.lt.s32.totalorder (!%p7203_p5), %v10006_v29, 50  ;;  %vm6241_vm3 = vcmp.ge.s32.totalorder (!%p7203_p5), %v9999_v24, 25 }
 0x3c4   : > { %v6036_v6 = vadd.f32 %v10001_v28, %v6010_v42  ;;  %v6037_v13 = vadd.f32 %v10003_v10, %v6011_v20  ;;  %v6038_v30 = vadd.f32 %v10001_v28, %v6012_v44  ;;  %v6039_v31 = vadd.f32 %v10003_v10, %v6013_v25 }
 0x3c6   : > { %v6022_v35 = vld [vmem:[#allocation2 + $0x60] sm:$0x3]  ;;  %v6107_v47 = vadd.f32 %v6038_v30, %v6036_v6  ;;  %v6121_v48 = vadd.f32 %v6039_v31, %v6037_v13 }
 0x3c7   : > { %v6014_v26 = vld [vmem:[#allocation2 + $0x20] sm:$0xff]  ;;  %v6023_v43 = vld [vmem:[#allocation2 + $0x68] sm:$0x3]  ;;  %v10028_v27 = vadd.f32 %v10001_v28, %v6022_v35 }
 0x3c8   : > { %v6015_v45 = vld [vmem:[#allocation2 + $0x28] sm:$0xff]  ;;  %v6040_v32 = vadd.f32 %v10001_v28, %v6014_v26  ;;  %v10031_v52 = vadd.f32 %v10003_v10, %v6023_v43 }
 0x3c9   : > { %v6016_v8 = vld [vmem:[#allocation2 + $0x30] sm:$0xff]  ;;  %v6041_v33 = vadd.f32 %v10003_v10, %v6015_v45  ;;  %v10036_v54 = vsel %vm6251_vm1, %v10028_v27, 0.0 }
 0x3ca   : > { %v6017_v7 = vld [vmem:[#allocation2 + $0x38] sm:$0xff]  ;;  %v10015_v49 = vadd.f32 %v10001_v28, %v6016_v8  ;;  %v6108_v36 = vadd.f32 %v6107_v47, %v6040_v32  ;;  %v10041_v11 = vsel %vm6251_vm1, %v10031_v52, 0.0 }
 0x3cb   : > { %v10018_v34 = vadd.f32 %v10003_v10, %v6017_v7  ;;  %v6122_v51 = vadd.f32 %v6121_v48, %v6041_v33 }
 0x3cc   : > { %v6099_v50 = vsel %vm6068_vm0, %v10015_v49, 0.0 }
 0x3cd   : > { %v6100_v21 = vsel %vm6068_vm0, %v10018_v34, 0.0  ;;  %v6109_v37 = vadd.f32 %v6108_v36, %v6099_v50 }
 0x3ce   : > { %v6123_v53 = vadd.f32 %v6122_v51, %v6100_v21 }
 0x3cf   : > { %v6115_v56 = vrot.slane %v6109_v37, 4 }
 0x3d0   : > { %v6128_v55 = vrot.slane %v6123_v53, 4 }
 0x3d1   : > { %v6116_v57 = vadd.f32 %v6115_v56, %v6109_v37  ;;  %v6018_v56 = vld [vmem:[#allocation2 + $0x40] sm:$0xff] }
 0x3d2   : > { %v6129_v59 = vadd.f32 %v6128_v55, %v6123_v53  ;;  %v6019_v55 = vld [vmem:[#allocation2 + $0x48] sm:$0xff] }
 0x3d3   : > { %v6117_v60 = vrot.slane %v6116_v57, 2 }
 0x3d4   : > { %v6130_v61 = vrot.slane %v6129_v59, 2 }
 0x3d5   : > { %v6118_v38 = vadd.f32 %v6117_v60, %v6116_v57  ;;  %v6020_v57 = vld [vmem:[#allocation2 + $0x50] sm:$0xff] }
 0x3d6   : > { %v6131_v58 = vadd.f32 %v6130_v61, %v6129_v59  ;;  %v6021_v59 = vld [vmem:[#allocation2 + $0x58] sm:$0xff]  ;;  %v10051_v61 = vadd.f32 %v10001_v28, %v6018_v56 }
 0x3d7   : > { %v6119_v62 = vrot.slane %v6118_v38, 1 }
 0x3d8   : > { %v6132_v63 = vrot.slane %v6131_v58, 1 }
 0x3d9   : > { %v6120_v0 = vadd.f32 %v6119_v62, %v6118_v38  ;;  %v10054_v38 = vadd.f32 %v10003_v10, %v6019_v55  ;;  %v10060_v62 = vadd.f32 %v10003_v10, %v6021_v59 }
 0x3da   : > { %v6133_v1 = vadd.f32 %v6132_v63, %v6131_v58  ;;  %v10057_v58 = vadd.f32 %v10001_v28, %v6020_v57 }
 0x3db   : > { %v6134_v2 = vmul.f32 0.04, %v6120_v0 }
 0x3dc   : > { %v6135_v3 = vmul.f32 0.04, %v6133_v1 }
 0x3dd   : > { %v6136_v4 = vsub.f32 %v6036_v6, %v6134_v2  ;;  %v6138_v9 = vsub.f32 %v6038_v30, %v6134_v2  ;;  %v6140_v14 = vsub.f32 %v6040_v32, %v6134_v2  ;;  %v6142_v46 = vsub.f32 %v10015_v49, %v6134_v2 }
 0x3de   : > { %v6137_v5 = vsub.f32 %v6037_v13, %v6135_v3  ;;  %v6139_v12 = vsub.f32 %v6039_v31, %v6135_v3  ;;  %v6141_v15 = vsub.f32 %v6041_v33, %v6135_v3  ;;  %v6143_v39 = vsub.f32 %v10018_v34, %v6135_v3 }
 0x3df   : > { %v6150_v16 = vmul.f32 %v6136_v4, %v6136_v4  ;;  %v6152_v40 = vmul.f32 %v6138_v9, %v6138_v9  ;;  %v6154_v41 = vmul.f32 %v6140_v14, %v6140_v14  ;;  %v6156_v42 = vmul.f32 %v6142_v46, %v6142_v46 }
 0x3e0   : > { %v6151_v17 = vmul.f32 %v6137_v5, %v6137_v5  ;;  %v6153_v18 = vmul.f32 %v6139_v12, %v6139_v12  ;;  %v6155_v19 = vmul.f32 %v6141_v15, %v6141_v15  ;;  %v6157_v20 = vmul.f32 %v6143_v39, %v6143_v39 }
 0x3e1   : > { %v6178_v22 = vadd.f32 %v6152_v40, %v6150_v16  ;;  %v6170_v44 = vsel %vm6068_vm0, %v6156_v42, 0.0 }
 0x3e2   : > { %v6191_v23 = vadd.f32 %v6153_v18, %v6151_v17  ;;  %v6171_v25 = vsel %vm6068_vm0, %v6157_v20, 0.0 }
 0x3e3   : > { %v6179_v26 = vadd.f32 %v6178_v22, %v6154_v41 }
 0x3e4   : > { %v6192_v45 = vadd.f32 %v6191_v23, %v6155_v19 }
 0x3e5   : > { %v6180_v8 = vadd.f32 %v6179_v26, %v6170_v44 }
 0x3e6   : > { %v6193_v7 = vadd.f32 %v6192_v45, %v6171_v25 }
 0x3e7   : > { %v6185_v6 = vrot.slane %v6180_v8, 4 }
 0x3e8   : > { %v6198_v13 = vrot.slane %v6193_v7, 4 }
 0x3e9   : > { %v6186_v30 = vadd.f32 %v6185_v6, %v6180_v8  ;;  %v6305_v8 = vsel %vm6112_vm2, %v10041_v11, 0.0 }
 0x3ea   : > { %v6199_v31 = vadd.f32 %v6198_v13, %v6193_v7 }
 0x3eb   : > { %v6187_v32 = vrot.slane %v6186_v30, 2 }
 0x3ec   : > { %v6200_v33 = vrot.slane %v6199_v31, 2 }
 0x3ed   : > { %v6188_v35 = vadd.f32 %v6187_v32, %v6186_v30 }
 0x3ee   : > { %v6201_v43 = vadd.f32 %v6200_v33, %v6199_v31 }
 0x3ef   : > { %v6189_v47 = vrot.slane %v6188_v35, 1 }
 0x3f0   : > { %v6202_v48 = vrot.slane %v6201_v43, 1 }
 0x3f1   : > { %v6190_v50 = vadd.f32 %v6189_v47, %v6188_v35 }
 0x3f2   : > { %v6203_v21 = vadd.f32 %v6202_v48, %v6201_v43 }
 0x3f3   : > { %v6204_v36 = vmul.f32 0.04, %v6190_v50 }
 0x3f4   : > { %v6205_v51 = vmul.f32 0.04, %v6203_v21 }
 0x3f5   : > { %v6206_v37 = vadd.f32 1e-05, %v6204_v36 }
 0x3f6   : > { %v6207_v53 = vadd.f32 1e-05, %v6205_v51 }
 0x3f7   : > { %8216 = vrsqrt.f32 %v6206_v37 }
 0x3f8   : > { %8218 = vrsqrt.f32 %v6207_v53 }
 0x401   : > { %v8217_v60 = vpop.eup %8216 }
 0x402   : > { %v8219_v63 = vpop.eup %8218  ;;  %v6210_v0 = vmul.f32 %v8217_v60, %v6136_v4  ;;  %v6212_v1 = vmul.f32 %v8217_v60, %v6138_v9  ;;  %v6214_v2 = vmul.f32 %v8217_v60, %v6140_v14  ;;  %v6216_v3 = vmul.f32 %v8217_v60, %v6142_v46 }
 0x403   : > { %v6211_v16 = vmul.f32 %v8219_v63, %v6137_v5  ;;  %v6213_v17 = vmul.f32 %v8219_v63, %v6139_v12  ;;  %v6215_v40 = vmul.f32 %v8219_v63, %v6141_v15  ;;  %v6217_v18 = vmul.f32 %v8219_v63, %v6143_v39 }
 0x404   : > { %vm6417_vm4 = vcmp.ge.f32.partialorder %v6210_v0, 0.0  ;;  %v6431_v41 = vmul.f32 0.2, %v6210_v0  ;;  %vm6419_vm5 = vcmp.ge.f32.partialorder %v6212_v1, 0.0  ;;  %v6433_v19 = vmul.f32 0.2, %v6212_v1 }
 0x405   : > { %vm6418_vm6 = vcmp.ge.f32.partialorder %v6211_v16, 0.0  ;;  %v6432_v42 = vmul.f32 0.2, %v6211_v16  ;;  %vm6420_vm7 = vcmp.ge.f32.partialorder %v6213_v17, 0.0  ;;  %v6434_v28 = vmul.f32 0.2, %v6213_v17 }
 0x406   : > { %v6445_v20 = vsel %vm6417_vm4, %v6210_v0, %v6431_v41  ;;  %v6447_v10 = vsel %vm6419_vm5, %v6212_v1, %v6433_v19  ;;  %vm6421_vm8 = vcmp.ge.f32.partialorder %v6214_v2, 0.0  ;;  %vm6422_vm9 = vcmp.ge.f32.partialorder %v6215_v40, 0.0 }
 0x407   : > { %v6446_v4 = vsel %vm6418_vm6, %v6211_v16, %v6432_v42  ;;  %v6448_v9 = vsel %vm6420_vm7, %v6213_v17, %v6434_v28  ;;  %v6435_v5 = vmul.f32 0.2, %v6214_v2  ;;  %v6436_v12 = vmul.f32 0.2, %v6215_v40 }
 0x408   : > { %v7217_v14 = vpack.c.bf16 %v6446_v4, %v6445_v20  ;;  %v7218_v15 = vpack.c.bf16 %v6448_v9, %v6447_v10  ;;  %v10065_v46 = vsel %vm6068_vm0, %v6216_v3, %v10015_v49  ;;  %v10070_v39 = vsel %vm6068_vm0, %v6217_v18, %v10018_v34 }
 0x409   : > { %v6449_v22 = vsel %vm6421_vm8, %v6214_v2, %v6435_v5  ;;  %v6450_v23 = vsel %vm6422_vm9, %v6215_v40, %v6436_v12  ;;  %v6279_v44 = vsel %vm6241_vm3, %v10065_v46, 0.0  ;;  %v6280_v25 = vsel %vm6241_vm3, %v10070_v39, 0.0 }
 0x40a   : > { %6503 = vst [vmem:[%s9454_s1] sm:$0xff] %v7217_v14  ;;  %6504 = vst [vmem:[%s9454_s1 + $0x8] sm:$0xff] %v7218_v15  ;;  %v7219_v26 = vpack.c.bf16 %v6450_v23, %v6449_v22  ;;  %v6290_v49 = vadd.f32 %v6279_v44, %v10051_v61  ;;  %v6303_v45 = vadd.f32 %v6280_v25, %v10054_v38  ;;  %v6292_v34 = vsel %vm6112_vm2, %v10036_v54, 0.0 }
 0x40c   : > { %6505 = vst [vmem:[%s9454_s1 + $0x10] sm:$0xff] %v7219_v26  ;;  %v6291_v7 = vadd.f32 %v6290_v49, %v10057_v58  ;;  %v6304_v6 = vadd.f32 %v6303_v45, %v10060_v62 }
 0x40e   : > { %v6293_v13 = vadd.f32 %v6292_v34, %v6291_v7  ;;  %v6306_v30 = vadd.f32 %v6305_v8, %v6304_v6 }
 0x410   : > { %v6294_v31 = vrot.slane %v6293_v13, 4  ;;  %v6307_v32 = vrot.slane %v6306_v30, 4 }
 0x412   : > { %v6295_v33 = vadd.f32 %v6294_v31, %v6293_v13  ;;  %v6308_v35 = vadd.f32 %v6307_v32, %v6306_v30 }
 0x414   : > { %v6296_v43 = vrot.slane %v6295_v33, 2  ;;  %v6309_v47 = vrot.slane %v6308_v35, 2 }
 0x416   : > { %v6297_v48 = vadd.f32 %v6296_v43, %v6295_v33  ;;  %v6310_v50 = vadd.f32 %v6309_v47, %v6308_v35 }
 0x418   : > { %v6298_v21 = vrot.slane %v6297_v48, 1  ;;  %v6311_v54 = vrot.slane %v6310_v50, 1 }
 0x41a   : > { %v6299_v36 = vadd.f32 %v6298_v21, %v6297_v48  ;;  %v6312_v51 = vadd.f32 %v6311_v54, %v6310_v50 }
 0x41c   : > { %v6313_v11 = vmul.f32 0.04, %v6299_v36  ;;  %v6314_v37 = vmul.f32 0.04, %v6312_v51 }
 0x41e   : > { %v6321_v53 = vsub.f32 %v10065_v46, %v6313_v11  ;;  %v6322_v56 = vsub.f32 %v10070_v39, %v6314_v37  ;;  %v6323_v55 = vsub.f32 %v10051_v61, %v6313_v11  ;;  %v6324_v57 = vsub.f32 %v10054_v38, %v6314_v37 }
 0x41f   : > { %v6325_v59 = vsub.f32 %v10057_v58, %v6313_v11  ;;  %v6326_v60 = vsub.f32 %v10060_v62, %v6314_v37  ;;  %v6327_v63 = vsub.f32 %v10028_v27, %v6313_v11  ;;  %v6328_v0 = vsub.f32 %v10031_v52, %v6314_v37 }
 0x420   : > { %v6335_v1 = vmul.f32 %v6321_v53, %v6321_v53  ;;  %v6336_v2 = vmul.f32 %v6322_v56, %v6322_v56  ;;  %v6337_v3 = vmul.f32 %v6323_v55, %v6323_v55  ;;  %v6338_v16 = vmul.f32 %v6324_v57, %v6324_v57 }
 0x421   : > { %v6339_v17 = vmul.f32 %v6325_v59, %v6325_v59  ;;  %v6340_v40 = vmul.f32 %v6326_v60, %v6326_v60  ;;  %v6341_v18 = vmul.f32 %v6327_v63, %v6327_v63  ;;  %v6342_v41 = vmul.f32 %v6328_v0, %v6328_v0 }
 0x422   : > { %v6349_v61 = vsel %vm6241_vm3, %v6335_v1, 0.0  ;;  %v6350_v38 = vsel %vm6241_vm3, %v6336_v2, 0.0 }
 0x423   : > { %v6355_v58 = vsel %vm6251_vm1, %v6341_v18, 0.0  ;;  %v6356_v62 = vsel %vm6251_vm1, %v6342_v41, 0.0  ;;  %v6360_v19 = vadd.f32 %v6349_v61, %v6337_v3  ;;  %v6373_v42 = vadd.f32 %v6350_v38, %v6338_v16 }
 0x424   : > { %v6362_v28 = vsel %vm6112_vm2, %v6355_v58, 0.0  ;;  %v6375_v20 = vsel %vm6112_vm2, %v6356_v62, 0.0 }
 0x425   : > { %v6361_v10 = vadd.f32 %v6360_v19, %v6339_v17  ;;  %v6374_v4 = vadd.f32 %v6373_v42, %v6340_v40 }
 0x427   : > { %v6363_v9 = vadd.f32 %v6362_v28, %v6361_v10  ;;  %v6376_v5 = vadd.f32 %v6375_v20, %v6374_v4 }
 0x429   : > { %v6364_v12 = vrot.slane %v6363_v9, 4  ;;  %v6377_v14 = vrot.slane %v6376_v5, 4 }
 0x42b   : > { %v6365_v15 = vadd.f32 %v6364_v12, %v6363_v9  ;;  %v6378_v22 = vadd.f32 %v6377_v14, %v6376_v5 }
 0x42d   : > { %v6366_v23 = vrot.slane %v6365_v15, 2  ;;  %v6379_v44 = vrot.slane %v6378_v22, 2 }
 0x42f   : > { %v6367_v25 = vadd.f32 %v6366_v23, %v6365_v15  ;;  %v6380_v26 = vadd.f32 %v6379_v44, %v6378_v22 }
 0x431   : > { %v6368_v49 = vrot.slane %v6367_v25, 1  ;;  %v6381_v45 = vrot.slane %v6380_v26, 1 }
 0x433   : > { %v6369_v34 = vadd.f32 %v6368_v49, %v6367_v25  ;;  %v6382_v8 = vadd.f32 %v6381_v45, %v6380_v26 }
 0x435   : > { %v6383_v7 = vmul.f32 0.04, %v6369_v34  ;;  %v6384_v6 = vmul.f32 0.04, %v6382_v8 }
 0x437   : > { %v6385_v13 = vadd.f32 1e-05, %v6383_v7  ;;  %v6386_v30 = vadd.f32 1e-05, %v6384_v6 }
 0x439   : > { %8220 = vrsqrt.f32 %v6385_v13 }
 0x43a   : > { %8222 = vrsqrt.f32 %v6386_v30 }
 0x443   : > { %v8221_v31 = vpop.eup %8220 }
 0x444   : > { %v8223_v32 = vpop.eup %8222  ;;  %v6395_v33 = vmul.f32 %v8221_v31, %v6321_v53  ;;  %v6397_v35 = vmul.f32 %v8221_v31, %v6323_v55  ;;  %v6399_v43 = vmul.f32 %v8221_v31, %v6325_v59  ;;  %v6401_v47 = vmul.f32 %v8221_v31, %v6327_v63 }
 0x445   : > { %v6396_v48 = vmul.f32 %v8223_v32, %v6322_v56  ;;  %v6398_v50 = vmul.f32 %v8223_v32, %v6324_v57  ;;  %v6400_v21 = vmul.f32 %v8223_v32, %v6326_v60  ;;  %v6402_v54 = vmul.f32 %v8223_v32, %v6328_v0 }
 0x446   : > { %v6409_v36 = vsel %vm6241_vm3, %v6395_v33, %v10065_v46  ;;  %vm6425_vm10 = vcmp.ge.f32.partialorder %v6397_v35, 0.0  ;;  %v6439_v51 = vmul.f32 0.2, %v6397_v35  ;;  %vm6427_vm11 = vcmp.ge.f32.partialorder %v6399_v43, 0.0 }
 0x447   : > { %v6410_v11 = vsel %vm6241_vm3, %v6396_v48, %v10070_v39  ;;  %vm6423_vm12 = vcmp.ge.f32.partialorder %v6409_v36, 0.0  ;;  %v6437_v37 = vmul.f32 0.2, %v6409_v36  ;;  %vm6426_vm13 = vcmp.ge.f32.partialorder %v6398_v50, 0.0 }
 0x448   : > { %vm6424_vm14 = vcmp.ge.f32.partialorder %v6410_v11, 0.0  ;;  %v6438_v53 = vmul.f32 0.2, %v6410_v11  ;;  %v6440_v56 = vmul.f32 0.2, %v6398_v50  ;;  %v6453_v55 = vsel %vm6425_vm10, %v6397_v35, %v6439_v51 }
 0x449   : > { %v6451_v57 = vsel %vm6423_vm12, %v6409_v36, %v6437_v37  ;;  %vm6428_vm15 = vcmp.ge.f32.partialorder %v6400_v21, 0.0  ;;  %v6441_v59 = vmul.f32 0.2, %v6399_v43  ;;  %v6442_v46 = vmul.f32 0.2, %v6400_v21 }
 0x44a   : > { %v6452_v60 = vsel %vm6424_vm14, %v6410_v11, %v6438_v53  ;;  %v6454_v63 = vsel %vm6426_vm13, %v6398_v50, %v6440_v56  ;;  %v6415_v24 = vsel %vm6251_vm1, %v6401_v47, %v10028_v27  ;;  %v6416_v39 = vsel %vm6251_vm1, %v6402_v54, %v10031_v52 }
 0x44b   : > { %v7220_v0 = vpack.c.bf16 %v6452_v60, %v6451_v57  ;;  %v7221_v1 = vpack.c.bf16 %v6454_v63, %v6453_v55  ;;  %v6455_v2 = vsel %vm6427_vm11, %v6399_v43, %v6441_v59  ;;  %v6456_v3 = vsel %vm6428_vm15, %v6400_v21, %v6442_v46 }
 0x44c   : > { %v7222_v16 = vpack.c.bf16 %v6456_v3, %v6455_v2  ;;  %vm6429_vm0 = vcmp.ge.f32.partialorder %v6415_v24, 0.0  ;;  %vm6430_vm2 = vcmp.ge.f32.partialorder %v6416_v39, 0.0  ;;  %v6443_v17 = vmul.f32 0.2, %v6415_v24 }
 0x44d   : > { %6506 = vst [vmem:[%s9454_s1 + $0x18] sm:$0xff] %v7220_v0  ;;  %6507 = vst [vmem:[%s9454_s1 + $0x20] sm:$0xff] %v7221_v1  ;;  %v6444_v40 = vmul.f32 0.2, %v6416_v39 }
 0x44e   : > { %6508 = vst [vmem:[%s9454_s1 + $0x28] sm:$0xff] %v7222_v16  ;;  %v6457_v18 = vsel %vm6429_vm0, %v6415_v24, %v6443_v17 }
 0x44f   : > { %v6458_v27 = vsel %vm6430_vm2, %v6416_v39, %v6444_v40 }
 0x450   : > { %v7223_v41 = vpack.c.bf16 %v6458_v27, %v6457_v18 }
 0x452   : > { %6509 = vst [vmem:[%s9454_s1 + $0x30] sm:$0x11] %v7223_v41 }
 0x453 PF: > { %6516 = sbr.rel (!%p8428_p12) target bundleno = 1115 (0x45b), region = 108  ;;  %s7224_s16 = sshll.u32 (%p8428_p12), %s8298_s19, 3  ;;  %v6559_v29 = vld [vmem:[%s9454_s1] sm:$0xff] (%p8428_p12)  ;;  %v6561_v52 = vld [vmem:[%s9454_s1 + $0x8] sm:$0xff] (%p8428_p12)  ;;  %v6563_v61 = vld [vmem:[%s9454_s1 + $0x10] sm:$0xff] (%p8428_p12) }
 0x454   : > { %s6519_s5 = scalar_lea.vmem (%p8428_p12), %s10173_s3, %s7224_s16  ;;  %v6565_v38 = vld [vmem:[%s9454_s1 + $0x18] sm:$0xff] (%p8428_p12)  ;;  %v6567_v58 = vld [vmem:[%s9454_s1 + $0x20] sm:$0xff] (%p8428_p12) }
 0x455   : > { %v6569_v62 = vld [vmem:[%s9454_s1 + $0x28] sm:$0xff] (%p8428_p12)  ;;  %6560 = vst [vmem:[%s6519_s5] sm:$0xff] (%p8428_p12), %v6559_v29  ;;  %6562 = vst [vmem:[%s6519_s5 + $0x10] sm:$0xff] (%p8428_p12), %v6561_v52 }
 0x456   : > { %6564 = vst [vmem:[%s6519_s5 + $0x20] sm:$0xff] (%p8428_p12), %v6563_v61  ;;  %6566 = vst [vmem:[%s6519_s5 + $0x30] sm:$0xff] (%p8428_p12), %v6565_v38 }
 0x457   : > { %6568 = vst [vmem:[%s6519_s5 + $0x40] sm:$0xff] (%p8428_p12), %v6567_v58  ;;  %6570 = vst [vmem:[%s6519_s5 + $0x50] sm:$0xff] (%p8428_p12), %v6569_v62 }
 0x459   : > { %v6571_v19 = vld [vmem:[%s9454_s1 + $0x30] sm:$0xff] (%p8428_p12) }
 0x45a   : > { %6572 = vst [vmem:[%s6519_s5 + $0x60] sm:$0xff] %v6571_v19 }
 0x45b PF: > { %s13_s22 = sadd.s32 1, %s8310_s22   ;;  %s10183_s10 = sld [smem:[#allocation6_spill]] }
 0x45c   : > { %p10_p6 = scmp.ge.s32.totalorder %s13_s22, 6   ;;  %s10184_s12 = smov %s8274_s13 }
 0x45d   : > { %s10185_s13 = smov %s8426_s9  ;;  %s10186_s14 = smov %s8282_s15 }
 0x45e   : > { %s10187_s15 = smov %s8423_s8  ;;  %s10188_s16 = smov %s8290_s17 }
 0x45f   : > { %s10189_s17 = smov %s8409_s30  ;;  %s10190_s18 = smov %s8302_s20 }
 0x460   : > { %s10191_s19 = smov %s8306_s21  ;;  %s10192_s20 = smov %s10195_s24 }
 0x461   : > { %s10193_s21 = smov %s10183_s10  ;;  %12 = sbr.rel (!%p10_p6) target bundleno = 9 (0x9), region = 194 }

</bundles_post_ra>
